<compile_context>
chip_gen: v7x
topology: tpu7x:2x2x1
jax: 0.10.0
libtpu: 0.0.40
codegen_flags: <defaults>
</compile_context>

<pallas_src>
from functools import partial

import numpy as np

import jax
import jax.numpy as jnp
from jax.experimental import pallas as pl
from jax.experimental.pallas import tpu as pltpu


_PAD = 8                  # zero-halo width = max dilation (2**3)
_DILATIONS = (1, 2, 4, 8)


# ----------------------------------------------------------------------------
# Fused RCAB kernel: one grid step = one image, all data lane-dense (rows, W*C)
# ----------------------------------------------------------------------------
def _rcab_fused_kernel(x_ref, wrow_ref, bconv_ref,
                       ca_pw1_ref, ca_b1_ref, ca_w2_ref, ca_b2_ref, ca_e_ref,
                       o_ref, pbuf_ref, *, H, W, C):
    # x_ref     : (1, H, W*C)             input image (NHWC rows, channels fastest)
    # wrow_ref  : (4, 3, (W+2P)*C, W*C)   row-convolution matrices (stage, ky)
    # bconv_ref : (4, 1, W*C)             conv biases pre-tiled across W
    # ca_pw1_ref: (W*C, Cr)               GAP (1/(H*W)) fused with CA 1x1 #1
    # ca_b1_ref : (1, Cr)   ca_w2_ref: (Cr, C)   ca_b2_ref: (1, C)
    # ca_e_ref  : (C, W*C)                channel-gate -> lane expansion matrix
    # o_ref     : (1, H, W*C)             output image
    # pbuf_ref  : (H+2P, (W+2P)*C) f32    zero-halo padded activation scratch
    P = _PAD
    WC = W * C
    WPC = (W + 2 * P) * C

    # Zero ONLY the halo ring (the centre is rewritten every stage).  Done on
    # every grid step: with "parallel" batch semantics each core owns its own
    # scratch, so this must not be gated on program_id.  All four writes are
    # sublane/lane aligned at C=16 (P*C = 128).
    pbuf_ref[0:P, :] = jnp.zeros((P, WPC), jnp.float32)
    pbuf_ref[P + H:2 * P + H, :] = jnp.zeros((P, WPC), jnp.float32)
    pbuf_ref[P:P + H, 0:P * C] = jnp.zeros((H, P * C), jnp.float32)
    pbuf_ref[P:P + H, P * C + WC:WPC] = jnp.zeros((H, P * C), jnp.float32)

    x2d = x_ref[0].astype(jnp.float32)                         # (H, W*C)

    cur = x2d
    for s, d in enumerate(_DILATIONS):
        # Place the current activation in the centre of the zero ring
        # (rows [P, P+H) and lanes [P*C, P*C+W*C) are both aligned).
        pbuf_ref[P:P + H, P * C:P * C + WC] = cur

        # One MXU matmul per kernel row ky: the kx taps and the channel
        # contraction live in the row-convolution matrix, so the only operand
        # slices are full-width row bands read directly from the scratch ref.
        acc = None
        for ky in range(3):
            y0 = P + (ky - 1) * d                              # static offset
            band = pbuf_ref[y0:y0 + H, :]                      # (H, (W+2P)*C)
            z = jnp.dot(band, wrow_ref[s, ky],
                        preferred_element_type=jnp.float32)    # (H, W*C)
            acc = z if acc is None else acc + z
        cur = jnp.maximum(acc + bconv_ref[s], 0.0)             # bias + ReLU

    # ---- CALayer + residual add (epilogue on the VMEM-resident result) ------
    res = cur                                                  # (H, W*C)
    colsum = jnp.sum(res, axis=0, keepdims=True)               # (1, W*C)
    # GAP mean and the first 1x1 conv are folded into ca_pw1 (host-side).
    t = jnp.dot(colsum, ca_pw1_ref[...],
                preferred_element_type=jnp.float32) + ca_b1_ref[...]
    t = jnp.maximum(t, 0.0)                                    # (1, Cr)
    g = jnp.dot(t, ca_w2_ref[...],
                preferred_element_type=jnp.float32) + ca_b2_ref[...]
    g = jax.nn.sigmoid(g)                                      # (1, C) channel gates
    g_wc = jnp.dot(g, ca_e_ref[...],
                   preferred_element_type=jnp.float32)         # (1, W*C)
    o_ref[0] = (res * g_wc + x2d).astype(o_ref.dtype)          # lane-dense store


# ----------------------------------------------------------------------------
# Wrappers
# ----------------------------------------------------------------------------
def _const_index_map(ndim):
    def index_map(n):
        return (0,) * ndim
    return index_map


def rcab_forward_nhwc(x_nhwc, prepped):
    """Fused RCAB on an NHWC tensor. One pallas_call, grid over the batch."""
    N, H, W, C = x_nhwc.shape
    WC = W * C
    assert H % 8 == 0 and WC % 128 == 0, "small-tile specialisation (see header)"

    x_ld = x_nhwc.reshape(N, H, WC)          # free view: NHWC rows are contiguous

    param_names = ("wrow", "bconv", "ca_pw1", "ca_b1", "ca_w2", "ca_b2", "ca_e")
    params = [prepped[k] for k in param_names]

    in_specs = [pl.BlockSpec((1, H, WC), lambda n: (n, 0, 0))]
    in_specs += [pl.BlockSpec(p.shape, _const_index_map(p.ndim)) for p in params]

    out = pl.pallas_call(
        partial(_rcab_fused_kernel, H=H, W=W, C=C),
        out_shape=jax.ShapeDtypeStruct((N, H, WC), x_nhwc.dtype),
        grid_spec=pltpu.PrefetchScalarGridSpec(
            num_scalar_prefetch=0,
            grid=(N,),
            in_specs=in_specs,
            out_specs=pl.BlockSpec((1, H, WC), lambda n: (n, 0, 0)),
            scratch_shapes=[
                pltpu.VMEM((H + 2 * _PAD, (W + 2 * _PAD) * C), jnp.float32)],
        ),
        compiler_params=pltpu.CompilerParams(
            dimension_semantics=("parallel",),      # shard batch across TCs (v7x)
            vmem_limit_bytes=32 * 1024 * 1024),     # safe scoped limit on all gens
    )(x_ld, *params)
    return out.reshape(N, H, W, C)                  # free view


def rcab_forward(x_nchw, prepped):
    """PyTorch-facing entry point: NCHW in / NCHW out.

    If the surrounding model is NHWC end-to-end, call rcab_forward_nhwc
    directly and skip these two boundary transposes (each is a full HBM
    read+write performed by XLA)."""
    x = jnp.transpose(x_nchw, (0, 2, 3, 1))         # NCHW -> NHWC
    out = rcab_forward_nhwc(x, prepped)
    return jnp.transpose(out, (0, 3, 1, 2))         # NHWC -> NCHW


def prepare_params(params, H, W):
    """One-time weight layout prep (hoisted out of the forward path).

    conv weights (Cout, Cin, 3, 3) -> row-convolution matrices: for each
    (stage, ky) a ((W+2P)*C, W*C) matrix whose (input-column, output-column)
    (C,C) blocks hold weight[:, :, ky, kx].T at column offset (kx-1)*dilation.
    conv biases -> (4, 1, W*C) tiled across W.
    CALayer: GAP (1/(H*W)) folded into the first 1x1; gate expansion matrix E.
    """
    C = int(params["conv0_b"].shape[0])
    cr = int(params["ca_b1"].shape[0])
    P = _PAD
    Wp = W + 2 * P
    WC = W * C

    wrow = np.zeros((4, 3, Wp * C, WC), np.float32)
    bconv = np.zeros((4, 1, WC), np.float32)
    for s, d in enumerate(_DILATIONS):
        w = np.asarray(params[f"conv{s}_w"], np.float32)       # (Cout, Cin, 3, 3)
        for ky in range(3):
            for kx in range(3):
                blk = w[:, :, ky, kx].T                        # (Cin, Cout)
                for wo in range(W):
                    xin = P + wo + (kx - 1) * d                # padded input col
                    wrow[s, ky, xin * C:(xin + 1) * C,
                         wo * C:(wo + 1) * C] = blk
        bconv[s, 0] = np.tile(np.asarray(params[f"conv{s}_b"], np.float32), W)

    w1 = np.asarray(params["ca_w1"], np.float32)[:, :, 0, 0]   # (Cr, C)
    w2 = np.asarray(params["ca_w2"], np.float32)[:, :, 0, 0]   # (C, Cr)
    ca_pw1 = np.tile(w1.T, (W, 1)) / float(H * W)              # (W*C, Cr)
    ca_e = np.tile(np.eye(C, dtype=np.float32), (1, W))        # (C, W*C)

    return {
        "wrow": jnp.asarray(wrow),
        "bconv": jnp.asarray(bconv),
        "ca_pw1": jnp.asarray(ca_pw1),
        "ca_b1": jnp.asarray(params["ca_b1"], jnp.float32).reshape(1, cr),
        "ca_w2": jnp.asarray(w2.T),                            # (Cr, C)
        "ca_b2": jnp.asarray(params["ca_b2"], jnp.float32).reshape(1, C),
        "ca_e": jnp.asarray(ca_e),
    }


# ----------------------------------------------------------------------------
# Pure-JAX reference (for correctness check only)
# ----------------------------------------------------------------------------
def rcab_reference(x_nchw, params):
    h = x_nchw
    for i in range(4):
        d = 2 ** i
        h = jax.lax.conv_general_dilated(
            h, params[f"conv{i}_w"], window_strides=(1, 1),
            padding=((d, d), (d, d)), rhs_dilation=(d, d),
            dimension_numbers=("NCHW", "OIHW", "NCHW"))
        h = jnp.maximum(h + params[f"conv{i}_b"][None, :, None, None], 0.0)
    y = jnp.mean(h, axis=(2, 3), keepdims=True)                       # (N, C, 1, 1)
    z = jnp.einsum("rc,ncij->nrij", params["ca_w1"][:, :, 0, 0], y)
    z = jnp.maximum(z + params["ca_b1"][None, :, None, None], 0.0)
    s = jnp.einsum("cr,nrij->ncij", params["ca_w2"][:, :, 0, 0], z)
    s = jax.nn.sigmoid(s + params["ca_b2"][None, :, None, None])
    return h * s + x_nchw


# ----------------------------------------------------------------------------
# Deterministic parameter init (synthetic; matches nn.Module __init__ shapes)
# ----------------------------------------------------------------------------
def init_params(key, n_feat, reduction, kernel_size=3):
    cr = n_feat // reduction
    keys = jax.random.split(key, 12)
    params = {}
    for i in range(4):
        params[f"conv{i}_w"] = 0.1 * jax.random.normal(
            keys[2 * i], (n_feat, n_feat, kernel_size, kernel_size), jnp.float32)
        params[f"conv{i}_b"] = 0.05 * jax.random.normal(
            keys[2 * i + 1], (n_feat,), jnp.float32)
    params["ca_w1"] = 0.1 * jax.random.normal(keys[8], (cr, n_feat, 1, 1), jnp.float32)
    params["ca_b1"] = 0.05 * jax.random.normal(keys[9], (cr,), jnp.float32)
    params["ca_w2"] = 0.1 * jax.random.normal(keys[10], (n_feat, cr, 1, 1), jnp.float32)
    params["ca_b2"] = 0.05 * jax.random.normal(keys[11], (n_feat,), jnp.float32)
    return params


if __name__ == "__main__":
    N, C, H, W = 2, 16, 16, 16       # n_feat=16, kernel_size=3
    REDUCTION = 4                    # C // reduction = 4

    key = jax.random.PRNGKey(0)
    k_x, k_p = jax.random.split(key)
    x = jax.random.normal(k_x, (N, C, H, W), jnp.float32)
    params = init_params(k_p, C, REDUCTION)
    prepped = prepare_params(params, H, W)       # layout transforms done ONCE

    fwd = jax.jit(rcab_forward)
    out = jax.block_until_ready(fwd(x, prepped))
    ref = jax.block_until_ready(rcab_reference(x, params))

    assert out.shape == (N, C, H, W)
    max_err = float(jnp.max(jnp.abs(out - ref)))
    assert jnp.allclose(out, ref, atol=5e-4, rtol=5e-4), f"max abs err {max_err}"
    print("KERNEL_OK")
</pallas_src>

<mosaic_0001>
module attributes {stable_mosaic.version = 11 : i64} {
  func.func @_rcab_fused_kernel(%arg0: i32, %arg1: memref<1x16x256xf32, #tpu.memory_space<vmem>>, %arg2: memref<4x3x512x256xf32, #tpu.memory_space<vmem>>, %arg3: memref<4x1x256xf32, #tpu.memory_space<vmem>>, %arg4: memref<256x4xf32, #tpu.memory_space<vmem>>, %arg5: memref<1x4xf32, #tpu.memory_space<vmem>>, %arg6: memref<4x16xf32, #tpu.memory_space<vmem>>, %arg7: memref<1x16xf32, #tpu.memory_space<vmem>>, %arg8: memref<16x256xf32, #tpu.memory_space<vmem>>, %arg9: memref<1x16x256xf32, #tpu.memory_space<vmem>>, %arg10: memref<32x512xf32, #tpu.memory_space<vmem>>) attributes {dimension_semantics = [#tpu.dimension_semantics<parallel>], iteration_bounds = array<i64: 2>, scalar_prefetch = 0 : i64, scratch_operands = 1 : i64, tpu.core_type = #tpu.core_type<tc>, window_params = [{transform_indices = @transform_0, window_bounds = array<i64: 1, 16, 256>}, {pipeline_mode = #tpu.pipeline_mode<synchronous>, transform_indices = @transform_1, window_bounds = array<i64: 4, 3, 512, 256>}, {pipeline_mode = #tpu.pipeline_mode<synchronous>, transform_indices = @transform_2, window_bounds = array<i64: 4, 1, 256>}, {pipeline_mode = #tpu.pipeline_mode<synchronous>, transform_indices = @transform_3, window_bounds = array<i64: 256, 4>}, {pipeline_mode = #tpu.pipeline_mode<synchronous>, transform_indices = @transform_4, window_bounds = array<i64: 1, 4>}, {pipeline_mode = #tpu.pipeline_mode<synchronous>, transform_indices = @transform_5, window_bounds = array<i64: 4, 16>}, {pipeline_mode = #tpu.pipeline_mode<synchronous>, transform_indices = @transform_6, window_bounds = array<i64: 1, 16>}, {pipeline_mode = #tpu.pipeline_mode<synchronous>, transform_indices = @transform_7, window_bounds = array<i64: 16, 256>}, {transform_indices = @transform_8, window_bounds = array<i64: 1, 16, 256>}]} {
    %cst = arith.constant 0.000000e+00 : f32
    %0 = vector.broadcast %cst : f32 to vector<8x512xf32>
    %c0 = arith.constant 0 : index
    %c0_0 = arith.constant 0 : index
    %1 = vector.load %arg10[%c0, %c0_0] : memref<32x512xf32, #tpu.memory_space<vmem>>, vector<8x512xf32>
    tpu.vector_store %arg10[%c0, %c0_0], %0 {strides = array<i32>} : memref<32x512xf32, #tpu.memory_space<vmem>>, vector<8x512xf32>,
    %cst_1 = arith.constant 0.000000e+00 : f32
    %2 = vector.broadcast %cst_1 : f32 to vector<8x512xf32>
    %c24 = arith.constant 24 : index
    %c0_2 = arith.constant 0 : index
    %3 = vector.load %arg10[%c24, %c0_2] : memref<32x512xf32, #tpu.memory_space<vmem>>, vector<8x512xf32>
    tpu.vector_store %arg10[%c24, %c0_2], %2 {strides = array<i32>} : memref<32x512xf32, #tpu.memory_space<vmem>>, vector<8x512xf32>,
    %cst_3 = arith.constant 0.000000e+00 : f32
    %4 = vector.broadcast %cst_3 : f32 to vector<16x128xf32>
    %c8 = arith.constant 8 : index
    %c0_4 = arith.constant 0 : index
    %5 = vector.load %arg10[%c8, %c0_4] : memref<32x512xf32, #tpu.memory_space<vmem>>, vector<16x128xf32>
    tpu.vector_store %arg10[%c8, %c0_4], %4 {strides = array<i32>} : memref<32x512xf32, #tpu.memory_space<vmem>>, vector<16x128xf32>,
    %cst_5 = arith.constant 0.000000e+00 : f32
    %6 = vector.broadcast %cst_5 : f32 to vector<16x128xf32>
    %c8_6 = arith.constant 8 : index
    %c384 = arith.constant 384 : index
    %7 = vector.load %arg10[%c8_6, %c384] : memref<32x512xf32, #tpu.memory_space<vmem>>, vector<16x128xf32>
    tpu.vector_store %arg10[%c8_6, %c384], %6 {strides = array<i32>} : memref<32x512xf32, #tpu.memory_space<vmem>>, vector<16x128xf32>,
    %c0_7 = arith.constant 0 : index
    %c0_8 = arith.constant 0 : index
    %c0_9 = arith.constant 0 : index
    %8 = vector.load %arg1[%c0_7, %c0_8, %c0_9] : memref<1x16x256xf32, #tpu.memory_space<vmem>>, vector<1x16x256xf32>
    %9 = vector.shape_cast %8 : vector<1x16x256xf32> to vector<16x256xf32>
    %c8_10 = arith.constant 8 : index
    %c128 = arith.constant 128 : index
    %10 = vector.load %arg10[%c8_10, %c128] : memref<32x512xf32, #tpu.memory_space<vmem>>, vector<16x256xf32>
    tpu.vector_store %arg10[%c8_10, %c128], %9 {strides = array<i32>} : memref<32x512xf32, #tpu.memory_space<vmem>>, vector<16x256xf32>,
    %c7 = arith.constant 7 : index
    %c0_11 = arith.constant 0 : index
    %11 = vector.load %arg10[%c7, %c0_11] : memref<32x512xf32, #tpu.memory_space<vmem>>, vector<16x512xf32>
    %c0_12 = arith.constant 0 : index
    %c0_13 = arith.constant 0 : index
    %c0_14 = arith.constant 0 : index
    %c0_15 = arith.constant 0 : index
    %12 = vector.load %arg2[%c0_12, %c0_13, %c0_14, %c0_15] : memref<4x3x512x256xf32, #tpu.memory_space<vmem>>, vector<1x1x512x256xf32>
    %13 = vector.shape_cast %12 : vector<1x1x512x256xf32> to vector<512x256xf32>
    %cst_16 = arith.constant dense<0.000000e+00> : vector<16x256xf32>
    %14 = tpu.matmul %11, %13, %cst_16 {dimension_numbers = #tpu.dot_dimension_numbers<[1], [0], [0], [1], [0, 0, 1, 1], [], []>} : vector<16x512xf32>, vector<512x256xf32>, vector<16x256xf32> -> vector<16x256xf32>
    %c8_17 = arith.constant 8 : index
    %c0_18 = arith.constant 0 : index
    %15 = vector.load %arg10[%c8_17, %c0_18] : memref<32x512xf32, #tpu.memory_space<vmem>>, vector<16x512xf32>
    %c0_19 = arith.constant 0 : index
    %c1 = arith.constant 1 : index
    %c0_20 = arith.constant 0 : index
    %c0_21 = arith.constant 0 : index
    %16 = vector.load %arg2[%c0_19, %c1, %c0_20, %c0_21] : memref<4x3x512x256xf32, #tpu.memory_space<vmem>>, vector<1x1x512x256xf32>
    %17 = vector.shape_cast %16 : vector<1x1x512x256xf32> to vector<512x256xf32>
    %cst_22 = arith.constant dense<0.000000e+00> : vector<16x256xf32>
    %18 = tpu.matmul %15, %17, %cst_22 {dimension_numbers = #tpu.dot_dimension_numbers<[1], [0], [0], [1], [0, 0, 1, 1], [], []>} : vector<16x512xf32>, vector<512x256xf32>, vector<16x256xf32> -> vector<16x256xf32>
    %19 = arith.addf %14, %18 : vector<16x256xf32>
    %c9 = arith.constant 9 : index
    %c0_23 = arith.constant 0 : index
    %20 = vector.load %arg10[%c9, %c0_23] : memref<32x512xf32, #tpu.memory_space<vmem>>, vector<16x512xf32>
    %c0_24 = arith.constant 0 : index
    %c2 = arith.constant 2 : index
    %c0_25 = arith.constant 0 : index
    %c0_26 = arith.constant 0 : index
    %21 = vector.load %arg2[%c0_24, %c2, %c0_25, %c0_26] : memref<4x3x512x256xf32, #tpu.memory_space<vmem>>, vector<1x1x512x256xf32>
    %22 = vector.shape_cast %21 : vector<1x1x512x256xf32> to vector<512x256xf32>
    %cst_27 = arith.constant dense<0.000000e+00> : vector<16x256xf32>
    %23 = tpu.matmul %20, %22, %cst_27 {dimension_numbers = #tpu.dot_dimension_numbers<[1], [0], [0], [1], [0, 0, 1, 1], [], []>} : vector<16x512xf32>, vector<512x256xf32>, vector<16x256xf32> -> vector<16x256xf32>
    %24 = arith.addf %19, %23 : vector<16x256xf32>
    %c0_28 = arith.constant 0 : index
    %c0_29 = arith.constant 0 : index
    %c0_30 = arith.constant 0 : index
    %25 = vector.load %arg3[%c0_28, %c0_29, %c0_30] : memref<4x1x256xf32, #tpu.memory_space<vmem>>, vector<1x1x256xf32>
    %26 = vector.shape_cast %25 : vector<1x1x256xf32> to vector<1x256xf32>
    %27 = vector.broadcast %26 : vector<1x256xf32> to vector<16x256xf32>
    %28 = arith.addf %24, %27 : vector<16x256xf32>
    %cst_31 = arith.constant 0.000000e+00 : f32
    %29 = vector.broadcast %cst_31 : f32 to vector<16x256xf32>
    %30 = arith.maximumf %28, %29 : vector<16x256xf32>
    %c8_32 = arith.constant 8 : index
    %c128_33 = arith.constant 128 : index
    %31 = vector.load %arg10[%c8_32, %c128_33] : memref<32x512xf32, #tpu.memory_space<vmem>>, vector<16x256xf32>
    tpu.vector_store %arg10[%c8_32, %c128_33], %30 {strides = array<i32>} : memref<32x512xf32, #tpu.memory_space<vmem>>, vector<16x256xf32>,
    %c6 = arith.constant 6 : index
    %c0_34 = arith.constant 0 : index
    %32 = vector.load %arg10[%c6, %c0_34] : memref<32x512xf32, #tpu.memory_space<vmem>>, vector<16x512xf32>
    %c1_35 = arith.constant 1 : index
    %c0_36 = arith.constant 0 : index
    %c0_37 = arith.constant 0 : index
    %c0_38 = arith.constant 0 : index
    %33 = vector.load %arg2[%c1_35, %c0_36, %c0_37, %c0_38] : memref<4x3x512x256xf32, #tpu.memory_space<vmem>>, vector<1x1x512x256xf32>
    %34 = vector.shape_cast %33 : vector<1x1x512x256xf32> to vector<512x256xf32>
    %cst_39 = arith.constant dense<0.000000e+00> : vector<16x256xf32>
    %35 = tpu.matmul %32, %34, %cst_39 {dimension_numbers = #tpu.dot_dimension_numbers<[1], [0], [0], [1], [0, 0, 1, 1], [], []>} : vector<16x512xf32>, vector<512x256xf32>, vector<16x256xf32> -> vector<16x256xf32>
    %c8_40 = arith.constant 8 : index
    %c0_41 = arith.constant 0 : index
    %36 = vector.load %arg10[%c8_40, %c0_41] : memref<32x512xf32, #tpu.memory_space<vmem>>, vector<16x512xf32>
    %c1_42 = arith.constant 1 : index
    %c1_43 = arith.constant 1 : index
    %c0_44 = arith.constant 0 : index
    %c0_45 = arith.constant 0 : index
    %37 = vector.load %arg2[%c1_42, %c1_43, %c0_44, %c0_45] : memref<4x3x512x256xf32, #tpu.memory_space<vmem>>, vector<1x1x512x256xf32>
    %38 = vector.shape_cast %37 : vector<1x1x512x256xf32> to vector<512x256xf32>
    %cst_46 = arith.constant dense<0.000000e+00> : vector<16x256xf32>
    %39 = tpu.matmul %36, %38, %cst_46 {dimension_numbers = #tpu.dot_dimension_numbers<[1], [0], [0], [1], [0, 0, 1, 1], [], []>} : vector<16x512xf32>, vector<512x256xf32>, vector<16x256xf32> -> vector<16x256xf32>
    %40 = arith.addf %35, %39 : vector<16x256xf32>
    %c10 = arith.constant 10 : index
    %c0_47 = arith.constant 0 : index
    %41 = vector.load %arg10[%c10, %c0_47] : memref<32x512xf32, #tpu.memory_space<vmem>>, vector<16x512xf32>
    %c1_48 = arith.constant 1 : index
    %c2_49 = arith.constant 2 : index
    %c0_50 = arith.constant 0 : index
    %c0_51 = arith.constant 0 : index
    %42 = vector.load %arg2[%c1_48, %c2_49, %c0_50, %c0_51] : memref<4x3x512x256xf32, #tpu.memory_space<vmem>>, vector<1x1x512x256xf32>
    %43 = vector.shape_cast %42 : vector<1x1x512x256xf32> to vector<512x256xf32>
    %cst_52 = arith.constant dense<0.000000e+00> : vector<16x256xf32>
    %44 = tpu.matmul %41, %43, %cst_52 {dimension_numbers = #tpu.dot_dimension_numbers<[1], [0], [0], [1], [0, 0, 1, 1], [], []>} : vector<16x512xf32>, vector<512x256xf32>, vector<16x256xf32> -> vector<16x256xf32>
    %45 = arith.addf %40, %44 : vector<16x256xf32>
    %c1_53 = arith.constant 1 : index
    %c0_54 = arith.constant 0 : index
    %c0_55 = arith.constant 0 : index
    %46 = vector.load %arg3[%c1_53, %c0_54, %c0_55] : memref<4x1x256xf32, #tpu.memory_space<vmem>>, vector<1x1x256xf32>
    %47 = vector.shape_cast %46 : vector<1x1x256xf32> to vector<1x256xf32>
    %48 = vector.broadcast %47 : vector<1x256xf32> to vector<16x256xf32>
    %49 = arith.addf %45, %48 : vector<16x256xf32>
    %cst_56 = arith.constant 0.000000e+00 : f32
    %50 = vector.broadcast %cst_56 : f32 to vector<16x256xf32>
    %51 = arith.maximumf %49, %50 : vector<16x256xf32>
    %c8_57 = arith.constant 8 : index
    %c128_58 = arith.constant 128 : index
    %52 = vector.load %arg10[%c8_57, %c128_58] : memref<32x512xf32, #tpu.memory_space<vmem>>, vector<16x256xf32>
    tpu.vector_store %arg10[%c8_57, %c128_58], %51 {strides = array<i32>} : memref<32x512xf32, #tpu.memory_space<vmem>>, vector<16x256xf32>,
    %c4 = arith.constant 4 : index
    %c0_59 = arith.constant 0 : index
    %53 = vector.load %arg10[%c4, %c0_59] : memref<32x512xf32, #tpu.memory_space<vmem>>, vector<16x512xf32>
    %c2_60 = arith.constant 2 : index
    %c0_61 = arith.constant 0 : index
    %c0_62 = arith.constant 0 : index
    %c0_63 = arith.constant 0 : index
    %54 = vector.load %arg2[%c2_60, %c0_61, %c0_62, %c0_63] : memref<4x3x512x256xf32, #tpu.memory_space<vmem>>, vector<1x1x512x256xf32>
    %55 = vector.shape_cast %54 : vector<1x1x512x256xf32> to vector<512x256xf32>
    %cst_64 = arith.constant dense<0.000000e+00> : vector<16x256xf32>
    %56 = tpu.matmul %53, %55, %cst_64 {dimension_numbers = #tpu.dot_dimension_numbers<[1], [0], [0], [1], [0, 0, 1, 1], [], []>} : vector<16x512xf32>, vector<512x256xf32>, vector<16x256xf32> -> vector<16x256xf32>
    %c8_65 = arith.constant 8 : index
    %c0_66 = arith.constant 0 : index
    %57 = vector.load %arg10[%c8_65, %c0_66] : memref<32x512xf32, #tpu.memory_space<vmem>>, vector<16x512xf32>
    %c2_67 = arith.constant 2 : index
    %c1_68 = arith.constant 1 : index
    %c0_69 = arith.constant 0 : index
    %c0_70 = arith.constant 0 : index
    %58 = vector.load %arg2[%c2_67, %c1_68, %c0_69, %c0_70] : memref<4x3x512x256xf32, #tpu.memory_space<vmem>>, vector<1x1x512x256xf32>
    %59 = vector.shape_cast %58 : vector<1x1x512x256xf32> to vector<512x256xf32>
    %cst_71 = arith.constant dense<0.000000e+00> : vector<16x256xf32>
    %60 = tpu.matmul %57, %59, %cst_71 {dimension_numbers = #tpu.dot_dimension_numbers<[1], [0], [0], [1], [0, 0, 1, 1], [], []>} : vector<16x512xf32>, vector<512x256xf32>, vector<16x256xf32> -> vector<16x256xf32>
    %61 = arith.addf %56, %60 : vector<16x256xf32>
    %c12 = arith.constant 12 : index
    %c0_72 = arith.constant 0 : index
    %62 = vector.load %arg10[%c12, %c0_72] : memref<32x512xf32, #tpu.memory_space<vmem>>, vector<16x512xf32>
    %c2_73 = arith.constant 2 : index
    %c2_74 = arith.constant 2 : index
    %c0_75 = arith.constant 0 : index
    %c0_76 = arith.constant 0 : index
    %63 = vector.load %arg2[%c2_73, %c2_74, %c0_75, %c0_76] : memref<4x3x512x256xf32, #tpu.memory_space<vmem>>, vector<1x1x512x256xf32>
    %64 = vector.shape_cast %63 : vector<1x1x512x256xf32> to vector<512x256xf32>
    %cst_77 = arith.constant dense<0.000000e+00> : vector<16x256xf32>
    %65 = tpu.matmul %62, %64, %cst_77 {dimension_numbers = #tpu.dot_dimension_numbers<[1], [0], [0], [1], [0, 0, 1, 1], [], []>} : vector<16x512xf32>, vector<512x256xf32>, vector<16x256xf32> -> vector<16x256xf32>
    %66 = arith.addf %61, %65 : vector<16x256xf32>
    %c2_78 = arith.constant 2 : index
    %c0_79 = arith.constant 0 : index
    %c0_80 = arith.constant 0 : index
    %67 = vector.load %arg3[%c2_78, %c0_79, %c0_80] : memref<4x1x256xf32, #tpu.memory_space<vmem>>, vector<1x1x256xf32>
    %68 = vector.shape_cast %67 : vector<1x1x256xf32> to vector<1x256xf32>
    %69 = vector.broadcast %68 : vector<1x256xf32> to vector<16x256xf32>
    %70 = arith.addf %66, %69 : vector<16x256xf32>
    %cst_81 = arith.constant 0.000000e+00 : f32
    %71 = vector.broadcast %cst_81 : f32 to vector<16x256xf32>
    %72 = arith.maximumf %70, %71 : vector<16x256xf32>
    %c8_82 = arith.constant 8 : index
    %c128_83 = arith.constant 128 : index
    %73 = vector.load %arg10[%c8_82, %c128_83] : memref<32x512xf32, #tpu.memory_space<vmem>>, vector<16x256xf32>
    tpu.vector_store %arg10[%c8_82, %c128_83], %72 {strides = array<i32>} : memref<32x512xf32, #tpu.memory_space<vmem>>, vector<16x256xf32>,
    %c0_84 = arith.constant 0 : index
    %c0_85 = arith.constant 0 : index
    %74 = vector.load %arg10[%c0_84, %c0_85] : memref<32x512xf32, #tpu.memory_space<vmem>>, vector<16x512xf32>
    %c3 = arith.constant 3 : index
    %c0_86 = arith.constant 0 : index
    %c0_87 = arith.constant 0 : index
    %c0_88 = arith.constant 0 : index
    %75 = vector.load %arg2[%c3, %c0_86, %c0_87, %c0_88] : memref<4x3x512x256xf32, #tpu.memory_space<vmem>>, vector<1x1x512x256xf32>
    %76 = vector.shape_cast %75 : vector<1x1x512x256xf32> to vector<512x256xf32>
    %cst_89 = arith.constant dense<0.000000e+00> : vector<16x256xf32>
    %77 = tpu.matmul %74, %76, %cst_89 {dimension_numbers = #tpu.dot_dimension_numbers<[1], [0], [0], [1], [0, 0, 1, 1], [], []>} : vector<16x512xf32>, vector<512x256xf32>, vector<16x256xf32> -> vector<16x256xf32>
    %c8_90 = arith.constant 8 : index
    %c0_91 = arith.constant 0 : index
    %78 = vector.load %arg10[%c8_90, %c0_91] : memref<32x512xf32, #tpu.memory_space<vmem>>, vector<16x512xf32>
    %c3_92 = arith.constant 3 : index
    %c1_93 = arith.constant 1 : index
    %c0_94 = arith.constant 0 : index
    %c0_95 = arith.constant 0 : index
    %79 = vector.load %arg2[%c3_92, %c1_93, %c0_94, %c0_95] : memref<4x3x512x256xf32, #tpu.memory_space<vmem>>, vector<1x1x512x256xf32>
    %80 = vector.shape_cast %79 : vector<1x1x512x256xf32> to vector<512x256xf32>
    %cst_96 = arith.constant dense<0.000000e+00> : vector<16x256xf32>
    %81 = tpu.matmul %78, %80, %cst_96 {dimension_numbers = #tpu.dot_dimension_numbers<[1], [0], [0], [1], [0, 0, 1, 1], [], []>} : vector<16x512xf32>, vector<512x256xf32>, vector<16x256xf32> -> vector<16x256xf32>
    %82 = arith.addf %77, %81 : vector<16x256xf32>
    %c16 = arith.constant 16 : index
    %c0_97 = arith.constant 0 : index
    %83 = vector.load %arg10[%c16, %c0_97] : memref<32x512xf32, #tpu.memory_space<vmem>>, vector<16x512xf32>
    %c3_98 = arith.constant 3 : index
    %c2_99 = arith.constant 2 : index
    %c0_100 = arith.constant 0 : index
    %c0_101 = arith.constant 0 : index
    %84 = vector.load %arg2[%c3_98, %c2_99, %c0_100, %c0_101] : memref<4x3x512x256xf32, #tpu.memory_space<vmem>>, vector<1x1x512x256xf32>
    %85 = vector.shape_cast %84 : vector<1x1x512x256xf32> to vector<512x256xf32>
    %cst_102 = arith.constant dense<0.000000e+00> : vector<16x256xf32>
    %86 = tpu.matmul %83, %85, %cst_102 {dimension_numbers = #tpu.dot_dimension_numbers<[1], [0], [0], [1], [0, 0, 1, 1], [], []>} : vector<16x512xf32>, vector<512x256xf32>, vector<16x256xf32> -> vector<16x256xf32>
    %87 = arith.addf %82, %86 : vector<16x256xf32>
    %c3_103 = arith.constant 3 : index
    %c0_104 = arith.constant 0 : index
    %c0_105 = arith.constant 0 : index
    %88 = vector.load %arg3[%c3_103, %c0_104, %c0_105] : memref<4x1x256xf32, #tpu.memory_space<vmem>>, vector<1x1x256xf32>
    %89 = vector.shape_cast %88 : vector<1x1x256xf32> to vector<1x256xf32>
    %90 = vector.broadcast %89 : vector<1x256xf32> to vector<16x256xf32>
    %91 = arith.addf %87, %90 : vector<16x256xf32>
    %cst_106 = arith.constant 0.000000e+00 : f32
    %92 = vector.broadcast %cst_106 : f32 to vector<16x256xf32>
    %93 = arith.maximumf %91, %92 : vector<16x256xf32>
    %cst_107 = arith.constant dense<0.000000e+00> : vector<256xf32>
    %94 = vector.multi_reduction <add>, %93, %cst_107 [0] : vector<16x256xf32> to vector<256xf32>
    %95 = vector.shape_cast %94 : vector<256xf32> to vector<1x256xf32>
    %c0_108 = arith.constant 0 : index
    %c0_109 = arith.constant 0 : index
    %96 = vector.load %arg4[%c0_108, %c0_109] : memref<256x4xf32, #tpu.memory_space<vmem>>, vector<256x4xf32>
    %cst_110 = arith.constant dense<0.000000e+00> : vector<1x4xf32>
    %97 = tpu.matmul %95, %96, %cst_110 {dimension_numbers = #tpu.dot_dimension_numbers<[1], [0], [0], [1], [0, 0, 1, 1], [], []>} : vector<1x256xf32>, vector<256x4xf32>, vector<1x4xf32> -> vector<1x4xf32>
    %c0_111 = arith.constant 0 : index
    %c0_112 = arith.constant 0 : index
    %98 = vector.load %arg5[%c0_111, %c0_112] : memref<1x4xf32, #tpu.memory_space<vmem>>, vector<1x4xf32>
    %99 = arith.addf %97, %98 : vector<1x4xf32>
    %cst_113 = arith.constant 0.000000e+00 : f32
    %100 = vector.broadcast %cst_113 : f32 to vector<1x4xf32>
    %101 = arith.maximumf %99, %100 : vector<1x4xf32>
    %c0_114 = arith.constant 0 : index
    %c0_115 = arith.constant 0 : index
    %102 = vector.load %arg6[%c0_114, %c0_115] : memref<4x16xf32, #tpu.memory_space<vmem>>, vector<4x16xf32>
    %cst_116 = arith.constant dense<0.000000e+00> : vector<1x16xf32>
    %103 = tpu.matmul %101, %102, %cst_116 {dimension_numbers = #tpu.dot_dimension_numbers<[1], [0], [0], [1], [0, 0, 1, 1], [], []>} : vector<1x4xf32>, vector<4x16xf32>, vector<1x16xf32> -> vector<1x16xf32>
    %c0_117 = arith.constant 0 : index
    %c0_118 = arith.constant 0 : index
    %104 = vector.load %arg7[%c0_117, %c0_118] : memref<1x16xf32, #tpu.memory_space<vmem>>, vector<1x16xf32>
    %105 = arith.addf %103, %104 : vector<1x16xf32>
    %106 = arith.negf %105 : vector<1x16xf32>
    %107 = math.exp %106 : vector<1x16xf32>
    %cst_119 = arith.constant 1.000000e+00 : f32
    %108 = vector.broadcast %cst_119 : f32 to vector<1x16xf32>
    %109 = arith.addf %108, %107 : vector<1x16xf32>
    %110 = arith.divf %108, %109 : vector<1x16xf32>
    %c0_120 = arith.constant 0 : index
    %c0_121 = arith.constant 0 : index
    %111 = vector.load %arg8[%c0_120, %c0_121] : memref<16x256xf32, #tpu.memory_space<vmem>>, vector<16x256xf32>
    %cst_122 = arith.constant dense<0.000000e+00> : vector<1x256xf32>
    %112 = tpu.matmul %110, %111, %cst_122 {dimension_numbers = #tpu.dot_dimension_numbers<[1], [0], [0], [1], [0, 0, 1, 1], [], []>} : vector<1x16xf32>, vector<16x256xf32>, vector<1x256xf32> -> vector<1x256xf32>
    %113 = vector.broadcast %112 : vector<1x256xf32> to vector<16x256xf32>
    %114 = arith.mulf %93, %113 : vector<16x256xf32>
    %115 = arith.addf %114, %9 : vector<16x256xf32>
    %c0_123 = arith.constant 0 : index
    %c0_124 = arith.constant 0 : index
    %c0_125 = arith.constant 0 : index
    %116 = vector.load %arg9[%c0_123, %c0_124, %c0_125] : memref<1x16x256xf32, #tpu.memory_space<vmem>>, vector<1x16x256xf32>
    %117 = vector.shape_cast %116 : vector<1x16x256xf32> to vector<16x256xf32>
    %118 = vector.shape_cast %115 : vector<16x256xf32> to vector<1x16x256xf32>
    tpu.vector_store %arg9[%c0_123, %c0_124, %c0_125], %118 {strides = array<i32>} : memref<1x16x256xf32, #tpu.memory_space<vmem>>, vector<1x16x256xf32>,
    return
  }
  func.func @transform_0(%arg0: i32) -> (i32, i32, i32) {
    %c0_i32 = arith.constant 0 : i32
    %c0_i32_0 = arith.constant 0 : i32
    %c0_i32_1 = arith.constant 0 : i32
    return %arg0, %c0_i32, %c0_i32_0 : i32, i32, i32
  }
  func.func @transform_1(%arg0: i32) -> (i32, i32, i32, i32) {
    %c0_i32 = arith.constant 0 : i32
    %c0_i32_0 = arith.constant 0 : i32
    %c0_i32_1 = arith.constant 0 : i32
    %c0_i32_2 = arith.constant 0 : i32
    %c0_i32_3 = arith.constant 0 : i32
    return %c0_i32, %c0_i32_0, %c0_i32_1, %c0_i32_2 : i32, i32, i32, i32
  }
  func.func @transform_2(%arg0: i32) -> (i32, i32, i32) {
    %c0_i32 = arith.constant 0 : i32
    %c0_i32_0 = arith.constant 0 : i32
    %c0_i32_1 = arith.constant 0 : i32
    %c0_i32_2 = arith.constant 0 : i32
    return %c0_i32, %c0_i32_0, %c0_i32_1 : i32, i32, i32
  }
  func.func @transform_3(%arg0: i32) -> (i32, i32) {
    %c0_i32 = arith.constant 0 : i32
    %c0_i32_0 = arith.constant 0 : i32
    %c0_i32_1 = arith.constant 0 : i32
    return %c0_i32, %c0_i32_0 : i32, i32
  }
  func.func @transform_4(%arg0: i32) -> (i32, i32) {
    %c0_i32 = arith.constant 0 : i32
    %c0_i32_0 = arith.constant 0 : i32
    %c0_i32_1 = arith.constant 0 : i32
    return %c0_i32, %c0_i32_0 : i32, i32
  }
  func.func @transform_5(%arg0: i32) -> (i32, i32) {
    %c0_i32 = arith.constant 0 : i32
    %c0_i32_0 = arith.constant 0 : i32
    %c0_i32_1 = arith.constant 0 : i32
    return %c0_i32, %c0_i32_0 : i32, i32
  }
  func.func @transform_6(%arg0: i32) -> (i32, i32) {
    %c0_i32 = arith.constant 0 : i32
    %c0_i32_0 = arith.constant 0 : i32
    %c0_i32_1 = arith.constant 0 : i32
    return %c0_i32, %c0_i32_0 : i32, i32
  }
  func.func @transform_7(%arg0: i32) -> (i32, i32) {
    %c0_i32 = arith.constant 0 : i32
    %c0_i32_0 = arith.constant 0 : i32
    %c0_i32_1 = arith.constant 0 : i32
    return %c0_i32, %c0_i32_0 : i32, i32
  }
  func.func @transform_8(%arg0: i32) -> (i32, i32, i32) {
    %c0_i32 = arith.constant 0 : i32
    %c0_i32_0 = arith.constant 0 : i32
    %c0_i32_1 = arith.constant 0 : i32
    return %arg0, %c0_i32, %c0_i32_0 : i32, i32, i32
  }
}

</mosaic_0001>

<bundles_post_ra>
// kernel: rcab_forward.1
= control target key start
LH: loop header
LB: loop body
LE: loop exit
PB: predicated region body
PF: predicated region fallthrough
CT: control target
= control target key end

     0   :  { %13 = vsyncpa [#allocation4], 0  ;;  %s7327_s0 = inlined_call_operand.vmem [shape: f32[2,16,256], index: 0, kind: input, shape index: {}]   ;;  %s7328_s1 = inlined_call_operand.hbm [shape: f32[4,3,512,256], index: 1, kind: input, shape index: {}]   ;;  %s7329_s2 = inlined_call_operand.hbm [shape: f32[4,1,256], index: 2, kind: input, shape index: {}]   ;;  %s7330_s3 = inlined_call_operand.vmem [shape: f32[256,4], index: 3, kind: input, shape index: {}]   ;;  %s7331_s4 = inlined_call_operand.hbm [shape: f32[1,4], index: 4, kind: input, shape index: {}]   ;;  %s7332_s5 = inlined_call_operand.hbm [shape: f32[4,16], index: 5, kind: input, shape index: {}]   ;;  %s7333_s6 = inlined_call_operand.hbm [shape: f32[1,16], index: 6, kind: input, shape index: {}]   ;;  %s7334_s7 = inlined_call_operand.hbm [shape: f32[16,256], index: 7, kind: input, shape index: {}]   ;;  %s7335_s8 = inlined_call_operand.vmem [shape: f32[2,16,256], index: 8, kind: output, shape index: {}]  }
   0x1   :  { %14 = vsyncpa [#allocation6], 0 }
   0x2   :  { %15 = vsyncpa [#allocation9], 0 }
   0x3   :  { %16 = vsyncpa [#allocation12], 0  ;;  %s6736_s27 = smov 0  }
   0x4 LB: > { %s6679_s28 = smov [#allocation5]   ;;  %s6742_s30 = sadd.s32 4294967295, %s6677_s27   ;;  %s6677_s27 = sphi %s6736_s27, %s22_s27  }
   0x5   : > { %s251_s29 = sshll.u32 %s6679_s28, 4  ;;  %p4682_p0 = scmp.ge.s32.totalorder %s6677_s27, 1  ;;  %s6747_s29 = int_to_ptr.vmem [resolvable:$true] %s251_s29 }
   0x6   : > { %p226_p1 = scmp.lt.s32.totalorder %s6677_s27, 3  ;;  %p7336_p2 = scmp.eq.s32.totalorder %s6742_s30, 0 }
   0x7   : > { %s6680_s10 = smov [#allocation8]   ;;  %s6681_s13 = smov [#allocation3]  }
   0x8   : > { %p6749_p3 = pnand %p4682_p0, %p226_p1  ;;  %s279_s11 = sshll.u32 %s6680_s10, 4  ;;  %s6755_s11 = int_to_ptr.vmem [resolvable:$true] %s279_s11 }
   0x9   : > { %s238_s14 = sshll.u32 %s6681_s13, 4  ;;  %s6487_s17 = scalar_lea.hbm %s7329_s2, 128  ;;  %s6763_s14 = int_to_ptr.vmem [resolvable:$true] %s238_s14 }
   0xa   : > { %s7338_s9 = scalar_select %p6749_p3, 1, 0 }
   0xb   : > { %p6427_p4 = pneg %p6749_p3  ;;  %p6488_p6 = scmp.ne.s32.totalorder %s7329_s2, %s6487_s17 }
   0xc   : > { %p6494_p10 = scmp.lt.u32.totalorder %s6487_s17, %s7329_s2 }
   0xd   : > { %p6759_p5 = pnand %p7336_p2, %p6427_p4 }
   0xf   : > { %p6773_p7 = pneg %p6759_p5 }
  0x11   : > { %p6490_p8 = pnand %p6773_p7, %p6488_p6 }
  0x13   : > { %p6491_p9 = pneg %p6490_p8 }
  0x15   : > { %p6496_p11 = pnand %p6494_p10, %p6491_p9 }
  0x17   : > { %6499 = shalt.err (!%p6496_p11)
}
  0x18   : > { %s6500_s23 = scalar_lea.vmem %s6747_s29, 128  ;;  %p6508_p1 = scmp.lt.s32.totalorder %s6747_s29, %s6747_s29 }
  0x19   : > { %p6501_p12 = scmp.ne.s32.totalorder %s6747_s29, %s6500_s23  ;;  %p6509_p4 = scmp.lt.s32.totalorder %s6500_s23, %s6500_s23 }
  0x1b   : > { %p6503_p13 = pnand %p6501_p12, %p6773_p7  ;;  %p6510_p6 = por %p6509_p4, %p6508_p1 }
  0x1d   : > { %p6504_p0 = pneg %p6503_p13 }
  0x1f   : > { %p6511_p8 = pnand %p6510_p6, %p6504_p0 }
  0x21   : > { %6514 = shalt.err (!%p6511_p8)
}
  0x22   : > { %s6682_s24 = smov 32   ;;  %s6683_s25 = smov 2  }
  0x23   : > { %6433 = dma.hbm_to_vmem [thread:$0]  (!%p6759_p5), %s7329_s2, 128, %s6747_s29, [#allocation6], %s6682_s24, %s6682_s24, %s6683_s25  }
  0x24   : > { %s6515_s15 = scalar_lea.hbm %s7332_s5, 64 }
  0x25   : > { %p6516_p9 = scmp.ne.s32.totalorder %s7332_s5, %s6515_s15  ;;  %p6522_p12 = scmp.lt.u32.totalorder %s6515_s15, %s7332_s5 }
  0x27   : > { %p6518_p10 = pnand %p6516_p9, %p6773_p7 }
  0x29   : > { %p6519_p11 = pneg %p6518_p10 }
  0x2b   : > { %p6524_p13 = pnand %p6522_p12, %p6519_p11 }
  0x2d   : > { %6527 = shalt.err (!%p6524_p13)
}
  0x2e   : > { %s6528_s29 = scalar_lea.vmem %s6755_s11, 64  ;;  %p6536_p6 = scmp.lt.s32.totalorder %s6755_s11, %s6755_s11 }
  0x2f   : > { %p6529_p0 = scmp.ne.s32.totalorder %s6755_s11, %s6528_s29  ;;  %p6537_p8 = scmp.lt.s32.totalorder %s6528_s29, %s6528_s29 }
  0x31   : > { %p6531_p1 = pnand %p6529_p0, %p6773_p7  ;;  %p6538_p9 = por %p6537_p8, %p6536_p6 }
  0x33   : > { %p6532_p4 = pneg %p6531_p1 }
  0x35   : > { %p6539_p10 = pnand %p6538_p9, %p6532_p4 }
  0x37   : > { %6542 = shalt.err (!%p6539_p10)
}
  0x38   : > { %6439 = dma.hbm_to_vmem [thread:$0]  (!%p6759_p5), %s7332_s5, 64, %s6755_s11, [#allocation9]  }
  0x39   : > { %s6543_s25 = scalar_lea.hbm %s7328_s1, 196608 }
  0x3a   : > { %p6544_p11 = scmp.ne.s32.totalorder %s7328_s1, %s6543_s25  ;;  %p6550_p0 = scmp.lt.u32.totalorder %s6543_s25, %s7328_s1 }
  0x3c   : > { %p6546_p12 = pnand %p6544_p11, %p6773_p7 }
  0x3e   : > { %p6547_p13 = pneg %p6546_p12 }
  0x40   : > { %p6552_p1 = pnand %p6550_p0, %p6547_p13 }
  0x42   : > { %6555 = shalt.err (!%p6552_p1)
}
  0x43   : > { %s6556_s11 = scalar_lea.vmem %s6763_s14, 196608  ;;  %p6564_p9 = scmp.lt.s32.totalorder %s6763_s14, %s6763_s14 }
  0x44   : > { %p6557_p4 = scmp.ne.s32.totalorder %s6763_s14, %s6556_s11  ;;  %p6565_p10 = scmp.lt.s32.totalorder %s6556_s11, %s6556_s11 }
  0x46   : > { %p6559_p6 = pnand %p6557_p4, %p6773_p7  ;;  %p6566_p11 = por %p6565_p10, %p6564_p9 }
  0x48   : > { %p6560_p8 = pneg %p6559_p6 }
  0x4a   : > { %p6567_p12 = pnand %p6566_p11, %p6560_p8 }
  0x4c   : > { %6570 = shalt.err (!%p6567_p12)
}
  0x4d   : > { %s6684_s15 = smov 256   ;;  %s6685_s16 = smov 16  }
  0x4e   : > { %6430 = dma.hbm_to_vmem [thread:$0]  (!%p6759_p5), %s7328_s1, 196608, %s6763_s14, [#allocation4], %s6684_s15, %s6684_s15, %s6685_s16  }
  0x4f   : > { %s6686_s19 = smov [#allocation7]   ;;  %s6687_s21 = smov [#allocation10]  }
  0x50   : > { %s268_s29 = sshll.u32 %s6686_s19, 4  ;;  %s290_s22 = sshll.u32 %s6687_s21, 4  ;;  %s269_s29 = int_to_ptr.vmem [resolvable:$true] %s268_s29  ;;  %s6843_s22 = int_to_ptr.vmem [resolvable:$true] %s290_s22 }
  0x51   : > { %s6571_s25 = scalar_lea.hbm %s7331_s4, 16 }
  0x52   : > { %p6572_p13 = scmp.ne.s32.totalorder %s7331_s4, %s6571_s25  ;;  %p6578_p4 = scmp.lt.u32.totalorder %s6571_s25, %s7331_s4 }
  0x54   : > { %p6574_p0 = pnand %p6572_p13, %p6773_p7 }
  0x56   : > { %p6575_p1 = pneg %p6574_p0 }
  0x58   : > { %p6580_p6 = pnand %p6578_p4, %p6575_p1 }
  0x5a   : > { %6583 = shalt.err (!%p6580_p6)
}
  0x5b   : > { %s6584_s13 = scalar_lea.vmem %s269_s29, 16  ;;  %s6591_s11 = scalar_lea.vmem %s269_s29, 32 }
  0x5c   : > { %p6585_p8 = scmp.ne.s32.totalorder %s269_s29, %s6584_s13  ;;  %p6592_p11 = scmp.lt.s32.totalorder %s269_s29, %s269_s29 }
  0x5d   : > { %p6593_p12 = scmp.lt.s32.totalorder %s6591_s11, %s6584_s13 }
  0x5e   : > { %p6587_p9 = pnand %p6585_p8, %p6773_p7 }
  0x5f   : > { %p6594_p2 = por %p6593_p12, %p6592_p11 }
  0x60   : > { %p6588_p10 = pneg %p6587_p9 }
  0x62   : > { %p6595_p3 = pnand %p6594_p2, %p6588_p10 }
  0x64   : > { %6598 = shalt.err (!%p6595_p3)
}
  0x65   : > { %6436 = dma.hbm_to_vmem [thread:$0]  (!%p6759_p5), %s7331_s4, 16, %s269_s29, [#allocation6]  }
  0x66   : > { %s6599_s23 = scalar_lea.hbm %s7333_s6, 16 }
  0x67   : > { %p6600_p13 = scmp.ne.s32.totalorder %s7333_s6, %s6599_s23  ;;  %p6606_p2 = scmp.lt.u32.totalorder %s6599_s23, %s7333_s6 }
  0x69   : > { %p6602_p0 = pnand %p6600_p13, %p6773_p7 }
  0x6b   : > { %p6603_p1 = pneg %p6602_p0 }
  0x6d   : > { %p6608_p3 = pnand %p6606_p2, %p6603_p1 }
  0x6f   : > { %6611 = shalt.err (!%p6608_p3)
}
  0x70   : > { %s6612_s29 = scalar_lea.vmem %s6843_s22, 16  ;;  %s6619_s10 = scalar_lea.vmem %s6843_s22, 32 }
  0x71   : > { %p6613_p4 = scmp.ne.s32.totalorder %s6843_s22, %s6612_s29  ;;  %p6620_p9 = scmp.lt.s32.totalorder %s6843_s22, %s6843_s22 }
  0x72   : > { %p6621_p10 = scmp.lt.s32.totalorder %s6619_s10, %s6612_s29 }
  0x73   : > { %p6615_p6 = pnand %p6613_p4, %p6773_p7 }
  0x74   : > { %p6622_p11 = por %p6621_p10, %p6620_p9 }
  0x75   : > { %p6616_p8 = pneg %p6615_p6 }
  0x77   : > { %p6623_p12 = pnand %p6622_p11, %p6616_p8 }
  0x79   : > { %6626 = shalt.err (!%p6623_p12)
}
  0x7a   : > { %6442 = dma.hbm_to_vmem [thread:$0]  (!%p6759_p5), %s7333_s6, 16, %s6843_s22, [#allocation9]  }
  0x7b   : > { %s6688_s11 = smov [#allocation11]   ;;  %s6627_s21 = scalar_lea.hbm %s7334_s7, 512 }
  0x7c   : > { %s300_s17 = sshll.u32 %s6688_s11, 4  ;;  %p6628_p13 = scmp.ne.s32.totalorder %s7334_s7, %s6627_s21  ;;  %s301_s17 = int_to_ptr.vmem [resolvable:$true] %s300_s17 }
  0x7d   : > { %p6634_p2 = scmp.lt.u32.totalorder %s6627_s21, %s7334_s7 }
  0x7e   : > { %p6630_p0 = pnand %p6628_p13, %p6773_p7 }
  0x80   : > { %p6631_p1 = pneg %p6630_p0 }
  0x82   : > { %p6636_p3 = pnand %p6634_p2, %p6631_p1 }
  0x84   : > { %6639 = shalt.err (!%p6636_p3)
}
  0x85   : > { %s6640_s22 = scalar_lea.vmem %s301_s17, 512  ;;  %p6648_p9 = scmp.lt.s32.totalorder %s301_s17, %s301_s17 }
  0x86   : > { %p6641_p4 = scmp.ne.s32.totalorder %s301_s17, %s6640_s22  ;;  %p6649_p10 = scmp.lt.s32.totalorder %s6640_s22, %s6640_s22 }
  0x88   : > { %p6643_p6 = pnand %p6641_p4, %p6773_p7  ;;  %p6650_p11 = por %p6649_p10, %p6648_p9 }
  0x8a   : > { %p6644_p8 = pneg %p6643_p6 }
  0x8c   : > { %p6651_p12 = pnand %p6650_p11, %p6644_p8 }
  0x8e   : > { %6654 = shalt.err (!%p6651_p12)
}
  0x8f   : > { %6445 = dma.hbm_to_vmem [thread:$0]  (!%p6759_p5), %s7334_s7, 512, %s301_s17, [#allocation12], %s6684_s15, %s6684_s15, %s6685_s16  }
  0x90   : > { %p7341_p13 = scmp.ne.s32.totalorder %s7338_s9, 0 }
  0x91   : > { %p7342_p7 = scmp.eq.s32.totalorder (!%p7341_p13), %s6742_s30, 0 }
  0x92   : > { %324 = sbr.rel (%p7341_p13) target bundleno = 3077 (0xc05), region = 52 }
  0x99   : > { %6660 = dma.done.wait (%p7342_p7), [#allocation4], 196608   ;;  %p7343_p0 = pmov %p7342_p7 }
  0x9b   : > { %6662 = vsyncadd (%p7343_p0), [#allocation4], 4294770688  ;;  %p7344_p1 = pmov %p7343_p0 }
  0x9c   : > { %p7345_p2 = pmov %p7343_p0 }
  0x9d   : > { %6664 = dma.done.wait (%p7344_p1), [#allocation6], 144  }
  0x9e   : > { %6666 = vsyncadd (%p7345_p2), [#allocation6], 4294967152  ;;  %p7346_p3 = pmov %p7343_p0 }
  0x9f   : > { %p7347_p5 = pmov %p7343_p0 }
  0xa0   : > { %6668 = dma.done.wait (%p7346_p3), [#allocation9], 80  }
  0xa1   : > { %6670 = vsyncadd (%p7347_p5), [#allocation9], 4294967216  ;;  %p7348_p4 = pmov %p7343_p0 }
  0xa2   : > { %p7349_p6 = pmov %p7343_p0 }
  0xa3   : > { %6672 = dma.done.wait (%p7348_p4), [#allocation12], 512  }
  0xa4   : > { %6674 = vsyncadd (%p7349_p6), [#allocation12], 4294966784  ;;  %v6689_v0 = vmov 0.0   ;;  %v554_v1 = vld [vmem:[#allocation3 + $0x408] sm:$0xff]  ;;  %v556_v2 = vld [vmem:[#allocation3 + $0x418] sm:$0xff]  ;;  %p378_p8 = scmp.lt.s32.totalorder %s6742_s30, 1 }
  0xa5   : > { %396 = vst [vmem:[#allocation2 + $0x20] sm:$0xff] %v6689_v0  ;;  %388 = vst [vmem:[#allocation2] sm:$0xff] %v6689_v0  ;;  %v553_v3 = vld [vmem:[#allocation3 + $0x400] sm:$0xff]  ;;  %v4751_v4 = vpack.c.bf16 %v556_v2, %v554_v1  ;;  %v555_v5 = vld [vmem:[#allocation3 + $0x410] sm:$0xff]  ;;  %vm847_vm0 = vcmask 1040384   ;;  %vm1183_vm1 = vcmask 1046528  }
  0xa6   : > { %389 = vst [vmem:[#allocation2 + $0x8] sm:$0xff] %v6689_v0  ;;  %390 = vst [vmem:[#allocation2 + $0x10] sm:$0xff] %v6689_v0  ;;  %v558_v6 = vld [vmem:[#allocation3 + $0x428] sm:$0xff]  ;;  %v560_v7 = vld [vmem:[#allocation3 + $0x438] sm:$0xff]  ;;  %v4753_v8 = vpack.c.bf16 %v555_v5, %v553_v3  ;;  %s7351_s30 = smov (!%p378_p8, %s6742_s30), 1  ;;  %vm1834_vm2 = vcmask 1041408  }
  0xa7   : > { %391 = vst [vmem:[#allocation2 + $0x18] sm:$0xff] %v6689_v0  ;;  %392 = vst [vmem:[#allocation2 + $0x60] sm:$0xff] %v6689_v0  ;;  %v4755_v9 = vpack.c.bf16 %v560_v7, %v558_v6  ;;  %v557_v10 = vld [vmem:[#allocation3 + $0x420] sm:$0xff]  ;;  %v559_v11 = vld [vmem:[#allocation3 + $0x430] sm:$0xff]  ;;  %4752 = vmatprep.subr.bf16.mxu0 %v4751_v4  ;;  %s4707_s9 = sshll.u32 %s7351_s30, 5  ;;  %vm2170_vm3 = vcmask 1045504  }
  0xa8   : > { %393 = vst [vmem:[#allocation2 + $0x68] sm:$0xff] %v6689_v0  ;;  %394 = vst [vmem:[#allocation2 + $0x70] sm:$0xff] %v6689_v0  ;;  %v562_v12 = vld [vmem:[#allocation3 + $0x448] sm:$0xff]  ;;  %v564_v13 = vld [vmem:[#allocation3 + $0x458] sm:$0xff]  ;;  %4754 = vmatpush1.bf16.msra.mxu0 %v4753_v8  ;;  %v4757_v14 = vpack.c.bf16 %v559_v11, %v557_v10  ;;  %s6948_s15 = scalar_lea.vmem %s7327_s0, %s4707_s9  ;;  %vm2822_vm4 = vcmask 1043456   ;;  %vm6690_vm5 = vmmov 0   ;;  %s387_s23 = scalar_lea.vmem %s7335_s8, %s4707_s9 }
  0xa9   : > { %395 = vst [vmem:[#allocation2 + $0x78] sm:$0xff] %v6689_v0  ;;  %397 = vst [vmem:[#allocation2 + $0x40] sm:$0xff] %v6689_v0  ;;  %4756 = vmatprep.subr.bf16.mxu0 %v4755_v9  ;;  %v4759_v15 = vpack.c.bf16 %v564_v13, %v562_v12  ;;  %v561_v16 = vld [vmem:[#allocation3 + $0x440] sm:$0xff]  ;;  %v563_v17 = vld [vmem:[#allocation3 + $0x450] sm:$0xff]  ;;  %vm4383_vm6 = vcmask 31744   ;;  %vm4470_vm7 = vcmask 130048  }
  0xaa   : > { %398 = vst [vmem:[#allocation2 + $0x38] sm:$0xff] %v6689_v0  ;;  %399 = vst [vmem:[#allocation2 + $0x58] sm:$0xff] %v6689_v0  ;;  %v566_v18 = vld [vmem:[#allocation3 + $0x468] sm:$0xff]  ;;  %v568_v19 = vld [vmem:[#allocation3 + $0x478] sm:$0xff]  ;;  %v4761_v20 = vpack.c.bf16 %v563_v17, %v561_v16 }
  0xab   : > { %v4763_v21 = vpack.c.bf16 %v568_v19, %v566_v18  ;;  %v565_v22 = vld [vmem:[#allocation3 + $0x460] sm:$0xff]  ;;  %v567_v23 = vld [vmem:[#allocation3 + $0x470] sm:$0xff]  ;;  %v570_v24 = vld [vmem:[#allocation3 + $0x488] sm:$0xff] }
  0xac   : > { %4758 = vmatpush1.bf16.msra.mxu0 %v4757_v14  ;;  %v572_v25 = vld [vmem:[#allocation3 + $0x498] sm:$0xff]  ;;  %v4765_v26 = vpack.c.bf16 %v567_v23, %v565_v22  ;;  %v569_v28 = vld [vmem:[#allocation3 + $0x480] sm:$0xff]  ;;  %v571_v29 = vld [vmem:[#allocation3 + $0x490] sm:$0xff] }
  0xad   : > { %4760 = vmatprep.subr.bf16.mxu0 %v4759_v15  ;;  %v4767_v27 = vpack.c.bf16 %v572_v25, %v570_v24  ;;  %v574_v30 = vld [vmem:[#allocation3 + $0x4a8] sm:$0xff]  ;;  %v576_v31 = vld [vmem:[#allocation3 + $0x4b8] sm:$0xff]  ;;  %v4769_v32 = vpack.c.bf16 %v571_v29, %v569_v28  ;;  %v573_v34 = vld [vmem:[#allocation3 + $0x4a0] sm:$0xff] }
  0xae   : > { %v4771_v33 = vpack.c.bf16 %v576_v31, %v574_v30  ;;  %v575_v35 = vld [vmem:[#allocation3 + $0x4b0] sm:$0xff]  ;;  %v578_v36 = vld [vmem:[#allocation3 + $0x4c8] sm:$0xff]  ;;  %v580_v37 = vld [vmem:[#allocation3 + $0x4d8] sm:$0xff] }
  0xaf   : > { %v4773_v38 = vpack.c.bf16 %v575_v35, %v573_v34  ;;  %v4775_v39 = vpack.c.bf16 %v580_v37, %v578_v36  ;;  %v577_v40 = vld [vmem:[#allocation3 + $0x4c0] sm:$0xff]  ;;  %v579_v41 = vld [vmem:[#allocation3 + $0x4d0] sm:$0xff]  ;;  %v582_v43 = vld [vmem:[#allocation3 + $0x4e8] sm:$0xff] }
  0xb0   : > { %4762 = vmatpush1.bf16.msra.mxu0 %v4761_v20  ;;  %v6951_v42 = vld [vmem:[%s6948_s15] sm:$0xff]  ;;  %v584_v44 = vld [vmem:[#allocation3 + $0x4f8] sm:$0xff]  ;;  %v4777_v45 = vpack.c.bf16 %v579_v41, %v577_v40  ;;  %v583_v48 = vld [vmem:[#allocation3 + $0x4f0] sm:$0xff] }
  0xb1   : > { %4764 = vmatprep.subr.bf16.mxu0 %v4763_v21  ;;  %404 = vst [vmem:[#allocation2 + $0x28] sm:$0xff] %v6951_v42  ;;  %745 = vmatprep.mubr.f32.mxu0 %v6951_v42  ;;  %v4779_v46 = vpack.c.bf16 %v584_v44, %v582_v43  ;;  %v581_v47 = vld [vmem:[#allocation3 + $0x4e0] sm:$0xff]  ;;  %v586_v49 = vld [vmem:[#allocation3 + $0x508] sm:$0xff]  ;;  %v588_v50 = vld [vmem:[#allocation3 + $0x518] sm:$0xff] }
  0xb2   : > { %v4781_v51 = vpack.c.bf16 %v583_v48, %v581_v47  ;;  %v4783_v52 = vpack.c.bf16 %v588_v50, %v586_v49  ;;  %v585_v53 = vld [vmem:[#allocation3 + $0x500] sm:$0xff]  ;;  %v587_v54 = vld [vmem:[#allocation3 + $0x510] sm:$0xff]  ;;  %v590_v55 = vld [vmem:[#allocation3 + $0x528] sm:$0xff] }
  0xb3   : > { %v592_v56 = vld [vmem:[#allocation3 + $0x538] sm:$0xff]  ;;  %v4785_v57 = vpack.c.bf16 %v587_v54, %v585_v53  ;;  %v589_v59 = vld [vmem:[#allocation3 + $0x520] sm:$0xff]  ;;  %v591_v60 = vld [vmem:[#allocation3 + $0x530] sm:$0xff] }
  0xb4   : > { %4766 = vmatpush1.bf16.msra.mxu0 %v4765_v26  ;;  %v4787_v58 = vpack.c.bf16 %v592_v56, %v590_v55  ;;  %v594_v61 = vld [vmem:[#allocation3 + $0x548] sm:$0xff]  ;;  %v596_v62 = vld [vmem:[#allocation3 + $0x558] sm:$0xff]  ;;  %v4789_v63 = vpack.c.bf16 %v591_v60, %v589_v59  ;;  %v593_v2 = vld [vmem:[#allocation3 + $0x540] sm:$0xff] }
  0xb5   : > { %4768 = vmatprep.subr.bf16.mxu0 %v4767_v27  ;;  %v4791_v1 = vpack.c.bf16 %v596_v62, %v594_v61  ;;  %v595_v3 = vld [vmem:[#allocation3 + $0x550] sm:$0xff]  ;;  %v598_v4 = vld [vmem:[#allocation3 + $0x568] sm:$0xff]  ;;  %v600_v5 = vld [vmem:[#allocation3 + $0x578] sm:$0xff] }
  0xb6   : > { %v4793_v6 = vpack.c.bf16 %v595_v3, %v593_v2  ;;  %v4795_v7 = vpack.c.bf16 %v600_v5, %v598_v4  ;;  %v597_v8 = vld [vmem:[#allocation3 + $0x560] sm:$0xff]  ;;  %v599_v9 = vld [vmem:[#allocation3 + $0x570] sm:$0xff]  ;;  %v602_v11 = vld [vmem:[#allocation3 + $0x588] sm:$0xff] }
  0xb7   : > { %v6956_v10 = vld [vmem:[%s6948_s15 + $0x10] sm:$0xff]  ;;  %v604_v12 = vld [vmem:[#allocation3 + $0x598] sm:$0xff]  ;;  %v4797_v13 = vpack.c.bf16 %v599_v9, %v597_v8  ;;  %v6960_v14 = vld [vmem:[%s6948_s15 + $0x8] sm:$0xff] }
  0xb8   : > { %4770 = vmatpush1.bf16.msra.mxu0 %v4769_v32  ;;  %406 = vst [vmem:[#allocation2 + $0x48] sm:$0xff] %v6956_v10  ;;  %v4799_v15 = vpack.c.bf16 %v604_v12, %v602_v11  ;;  %v601_v16 = vld [vmem:[#allocation3 + $0x580] sm:$0xff]  ;;  %v603_v17 = vld [vmem:[#allocation3 + $0x590] sm:$0xff]  ;;  %405 = vst [vmem:[#allocation2 + $0x30] sm:$0xff] %v6960_v14 }
  0xb9   : > { %4772 = vmatprep.subr.bf16.mxu0 %v4771_v33  ;;  %v606_v18 = vld [vmem:[#allocation3 + $0x5a8] sm:$0xff]  ;;  %v608_v19 = vld [vmem:[#allocation3 + $0x5b8] sm:$0xff]  ;;  %v4801_v20 = vpack.c.bf16 %v603_v17, %v601_v16  ;;  %v605_v22 = vld [vmem:[#allocation3 + $0x5a0] sm:$0xff] }
  0xba   : > { %v4803_v21 = vpack.c.bf16 %v608_v19, %v606_v18  ;;  %v607_v23 = vld [vmem:[#allocation3 + $0x5b0] sm:$0xff]  ;;  %v610_v24 = vld [vmem:[#allocation3 + $0x5c8] sm:$0xff]  ;;  %v612_v25 = vld [vmem:[#allocation3 + $0x5d8] sm:$0xff] }
  0xbb   : > { %v4805_v26 = vpack.c.bf16 %v607_v23, %v605_v22  ;;  %v4807_v27 = vpack.c.bf16 %v612_v25, %v610_v24  ;;  %v609_v28 = vld [vmem:[#allocation3 + $0x5c0] sm:$0xff]  ;;  %v611_v29 = vld [vmem:[#allocation3 + $0x5d0] sm:$0xff]  ;;  %v614_v30 = vld [vmem:[#allocation3 + $0x5e8] sm:$0xff] }
  0xbc   : > { %4774 = vmatpush1.bf16.msra.mxu0 %v4773_v38  ;;  %v616_v31 = vld [vmem:[#allocation3 + $0x5f8] sm:$0xff]  ;;  %v4809_v32 = vpack.c.bf16 %v611_v29, %v609_v28  ;;  %v613_v34 = vld [vmem:[#allocation3 + $0x5e0] sm:$0xff]  ;;  %v615_v35 = vld [vmem:[#allocation3 + $0x5f0] sm:$0xff] }
  0xbd   : > { %4776 = vmatprep.subr.bf16.mxu0 %v4775_v39  ;;  %v4811_v33 = vpack.c.bf16 %v616_v31, %v614_v30  ;;  %v618_v36 = vld [vmem:[#allocation3 + $0x608] sm:$0xff]  ;;  %v620_v37 = vld [vmem:[#allocation3 + $0x618] sm:$0xff]  ;;  %v4813_v38 = vpack.c.bf16 %v615_v35, %v613_v34  ;;  %v617_v40 = vld [vmem:[#allocation3 + $0x600] sm:$0xff] }
  0xbe   : > { %v4815_v39 = vpack.c.bf16 %v620_v37, %v618_v36  ;;  %v619_v41 = vld [vmem:[#allocation3 + $0x610] sm:$0xff]  ;;  %v622_v43 = vld [vmem:[#allocation3 + $0x628] sm:$0xff]  ;;  %v624_v44 = vld [vmem:[#allocation3 + $0x638] sm:$0xff] }
  0xbf   : > { %v4819_v47 = vpack.c.bf16 %v624_v44, %v622_v43  ;;  %v621_v48 = vld [vmem:[#allocation3 + $0x620] sm:$0xff]  ;;  %v623_v49 = vld [vmem:[#allocation3 + $0x630] sm:$0xff]  ;;  %v626_v50 = vld [vmem:[#allocation3 + $0x648] sm:$0xff] }
  0xc0   : > { %4778 = vmatpush1.bf16.msra.mxu0 %v4777_v45  ;;  %v4817_v45 = vpack.c.bf16 %v619_v41, %v617_v40  ;;  %v625_v54 = vld [vmem:[#allocation3 + $0x640] sm:$0xff]  ;;  %v627_v55 = vld [vmem:[#allocation3 + $0x650] sm:$0xff]  ;;  %v630_v56 = vld [vmem:[#allocation3 + $0x668] sm:$0xff] }
  0xc1   : > { %4780 = vmatprep.subr.bf16.mxu0 %v4779_v46  ;;  %v6964_v46 = vld [vmem:[%s6948_s15 + $0x18] sm:$0xff]  ;;  %v629_v60 = vld [vmem:[#allocation3 + $0x660] sm:$0xff]  ;;  %v631_v61 = vld [vmem:[#allocation3 + $0x670] sm:$0xff] }
  0xc2   : > { %407 = vst [vmem:[#allocation2 + $0x50] sm:$0xff] %v6964_v46  ;;  %v634_v62 = vld [vmem:[#allocation3 + $0x688] sm:$0xff]  ;;  %v633_v3 = vld [vmem:[#allocation3 + $0x680] sm:$0xff]  ;;  %v635_v4 = vld [vmem:[#allocation3 + $0x690] sm:$0xff] }
  0xc3   : > { %v638_v5 = vld [vmem:[#allocation3 + $0x6a8] sm:$0xff]  ;;  %v637_v9 = vld [vmem:[#allocation3 + $0x6a0] sm:$0xff]  ;;  %v639_v11 = vld [vmem:[#allocation3 + $0x6b0] sm:$0xff] }
  0xc4   : > { %4782 = vmatpush1.bf16.msra.mxu0 %v4781_v51  ;;  %v628_v51 = vld [vmem:[#allocation3 + $0x658] sm:$0xff]  ;;  %v642_v12 = vld [vmem:[#allocation3 + $0x6c8] sm:$0xff]  ;;  %v641_v17 = vld [vmem:[#allocation3 + $0x6c0] sm:$0xff] }
  0xc5   : > { %4784 = vmatprep.subr.bf16.mxu0 %v4783_v52  ;;  %v4821_v52 = vpack.c.bf16 %v623_v49, %v621_v48  ;;  %v4823_v53 = vpack.c.bf16 %v628_v51, %v626_v50  ;;  %v643_v18 = vld [vmem:[#allocation3 + $0x6d0] sm:$0xff]  ;;  %v646_v19 = vld [vmem:[#allocation3 + $0x6e8] sm:$0xff]  ;;  %v645_v23 = vld [vmem:[#allocation3 + $0x6e0] sm:$0xff] }
  0xc6   : > { %v647_v24 = vld [vmem:[#allocation3 + $0x6f0] sm:$0xff]  ;;  %v650_v25 = vld [vmem:[#allocation3 + $0x708] sm:$0xff]  ;;  %v649_v29 = vld [vmem:[#allocation3 + $0x700] sm:$0xff] }
  0xc7   : > { %v651_v30 = vld [vmem:[#allocation3 + $0x710] sm:$0xff]  ;;  %v654_v31 = vld [vmem:[#allocation3 + $0x728] sm:$0xff]  ;;  %v653_v35 = vld [vmem:[#allocation3 + $0x720] sm:$0xff] }
  0xc8   : > { %4786 = vmatpush1.bf16.msra.mxu0 %v4785_v57  ;;  %v632_v57 = vld [vmem:[#allocation3 + $0x678] sm:$0xff]  ;;  %v655_v36 = vld [vmem:[#allocation3 + $0x730] sm:$0xff]  ;;  %v658_v37 = vld [vmem:[#allocation3 + $0x748] sm:$0xff] }
  0xc9   : > { %4788 = vmatprep.subr.bf16.mxu0 %v4787_v58  ;;  %v4825_v58 = vpack.c.bf16 %v627_v55, %v625_v54  ;;  %v4827_v59 = vpack.c.bf16 %v632_v57, %v630_v56  ;;  %v657_v41 = vld [vmem:[#allocation3 + $0x740] sm:$0xff]  ;;  %v659_v43 = vld [vmem:[#allocation3 + $0x750] sm:$0xff]  ;;  %v662_v44 = vld [vmem:[#allocation3 + $0x768] sm:$0xff] }
  0xca   : > { %v661_v49 = vld [vmem:[#allocation3 + $0x760] sm:$0xff]  ;;  %v663_v50 = vld [vmem:[#allocation3 + $0x770] sm:$0xff]  ;;  %v666_v51 = vld [vmem:[#allocation3 + $0x788] sm:$0xff] }
  0xcb   : > { %v665_v55 = vld [vmem:[#allocation3 + $0x780] sm:$0xff]  ;;  %v667_v56 = vld [vmem:[#allocation3 + $0x790] sm:$0xff]  ;;  %v670_v57 = vld [vmem:[#allocation3 + $0x7a8] sm:$0xff] }
  0xcc   : > { %4790 = vmatpush1.bf16.msra.mxu0 %v4789_v63  ;;  %v636_v63 = vld [vmem:[#allocation3 + $0x698] sm:$0xff] }
  0xcd   : > { %4792 = vmatprep.subr.bf16.mxu0 %v4791_v1  ;;  %v4829_v1 = vpack.c.bf16 %v631_v61, %v629_v60  ;;  %v4831_v2 = vpack.c.bf16 %v636_v63, %v634_v62  ;;  %v669_v61 = vld [vmem:[#allocation3 + $0x7a0] sm:$0xff]  ;;  %v671_v62 = vld [vmem:[#allocation3 + $0x7b0] sm:$0xff]  ;;  %v674_v63 = vld [vmem:[#allocation3 + $0x7c8] sm:$0xff] }
  0xd0   : > { %4794 = vmatpush1.bf16.msra.mxu0 %v4793_v6  ;;  %v640_v6 = vld [vmem:[#allocation3 + $0x6b8] sm:$0xff] }
  0xd1   : > { %4796 = vmatprep.subr.bf16.mxu0 %v4795_v7  ;;  %v4833_v7 = vpack.c.bf16 %v635_v4, %v633_v3  ;;  %v4835_v8 = vpack.c.bf16 %v640_v6, %v638_v5  ;;  %v673_v4 = vld [vmem:[#allocation3 + $0x7c0] sm:$0xff]  ;;  %v675_v5 = vld [vmem:[#allocation3 + $0x7d0] sm:$0xff]  ;;  %v678_v6 = vld [vmem:[#allocation3 + $0x7e8] sm:$0xff] }
  0xd4   : > { %4798 = vmatpush1.bf16.msra.mxu0 %v4797_v13  ;;  %v644_v13 = vld [vmem:[#allocation3 + $0x6d8] sm:$0xff] }
  0xd5   : > { %4800 = vmatprep.subr.bf16.mxu0 %v4799_v15  ;;  %v4837_v15 = vpack.c.bf16 %v639_v11, %v637_v9  ;;  %v4839_v16 = vpack.c.bf16 %v644_v13, %v642_v12  ;;  %v677_v11 = vld [vmem:[#allocation3 + $0x7e0] sm:$0xff]  ;;  %v679_v12 = vld [vmem:[#allocation3 + $0x7f0] sm:$0xff]  ;;  %v421_v13 = vld [vmem:[#allocation3 + $0x8] sm:$0xff] }
  0xd8   : > { %4802 = vmatpush1.bf16.msra.mxu0 %v4801_v20  ;;  %v648_v20 = vld [vmem:[#allocation3 + $0x6f8] sm:$0xff] }
  0xd9   : > { %4804 = vmatprep.subr.bf16.mxu0 %v4803_v21  ;;  %v4841_v21 = vpack.c.bf16 %v643_v18, %v641_v17  ;;  %v4843_v22 = vpack.c.bf16 %v648_v20, %v646_v19  ;;  %v420_v18 = vld [vmem:[#allocation3] sm:$0xff]  ;;  %v422_v19 = vld [vmem:[#allocation3 + $0x10] sm:$0xff]  ;;  %v425_v20 = vld [vmem:[#allocation3 + $0x28] sm:$0xff] }
  0xdc   : > { %4806 = vmatpush1.bf16.msra.mxu0 %v4805_v26  ;;  %v652_v26 = vld [vmem:[#allocation3 + $0x718] sm:$0xff] }
  0xdd   : > { %4808 = vmatprep.subr.bf16.mxu0 %v4807_v27  ;;  %v4845_v27 = vpack.c.bf16 %v647_v24, %v645_v23  ;;  %v4847_v28 = vpack.c.bf16 %v652_v26, %v650_v25  ;;  %v4881_v23 = vpack.c.bf16 %v422_v19, %v420_v18  ;;  %v852_v24 = vrot.slane %v6951_v42, 7  ;;  %v424_v26 = vld [vmem:[#allocation3 + $0x20] sm:$0xff]  ;;  %v461_v18 = vld [vmem:[#allocation3 + $0x148] sm:$0xff]  ;;  %v463_v19 = vld [vmem:[#allocation3 + $0x158] sm:$0xff] }
  0xe0   : > { %4810 = vmatpush1.bf16.msra.mxu0 %v4809_v32  ;;  %v656_v32 = vld [vmem:[#allocation3 + $0x738] sm:$0xff] }
  0xe1   : > { %4812 = vmatprep.subr.bf16.mxu0 %v4811_v33  ;;  %v4849_v33 = vpack.c.bf16 %v651_v30, %v649_v29  ;;  %v4851_v34 = vpack.c.bf16 %v656_v32, %v654_v31  ;;  %v429_v29 = vld [vmem:[#allocation3 + $0x48] sm:$0xff]  ;;  %v431_v30 = vld [vmem:[#allocation3 + $0x58] sm:$0xff] }
  0xe2   : > { %v4887_v32 = vpack.c.bf16 %v431_v30, %v429_v29  ;;  %v464_v29 = vld [vmem:[#allocation3 + $0x160] sm:$0xff]  ;;  %v466_v30 = vld [vmem:[#allocation3 + $0x170] sm:$0xff] }
  0xe4   : > { %4814 = vmatpush1.bf16.msra.mxu0 %v4813_v38  ;;  %v660_v38 = vld [vmem:[#allocation3 + $0x758] sm:$0xff] }
  0xe5   : > { %4816 = vmatprep.subr.bf16.mxu0 %v4815_v39  ;;  %v4853_v39 = vpack.c.bf16 %v655_v36, %v653_v35  ;;  %v4855_v40 = vpack.c.bf16 %v660_v38, %v658_v37  ;;  %v433_v36 = vld [vmem:[#allocation3 + $0x68] sm:$0xff]  ;;  %v435_v37 = vld [vmem:[#allocation3 + $0x78] sm:$0xff] }
  0xe7   : > { %746 = vmatmul.mubr.f32.vlgmr.msra.gmra.mrb[0].mxu0 %v6689_v0 }
  0xe8   : > { %4818 = vmatpush1.bf16.msra.mxu0 %v4817_v45  ;;  %751 = vmatprep.mubr.f32.mxu0 %v6956_v10  ;;  %v664_v45 = vld [vmem:[#allocation3 + $0x778] sm:$0xff] }
  0xe9   : > { %4820 = vmatprep.subr.bf16.mxu0 %v4819_v47  ;;  %v4857_v47 = vpack.c.bf16 %v659_v43, %v657_v41  ;;  %v4859_v48 = vpack.c.bf16 %v664_v45, %v662_v44  ;;  %v434_v41 = vld [vmem:[#allocation3 + $0x70] sm:$0xff]  ;;  %v437_v43 = vld [vmem:[#allocation3 + $0x88] sm:$0xff]  ;;  %v439_v44 = vld [vmem:[#allocation3 + $0x98] sm:$0xff] }
  0xeb   : > { %752 = vmatmul.mubr.f32.gmra.mrb[2].mxu0 %v6689_v0 }
  0xec   : > { %4822 = vmatpush1.bf16.msra.mxu0 %v4821_v52  ;;  %822 = vmatprep.mubr.f32.mxu0 %v6689_v0  ;;  %v668_v52 = vld [vmem:[#allocation3 + $0x798] sm:$0xff] }
  0xed   : > { %4824 = vmatprep.subr.bf16.mxu0 %v4823_v53  ;;  %v4861_v53 = vpack.c.bf16 %v663_v50, %v661_v49  ;;  %v4863_v54 = vpack.c.bf16 %v668_v52, %v666_v51  ;;  %v438_v49 = vld [vmem:[#allocation3 + $0x90] sm:$0xff]  ;;  %v441_v50 = vld [vmem:[#allocation3 + $0xa8] sm:$0xff]  ;;  %v443_v51 = vld [vmem:[#allocation3 + $0xb8] sm:$0xff] }
  0xf0   : > { %4826 = vmatpush1.bf16.msra.mxu0 %v4825_v58  ;;  %v672_v58 = vld [vmem:[#allocation3 + $0x7b8] sm:$0xff] }
  0xf1   : > { %4828 = vmatprep.subr.bf16.mxu0 %v4827_v59  ;;  %v4865_v59 = vpack.c.bf16 %v667_v56, %v665_v55  ;;  %v4867_v60 = vpack.c.bf16 %v672_v58, %v670_v57  ;;  %v445_v55 = vld [vmem:[#allocation3 + $0xc8] sm:$0xff]  ;;  %v447_v56 = vld [vmem:[#allocation3 + $0xd8] sm:$0xff] }
  0xf2   : > { %v4903_v58 = vpack.c.bf16 %v447_v56, %v445_v55  ;;  %v482_v55 = vld [vmem:[#allocation3 + $0x1f0] sm:$0xff]  ;;  %v408_v56 = vld [vmem:[#allocation2] sm:$0x80] }
  0xf4   : > { %4830 = vmatpush1.bf16.msra.mxu0 %v4829_v1  ;;  %v676_v1 = vld [vmem:[#allocation3 + $0x7d8] sm:$0xff] }
  0xf5   : > { %4832 = vmatprep.subr.bf16.mxu0 %v4831_v2  ;;  %v4869_v2 = vpack.c.bf16 %v671_v62, %v669_v61  ;;  %v4871_v3 = vpack.c.bf16 %v676_v1, %v674_v63  ;;  %v449_v61 = vld [vmem:[#allocation3 + $0xe8] sm:$0xff]  ;;  %v451_v62 = vld [vmem:[#allocation3 + $0xf8] sm:$0xff] }
  0xf6   : > { %v4907_v1 = vpack.c.bf16 %v451_v62, %v449_v61  ;;  %v848_v62 = vrot.slane %v408_v56, 7  ;;  %v517_v56 = vld [vmem:[#allocation3 + $0x308] sm:$0xff] }
  0xf8   : > { %4834 = vmatpush1.bf16.msra.mxu0 %v4833_v7  ;;  %v680_v7 = vld [vmem:[#allocation3 + $0x7f8] sm:$0xff] }
  0xf9   : > { %4836 = vmatprep.subr.bf16.mxu0 %v4835_v8  ;;  %v4873_v8 = vpack.c.bf16 %v675_v5, %v673_v4  ;;  %v4875_v9 = vpack.c.bf16 %v680_v7, %v678_v6  ;;  %v453_v4 = vld [vmem:[#allocation3 + $0x108] sm:$0xff]  ;;  %v455_v5 = vld [vmem:[#allocation3 + $0x118] sm:$0xff] }
  0xfa   : > { %v4911_v7 = vpack.c.bf16 %v455_v5, %v453_v4  ;;  %v416_v4 = vld [vmem:[#allocation2 + $0x40] sm:$0x7f]  ;;  %v489_v5 = vld [vmem:[#allocation3 + $0x228] sm:$0xff] }
  0xfc   : > { %4838 = vmatpush1.bf16.msra.mxu0 %v4837_v15  ;;  %v423_v15 = vld [vmem:[#allocation3 + $0x18] sm:$0xff] }
  0xfd   : > { %4840 = vmatprep.subr.bf16.mxu0 %v4839_v16  ;;  %v4877_v16 = vpack.c.bf16 %v679_v12, %v677_v11  ;;  %v4879_v17 = vpack.c.bf16 %v423_v15, %v421_v13  ;;  %v457_v11 = vld [vmem:[#allocation3 + $0x128] sm:$0xff]  ;;  %v459_v12 = vld [vmem:[#allocation3 + $0x138] sm:$0xff] }
  0xfe   : > { %v4915_v15 = vpack.c.bf16 %v459_v12, %v457_v11  ;;  %v860_v11 = vrot.slane %v416_v4, 7  ;;  %v488_v12 = vld [vmem:[#allocation3 + $0x220] sm:$0xff] }
  0xff   : > { %v520_v4 = vld [vmem:[#allocation3 + $0x320] sm:$0xff] }
 0x100   : > { %4842 = vmatpush1.bf16.msra.mxu0 %v4841_v21  ;;  %v427_v21 = vld [vmem:[#allocation3 + $0x38] sm:$0xff] }
 0x101   : > { %4844 = vmatprep.subr.bf16.mxu0 %v4843_v22  ;;  %v409_v22 = vld [vmem:[#allocation2 + $0x8] sm:$0x80]  ;;  %v4883_v25 = vpack.c.bf16 %v427_v21, %v425_v20  ;;  %v4919_v21 = vpack.c.bf16 %v463_v19, %v461_v18  ;;  %v495_v18 = vld [vmem:[#allocation3 + $0x258] sm:$0xff] }
 0x104   : > { %4846 = vmatpush1.bf16.msra.mxu0 %v4845_v27  ;;  %v426_v27 = vld [vmem:[#allocation3 + $0x30] sm:$0xff] }
 0x105   : > { %4848 = vmatprep.subr.bf16.mxu0 %v4847_v28  ;;  %v851_v28 = vrot.slane %v409_v22, 7  ;;  %v4885_v31 = vpack.c.bf16 %v426_v27, %v424_v26  ;;  %v460_v22 = vld [vmem:[#allocation3 + $0x140] sm:$0xff]  ;;  %v467_v26 = vld [vmem:[#allocation3 + $0x178] sm:$0xff] }
 0x107   : > { %v853_v35 = vsel %vm847_vm0, %v851_v28, %v852_v24 }
 0x108   : > { %4850 = vmatpush1.bf16.msra.mxu0 %v4849_v33  ;;  %v428_v33 = vld [vmem:[#allocation3 + $0x40] sm:$0xff] }
 0x109   : > { %4852 = vmatprep.subr.bf16.mxu0 %v4851_v34  ;;  %v430_v34 = vld [vmem:[#allocation3 + $0x50] sm:$0xff] }
 0x10a   : > { %v4889_v38 = vpack.c.bf16 %v430_v34, %v428_v33  ;;  %v4925_v33 = vpack.c.bf16 %v466_v30, %v464_v29  ;;  %v496_v29 = vld [vmem:[#allocation3 + $0x260] sm:$0xff]  ;;  %v498_v30 = vld [vmem:[#allocation3 + $0x270] sm:$0xff] }
 0x10c   : > { %4854 = vmatpush1.bf16.msra.mxu0 %v4853_v39  ;;  %v4891_v39 = vpack.c.bf16 %v435_v37, %v433_v36  ;;  %v470_v36 = vld [vmem:[#allocation3 + $0x190] sm:$0xff]  ;;  %v473_v37 = vld [vmem:[#allocation3 + $0x1a8] sm:$0xff] }
 0x10d   : > { %4856 = vmatprep.subr.bf16.mxu0 %v4855_v40  ;;  %v432_v40 = vld [vmem:[#allocation3 + $0x60] sm:$0xff] }
 0x10e   : > { %v4893_v45 = vpack.c.bf16 %v434_v41, %v432_v40  ;;  %v472_v41 = vld [vmem:[#allocation3 + $0x1a0] sm:$0xff] }
 0x110   : > { %4858 = vmatpush1.bf16.msra.mxu0 %v4857_v47  ;;  %v4895_v47 = vpack.c.bf16 %v439_v44, %v437_v43  ;;  %v474_v43 = vld [vmem:[#allocation3 + $0x1b0] sm:$0xff]  ;;  %v477_v44 = vld [vmem:[#allocation3 + $0x1c8] sm:$0xff] }
 0x111   : > { %4860 = vmatprep.subr.bf16.mxu0 %v4859_v48  ;;  %v436_v48 = vld [vmem:[#allocation3 + $0x80] sm:$0xff] }
 0x112   : > { %v4897_v52 = vpack.c.bf16 %v438_v49, %v436_v48  ;;  %v476_v49 = vld [vmem:[#allocation3 + $0x1c0] sm:$0xff] }
 0x114   : > { %4862 = vmatpush1.bf16.msra.mxu0 %v4861_v53  ;;  %v440_v53 = vld [vmem:[#allocation3 + $0xa0] sm:$0xff] }
 0x115   : > { %4864 = vmatprep.subr.bf16.mxu0 %v4863_v54  ;;  %v442_v54 = vld [vmem:[#allocation3 + $0xb0] sm:$0xff] }
 0x116   : > { %v4901_v57 = vpack.c.bf16 %v442_v54, %v440_v53  ;;  %v480_v54 = vld [vmem:[#allocation3 + $0x1e0] sm:$0xff] }
 0x117   : > { %v4941_v61 = vpack.c.bf16 %v482_v55, %v480_v54  ;;  %v512_v54 = vld [vmem:[#allocation3 + $0x2e0] sm:$0xff]  ;;  %v514_v55 = vld [vmem:[#allocation3 + $0x2f0] sm:$0xff] }
 0x118   : > { %4866 = vmatpush1.bf16.msra.mxu0 %v4865_v59  ;;  %v444_v59 = vld [vmem:[#allocation3 + $0xc0] sm:$0xff] }
 0x119   : > { %4868 = vmatprep.subr.bf16.mxu0 %v4867_v60  ;;  %v446_v60 = vld [vmem:[#allocation3 + $0xd0] sm:$0xff] }
 0x11a   : > { %v4905_v63 = vpack.c.bf16 %v446_v60, %v444_v59  ;;  %v417_v59 = vld [vmem:[#allocation2 + $0x48] sm:$0x7f]  ;;  %v6979_v60 = vrot.slane %v6689_v0, 7 }
 0x11c   : > { %4870 = vmatpush1.bf16.msra.mxu0 %v4869_v2  ;;  %v448_v2 = vld [vmem:[#allocation3 + $0xe0] sm:$0xff] }
 0x11d   : > { %4872 = vmatprep.subr.bf16.mxu0 %v4871_v3  ;;  %v450_v3 = vld [vmem:[#allocation3 + $0xf0] sm:$0xff] }
 0x11e   : > { %v4909_v6 = vpack.c.bf16 %v450_v3, %v448_v2  ;;  %v486_v2 = vld [vmem:[#allocation3 + $0x210] sm:$0xff]  ;;  %v862_v3 = vrot.slane %v417_v59, 7 }
 0x120   : > { %4874 = vmatpush1.bf16.msra.mxu0 %v4873_v8  ;;  %v452_v8 = vld [vmem:[#allocation3 + $0x100] sm:$0xff] }
 0x121   : > { %4876 = vmatprep.subr.bf16.mxu0 %v4875_v9  ;;  %v454_v9 = vld [vmem:[#allocation3 + $0x110] sm:$0xff] }
 0x122   : > { %v4913_v13 = vpack.c.bf16 %v454_v9, %v452_v8  ;;  %v850_v8 = vsel %vm847_vm0, %v848_v62, %v6979_v60  ;;  %v518_v62 = vld [vmem:[#allocation3 + $0x310] sm:$0xff] }
 0x124   : > { %4878 = vmatpush1.bf16.msra.mxu0 %v4877_v16  ;;  %v456_v16 = vld [vmem:[#allocation3 + $0x120] sm:$0xff] }
 0x125   : > { %4880 = vmatprep.subr.bf16.mxu0 %v4879_v17  ;;  %v458_v17 = vld [vmem:[#allocation3 + $0x130] sm:$0xff] }
 0x126   : > { %v4917_v20 = vpack.c.bf16 %v458_v17, %v456_v16  ;;  %v493_v17 = vld [vmem:[#allocation3 + $0x248] sm:$0xff] }
 0x127   : > { %823 = vmatmul.mubr.f32.vlgmr.msra.gmra.mrb[0].mxu0 %v6960_v14 }
 0x128   : > { %4882 = vmatpush1.bf16.msra.mxu0 %v4881_v23  ;;  %828 = vmatprep.mubr.f32.mxu0 %v6689_v0  ;;  %v462_v23 = vld [vmem:[#allocation3 + $0x150] sm:$0xff] }
 0x129   : > { %4884 = vmatprep.subr.bf16.mxu0 %v4883_v25  ;;  %v465_v25 = vld [vmem:[#allocation3 + $0x168] sm:$0xff]  ;;  %v4921_v27 = vpack.c.bf16 %v462_v23, %v460_v22  ;;  %v492_v22 = vld [vmem:[#allocation3 + $0x240] sm:$0xff]  ;;  %v494_v23 = vld [vmem:[#allocation3 + $0x250] sm:$0xff] }
 0x12a   : > { %v4923_v28 = vpack.c.bf16 %v467_v26, %v465_v25  ;;  %v497_v26 = vld [vmem:[#allocation3 + $0x268] sm:$0xff] }
 0x12b   : > { %829 = vmatmul.mubr.f32.gmra.mrb[2].mxu0 %v6964_v46  ;;  %v4899_v46 = vpack.c.bf16 %v443_v51, %v441_v50  ;;  %v478_v50 = vld [vmem:[#allocation3 + $0x1d0] sm:$0xff]  ;;  %v481_v51 = vld [vmem:[#allocation3 + $0x1e8] sm:$0xff] }
 0x12c   : > { %4886 = vmatpush1.bf16.msra.mxu0 %v4885_v31  ;;  %940 = vmatprep.mubr.f32.mxu0 %v853_v35  ;;  %v469_v31 = vld [vmem:[#allocation3 + $0x188] sm:$0xff]  ;;  %v468_v35 = vld [vmem:[#allocation3 + $0x180] sm:$0xff] }
 0x12d   : > { %4888 = vmatprep.subr.bf16.mxu0 %v4887_v32  ;;  %v471_v32 = vld [vmem:[#allocation3 + $0x198] sm:$0xff] }
 0x12e   : > { %v4927_v34 = vpack.c.bf16 %v471_v32, %v469_v31  ;;  %v501_v31 = vld [vmem:[#allocation3 + $0x288] sm:$0xff]  ;;  %v503_v32 = vld [vmem:[#allocation3 + $0x298] sm:$0xff] }
 0x130   : > { %4890 = vmatpush1.bf16.msra.mxu0 %v4889_v38  ;;  %v475_v38 = vld [vmem:[#allocation3 + $0x1b8] sm:$0xff] }
 0x131   : > { %4892 = vmatprep.subr.bf16.mxu0 %v4891_v39  ;;  %v4929_v39 = vpack.c.bf16 %v470_v36, %v468_v35  ;;  %v4931_v40 = vpack.c.bf16 %v475_v38, %v473_v37  ;;  %v500_v35 = vld [vmem:[#allocation3 + $0x280] sm:$0xff]  ;;  %v502_v36 = vld [vmem:[#allocation3 + $0x290] sm:$0xff]  ;;  %v505_v37 = vld [vmem:[#allocation3 + $0x2a8] sm:$0xff] }
 0x132   : > { %v507_v38 = vld [vmem:[#allocation3 + $0x2b8] sm:$0xff] }
 0x134   : > { %4894 = vmatpush1.bf16.msra.mxu0 %v4893_v45  ;;  %v479_v45 = vld [vmem:[#allocation3 + $0x1d8] sm:$0xff] }
 0x135   : > { %4896 = vmatprep.subr.bf16.mxu0 %v4895_v47  ;;  %v4933_v47 = vpack.c.bf16 %v474_v43, %v472_v41  ;;  %v4935_v48 = vpack.c.bf16 %v479_v45, %v477_v44  ;;  %v504_v41 = vld [vmem:[#allocation3 + $0x2a0] sm:$0xff]  ;;  %v506_v43 = vld [vmem:[#allocation3 + $0x2b0] sm:$0xff]  ;;  %v509_v44 = vld [vmem:[#allocation3 + $0x2c8] sm:$0xff] }
 0x136   : > { %v511_v45 = vld [vmem:[#allocation3 + $0x2d8] sm:$0xff] }
 0x138   : > { %4898 = vmatpush1.bf16.msra.mxu0 %v4897_v52  ;;  %v483_v52 = vld [vmem:[#allocation3 + $0x1f8] sm:$0xff] }
 0x139   : > { %4900 = vmatprep.subr.bf16.mxu0 %v4899_v46  ;;  %v4937_v46 = vpack.c.bf16 %v478_v50, %v476_v49  ;;  %v4939_v53 = vpack.c.bf16 %v483_v52, %v481_v51  ;;  %v508_v49 = vld [vmem:[#allocation3 + $0x2c0] sm:$0xff]  ;;  %v510_v50 = vld [vmem:[#allocation3 + $0x2d0] sm:$0xff]  ;;  %v513_v51 = vld [vmem:[#allocation3 + $0x2e8] sm:$0xff] }
 0x13a   : > { %v515_v52 = vld [vmem:[#allocation3 + $0x2f8] sm:$0xff] }
 0x13c   : > { %4902 = vmatpush1.bf16.msra.mxu0 %v4901_v57  ;;  %v485_v57 = vld [vmem:[#allocation3 + $0x208] sm:$0xff] }
 0x13d   : > { %4904 = vmatprep.subr.bf16.mxu0 %v4903_v58  ;;  %v487_v58 = vld [vmem:[#allocation3 + $0x218] sm:$0xff] }
 0x140   : > { %4906 = vmatpush1.bf16.msra.mxu0 %v4905_v63  ;;  %v4943_v63 = vpack.c.bf16 %v487_v58, %v485_v57  ;;  %v519_v57 = vld [vmem:[#allocation3 + $0x318] sm:$0xff]  ;;  %v4973_v58 = vpack.c.bf16 %v514_v55, %v512_v54  ;;  %v418_v55 = vld [vmem:[#allocation2 + $0x50] sm:$0x7f] }
 0x141   : > { %4908 = vmatprep.subr.bf16.mxu0 %v4907_v1  ;;  %v484_v1 = vld [vmem:[#allocation3 + $0x200] sm:$0xff]  ;;  %v4975_v59 = vpack.c.bf16 %v519_v57, %v517_v56  ;;  %v1048_v56 = vld [vmem:[#allocation3 + $0x828] sm:$0xff]  ;;  %v1050_v57 = vld [vmem:[#allocation3 + $0x838] sm:$0xff] }
 0x142   : > { %v4945_v9 = vpack.c.bf16 %v486_v2, %v484_v1  ;;  %v523_v1 = vld [vmem:[#allocation3 + $0x338] sm:$0xff] }
 0x144   : > { %4910 = vmatpush1.bf16.msra.mxu0 %v4909_v6  ;;  %v491_v6 = vld [vmem:[#allocation3 + $0x238] sm:$0xff] }
 0x145   : > { %4912 = vmatprep.subr.bf16.mxu0 %v4911_v7  ;;  %v411_v7 = vld [vmem:[#allocation2 + $0x18] sm:$0x80]  ;;  %v4947_v0 = vpack.c.bf16 %v491_v6, %v489_v5  ;;  %v522_v5 = vld [vmem:[#allocation3 + $0x330] sm:$0xff]  ;;  %v525_v6 = vld [vmem:[#allocation3 + $0x348] sm:$0xff] }
 0x146   : > { %v857_v16 = vrot.slane %v411_v7, 7  ;;  %v527_v7 = vld [vmem:[#allocation3 + $0x358] sm:$0xff] }
 0x148   : > { %4914 = vmatpush1.bf16.msra.mxu0 %v4913_v13  ;;  %v490_v13 = vld [vmem:[#allocation3 + $0x230] sm:$0xff]  ;;  %v859_v25 = vsel %vm847_vm0, %v857_v16, %v6979_v60 }
 0x149   : > { %4916 = vmatprep.subr.bf16.mxu0 %v4915_v15  ;;  %v863_v15 = vsel %vm847_vm0, %v852_v24, %v862_v3  ;;  %v4949_v19 = vpack.c.bf16 %v490_v13, %v488_v12  ;;  %v4953_v24 = vpack.c.bf16 %v494_v23, %v492_v22  ;;  %v529_v12 = vld [vmem:[#allocation3 + $0x368] sm:$0xff]  ;;  %v531_v13 = vld [vmem:[#allocation3 + $0x378] sm:$0xff]  ;;  %v532_v23 = vld [vmem:[#allocation3 + $0x380] sm:$0xff] }
 0x14a   : > { %v4987_v16 = vpack.c.bf16 %v531_v13, %v529_v12  ;;  %v1053_v12 = vld [vmem:[#allocation3 + $0x850] sm:$0xff]  ;;  %v1056_v13 = vld [vmem:[#allocation3 + $0x868] sm:$0xff] }
 0x14c   : > { %4918 = vmatpush1.bf16.msra.mxu0 %v4917_v20  ;;  %v861_v20 = vsel %vm847_vm0, %v6979_v60, %v860_v11  ;;  %v524_v11 = vld [vmem:[#allocation3 + $0x340] sm:$0xff] }
 0x14d   : > { %4920 = vmatprep.subr.bf16.mxu0 %v4919_v21  ;;  %v4951_v21 = vpack.c.bf16 %v495_v18, %v493_v17  ;;  %v528_v17 = vld [vmem:[#allocation3 + $0x360] sm:$0xff]  ;;  %v530_v18 = vld [vmem:[#allocation3 + $0x370] sm:$0xff] }
 0x150   : > { %4922 = vmatpush1.bf16.msra.mxu0 %v4921_v27  ;;  %v499_v27 = vld [vmem:[#allocation3 + $0x278] sm:$0xff] }
 0x151   : > { %4924 = vmatprep.subr.bf16.mxu0 %v4923_v28  ;;  %v4955_v28 = vpack.c.bf16 %v499_v27, %v497_v26  ;;  %v537_v26 = vld [vmem:[#allocation3 + $0x3a8] sm:$0xff]  ;;  %v539_v27 = vld [vmem:[#allocation3 + $0x3b8] sm:$0xff] }
 0x154   : > { %4926 = vmatpush1.bf16.msra.mxu0 %v4925_v33  ;;  %v4957_v33 = vpack.c.bf16 %v498_v30, %v496_v29  ;;  %v536_v29 = vld [vmem:[#allocation3 + $0x3a0] sm:$0xff]  ;;  %v538_v30 = vld [vmem:[#allocation3 + $0x3b0] sm:$0xff] }
 0x155   : > { %4928 = vmatprep.subr.bf16.mxu0 %v4927_v34  ;;  %v4959_v34 = vpack.c.bf16 %v503_v32, %v501_v31  ;;  %v541_v31 = vld [vmem:[#allocation3 + $0x3c8] sm:$0xff]  ;;  %v543_v32 = vld [vmem:[#allocation3 + $0x3d8] sm:$0xff] }
 0x158   : > { %4930 = vmatpush1.bf16.msra.mxu0 %v4929_v39  ;;  %v4961_v39 = vpack.c.bf16 %v502_v36, %v500_v35  ;;  %v540_v35 = vld [vmem:[#allocation3 + $0x3c0] sm:$0xff]  ;;  %v542_v36 = vld [vmem:[#allocation3 + $0x3d0] sm:$0xff] }
 0x159   : > { %4932 = vmatprep.subr.bf16.mxu0 %v4931_v40  ;;  %v4963_v40 = vpack.c.bf16 %v507_v38, %v505_v37  ;;  %v545_v37 = vld [vmem:[#allocation3 + $0x3e8] sm:$0xff]  ;;  %v547_v38 = vld [vmem:[#allocation3 + $0x3f8] sm:$0xff] }
 0x15c   : > { %4934 = vmatpush1.bf16.msra.mxu0 %v4933_v47  ;;  %v4965_v47 = vpack.c.bf16 %v506_v43, %v504_v41  ;;  %v544_v41 = vld [vmem:[#allocation3 + $0x3e0] sm:$0xff]  ;;  %v546_v43 = vld [vmem:[#allocation3 + $0x3f0] sm:$0xff] }
 0x15d   : > { %4936 = vmatprep.subr.bf16.mxu0 %v4935_v48  ;;  %v4967_v48 = vpack.c.bf16 %v511_v45, %v509_v44  ;;  %v410_v44 = vld [vmem:[#allocation2 + $0x10] sm:$0x80]  ;;  %v1044_v45 = vld [vmem:[#allocation3 + $0x808] sm:$0xff] }
 0x160   : > { %4938 = vmatpush1.bf16.msra.mxu0 %v4937_v46  ;;  %v4969_v46 = vpack.c.bf16 %v510_v50, %v508_v49  ;;  %v855_v49 = vrot.slane %v6960_v14, 7  ;;  %v5005_v50 = vpack.c.bf16 %v546_v43, %v544_v41  ;;  %v1061_v43 = vld [vmem:[#allocation3 + $0x890] sm:$0xff] }
 0x161   : > { %4940 = vmatprep.subr.bf16.mxu0 %v4939_v53  ;;  %v4971_v53 = vpack.c.bf16 %v515_v52, %v513_v51  ;;  %v854_v51 = vrot.slane %v410_v44, 7  ;;  %v1553_v44 = vld [vmem:[#allocation3 + $0x1068] sm:$0xff] }
 0x164   : > { %4942 = vmatpush1.bf16.msra.mxu0 %v4941_v61  ;;  %v516_v61 = vld [vmem:[#allocation3 + $0x300] sm:$0xff] }
 0x165   : > { %4944 = vmatprep.subr.bf16.mxu0 %v4943_v63  ;;  %v521_v63 = vld [vmem:[#allocation3 + $0x328] sm:$0xff]  ;;  %v4977_v2 = vpack.c.bf16 %v518_v62, %v516_v61  ;;  %v864_v62 = vrot.slane %v418_v55, 7  ;;  %v1065_v55 = vld [vmem:[#allocation3 + $0x8b0] sm:$0xff] }
 0x166   : > { %v4979_v3 = vpack.c.bf16 %v523_v1, %v521_v63  ;;  %v5011_v63 = vpack.c.bf16 %v1050_v57, %v1048_v56  ;;  %v1047_v1 = vld [vmem:[#allocation3 + $0x820] sm:$0xff]  ;;  %v1557_v56 = vld [vmem:[#allocation3 + $0x1088] sm:$0xff]  ;;  %v1559_v57 = vld [vmem:[#allocation3 + $0x1098] sm:$0xff] }
 0x167   : > { %941 = vmatmul.mubr.f32.vlgmr.msra.gmra.mrb[0].mxu0 %v850_v8  ;;  %v4981_v8 = vpack.c.bf16 %v522_v5, %v520_v4  ;;  %v1188_v5 = vrot.slane %v6956_v10, 1 }
 0x168   : > { %4946 = vmatpush1.bf16.msra.mxu0 %v4945_v9  ;;  %946 = vmatprep.mubr.f32.mxu0 %v863_v15  ;;  %v4983_v9 = vpack.c.bf16 %v527_v7, %v525_v6  ;;  %v1052_v6 = vld [vmem:[#allocation3 + $0x848] sm:$0xff]  ;;  %v1054_v7 = vld [vmem:[#allocation3 + $0x858] sm:$0xff] }
 0x169   : > { %4948 = vmatprep.subr.bf16.mxu0 %v4947_v0  ;;  %v526_v0 = vld [vmem:[#allocation3 + $0x350] sm:$0xff] }
 0x16a   : > { %v4985_v15 = vpack.c.bf16 %v526_v0, %v524_v11  ;;  %v5015_v11 = vpack.c.bf16 %v1054_v7, %v1052_v6  ;;  %v1051_v0 = vld [vmem:[#allocation3 + $0x840] sm:$0xff]  ;;  %v1069_v6 = vld [vmem:[#allocation3 + $0x8d0] sm:$0xff]  ;;  %v1561_v7 = vld [vmem:[#allocation3 + $0x10a8] sm:$0xff] }
 0x16b   : > { %947 = vmatmul.mubr.f32.gmra.mrb[2].mxu0 %v861_v20  ;;  %v535_v20 = vld [vmem:[#allocation3 + $0x398] sm:$0xff] }
 0x16c   : > { %4950 = vmatpush1.bf16.msra.mxu0 %v4949_v19  ;;  %1017 = vmatprep.mubr.f32.mxu0 %v859_v25  ;;  %v533_v19 = vld [vmem:[#allocation3 + $0x388] sm:$0xff]  ;;  %v534_v25 = vld [vmem:[#allocation3 + $0x390] sm:$0xff] }
 0x16d   : > { %4952 = vmatprep.subr.bf16.mxu0 %v4951_v21  ;;  %v4989_v21 = vpack.c.bf16 %v530_v18, %v528_v17  ;;  %v4991_v22 = vpack.c.bf16 %v535_v20, %v533_v19  ;;  %v1057_v17 = vld [vmem:[#allocation3 + $0x870] sm:$0xff]  ;;  %v1541_v18 = vld [vmem:[#allocation3 + $0x1008] sm:$0xff]  ;;  %v1543_v19 = vld [vmem:[#allocation3 + $0x1018] sm:$0xff] }
 0x16e   : > { %v1540_v20 = vld [vmem:[#allocation3 + $0x1000] sm:$0xff] }
 0x170   : > { %4954 = vmatpush1.bf16.msra.mxu0 %v4953_v24  ;;  %v4993_v24 = vpack.c.bf16 %v534_v25, %v532_v23  ;;  %v1542_v23 = vld [vmem:[#allocation3 + $0x1010] sm:$0xff]  ;;  %v1545_v25 = vld [vmem:[#allocation3 + $0x1028] sm:$0xff] }
 0x171   : > { %4956 = vmatprep.subr.bf16.mxu0 %v4955_v28  ;;  %v4995_v28 = vpack.c.bf16 %v539_v27, %v537_v26  ;;  %v1547_v26 = vld [vmem:[#allocation3 + $0x1038] sm:$0xff] }
 0x174   : > { %4958 = vmatpush1.bf16.msra.mxu0 %v4957_v33  ;;  %v4997_v33 = vpack.c.bf16 %v538_v30, %v536_v29  ;;  %v1544_v29 = vld [vmem:[#allocation3 + $0x1020] sm:$0xff]  ;;  %v1546_v30 = vld [vmem:[#allocation3 + $0x1030] sm:$0xff] }
 0x175   : > { %4960 = vmatprep.subr.bf16.mxu0 %v4959_v34  ;;  %v4999_v34 = vpack.c.bf16 %v543_v32, %v541_v31  ;;  %v1549_v31 = vld [vmem:[#allocation3 + $0x1048] sm:$0xff] }
 0x176   : > { %v1060_v32 = vld [vmem:[#allocation3 + $0x888] sm:$0xff] }
 0x178   : > { %4962 = vmatpush1.bf16.msra.mxu0 %v4961_v39  ;;  %v5001_v39 = vpack.c.bf16 %v542_v36, %v540_v35  ;;  %v5141_v35 = vpack.c.bf16 %v1546_v30, %v1544_v29  ;;  %v1077_v30 = vld [vmem:[#allocation3 + $0x910] sm:$0xff] }
 0x179   : > { %4964 = vmatprep.subr.bf16.mxu0 %v4963_v40  ;;  %v5003_v40 = vpack.c.bf16 %v547_v38, %v545_v37  ;;  %v1059_v37 = vld [vmem:[#allocation3 + $0x880] sm:$0xff] }
 0x17c   : > { %4966 = vmatpush1.bf16.msra.mxu0 %v4965_v47  ;;  %v1046_v47 = vld [vmem:[#allocation3 + $0x818] sm:$0xff] }
 0x17d   : > { %4968 = vmatprep.subr.bf16.mxu0 %v4967_v48  ;;  %v419_v48 = vld [vmem:[#allocation2 + $0x58] sm:$0x7f]  ;;  %v5007_v52 = vpack.c.bf16 %v1046_v47, %v1044_v45  ;;  %v1064_v47 = vld [vmem:[#allocation3 + $0x8a8] sm:$0xff] }
 0x17e   : > { %v866_v54 = vrot.slane %v419_v48, 7  ;;  %v1555_v45 = vld [vmem:[#allocation3 + $0x1078] sm:$0xff] }
 0x17f   : > { %v1066_v48 = vld [vmem:[#allocation3 + $0x8b8] sm:$0xff] }
 0x180   : > { %4970 = vmatpush1.bf16.msra.mxu0 %v4969_v46  ;;  %v1043_v46 = vld [vmem:[#allocation3 + $0x800] sm:$0xff] }
 0x181   : > { %4972 = vmatprep.subr.bf16.mxu0 %v4971_v53  ;;  %v1045_v53 = vld [vmem:[#allocation3 + $0x810] sm:$0xff] }
 0x182   : > { %v5009_v61 = vpack.c.bf16 %v1045_v53, %v1043_v46  ;;  %v1552_v46 = vld [vmem:[#allocation3 + $0x1060] sm:$0xff]  ;;  %v1554_v53 = vld [vmem:[#allocation3 + $0x1070] sm:$0xff] }
 0x184   : > { %4974 = vmatpush1.bf16.msra.mxu0 %v4973_v58  ;;  %v1031_v58 = vld [vmem:[#allocation2 + $0x28] sm:$0xfe] }
 0x185   : > { %4976 = vmatprep.subr.bf16.mxu0 %v4975_v59  ;;  %v856_v59 = vsel %vm847_vm0, %v854_v51, %v855_v49  ;;  %v1187_v4 = vrot.slane %v1031_v58, 1  ;;  %v1063_v51 = vld [vmem:[#allocation3 + $0x8a0] sm:$0xff]  ;;  %v1068_v58 = vld [vmem:[#allocation3 + $0x8c8] sm:$0xff] }
 0x188   : > { %4978 = vmatpush1.bf16.msra.mxu0 %v4977_v2  ;;  %v1049_v2 = vld [vmem:[#allocation3 + $0x830] sm:$0xff] }
 0x189   : > { %4980 = vmatprep.subr.bf16.mxu0 %v4979_v3  ;;  %v867_v3 = vsel %vm847_vm0, %v6979_v60, %v866_v54  ;;  %v1189_v60 = vsel %vm1183_vm1, %v1187_v4, %v1188_v5  ;;  %v5027_v54 = vpack.c.bf16 %v1066_v48, %v1064_v47  ;;  %v1084_v47 = vld [vmem:[#allocation3 + $0x948] sm:$0xff]  ;;  %v1086_v48 = vld [vmem:[#allocation3 + $0x958] sm:$0xff] }
 0x18c   : > { %4982 = vmatpush1.bf16.msra.mxu0 %v4981_v8  ;;  %v5013_v8 = vpack.c.bf16 %v1049_v2, %v1047_v1  ;;  %v5151_v1 = vpack.c.bf16 %v1559_v57, %v1557_v56  ;;  %v1556_v2 = vld [vmem:[#allocation3 + $0x1080] sm:$0xff]  ;;  %v1577_v56 = vld [vmem:[#allocation3 + $0x1128] sm:$0xff]  ;;  %v1579_v57 = vld [vmem:[#allocation3 + $0x1138] sm:$0xff] }
 0x18d   : > { %4984 = vmatprep.subr.bf16.mxu0 %v4983_v9  ;;  %v865_v9 = vsel %vm847_vm0, %v855_v49, %v864_v62  ;;  %v5029_v62 = vpack.c.bf16 %v1065_v55, %v1063_v51  ;;  %v1083_v51 = vld [vmem:[#allocation3 + $0x940] sm:$0xff]  ;;  %v1085_v55 = vld [vmem:[#allocation3 + $0x950] sm:$0xff] }
 0x190   : > { %4986 = vmatpush1.bf16.msra.mxu0 %v4985_v15  ;;  %v1058_v15 = vld [vmem:[#allocation3 + $0x878] sm:$0xff] }
 0x191   : > { %4988 = vmatprep.subr.bf16.mxu0 %v4987_v16  ;;  %v1055_v16 = vld [vmem:[#allocation3 + $0x860] sm:$0xff]  ;;  %v5019_v27 = vpack.c.bf16 %v1058_v15, %v1056_v13 }
 0x192   : > { %v5021_v36 = vpack.c.bf16 %v1057_v17, %v1055_v16  ;;  %v1560_v15 = vld [vmem:[#allocation3 + $0x10a0] sm:$0xff]  ;;  %v1562_v16 = vld [vmem:[#allocation3 + $0x10b0] sm:$0xff] }
 0x194   : > { %4990 = vmatpush1.bf16.msra.mxu0 %v4989_v21  ;;  %v5017_v21 = vpack.c.bf16 %v1053_v12, %v1051_v0 }
 0x195   : > { %4992 = vmatprep.subr.bf16.mxu0 %v4991_v22  ;;  %v5135_v22 = vpack.c.bf16 %v1543_v19, %v1541_v18  ;;  %v1073_v18 = vld [vmem:[#allocation3 + $0x8f0] sm:$0xff]  ;;  %v1565_v19 = vld [vmem:[#allocation3 + $0x10c8] sm:$0xff] }
 0x197   : > { %5136 = vmatprep.subr.bf16.mxu1 %v5135_v22  ;;  %v1078_v22 = vld [vmem:[#allocation3 + $0x918] sm:$0xff] }
 0x198   : > { %4994 = vmatpush1.bf16.msra.mxu0 %v4993_v24  ;;  %v5137_v24 = vpack.c.bf16 %v1542_v23, %v1540_v20  ;;  %v1567_v20 = vld [vmem:[#allocation3 + $0x10d8] sm:$0xff]  ;;  %v5157_v23 = vpack.c.bf16 %v1562_v16, %v1560_v15  ;;  %v1580_v15 = vld [vmem:[#allocation3 + $0x1140] sm:$0xff]  ;;  %v1582_v16 = vld [vmem:[#allocation3 + $0x1150] sm:$0xff] }
 0x199   : > { %4996 = vmatprep.subr.bf16.mxu0 %v4995_v28  ;;  %v5139_v28 = vpack.c.bf16 %v1547_v26, %v1545_v25  ;;  %v1075_v26 = vld [vmem:[#allocation3 + $0x900] sm:$0xff] }
 0x19a   : > { %5138 = vmatpush1.bf16.msra.mxu1 %v5137_v24  ;;  %v1564_v24 = vld [vmem:[#allocation3 + $0x10c0] sm:$0xff] }
 0x19b   : > { %5140 = vmatprep.subr.bf16.mxu1 %v5139_v28  ;;  %v1566_v28 = vld [vmem:[#allocation3 + $0x10d0] sm:$0xff] }
 0x19c   : > { %4998 = vmatpush1.bf16.msra.mxu0 %v4997_v33  ;;  %v1062_v33 = vld [vmem:[#allocation3 + $0x898] sm:$0xff] }
 0x19d   : > { %5000 = vmatprep.subr.bf16.mxu0 %v4999_v34  ;;  %v1551_v34 = vld [vmem:[#allocation3 + $0x1058] sm:$0xff]  ;;  %v5023_v41 = vpack.c.bf16 %v1062_v33, %v1060_v32  ;;  %v1080_v33 = vld [vmem:[#allocation3 + $0x928] sm:$0xff] }
 0x19e   : > { %v5143_v38 = vpack.c.bf16 %v1551_v34, %v1549_v31  ;;  %5142 = vmatpush1.bf16.msra.mxu1 %v5141_v35  ;;  %v1569_v31 = vld [vmem:[#allocation3 + $0x10e8] sm:$0xff]  ;;  %v1571_v32 = vld [vmem:[#allocation3 + $0x10f8] sm:$0xff]  ;;  %v5161_v35 = vpack.c.bf16 %v1566_v28, %v1564_v24  ;;  %v1584_v24 = vld [vmem:[#allocation3 + $0x1160] sm:$0xff] }
 0x19f   : > { %v1082_v34 = vld [vmem:[#allocation3 + $0x938] sm:$0xff]  ;;  %v1586_v28 = vld [vmem:[#allocation3 + $0x1170] sm:$0xff] }
 0x1a0   : > { %5002 = vmatpush1.bf16.msra.mxu0 %v5001_v39  ;;  %v1548_v39 = vld [vmem:[#allocation3 + $0x1040] sm:$0xff]  ;;  %5144 = vmatprep.subr.bf16.mxu1 %v5143_v38  ;;  %v5163_v38 = vpack.c.bf16 %v1571_v32, %v1569_v31  ;;  %v1589_v31 = vld [vmem:[#allocation3 + $0x1188] sm:$0xff]  ;;  %v1591_v32 = vld [vmem:[#allocation3 + $0x1198] sm:$0xff] }
 0x1a1   : > { %5004 = vmatprep.subr.bf16.mxu0 %v5003_v40  ;;  %v1550_v40 = vld [vmem:[#allocation3 + $0x1050] sm:$0xff] }
 0x1a2   : > { %v5145_v49 = vpack.c.bf16 %v1550_v40, %v1548_v39  ;;  %v1568_v39 = vld [vmem:[#allocation3 + $0x10e0] sm:$0xff]  ;;  %v1570_v40 = vld [vmem:[#allocation3 + $0x10f0] sm:$0xff] }
 0x1a4   : > { %5006 = vmatpush1.bf16.msra.mxu0 %v5005_v50  ;;  %v5025_v50 = vpack.c.bf16 %v1061_v43, %v1059_v37  ;;  %5146 = vmatpush1.bf16.msra.mxu1 %v5145_v49  ;;  %v1079_v37 = vld [vmem:[#allocation3 + $0x920] sm:$0xff]  ;;  %v1081_v43 = vld [vmem:[#allocation3 + $0x930] sm:$0xff]  ;;  %v5165_v49 = vpack.c.bf16 %v1570_v40, %v1568_v39 }
 0x1a5   : > { %5008 = vmatprep.subr.bf16.mxu0 %v5007_v52  ;;  %v5147_v52 = vpack.c.bf16 %v1555_v45, %v1553_v44  ;;  %v1573_v44 = vld [vmem:[#allocation3 + $0x1108] sm:$0xff]  ;;  %v1575_v45 = vld [vmem:[#allocation3 + $0x1118] sm:$0xff]  ;;  %v1590_v39 = vld [vmem:[#allocation3 + $0x1190] sm:$0xff] }
 0x1a7   : > { %1018 = vmatmul.mubr.f32.vlgmr.msra.gmra.mrb[0].mxu0 %v856_v59  ;;  %v1070_v59 = vld [vmem:[#allocation3 + $0x8d8] sm:$0xff]  ;;  %5148 = vmatprep.subr.bf16.mxu1 %v5147_v52  ;;  %v5167_v52 = vpack.c.bf16 %v1575_v45, %v1573_v44  ;;  %v1104_v44 = vld [vmem:[#allocation3 + $0x9e8] sm:$0xff] }
 0x1a8   : > { %5010 = vmatpush1.bf16.msra.mxu0 %v5009_v61  ;;  %1023 = vmatprep.mubr.f32.mxu0 %v867_v3  ;;  %v5149_v61 = vpack.c.bf16 %v1554_v53, %v1552_v46  ;;  %v1558_v3 = vld [vmem:[#allocation3 + $0x1090] sm:$0xff]  ;;  %v5031_v4 = vpack.c.bf16 %v1070_v59, %v1068_v58  ;;  %v1572_v46 = vld [vmem:[#allocation3 + $0x1100] sm:$0xff]  ;;  %v1088_v58 = vld [vmem:[#allocation3 + $0x968] sm:$0xff] }
 0x1a9   : > { %5012 = vmatprep.subr.bf16.mxu0 %v5011_v63  ;;  %v1067_v63 = vld [vmem:[#allocation3 + $0x8c0] sm:$0xff]  ;;  %v5153_v0 = vpack.c.bf16 %v1558_v3, %v1556_v2  ;;  %v1574_v53 = vld [vmem:[#allocation3 + $0x1110] sm:$0xff]  ;;  %v1090_v59 = vld [vmem:[#allocation3 + $0x978] sm:$0xff] }
 0x1aa   : > { %5150 = vmatpush1.bf16.msra.mxu1 %v5149_v61  ;;  %v5033_v12 = vpack.c.bf16 %v1069_v6, %v1067_v63  ;;  %v5169_v61 = vpack.c.bf16 %v1574_v53, %v1572_v46  ;;  %v1087_v63 = vld [vmem:[#allocation3 + $0x960] sm:$0xff]  ;;  %v1578_v3 = vld [vmem:[#allocation3 + $0x1130] sm:$0xff]  ;;  %v1106_v45 = vld [vmem:[#allocation3 + $0x9f8] sm:$0xff] }
 0x1ab   : > { %1024 = vmatmul.mubr.f32.gmra.mrb[2].mxu0 %v865_v9  ;;  %v1072_v9 = vld [vmem:[#allocation3 + $0x8e8] sm:$0xff]  ;;  %5152 = vmatprep.subr.bf16.mxu1 %v5151_v1  ;;  %v5171_v1 = vpack.c.bf16 %v1579_v57, %v1577_v56  ;;  %v1576_v2 = vld [vmem:[#allocation3 + $0x1120] sm:$0xff]  ;;  %v1089_v6 = vld [vmem:[#allocation3 + $0x970] sm:$0xff] }
 0x1ac   : > { %5014 = vmatpush1.bf16.msra.mxu0 %v5013_v8  ;;  %1276 = vmatprep.mubr.f32.mxu0 %v1189_v60  ;;  %v1563_v8 = vld [vmem:[#allocation3 + $0x10b8] sm:$0xff]  ;;  %v1071_v60 = vld [vmem:[#allocation3 + $0x8e0] sm:$0xff]  ;;  %v1108_v46 = vld [vmem:[#allocation3 + $0xa08] sm:$0xff] }
 0x1ad   : > { %5016 = vmatprep.subr.bf16.mxu0 %v5015_v11  ;;  %v1074_v11 = vld [vmem:[#allocation3 + $0x8f8] sm:$0xff]  ;;  %v5155_v13 = vpack.c.bf16 %v1563_v8, %v1561_v7  ;;  %v5037_v25 = vpack.c.bf16 %v1073_v18, %v1071_v60  ;;  %v1581_v7 = vld [vmem:[#allocation3 + $0x1148] sm:$0xff]  ;;  %v1091_v60 = vld [vmem:[#allocation3 + $0x980] sm:$0xff] }
 0x1ae   : > { %v5035_v17 = vpack.c.bf16 %v1074_v11, %v1072_v9  ;;  %5154 = vmatpush1.bf16.msra.mxu1 %v5153_v0  ;;  %v1583_v8 = vld [vmem:[#allocation3 + $0x1158] sm:$0xff]  ;;  %v1092_v9 = vld [vmem:[#allocation3 + $0x988] sm:$0xff]  ;;  %v5173_v0 = vpack.c.bf16 %v1578_v3, %v1576_v2  ;;  %v1093_v18 = vld [vmem:[#allocation3 + $0x990] sm:$0xff] }
 0x1af   : > { %5156 = vmatprep.subr.bf16.mxu1 %v5155_v13  ;;  %v1094_v11 = vld [vmem:[#allocation3 + $0x998] sm:$0xff]  ;;  %v5175_v13 = vpack.c.bf16 %v1583_v8, %v1581_v7  ;;  %v6999_v57 = vld [vmem:[#allocation2 + $0x20] sm:$0xff]  ;;  %v1112_v2 = vld [vmem:[#allocation3 + $0xa28] sm:$0xff] }
 0x1b0   : > { %5018 = vmatpush1.bf16.msra.mxu0 %v5017_v21  ;;  %v1076_v21 = vld [vmem:[#allocation3 + $0x908] sm:$0xff]  ;;  %v1110_v53 = vld [vmem:[#allocation3 + $0xa18] sm:$0xff] }
 0x1b1   : > { %5020 = vmatprep.subr.bf16.mxu0 %v5019_v27  ;;  %v5159_v27 = vpack.c.bf16 %v1567_v20, %v1565_v19  ;;  %v5039_v29 = vpack.c.bf16 %v1078_v22, %v1076_v21  ;;  %v1585_v19 = vld [vmem:[#allocation3 + $0x1168] sm:$0xff]  ;;  %v1587_v20 = vld [vmem:[#allocation3 + $0x1178] sm:$0xff] }
 0x1b2   : > { %5158 = vmatpush1.bf16.msra.mxu1 %v5157_v23  ;;  %v1096_v21 = vld [vmem:[#allocation3 + $0x9a8] sm:$0xff]  ;;  %v1098_v22 = vld [vmem:[#allocation3 + $0x9b8] sm:$0xff]  ;;  %v5177_v23 = vpack.c.bf16 %v1582_v16, %v1580_v15 }
 0x1b3   : > { %5160 = vmatprep.subr.bf16.mxu1 %v5159_v27  ;;  %v5179_v27 = vpack.c.bf16 %v1587_v20, %v1585_v19  ;;  %v1114_v3 = vld [vmem:[#allocation3 + $0xa38] sm:$0xff]  ;;  %v1115_v19 = vld [vmem:[#allocation3 + $0xa40] sm:$0xff]  ;;  %v1117_v20 = vld [vmem:[#allocation3 + $0xa50] sm:$0xff] }
 0x1b4   : > { %5022 = vmatpush1.bf16.msra.mxu0 %v5021_v36  ;;  %v5041_v36 = vpack.c.bf16 %v1077_v30, %v1075_v26  ;;  %v1095_v26 = vld [vmem:[#allocation3 + $0x9a0] sm:$0xff]  ;;  %v1097_v30 = vld [vmem:[#allocation3 + $0x9b0] sm:$0xff]  ;;  %v1118_v15 = vld [vmem:[#allocation3 + $0xa58] sm:$0xff] }
 0x1b5   : > { %5024 = vmatprep.subr.bf16.mxu0 %v5023_v41  ;;  %v5043_v41 = vpack.c.bf16 %v1082_v34, %v1080_v33  ;;  %v1100_v33 = vld [vmem:[#allocation3 + $0x9c8] sm:$0xff]  ;;  %v1102_v34 = vld [vmem:[#allocation3 + $0x9d8] sm:$0xff] }
 0x1b6   : > { %5162 = vmatpush1.bf16.msra.mxu1 %v5161_v35  ;;  %v5181_v35 = vpack.c.bf16 %v1586_v28, %v1584_v24  ;;  %v5063_v40 = vpack.c.bf16 %v1102_v34, %v1100_v33  ;;  %v1124_v24 = vld [vmem:[#allocation3 + $0xa88] sm:$0xff]  ;;  %v1126_v28 = vld [vmem:[#allocation3 + $0xa98] sm:$0xff] }
 0x1b7   : > { %5164 = vmatprep.subr.bf16.mxu1 %v5163_v38  ;;  %v1588_v38 = vld [vmem:[#allocation3 + $0x1180] sm:$0xff]  ;;  %v1128_v33 = vld [vmem:[#allocation3 + $0xaa8] sm:$0xff]  ;;  %v1130_v34 = vld [vmem:[#allocation3 + $0xab8] sm:$0xff] }
 0x1b8   : > { %5026 = vmatpush1.bf16.msra.mxu0 %v5025_v50  ;;  %v5045_v50 = vpack.c.bf16 %v1081_v43, %v1079_v37  ;;  %v5183_v37 = vpack.c.bf16 %v1591_v32, %v1589_v31  ;;  %v1101_v43 = vld [vmem:[#allocation3 + $0x9d0] sm:$0xff]  ;;  %v1123_v31 = vld [vmem:[#allocation3 + $0xa80] sm:$0xff] }
 0x1b9   : > { %5028 = vmatprep.subr.bf16.mxu0 %v5027_v54  ;;  %v5047_v54 = vpack.c.bf16 %v1086_v48, %v1084_v47  ;;  %v5185_v47 = vpack.c.bf16 %v1590_v39, %v1588_v38  ;;  %v1125_v32 = vld [vmem:[#allocation3 + $0xa90] sm:$0xff]  ;;  %v1132_v39 = vld [vmem:[#allocation3 + $0xac8] sm:$0xff] }
 0x1ba   : > { %5166 = vmatpush1.bf16.msra.mxu1 %v5165_v49  ;;  %v5067_v49 = vpack.c.bf16 %v1106_v45, %v1104_v44  ;;  %v1129_v38 = vld [vmem:[#allocation3 + $0xab0] sm:$0xff]  ;;  %v1131_v44 = vld [vmem:[#allocation3 + $0xac0] sm:$0xff] }
 0x1bb   : > { %5168 = vmatprep.subr.bf16.mxu1 %v5167_v52  ;;  %v1030_v52 = vld [vmem:[#allocation2 + $0x20] sm:$0xfe]  ;;  %v1133_v45 = vld [vmem:[#allocation3 + $0xad0] sm:$0xff] }
 0x1bc   : > { %5030 = vmatpush1.bf16.msra.mxu0 %v5029_v62  ;;  %v5049_v62 = vpack.c.bf16 %v1085_v55, %v1083_v51  ;;  %v1105_v51 = vld [vmem:[#allocation3 + $0x9f0] sm:$0xff]  ;;  %v1184_v56 = vrot.slane %v1030_v52, 1 }
 0x1bd   : > { %5032 = vmatprep.subr.bf16.mxu0 %v5031_v4  ;;  %v5051_v4 = vpack.c.bf16 %v1090_v59, %v1088_v58  ;;  %v7002_v58 = vrot.slane %v6999_v57, 1  ;;  %v5071_v59 = vpack.c.bf16 %v1110_v53, %v1108_v46  ;;  %v1137_v52 = vld [vmem:[#allocation3 + $0xaf0] sm:$0xff]  ;;  %v1140_v46 = vld [vmem:[#allocation3 + $0xb08] sm:$0xff]  ;;  %v1142_v53 = vld [vmem:[#allocation3 + $0xb18] sm:$0xff] }
 0x1be   : > { %5170 = vmatpush1.bf16.msra.mxu1 %v5169_v61  ;;  %v1107_v61 = vld [vmem:[#allocation3 + $0xa00] sm:$0xff] }
 0x1bf   : > { %5172 = vmatprep.subr.bf16.mxu1 %v5171_v1  ;;  %v1038_v1 = vld [vmem:[#allocation2 + $0x60] sm:$0x1] }
 0x1c0   : > { %5034 = vmatpush1.bf16.msra.mxu0 %v5033_v12  ;;  %v5053_v12 = vpack.c.bf16 %v1089_v6, %v1087_v63  ;;  %v1186_v6 = vsel %vm1183_vm1, %v1184_v56, %v7002_v58  ;;  %v1196_v8 = vrot.slane %v1038_v1, 1  ;;  %v1139_v56 = vld [vmem:[#allocation3 + $0xb00] sm:$0xff] }
 0x1c1   : > { %5036 = vmatprep.subr.bf16.mxu0 %v5035_v17  ;;  %v5055_v17 = vpack.c.bf16 %v1094_v11, %v1092_v9  ;;  %v5075_v9 = vpack.c.bf16 %v1114_v3, %v1112_v2  ;;  %v1111_v11 = vld [vmem:[#allocation3 + $0xa20] sm:$0xff]  ;;  %v1145_v3 = vld [vmem:[#allocation3 + $0xb30] sm:$0xff] }
 0x1c2   : > { %5174 = vmatpush1.bf16.msra.mxu1 %v5173_v0  ;;  %v1113_v0 = vld [vmem:[#allocation3 + $0xa30] sm:$0xff]  ;;  %v1143_v2 = vld [vmem:[#allocation3 + $0xb20] sm:$0xff] }
 0x1c3   : > { %5176 = vmatprep.subr.bf16.mxu1 %v5175_v13  ;;  %v1116_v13 = vld [vmem:[#allocation3 + $0xa48] sm:$0xff]  ;;  %v5077_v16 = vpack.c.bf16 %v1113_v0, %v1111_v11  ;;  %v1149_v11 = vld [vmem:[#allocation3 + $0xb50] sm:$0xff] }
 0x1c4   : > { %5038 = vmatpush1.bf16.msra.mxu0 %v5037_v25  ;;  %v5057_v25 = vpack.c.bf16 %v1093_v18, %v1091_v60  ;;  %v5079_v18 = vpack.c.bf16 %v1118_v15, %v1116_v13  ;;  %v1152_v0 = vld [vmem:[#allocation3 + $0xb68] sm:$0xff]  ;;  %v1151_v15 = vld [vmem:[#allocation3 + $0xb60] sm:$0xff] }
 0x1c5   : > { %5040 = vmatprep.subr.bf16.mxu0 %v5039_v29  ;;  %v5059_v29 = vpack.c.bf16 %v1098_v22, %v1096_v21  ;;  %v1120_v22 = vld [vmem:[#allocation3 + $0xa68] sm:$0xff] }
 0x1c6   : > { %5178 = vmatpush1.bf16.msra.mxu1 %v5177_v23  ;;  %v1122_v23 = vld [vmem:[#allocation3 + $0xa78] sm:$0xff] }
 0x1c7   : > { %5180 = vmatprep.subr.bf16.mxu1 %v5179_v27  ;;  %v1121_v27 = vld [vmem:[#allocation3 + $0xa70] sm:$0xff] }
 0x1c8   : > { %5042 = vmatpush1.bf16.msra.mxu0 %v5041_v36  ;;  %v5061_v36 = vpack.c.bf16 %v1097_v30, %v1095_v26  ;;  %v1119_v26 = vld [vmem:[#allocation3 + $0xa60] sm:$0xff]  ;;  %v5087_v30 = vpack.c.bf16 %v1126_v28, %v1124_v24  ;;  %v1161_v24 = vld [vmem:[#allocation3 + $0xbb0] sm:$0xff]  ;;  %v1164_v28 = vld [vmem:[#allocation3 + $0xbc8] sm:$0xff] }
 0x1c9   : > { %5044 = vmatprep.subr.bf16.mxu0 %v5043_v41  ;;  %v1099_v41 = vld [vmem:[#allocation3 + $0x9c0] sm:$0xff] }
 0x1ca   : > { %5182 = vmatpush1.bf16.msra.mxu1 %v5181_v35  ;;  %v5065_v48 = vpack.c.bf16 %v1101_v43, %v1099_v41  ;;  %v5089_v35 = vpack.c.bf16 %v1125_v32, %v1123_v31  ;;  %v1163_v32 = vld [vmem:[#allocation3 + $0xbc0] sm:$0xff] }
 0x1cb   : > { %5184 = vmatprep.subr.bf16.mxu1 %v5183_v37  ;;  %v1127_v37 = vld [vmem:[#allocation3 + $0xaa0] sm:$0xff] }
 0x1cc   : > { %5046 = vmatpush1.bf16.msra.mxu0 %v5045_v50  ;;  %v1103_v50 = vld [vmem:[#allocation3 + $0x9e0] sm:$0xff]  ;;  %v5093_v41 = vpack.c.bf16 %v1129_v38, %v1127_v37 }
 0x1cd   : > { %5048 = vmatprep.subr.bf16.mxu0 %v5047_v54  ;;  %v1039_v54 = vld [vmem:[#allocation2 + $0x68] sm:$0x1]  ;;  %v5069_v55 = vpack.c.bf16 %v1105_v51, %v1103_v50  ;;  %v1135_v51 = vld [vmem:[#allocation3 + $0xae0] sm:$0xff] }
 0x1ce   : > { %5186 = vmatpush1.bf16.msra.mxu1 %v5185_v47  ;;  %v1198_v63 = vrot.slane %v1039_v54, 1  ;;  %v1136_v47 = vld [vmem:[#allocation3 + $0xae8] sm:$0xff]  ;;  %v5101_v54 = vpack.c.bf16 %v1137_v52, %v1135_v51  ;;  %v1167_v38 = vld [vmem:[#allocation3 + $0xbe0] sm:$0xff] }
 0x1d0   : > { %5050 = vmatpush1.bf16.msra.mxu0 %v5049_v62  ;;  %v1109_v62 = vld [vmem:[#allocation3 + $0xa10] sm:$0xff] }
 0x1d1   : > { %5052 = vmatprep.subr.bf16.mxu0 %v5051_v4  ;;  %v1033_v4 = vld [vmem:[#allocation2 + $0x38] sm:$0xfe]  ;;  %v5073_v7 = vpack.c.bf16 %v1109_v62, %v1107_v61  ;;  %v1144_v61 = vld [vmem:[#allocation3 + $0xb28] sm:$0xff] }
 0x1d2   : > { %v1193_v60 = vrot.slane %v1033_v4, 1  ;;  %v1146_v62 = vld [vmem:[#allocation3 + $0xb38] sm:$0xff]  ;;  %v1148_v4 = vld [vmem:[#allocation3 + $0xb48] sm:$0xff] }
 0x1d3   : > { %v5107_v1 = vpack.c.bf16 %v1146_v62, %v1144_v61  ;;  %v1597_v62 = vld [vmem:[#allocation3 + $0x11c8] sm:$0xff] }
 0x1d4   : > { %5054 = vmatpush1.bf16.msra.mxu0 %v5053_v12  ;;  %v1199_v12 = vsel %vm1183_vm1, %v1188_v5, %v1198_v63  ;;  %v1195_v21 = vsel %vm1183_vm1, %v1193_v60, %v7002_v58  ;;  %v5081_v5 = vpack.c.bf16 %v1117_v20, %v1115_v19 }
 0x1d5   : > { %5056 = vmatprep.subr.bf16.mxu0 %v5055_v17  ;;  %v1197_v17 = vsel %vm1183_vm1, %v7002_v58, %v1196_v8 }
 0x1d8   : > { %5058 = vmatpush1.bf16.msra.mxu0 %v5057_v25  ;;  %v5083_v25 = vpack.c.bf16 %v1122_v23, %v1120_v22  ;;  %v1157_v22 = vld [vmem:[#allocation3 + $0xb90] sm:$0xff]  ;;  %v1160_v23 = vld [vmem:[#allocation3 + $0xba8] sm:$0xff] }
 0x1d9   : > { %5060 = vmatprep.subr.bf16.mxu0 %v5059_v29  ;;  %v5085_v29 = vpack.c.bf16 %v1121_v27, %v1119_v26  ;;  %v1159_v27 = vld [vmem:[#allocation3 + $0xba0] sm:$0xff] }
 0x1dc   : > { %5062 = vmatpush1.bf16.msra.mxu0 %v5061_v36  ;;  %v5091_v36 = vpack.c.bf16 %v1130_v34, %v1128_v33  ;;  %v1165_v33 = vld [vmem:[#allocation3 + $0xbd0] sm:$0xff]  ;;  %v1168_v34 = vld [vmem:[#allocation3 + $0xbe8] sm:$0xff] }
 0x1dd   : > { %5064 = vmatprep.subr.bf16.mxu0 %v5063_v40  ;;  %v1134_v40 = vld [vmem:[#allocation3 + $0xad8] sm:$0xff] }
 0x1de   : > { %v5095_v43 = vpack.c.bf16 %v1134_v40, %v1132_v39  ;;  %v1169_v39 = vld [vmem:[#allocation3 + $0xbf0] sm:$0xff] }
 0x1df   : > { %v1032_v40 = vld [vmem:[#allocation2 + $0x30] sm:$0xfe] }
 0x1e0   : > { %5066 = vmatpush1.bf16.msra.mxu0 %v5065_v48  ;;  %v1138_v48 = vld [vmem:[#allocation3 + $0xaf8] sm:$0xff] }
 0x1e1   : > { %5068 = vmatprep.subr.bf16.mxu0 %v5067_v49  ;;  %v5097_v49 = vpack.c.bf16 %v1133_v45, %v1131_v44  ;;  %v5099_v50 = vpack.c.bf16 %v1138_v48, %v1136_v47  ;;  %v1190_v44 = vrot.slane %v1032_v40, 1  ;;  %v7013_v45 = vld [vmem:[#allocation2 + $0x50] sm:$0xff] }
 0x1e2   : > { %v1191_v47 = vrot.slane %v7013_v45, 1 }
 0x1e4   : > { %5070 = vmatpush1.bf16.msra.mxu0 %v5069_v55  ;;  %v5103_v55 = vpack.c.bf16 %v1142_v53, %v1140_v46  ;;  %v1593_v53 = vld [vmem:[#allocation3 + $0x11a8] sm:$0xff] }
 0x1e5   : > { %5072 = vmatprep.subr.bf16.mxu0 %v5071_v59  ;;  %v1141_v59 = vld [vmem:[#allocation3 + $0xb10] sm:$0xff] }
 0x1e6   : > { %v5105_v63 = vpack.c.bf16 %v1141_v59, %v1139_v56  ;;  %v1592_v56 = vld [vmem:[#allocation3 + $0x11a0] sm:$0xff]  ;;  %v1594_v59 = vld [vmem:[#allocation3 + $0x11b0] sm:$0xff] }
 0x1e7   : > { %1277 = vmatmul.mubr.f32.vlgmr.msra.gmra.mrb[0].mxu0 %v1186_v6  ;;  %v1150_v6 = vld [vmem:[#allocation3 + $0xb58] sm:$0xff]  ;;  %v5189_v61 = vpack.c.bf16 %v1594_v59, %v1592_v56 }
 0x1e8   : > { %5074 = vmatpush1.bf16.msra.mxu0 %v5073_v7  ;;  %1282 = vmatprep.mubr.f32.mxu0 %v1199_v12  ;;  %v5109_v7 = vpack.c.bf16 %v1145_v3, %v1143_v2  ;;  %v5111_v8 = vpack.c.bf16 %v1150_v6, %v1148_v4  ;;  %v1154_v12 = vld [vmem:[#allocation3 + $0xb78] sm:$0xff]  ;;  %v1596_v2 = vld [vmem:[#allocation3 + $0x11c0] sm:$0xff]  ;;  %v1598_v3 = vld [vmem:[#allocation3 + $0x11d0] sm:$0xff] }
 0x1e9   : > { %5076 = vmatprep.subr.bf16.mxu0 %v5075_v9  ;;  %v1147_v9 = vld [vmem:[#allocation3 + $0xb40] sm:$0xff]  ;;  %v5115_v13 = vpack.c.bf16 %v1154_v12, %v1152_v0  ;;  %v5193_v4 = vpack.c.bf16 %v1598_v3, %v1596_v2  ;;  %v1603_v6 = vld [vmem:[#allocation3 + $0x11f8] sm:$0xff]  ;;  %v1605_v0 = vld [vmem:[#allocation3 + $0x1208] sm:$0xff] }
 0x1ea   : > { %v5113_v60 = vpack.c.bf16 %v1149_v11, %v1147_v9  ;;  %v1602_v9 = vld [vmem:[#allocation3 + $0x11f0] sm:$0xff]  ;;  %v1607_v12 = vld [vmem:[#allocation3 + $0x1218] sm:$0xff] }
 0x1eb   : > { %1283 = vmatmul.mubr.f32.gmra.mrb[2].mxu0 %v1197_v17  ;;  %v1156_v17 = vld [vmem:[#allocation3 + $0xb88] sm:$0xff] }
 0x1ec   : > { %5078 = vmatpush1.bf16.msra.mxu0 %v5077_v16  ;;  %1353 = vmatprep.mubr.f32.mxu0 %v1195_v21  ;;  %v1153_v16 = vld [vmem:[#allocation3 + $0xb70] sm:$0xff]  ;;  %v1155_v21 = vld [vmem:[#allocation3 + $0xb80] sm:$0xff] }
 0x1ed   : > { %5080 = vmatprep.subr.bf16.mxu0 %v5079_v18  ;;  %v1158_v18 = vld [vmem:[#allocation3 + $0xb98] sm:$0xff]  ;;  %v5117_v19 = vpack.c.bf16 %v1153_v16, %v1151_v15 }
 0x1ee   : > { %v5119_v20 = vpack.c.bf16 %v1158_v18, %v1156_v17  ;;  %v1370_v17 = vld [vmem:[#allocation5] sm:$0x3] }
 0x1f0   : > { %5082 = vmatpush1.bf16.msra.mxu0 %v5081_v5  ;;  %v1162_v5 = vld [vmem:[#allocation3 + $0xbb8] sm:$0xff] }
 0x1f1   : > { %5084 = vmatprep.subr.bf16.mxu0 %v5083_v25  ;;  %v5121_v25 = vpack.c.bf16 %v1157_v22, %v1155_v21  ;;  %v5123_v26 = vpack.c.bf16 %v1162_v5, %v1160_v23  ;;  %v1604_v22 = vld [vmem:[#allocation3 + $0x1200] sm:$0xff]  ;;  %v1606_v23 = vld [vmem:[#allocation3 + $0x1210] sm:$0xff] }
 0x1f4   : > { %5086 = vmatpush1.bf16.msra.mxu0 %v5085_v29  ;;  %v1166_v29 = vld [vmem:[#allocation3 + $0xbd8] sm:$0xff] }
 0x1f5   : > { %5088 = vmatprep.subr.bf16.mxu0 %v5087_v30  ;;  %v5125_v30 = vpack.c.bf16 %v1161_v24, %v1159_v27  ;;  %v5127_v31 = vpack.c.bf16 %v1166_v29, %v1164_v28  ;;  %v1611_v27 = vld [vmem:[#allocation3 + $0x1238] sm:$0xff]  ;;  %v5201_v29 = vpack.c.bf16 %v1606_v23, %v1604_v22 }
 0x1f8   : > { %5090 = vmatpush1.bf16.msra.mxu0 %v5089_v35  ;;  %v1170_v35 = vld [vmem:[#allocation3 + $0xbf8] sm:$0xff] }
 0x1f9   : > { %5092 = vmatprep.subr.bf16.mxu0 %v5091_v36  ;;  %v5129_v36 = vpack.c.bf16 %v1165_v33, %v1163_v32  ;;  %v5131_v37 = vpack.c.bf16 %v1170_v35, %v1168_v34  ;;  %v1608_v33 = vld [vmem:[#allocation3 + $0x1220] sm:$0xff]  ;;  %v1610_v34 = vld [vmem:[#allocation3 + $0x1230] sm:$0xff] }
 0x1fc   : > { %5094 = vmatpush1.bf16.msra.mxu0 %v5093_v41  ;;  %v1041_v41 = vld [vmem:[#allocation2 + $0x78] sm:$0x1] }
 0x1fd   : > { %5096 = vmatprep.subr.bf16.mxu0 %v5095_v43  ;;  %v5133_v43 = vpack.c.bf16 %v1169_v39, %v1167_v38  ;;  %v1202_v48 = vrot.slane %v1041_v41, 1  ;;  %v1615_v38 = vld [vmem:[#allocation3 + $0x1258] sm:$0xff]  ;;  %v5205_v41 = vpack.c.bf16 %v1610_v34, %v1608_v33  ;;  %v1645_v33 = vld [vmem:[#allocation3 + $0x1348] sm:$0xff] }
 0x1fe   : > { %v1647_v34 = vld [vmem:[#allocation3 + $0x1358] sm:$0xff] }
 0x1ff   : > { %v1203_v52 = vsel %vm1183_vm1, %v7002_v58, %v1202_v48  ;;  %v1601_v58 = vld [vmem:[#allocation3 + $0x11e8] sm:$0xff]  ;;  %v1614_v48 = vld [vmem:[#allocation3 + $0x1250] sm:$0xff] }
 0x200   : > { %5098 = vmatpush1.bf16.msra.mxu0 %v5097_v49  ;;  %v1040_v49 = vld [vmem:[#allocation2 + $0x70] sm:$0x1] }
 0x201   : > { %5100 = vmatprep.subr.bf16.mxu0 %v5099_v50  ;;  %v1192_v50 = vsel %vm1183_vm1, %v1190_v44, %v1191_v47  ;;  %v1200_v51 = vrot.slane %v1040_v49, 1  ;;  %v1617_v49 = vld [vmem:[#allocation3 + $0x1268] sm:$0xff] }
 0x203   : > { %v1201_v46 = vsel %vm1183_vm1, %v1191_v47, %v1200_v51  ;;  %v1612_v47 = vld [vmem:[#allocation3 + $0x1240] sm:$0xff] }
 0x204   : > { %5102 = vmatpush1.bf16.msra.mxu0 %v5101_v54  ;;  %v1595_v54 = vld [vmem:[#allocation3 + $0x11b8] sm:$0xff]  ;;  %v5209_v51 = vpack.c.bf16 %v1614_v48, %v1612_v47 }
 0x205   : > { %5104 = vmatprep.subr.bf16.mxu0 %v5103_v55  ;;  %v5187_v55 = vpack.c.bf16 %v1595_v54, %v1593_v53  ;;  %v1618_v53 = vld [vmem:[#allocation3 + $0x1270] sm:$0xff]  ;;  %v1621_v54 = vld [vmem:[#allocation3 + $0x1288] sm:$0xff] }
 0x207   : > { %5188 = vmatprep.subr.bf16.mxu1 %v5187_v55  ;;  %v1623_v55 = vld [vmem:[#allocation3 + $0x1298] sm:$0xff] }
 0x208   : > { %5106 = vmatpush1.bf16.msra.mxu0 %v5105_v63  ;;  %5190 = vmatpush1.bf16.msra.mxu1 %v5189_v61  ;;  %v1599_v63 = vld [vmem:[#allocation3 + $0x11d8] sm:$0xff]  ;;  %v5215_v59 = vpack.c.bf16 %v1623_v55, %v1621_v54  ;;  %v1620_v61 = vld [vmem:[#allocation3 + $0x1280] sm:$0xff]  ;;  %v1654_v55 = vld [vmem:[#allocation3 + $0x1390] sm:$0xff] }
 0x209   : > { %5108 = vmatprep.subr.bf16.mxu0 %v5107_v1  ;;  %v5191_v1 = vpack.c.bf16 %v1599_v63, %v1597_v62  ;;  %v1622_v62 = vld [vmem:[#allocation3 + $0x1290] sm:$0xff]  ;;  %v1625_v63 = vld [vmem:[#allocation3 + $0x12a8] sm:$0xff]  ;;  %v1652_v54 = vld [vmem:[#allocation3 + $0x1380] sm:$0xff] }
 0x20a   : > { %v5217_v2 = vpack.c.bf16 %v1622_v62, %v1620_v61  ;;  %v5249_v61 = vpack.c.bf16 %v1654_v55, %v1652_v54  ;;  %v1423_v54 = vld [vmem:[#allocation3 + $0xc80] sm:$0xff]  ;;  %v1430_v55 = vld [vmem:[#allocation3 + $0xcb8] sm:$0xff] }
 0x20b   : > { %5192 = vmatprep.subr.bf16.mxu1 %v5191_v1  ;;  %v1627_v1 = vld [vmem:[#allocation3 + $0x12b8] sm:$0xff] }
 0x20c   : > { %5110 = vmatpush1.bf16.msra.mxu0 %v5109_v7  ;;  %5194 = vmatpush1.bf16.msra.mxu1 %v5193_v4  ;;  %v5195_v7 = vpack.c.bf16 %v1603_v6, %v1601_v58  ;;  %v5219_v3 = vpack.c.bf16 %v1627_v1, %v1625_v63  ;;  %v1624_v4 = vld [vmem:[#allocation3 + $0x12a0] sm:$0xff]  ;;  %v1626_v58 = vld [vmem:[#allocation3 + $0x12b0] sm:$0xff]  ;;  %v1629_v6 = vld [vmem:[#allocation3 + $0x12c8] sm:$0xff] }
 0x20d   : > { %5112 = vmatprep.subr.bf16.mxu0 %v5111_v8  ;;  %v1600_v8 = vld [vmem:[#allocation3 + $0x11e0] sm:$0xff]  ;;  %v1658_v1 = vld [vmem:[#allocation3 + $0x13b0] sm:$0xff] }
 0x20e   : > { %v5197_v11 = vpack.c.bf16 %v1602_v9, %v1600_v8  ;;  %5196 = vmatprep.subr.bf16.mxu1 %v5195_v7  ;;  %v1631_v7 = vld [vmem:[#allocation3 + $0x12d8] sm:$0xff]  ;;  %v5221_v8 = vpack.c.bf16 %v1626_v58, %v1624_v4  ;;  %v1656_v63 = vld [vmem:[#allocation3 + $0x13a0] sm:$0xff] }
 0x20f   : > { %v5223_v9 = vpack.c.bf16 %v1631_v7, %v1629_v6  ;;  %v5253_v4 = vpack.c.bf16 %v1658_v1, %v1656_v63  ;;  %v1660_v6 = vld [vmem:[#allocation3 + $0x13c0] sm:$0xff]  ;;  %v1662_v7 = vld [vmem:[#allocation3 + $0x13d0] sm:$0xff]  ;;  %v1432_v63 = vld [vmem:[#allocation3 + $0xcc8] sm:$0xff] }
 0x210   : > { %5114 = vmatpush1.bf16.msra.mxu0 %v5113_v60  ;;  %5198 = vmatpush1.bf16.msra.mxu1 %v5197_v11  ;;  %v5199_v60 = vpack.c.bf16 %v1607_v12, %v1605_v0  ;;  %v1628_v11 = vld [vmem:[#allocation3 + $0x12c0] sm:$0xff]  ;;  %v1630_v0 = vld [vmem:[#allocation3 + $0x12d0] sm:$0xff]  ;;  %v1633_v12 = vld [vmem:[#allocation3 + $0x12e8] sm:$0xff] }
 0x211   : > { %5116 = vmatprep.subr.bf16.mxu0 %v5115_v13  ;;  %v1372_v13 = vlaneseq  ;;  %v1434_v1 = vld [vmem:[#allocation3 + $0xcd8] sm:$0xff] }
 0x212   : > { %5200 = vmatprep.subr.bf16.mxu1 %v5199_v60  ;;  %v1635_v60 = vld [vmem:[#allocation3 + $0x12f8] sm:$0xff] }
 0x213   : > { %v1373_v15 = vshrl.u32 %v1372_v13, 7  ;;  %v5225_v13 = vpack.c.bf16 %v1630_v0, %v1628_v11  ;;  %v5257_v11 = vpack.c.bf16 %v1662_v7, %v1660_v6  ;;  %v1436_v6 = vld [vmem:[#allocation3 + $0xce8] sm:$0xff]  ;;  %v1438_v7 = vld [vmem:[#allocation3 + $0xcf8] sm:$0xff] }
 0x214   : > { %5118 = vmatpush1.bf16.msra.mxu0 %v5117_v19 }
 0x215   : > { %5120 = vmatprep.subr.bf16.mxu0 %v5119_v20  ;;  %v7020_v16 = vsub.s32 0, %v1373_v15  ;;  %v7022_v18 = vsub.s32 1, %v1373_v15  ;;  %v5227_v15 = vpack.c.bf16 %v1635_v60, %v1633_v12  ;;  %v1664_v12 = vld [vmem:[#allocation3 + $0x13e0] sm:$0xff]  ;;  %v1666_v60 = vld [vmem:[#allocation3 + $0x13f0] sm:$0xff] }
 0x217   : > { %v1375_v19 = vrot.slane %v1370_v17, %v7020_v16  ;;  %v1379_v20 = vrot.slane %v1370_v17, %v7022_v18  ;;  %v1632_v17 = vld [vmem:[#allocation3 + $0x12e0] sm:$0xff] }
 0x218   : > { %5122 = vmatpush1.bf16.msra.mxu0 %v5121_v25 }
 0x219   : > { %5124 = vmatprep.subr.bf16.mxu0 %v5123_v26  ;;  %v1609_v26 = vld [vmem:[#allocation3 + $0x1228] sm:$0xff] }
 0x21a   : > { %v5203_v32 = vpack.c.bf16 %v1611_v27, %v1609_v26  ;;  %v1641_v26 = vld [vmem:[#allocation3 + $0x1328] sm:$0xff]  ;;  %v1643_v27 = vld [vmem:[#allocation3 + $0x1338] sm:$0xff] }
 0x21c   : > { %5126 = vmatpush1.bf16.msra.mxu0 %v5125_v30 }
 0x21d   : > { %5128 = vmatprep.subr.bf16.mxu0 %v5127_v31 }
 0x220   : > { %5130 = vmatpush1.bf16.msra.mxu0 %v5129_v36 }
 0x221   : > { %5132 = vmatprep.subr.bf16.mxu0 %v5131_v37  ;;  %v1613_v37 = vld [vmem:[#allocation3 + $0x1248] sm:$0xff] }
 0x222   : > { %v5207_v44 = vpack.c.bf16 %v1615_v38, %v1613_v37  ;;  %v1644_v37 = vld [vmem:[#allocation3 + $0x1340] sm:$0xff]  ;;  %v1646_v38 = vld [vmem:[#allocation3 + $0x1350] sm:$0xff] }
 0x223   : > { %v5241_v47 = vpack.c.bf16 %v1646_v38, %v1644_v37  ;;  %v1417_v37 = vld [vmem:[#allocation3 + $0xc50] sm:$0xff]  ;;  %v1420_v38 = vld [vmem:[#allocation3 + $0xc68] sm:$0xff] }
 0x224   : > { %5134 = vmatpush1.bf16.msra.mxu0 %v5133_v43 }
 0x227   : > { %1354 = vmatmul.mubr.f32.vlgmr.msra.gmra.mrb[0].mxu0 %v1192_v50  ;;  %v1619_v50 = vld [vmem:[#allocation3 + $0x1278] sm:$0xff] }
 0x228   : > { %1359 = vmatprep.mubr.f32.mxu0 %v1203_v52  ;;  %v5211_v52 = vpack.c.bf16 %v1619_v50, %v1617_v49  ;;  %v1648_v49 = vld [vmem:[#allocation3 + $0x1360] sm:$0xff]  ;;  %v1650_v50 = vld [vmem:[#allocation3 + $0x1370] sm:$0xff] }
 0x22b   : > { %1360 = vmatmul.mubr.f32.gmra.mrb[2].mxu0 %v1201_v46  ;;  %v1616_v46 = vld [vmem:[#allocation3 + $0x1260] sm:$0xff] }
 0x22c   : > { %v5213_v56 = vpack.c.bf16 %v1618_v53, %v1616_v46  ;;  %v5245_v46 = vpack.c.bf16 %v1650_v50, %v1648_v49  ;;  %v1419_v49 = vld [vmem:[#allocation3 + $0xc60] sm:$0xff]  ;;  %v1421_v50 = vld [vmem:[#allocation3 + $0xc70] sm:$0xff] }
 0x2fa   : > { %v1355_v21 = vpop.f32.mrb[0].mxu0 }
 0x2fb   : > { %v1382_v5 = vadd.f32 %v1375_v19, %v1355_v21  ;;  %v1357_v25 = vpop.f32.mrb[1].mxu0  ;;  %v1639_v21 = vld [vmem:[#allocation3 + $0x1318] sm:$0xff] }
 0x2fc   : > { %v1383_v24 = vadd.f32 %v1379_v20, %v1357_v25  ;;  %v1638_v25 = vld [vmem:[#allocation3 + $0x1310] sm:$0xff] }
 0x2fd   : > { %v7026_v28 = vmax.f32 %v1382_v5, 0.0  ;;  %v1636_v5 = vld [vmem:[#allocation3 + $0x1300] sm:$0xff] }
 0x2fe   : > { %v7028_v30 = vmax.f32 %v1383_v24, 0.0  ;;  %v1361_v31 = vpop.f32.mrb[2].mxu0  ;;  %v5233_v24 = vpack.c.bf16 %v1638_v25, %v1636_v5  ;;  %v1395_v25 = vld [vmem:[#allocation2 + $0x8] sm:$0xc0] }
 0x2ff   : > { %1390 = vst [vmem:[#allocation2 + $0x28] sm:$0xff] %v7026_v28  ;;  %v1384_v35 = vadd.f32 %v1375_v19, %v1361_v31  ;;  %v1363_v36 = vpop.f32.mrb[3].mxu0  ;;  %1732 = vmatprep.mubr.f32.mxu1 %v7026_v28  ;;  %v1634_v19 = vld [vmem:[#allocation3 + $0x12f0] sm:$0xff]  ;;  %v1640_v31 = vld [vmem:[#allocation3 + $0x1320] sm:$0xff] }
 0x300   : > { %1391 = vst [vmem:[#allocation2 + $0x30] sm:$0xff] %v7028_v30  ;;  %v7033_v39 = vadd.f32 %v1379_v20, %v1363_v36  ;;  %1733 = vmatmul.mubr.f32.vlgmr.msra.gmra.mrb[0].mxu1 %v6999_v57  ;;  %v1637_v20 = vld [vmem:[#allocation3 + $0x1308] sm:$0xff]  ;;  %v5229_v22 = vpack.c.bf16 %v1634_v19, %v1632_v17  ;;  %v5239_v36 = vpack.c.bf16 %v1647_v34, %v1645_v33  ;;  %v1838_v33 = vrot.slane %v1395_v25, 6  ;;  %v1445_v25 = vld [vmem:[#allocation3 + $0xd30] sm:$0xff] }
 0x301   : > { %v7036_v40 = vmax.f32 %v1384_v35, 0.0  ;;  %5202 = vmatpush1.bf16.msra.mxu1 %v5201_v29  ;;  %v5231_v23 = vpack.c.bf16 %v1639_v21, %v1637_v20  ;;  %v5235_v29 = vpack.c.bf16 %v1643_v27, %v1641_v26  ;;  %v5261_v17 = vpack.c.bf16 %v1666_v60, %v1664_v12  ;;  %v1407_v20 = vld [vmem:[#allocation3 + $0xc00] sm:$0xff]  ;;  %v1409_v21 = vld [vmem:[#allocation3 + $0xc10] sm:$0xff]  ;;  %v1440_v12 = vld [vmem:[#allocation3 + $0xd08] sm:$0xff] }
 0x302   : > { %v1389_v43 = vmax.f32 %v7033_v39, 0.0  ;;  %5204 = vmatprep.subr.bf16.mxu1 %v5203_v32  ;;  %v1642_v32 = vld [vmem:[#allocation3 + $0x1330] sm:$0xff]  ;;  %v5265_v5 = vpack.c.bf16 %v1409_v21, %v1407_v20  ;;  %v1411_v27 = vld [vmem:[#allocation3 + $0xc20] sm:$0xff]  ;;  %v1442_v60 = vld [vmem:[#allocation3 + $0xd18] sm:$0xff] }
 0x303   : > { %1392 = vst [vmem:[#allocation2 + $0x48] sm:$0xff] %v7036_v40  ;;  %1738 = vmatprep.mubr.f32.mxu1 %v7036_v40  ;;  %v5237_v35 = vpack.c.bf16 %v1642_v32, %v1640_v31  ;;  %v1418_v31 = vld [vmem:[#allocation3 + $0xc58] sm:$0xff]  ;;  %v1839_v32 = vrot.slane %v7026_v28, 6  ;;  %v1425_v39 = vld [vmem:[#allocation3 + $0xc90] sm:$0xff]  ;;  %v1444_v20 = vld [vmem:[#allocation3 + $0xd28] sm:$0xff] }
 0x304   : > { %1393 = vst [vmem:[#allocation2 + $0x50] sm:$0xff] %v1389_v43  ;;  %1739 = vmatmul.mubr.f32.gmra.mrb[2].mxu1 %v6999_v57  ;;  %v1446_v21 = vld [vmem:[#allocation3 + $0xd38] sm:$0xff] }
 0x305   : > { %5206 = vmatpush1.bf16.msra.mxu1 %v5205_v41  ;;  %1809 = vmatprep.mubr.f32.mxu1 %v6999_v57  ;;  %v1649_v41 = vld [vmem:[#allocation3 + $0x1368] sm:$0xff] }
 0x306   : > { %5208 = vmatprep.subr.bf16.mxu1 %v5207_v44  ;;  %v1651_v44 = vld [vmem:[#allocation3 + $0x1378] sm:$0xff] }
 0x307   : > { %v5243_v48 = vpack.c.bf16 %v1651_v44, %v1649_v41  ;;  %v1422_v41 = vld [vmem:[#allocation3 + $0xc78] sm:$0xff]  ;;  %v1840_v44 = vsel %vm1834_vm2, %v1838_v33, %v1839_v32  ;;  %v1449_v33 = vld [vmem:[#allocation3 + $0xd50] sm:$0xff] }
 0x309   : > { %5210 = vmatpush1.bf16.msra.mxu1 %v5209_v51  ;;  %v1653_v51 = vld [vmem:[#allocation3 + $0x1388] sm:$0xff] }
 0x30a   : > { %5212 = vmatprep.subr.bf16.mxu1 %v5211_v52  ;;  %v1655_v52 = vld [vmem:[#allocation3 + $0x1398] sm:$0xff] }
 0x30b   : > { %v5247_v53 = vpack.c.bf16 %v1655_v52, %v1653_v51  ;;  %v1424_v51 = vld [vmem:[#allocation3 + $0xc88] sm:$0xff]  ;;  %v1426_v52 = vld [vmem:[#allocation3 + $0xc98] sm:$0xff] }
 0x30d   : > { %5214 = vmatpush1.bf16.msra.mxu1 %v5213_v56  ;;  %v1657_v56 = vld [vmem:[#allocation3 + $0x13a8] sm:$0xff] }
 0x30e   : > { %5216 = vmatprep.subr.bf16.mxu1 %v5215_v59  ;;  %v1659_v59 = vld [vmem:[#allocation3 + $0x13b8] sm:$0xff] }
 0x30f   : > { %v5251_v62 = vpack.c.bf16 %v1659_v59, %v1657_v56  ;;  %v5281_v56 = vpack.c.bf16 %v1425_v39, %v1423_v54  ;;  %v1459_v39 = vld [vmem:[#allocation3 + $0xda0] sm:$0xff] }
 0x311   : > { %5218 = vmatpush1.bf16.msra.mxu1 %v5217_v2  ;;  %v1661_v2 = vld [vmem:[#allocation3 + $0x13c8] sm:$0xff] }
 0x312   : > { %5220 = vmatprep.subr.bf16.mxu1 %v5219_v3  ;;  %v1663_v3 = vld [vmem:[#allocation3 + $0x13d8] sm:$0xff] }
 0x313   : > { %v5255_v58 = vpack.c.bf16 %v1663_v3, %v1661_v2  ;;  %v5287_v3 = vpack.c.bf16 %v1434_v1, %v1432_v63  ;;  %v1465_v63 = vld [vmem:[#allocation3 + $0xdd0] sm:$0xff]  ;;  %v1468_v1 = vld [vmem:[#allocation3 + $0xde8] sm:$0xff] }
 0x315   : > { %5222 = vmatpush1.bf16.msra.mxu1 %v5221_v8  ;;  %v1665_v8 = vld [vmem:[#allocation3 + $0x13e8] sm:$0xff] }
 0x316   : > { %5224 = vmatprep.subr.bf16.mxu1 %v5223_v9  ;;  %v1667_v9 = vld [vmem:[#allocation3 + $0x13f8] sm:$0xff] }
 0x317   : > { %v5259_v0 = vpack.c.bf16 %v1667_v9, %v1665_v8  ;;  %v5291_v9 = vpack.c.bf16 %v1438_v7, %v1436_v6  ;;  %v1469_v6 = vld [vmem:[#allocation3 + $0xdf0] sm:$0xff]  ;;  %v1394_v7 = vld [vmem:[#allocation2] sm:$0xc0] }
 0x319   : > { %5226 = vmatpush1.bf16.msra.mxu1 %v5225_v13  ;;  %v1408_v13 = vld [vmem:[#allocation3 + $0xc08] sm:$0xff] }
 0x31a   : > { %5228 = vmatprep.subr.bf16.mxu1 %v5227_v15  ;;  %v1410_v15 = vld [vmem:[#allocation3 + $0xc18] sm:$0xff] }
 0x31b   : > { %v5263_v19 = vpack.c.bf16 %v1410_v15, %v1408_v13  ;;  %v5295_v15 = vpack.c.bf16 %v1442_v60, %v1440_v12  ;;  %v1835_v12 = vrot.slane %v1394_v7, 6  ;;  %v1403_v60 = vld [vmem:[#allocation2 + $0x48] sm:$0x3f]  ;;  %v1502_v7 = vld [vmem:[#allocation3 + $0xef8] sm:$0xff] }
 0x31d   : > { %5230 = vmatpush1.bf16.msra.mxu1 %v5229_v22  ;;  %v1412_v22 = vld [vmem:[#allocation3 + $0xc28] sm:$0xff] }
 0x31e   : > { %5232 = vmatprep.subr.bf16.mxu1 %v5231_v23  ;;  %v1414_v23 = vld [vmem:[#allocation3 + $0xc38] sm:$0xff] }
 0x31f   : > { %v5267_v26 = vpack.c.bf16 %v1414_v23, %v1412_v22  ;;  %v5299_v23 = vpack.c.bf16 %v1446_v21, %v1444_v20  ;;  %v1476_v20 = vld [vmem:[#allocation3 + $0xe28] sm:$0xff]  ;;  %v1478_v21 = vld [vmem:[#allocation3 + $0xe38] sm:$0xff] }
 0x321   : > { %5234 = vmatpush1.bf16.msra.mxu1 %v5233_v24  ;;  %v1413_v24 = vld [vmem:[#allocation3 + $0xc30] sm:$0xff] }
 0x322   : > { %5236 = vmatprep.subr.bf16.mxu1 %v5235_v29  ;;  %v1416_v29 = vld [vmem:[#allocation3 + $0xc48] sm:$0xff]  ;;  %v5269_v34 = vpack.c.bf16 %v1413_v24, %v1411_v27  ;;  %v1450_v27 = vld [vmem:[#allocation3 + $0xd58] sm:$0xff] }
 0x325   : > { %5238 = vmatpush1.bf16.msra.mxu1 %v5237_v35  ;;  %v5271_v35 = vpack.c.bf16 %v1418_v31, %v1416_v29  ;;  %v1447_v31 = vld [vmem:[#allocation3 + $0xd40] sm:$0xff] }
 0x326   : > { %5240 = vmatprep.subr.bf16.mxu1 %v5239_v36  ;;  %v1415_v36 = vld [vmem:[#allocation3 + $0xc40] sm:$0xff] }
 0x329   : > { %5242 = vmatpush1.bf16.msra.mxu1 %v5241_v47  ;;  %v5273_v47 = vpack.c.bf16 %v1417_v37, %v1415_v36  ;;  %v5305_v36 = vpack.c.bf16 %v1449_v33, %v1447_v31  ;;  %v1480_v31 = vld [vmem:[#allocation3 + $0xe48] sm:$0xff]  ;;  %v1482_v33 = vld [vmem:[#allocation3 + $0xe58] sm:$0xff] }
 0x32a   : > { %5244 = vmatprep.subr.bf16.mxu1 %v5243_v48  ;;  %v5275_v48 = vpack.c.bf16 %v1422_v41, %v1420_v38  ;;  %v1451_v38 = vld [vmem:[#allocation3 + $0xd60] sm:$0xff]  ;;  %v1453_v41 = vld [vmem:[#allocation3 + $0xd70] sm:$0xff] }
 0x32d   : > { %5246 = vmatpush1.bf16.msra.mxu1 %v5245_v46  ;;  %v5277_v46 = vpack.c.bf16 %v1421_v50, %v1419_v49  ;;  %v1455_v50 = vld [vmem:[#allocation3 + $0xd80] sm:$0xff] }
 0x32e   : > { %5248 = vmatprep.subr.bf16.mxu1 %v5247_v53  ;;  %v5279_v53 = vpack.c.bf16 %v1426_v52, %v1424_v51  ;;  %v1457_v51 = vld [vmem:[#allocation3 + $0xd90] sm:$0xff]  ;;  %v1460_v52 = vld [vmem:[#allocation3 + $0xda8] sm:$0xff] }
 0x331   : > { %5250 = vmatpush1.bf16.msra.mxu1 %v5249_v61  ;;  %v1427_v61 = vld [vmem:[#allocation3 + $0xca0] sm:$0xff] }
 0x332   : > { %5252 = vmatprep.subr.bf16.mxu1 %v5251_v62  ;;  %v1429_v62 = vld [vmem:[#allocation3 + $0xcb0] sm:$0xff] }
 0x333   : > { %v5285_v2 = vpack.c.bf16 %v1429_v62, %v1427_v61  ;;  %v1463_v62 = vld [vmem:[#allocation3 + $0xdc0] sm:$0xff] }
 0x335   : > { %5254 = vmatpush1.bf16.msra.mxu1 %v5253_v4  ;;  %v1431_v4 = vld [vmem:[#allocation3 + $0xcc0] sm:$0xff] }
 0x336   : > { %5256 = vmatprep.subr.bf16.mxu1 %v5255_v58  ;;  %v1433_v58 = vld [vmem:[#allocation3 + $0xcd0] sm:$0xff] }
 0x337   : > { %v5289_v8 = vpack.c.bf16 %v1433_v58, %v1431_v4  ;;  %v1467_v58 = vld [vmem:[#allocation3 + $0xde0] sm:$0xff] }
 0x339   : > { %5258 = vmatpush1.bf16.msra.mxu1 %v5257_v11  ;;  %v1435_v11 = vld [vmem:[#allocation3 + $0xce0] sm:$0xff] }
 0x33a   : > { %5260 = vmatprep.subr.bf16.mxu1 %v5259_v0  ;;  %v1437_v0 = vld [vmem:[#allocation3 + $0xcf0] sm:$0xff] }
 0x33b   : > { %v5293_v13 = vpack.c.bf16 %v1437_v0, %v1435_v11  ;;  %v7054_v11 = vrot.slane %v6999_v57, 6  ;;  %v5325_v0 = vpack.c.bf16 %v1469_v6, %v1467_v58  ;;  %v1497_v58 = vld [vmem:[#allocation3 + $0xed0] sm:$0xff]  ;;  %v1500_v6 = vld [vmem:[#allocation3 + $0xee8] sm:$0xff] }
 0x33d   : > { %5262 = vmatpush1.bf16.msra.mxu1 %v5261_v17  ;;  %v1439_v17 = vld [vmem:[#allocation3 + $0xd00] sm:$0xff] }
 0x33e   : > { %5264 = vmatprep.subr.bf16.mxu1 %v5263_v19  ;;  %v1441_v19 = vld [vmem:[#allocation3 + $0xd10] sm:$0xff] }
 0x33f   : > { %v5297_v22 = vpack.c.bf16 %v1441_v19, %v1439_v17  ;;  %v1473_v17 = vld [vmem:[#allocation3 + $0xe10] sm:$0xff]  ;;  %v1402_v19 = vld [vmem:[#allocation2 + $0x40] sm:$0x3f] }
 0x340   : > { %1810 = vmatmul.mubr.f32.vlgmr.msra.gmra.mrb[0].mxu1 %v7028_v30 }
 0x341   : > { %5266 = vmatpush1.bf16.msra.mxu1 %v5265_v5  ;;  %1815 = vmatprep.mubr.f32.mxu1 %v6999_v57  ;;  %v1443_v5 = vld [vmem:[#allocation3 + $0xd20] sm:$0xff]  ;;  %v1847_v57 = vrot.slane %v1402_v19, 6 }
 0x342   : > { %5268 = vmatprep.subr.bf16.mxu1 %v5267_v26  ;;  %v1448_v26 = vld [vmem:[#allocation3 + $0xd48] sm:$0xff]  ;;  %v5301_v24 = vpack.c.bf16 %v1445_v25, %v1443_v5  ;;  %v1837_v5 = vsel %vm1834_vm2, %v1835_v12, %v7054_v11  ;;  %v1501_v12 = vld [vmem:[#allocation3 + $0xef0] sm:$0xff]  ;;  %v1503_v19 = vld [vmem:[#allocation3 + $0xf00] sm:$0xff] }
 0x343   : > { %v5303_v29 = vpack.c.bf16 %v1450_v27, %v1448_v26  ;;  %v5331_v26 = vpack.c.bf16 %v1478_v21, %v1476_v20  ;;  %v1475_v27 = vld [vmem:[#allocation3 + $0xe20] sm:$0xff]  ;;  %v1505_v20 = vld [vmem:[#allocation3 + $0xf10] sm:$0xff]  ;;  %v1508_v21 = vld [vmem:[#allocation3 + $0xf28] sm:$0xff] }
 0x344   : > { %1816 = vmatmul.mubr.f32.gmra.mrb[2].mxu1 %v1389_v43  ;;  %v1428_v43 = vld [vmem:[#allocation3 + $0xca8] sm:$0xff] }
 0x345   : > { %5270 = vmatpush1.bf16.msra.mxu1 %v5269_v34  ;;  %1927 = vmatprep.mubr.f32.mxu1 %v1840_v44  ;;  %v5283_v59 = vpack.c.bf16 %v1430_v55, %v1428_v43  ;;  %v1452_v34 = vld [vmem:[#allocation3 + $0xd68] sm:$0xff]  ;;  %v1461_v43 = vld [vmem:[#allocation3 + $0xdb0] sm:$0xff] }
 0x346   : > { %5272 = vmatprep.subr.bf16.mxu1 %v5271_v35  ;;  %v1454_v35 = vld [vmem:[#allocation3 + $0xd78] sm:$0xff]  ;;  %v1456_v44 = vld [vmem:[#allocation3 + $0xd88] sm:$0xff] }
 0x347   : > { %v5307_v37 = vpack.c.bf16 %v1454_v35, %v1452_v34  ;;  %v1464_v55 = vld [vmem:[#allocation3 + $0xdc8] sm:$0xff] }
 0x349   : > { %5274 = vmatpush1.bf16.msra.mxu1 %v5273_v47  ;;  %v1458_v47 = vld [vmem:[#allocation3 + $0xd98] sm:$0xff] }
 0x34a   : > { %5276 = vmatprep.subr.bf16.mxu1 %v5275_v48  ;;  %v5309_v48 = vpack.c.bf16 %v1453_v41, %v1451_v38  ;;  %v5311_v49 = vpack.c.bf16 %v1458_v47, %v1456_v44  ;;  %v1479_v38 = vld [vmem:[#allocation3 + $0xe40] sm:$0xff]  ;;  %v1481_v41 = vld [vmem:[#allocation3 + $0xe50] sm:$0xff]  ;;  %v1484_v47 = vld [vmem:[#allocation3 + $0xe68] sm:$0xff] }
 0x34b   : > { %v5337_v28 = vpack.c.bf16 %v1481_v41, %v1479_v38  ;;  %v1515_v38 = vld [vmem:[#allocation3 + $0xf60] sm:$0xff]  ;;  %v1517_v41 = vld [vmem:[#allocation3 + $0xf70] sm:$0xff] }
 0x34d   : > { %5278 = vmatpush1.bf16.msra.mxu1 %v5277_v46  ;;  %v1462_v46 = vld [vmem:[#allocation3 + $0xdb8] sm:$0xff] }
 0x34e   : > { %5280 = vmatprep.subr.bf16.mxu1 %v5279_v53  ;;  %v5313_v53 = vpack.c.bf16 %v1457_v51, %v1455_v50  ;;  %v5315_v54 = vpack.c.bf16 %v1462_v46, %v1460_v52  ;;  %v1485_v50 = vld [vmem:[#allocation3 + $0xe70] sm:$0xff]  ;;  %v1488_v51 = vld [vmem:[#allocation3 + $0xe88] sm:$0xff]  ;;  %v1490_v52 = vld [vmem:[#allocation3 + $0xe98] sm:$0xff] }
 0x351   : > { %5282 = vmatpush1.bf16.msra.mxu1 %v5281_v56  ;;  %v1466_v56 = vld [vmem:[#allocation3 + $0xdd8] sm:$0xff] }
 0x352   : > { %5284 = vmatprep.subr.bf16.mxu1 %v5283_v59  ;;  %v5317_v59 = vpack.c.bf16 %v1461_v43, %v1459_v39  ;;  %v5319_v61 = vpack.c.bf16 %v1466_v56, %v1464_v55  ;;  %v1489_v39 = vld [vmem:[#allocation3 + $0xe90] sm:$0xff]  ;;  %v1492_v43 = vld [vmem:[#allocation3 + $0xea8] sm:$0xff]  ;;  %v1494_v55 = vld [vmem:[#allocation3 + $0xeb8] sm:$0xff] }
 0x355   : > { %5286 = vmatpush1.bf16.msra.mxu1 %v5285_v2  ;;  %v1470_v2 = vld [vmem:[#allocation3 + $0xdf8] sm:$0xff] }
 0x356   : > { %5288 = vmatprep.subr.bf16.mxu1 %v5287_v3  ;;  %v5321_v3 = vpack.c.bf16 %v1465_v63, %v1463_v62  ;;  %v5323_v4 = vpack.c.bf16 %v1470_v2, %v1468_v1  ;;  %v1493_v62 = vld [vmem:[#allocation3 + $0xeb0] sm:$0xff]  ;;  %v1496_v63 = vld [vmem:[#allocation3 + $0xec8] sm:$0xff]  ;;  %v1498_v1 = vld [vmem:[#allocation3 + $0xed8] sm:$0xff] }
 0x359   : > { %5290 = vmatpush1.bf16.msra.mxu1 %v5289_v8  ;;  %v1472_v8 = vld [vmem:[#allocation3 + $0xe08] sm:$0xff] }
 0x35a   : > { %5292 = vmatprep.subr.bf16.mxu1 %v5291_v9  ;;  %v1474_v9 = vld [vmem:[#allocation3 + $0xe18] sm:$0xff] }
 0x35d   : > { %5294 = vmatpush1.bf16.msra.mxu1 %v5293_v13  ;;  %v5327_v13 = vpack.c.bf16 %v1474_v9, %v1472_v8  ;;  %v5355_v9 = vpack.c.bf16 %v1502_v7, %v1500_v6  ;;  %v2033_v6 = vld [vmem:[#allocation3 + $0x1418] sm:$0xff] }
 0x35e   : > { %5296 = vmatprep.subr.bf16.mxu1 %v5295_v15  ;;  %v1471_v15 = vld [vmem:[#allocation3 + $0xe00] sm:$0xff]  ;;  %v1405_v7 = vld [vmem:[#allocation2 + $0x58] sm:$0x3f] }
 0x35f   : > { %v5329_v25 = vpack.c.bf16 %v1473_v17, %v1471_v15 }
 0x361   : > { %5298 = vmatpush1.bf16.msra.mxu1 %v5297_v22  ;;  %v1397_v22 = vld [vmem:[#allocation2 + $0x18] sm:$0xc0] }
 0x362   : > { %5300 = vmatprep.subr.bf16.mxu1 %v5299_v23  ;;  %v1849_v23 = vrot.slane %v1403_v60, 6  ;;  %v1504_v60 = vld [vmem:[#allocation3 + $0xf08] sm:$0xff] }
 0x364   : > { %v1850_v34 = vsel %vm1834_vm2, %v1839_v32, %v1849_v23  ;;  %v5361_v23 = vpack.c.bf16 %v1505_v20, %v1503_v19  ;;  %v2035_v19 = vld [vmem:[#allocation3 + $0x1428] sm:$0xff]  ;;  %v2037_v20 = vld [vmem:[#allocation3 + $0x1438] sm:$0xff] }
 0x365   : > { %5302 = vmatpush1.bf16.msra.mxu1 %v5301_v24  ;;  %v1477_v24 = vld [vmem:[#allocation3 + $0xe30] sm:$0xff] }
 0x366   : > { %5304 = vmatprep.subr.bf16.mxu1 %v5303_v29  ;;  %v1844_v29 = vrot.slane %v1397_v22, 6  ;;  %v5333_v35 = vpack.c.bf16 %v1477_v24, %v1475_v27  ;;  %v1510_v22 = vld [vmem:[#allocation3 + $0xf38] sm:$0xff] }
 0x367   : > { %v1514_v27 = vld [vmem:[#allocation3 + $0xf58] sm:$0xff] }
 0x368   : > { %v1846_v44 = vsel %vm1834_vm2, %v1844_v29, %v7054_v11 }
 0x369   : > { %5306 = vmatpush1.bf16.msra.mxu1 %v5305_v36  ;;  %v1848_v36 = vsel %vm1834_vm2, %v7054_v11, %v1847_v57  ;;  %v1509_v57 = vld [vmem:[#allocation3 + $0xf30] sm:$0xff] }
 0x36a   : > { %5308 = vmatprep.subr.bf16.mxu1 %v5307_v37  ;;  %v5335_v37 = vpack.c.bf16 %v1482_v33, %v1480_v31  ;;  %v1511_v31 = vld [vmem:[#allocation3 + $0xf40] sm:$0xff]  ;;  %v1513_v33 = vld [vmem:[#allocation3 + $0xf50] sm:$0xff] }
 0x36d   : > { %5310 = vmatpush1.bf16.msra.mxu1 %v5309_v48  ;;  %v1486_v48 = vld [vmem:[#allocation3 + $0xe78] sm:$0xff] }
 0x36e   : > { %5312 = vmatprep.subr.bf16.mxu1 %v5311_v49  ;;  %v5339_v32 = vpack.c.bf16 %v1486_v48, %v1484_v47  ;;  %v1483_v49 = vld [vmem:[#allocation3 + $0xe60] sm:$0xff]  ;;  %v1522_v47 = vld [vmem:[#allocation3 + $0xf98] sm:$0xff]  ;;  %v5373_v48 = vpack.c.bf16 %v1517_v41, %v1515_v38  ;;  %v2043_v38 = vld [vmem:[#allocation3 + $0x1468] sm:$0xff] }
 0x36f   : > { %v5341_v46 = vpack.c.bf16 %v1485_v50, %v1483_v49  ;;  %v1521_v49 = vld [vmem:[#allocation3 + $0xf90] sm:$0xff]  ;;  %v1524_v50 = vld [vmem:[#allocation3 + $0xfa8] sm:$0xff]  ;;  %v2045_v41 = vld [vmem:[#allocation3 + $0x1478] sm:$0xff] }
 0x371   : > { %5314 = vmatpush1.bf16.msra.mxu1 %v5313_v53  ;;  %v5343_v53 = vpack.c.bf16 %v1490_v52, %v1488_v51  ;;  %v1526_v51 = vld [vmem:[#allocation3 + $0xfb8] sm:$0xff] }
 0x372   : > { %5316 = vmatprep.subr.bf16.mxu1 %v5315_v54  ;;  %v1487_v54 = vld [vmem:[#allocation3 + $0xe80] sm:$0xff] }
 0x373   : > { %v5345_v56 = vpack.c.bf16 %v1489_v39, %v1487_v54  ;;  %v1525_v54 = vld [vmem:[#allocation3 + $0xfb0] sm:$0xff]  ;;  %v1528_v39 = vld [vmem:[#allocation3 + $0xfc8] sm:$0xff] }
 0x375   : > { %5318 = vmatpush1.bf16.msra.mxu1 %v5317_v59  ;;  %v5347_v59 = vpack.c.bf16 %v1494_v55, %v1492_v43  ;;  %v1530_v43 = vld [vmem:[#allocation3 + $0xfd8] sm:$0xff] }
 0x376   : > { %5320 = vmatprep.subr.bf16.mxu1 %v5319_v61  ;;  %v1491_v61 = vld [vmem:[#allocation3 + $0xea0] sm:$0xff] }
 0x377   : > { %v5349_v2 = vpack.c.bf16 %v1493_v62, %v1491_v61  ;;  %v1529_v61 = vld [vmem:[#allocation3 + $0xfd0] sm:$0xff]  ;;  %v1532_v62 = vld [vmem:[#allocation3 + $0xfe8] sm:$0xff] }
 0x379   : > { %5322 = vmatpush1.bf16.msra.mxu1 %v5321_v3  ;;  %v5351_v3 = vpack.c.bf16 %v1498_v1, %v1496_v63  ;;  %v1534_v63 = vld [vmem:[#allocation3 + $0xff8] sm:$0xff] }
 0x37a   : > { %5324 = vmatprep.subr.bf16.mxu1 %v5323_v4  ;;  %v1495_v4 = vld [vmem:[#allocation3 + $0xec0] sm:$0xff] }
 0x37b   : > { %v5353_v8 = vpack.c.bf16 %v1497_v58, %v1495_v4  ;;  %v1533_v4 = vld [vmem:[#allocation3 + $0xff0] sm:$0xff]  ;;  %v2031_v58 = vld [vmem:[#allocation3 + $0x1408] sm:$0xff] }
 0x37d   : > { %5326 = vmatpush1.bf16.msra.mxu1 %v5325_v0  ;;  %v1499_v0 = vld [vmem:[#allocation3 + $0xee0] sm:$0xff] }
 0x37e   : > { %5328 = vmatprep.subr.bf16.mxu1 %v5327_v13  ;;  %v1506_v13 = vld [vmem:[#allocation3 + $0xf18] sm:$0xff]  ;;  %v5357_v15 = vpack.c.bf16 %v1501_v12, %v1499_v0  ;;  %v5391_v0 = vpack.c.bf16 %v2033_v6, %v2031_v58  ;;  %v2030_v12 = vld [vmem:[#allocation3 + $0x1400] sm:$0xff]  ;;  %v2538_v6 = vld [vmem:[#allocation3 + $0x1c50] sm:$0xff] }
 0x37f   : > { %v5359_v17 = vpack.c.bf16 %v1506_v13, %v1504_v60  ;;  %v2032_v60 = vld [vmem:[#allocation3 + $0x1410] sm:$0xff]  ;;  %v1853_v13 = vrot.slane %v1405_v7, 6  ;;  %v2536_v58 = vld [vmem:[#allocation3 + $0x1c40] sm:$0xff] }
 0x380   : > { %1928 = vmatmul.mubr.f32.vlgmr.msra.gmra.mrb[0].mxu1 %v1837_v5  ;;  %v5363_v5 = vpack.c.bf16 %v1510_v22, %v1508_v21  ;;  %v1404_v21 = vld [vmem:[#allocation2 + $0x50] sm:$0x3f]  ;;  %v5393_v22 = vpack.c.bf16 %v2032_v60, %v2030_v12  ;;  %v2051_v12 = vld [vmem:[#allocation3 + $0x14a8] sm:$0xff]  ;;  %v2053_v60 = vld [vmem:[#allocation3 + $0x14b8] sm:$0xff] }
 0x381   : > { %1933 = vmatprep.mubr.f32.mxu1 %v1850_v34  ;;  %5330 = vmatpush1.bf16.msra.mxu1 %v5329_v25  ;;  %v1507_v25 = vld [vmem:[#allocation3 + $0xf20] sm:$0xff]  ;;  %v1516_v34 = vld [vmem:[#allocation3 + $0xf68] sm:$0xff] }
 0x382   : > { %5332 = vmatprep.subr.bf16.mxu1 %v5331_v26  ;;  %v1512_v26 = vld [vmem:[#allocation3 + $0xf48] sm:$0xff]  ;;  %v5365_v24 = vpack.c.bf16 %v1509_v57, %v1507_v25  ;;  %v5395_v25 = vpack.c.bf16 %v2037_v20, %v2035_v19  ;;  %v2034_v57 = vld [vmem:[#allocation3 + $0x1420] sm:$0xff] }
 0x383   : > { %v5367_v29 = vpack.c.bf16 %v1514_v27, %v1512_v26  ;;  %v2036_v26 = vld [vmem:[#allocation3 + $0x1430] sm:$0xff]  ;;  %v2540_v20 = vld [vmem:[#allocation3 + $0x1c60] sm:$0xff] }
 0x384   : > { %1934 = vmatmul.mubr.f32.gmra.mrb[2].mxu1 %v1848_v36  ;;  %v5369_v36 = vpack.c.bf16 %v1513_v33, %v1511_v31  ;;  %v2041_v31 = vld [vmem:[#allocation3 + $0x1458] sm:$0xff]  ;;  %v5397_v33 = vpack.c.bf16 %v2036_v26, %v2034_v57  ;;  %v2055_v57 = vld [vmem:[#allocation3 + $0x14c8] sm:$0xff] }
 0x385   : > { %5334 = vmatpush1.bf16.msra.mxu1 %v5333_v35  ;;  %2004 = vmatprep.mubr.f32.mxu1 %v1846_v44  ;;  %v1518_v35 = vld [vmem:[#allocation3 + $0xf78] sm:$0xff]  ;;  %v1520_v44 = vld [vmem:[#allocation3 + $0xf88] sm:$0xff] }
 0x386   : > { %5336 = vmatprep.subr.bf16.mxu1 %v5335_v37  ;;  %v5371_v37 = vpack.c.bf16 %v1518_v35, %v1516_v34  ;;  %v2175_v34 = vrot.slane %v7036_v40, 2  ;;  %v2057_v26 = vld [vmem:[#allocation3 + $0x14d8] sm:$0xff] }
 0x389   : > { %5338 = vmatpush1.bf16.msra.mxu1 %v5337_v28  ;;  %v5375_v28 = vpack.c.bf16 %v1522_v47, %v1520_v44  ;;  %v2042_v47 = vld [vmem:[#allocation3 + $0x1460] sm:$0xff] }
 0x38a   : > { %5340 = vmatprep.subr.bf16.mxu1 %v5339_v32  ;;  %v1519_v32 = vld [vmem:[#allocation3 + $0xf80] sm:$0xff] }
 0x38b   : > { %v5377_v52 = vpack.c.bf16 %v1521_v49, %v1519_v32  ;;  %v2531_v32 = vld [vmem:[#allocation3 + $0x1c18] sm:$0xff]  ;;  %v2528_v49 = vld [vmem:[#allocation3 + $0x1c00] sm:$0xff] }
 0x38d   : > { %5342 = vmatpush1.bf16.msra.mxu1 %v5341_v46  ;;  %v5379_v46 = vpack.c.bf16 %v1526_v51, %v1524_v50 }
 0x38e   : > { %5344 = vmatprep.subr.bf16.mxu1 %v5343_v53  ;;  %v1523_v53 = vld [vmem:[#allocation3 + $0xfa0] sm:$0xff] }
 0x38f   : > { %v5381_v55 = vpack.c.bf16 %v1525_v54, %v1523_v53  ;;  %v2535_v53 = vld [vmem:[#allocation3 + $0x1c38] sm:$0xff]  ;;  %v5403_v54 = vpack.c.bf16 %v2045_v41, %v2043_v38  ;;  %v2059_v38 = vld [vmem:[#allocation3 + $0x14e8] sm:$0xff] }
 0x390   : > { %v2061_v41 = vld [vmem:[#allocation3 + $0x14f8] sm:$0xff] }
 0x391   : > { %5346 = vmatpush1.bf16.msra.mxu1 %v5345_v56  ;;  %v5383_v56 = vpack.c.bf16 %v1530_v43, %v1528_v39 }
 0x392   : > { %5348 = vmatprep.subr.bf16.mxu1 %v5347_v59  ;;  %v1527_v59 = vld [vmem:[#allocation3 + $0xfc0] sm:$0xff] }
 0x393   : > { %v5385_v1 = vpack.c.bf16 %v1529_v61, %v1527_v59  ;;  %v2537_v59 = vld [vmem:[#allocation3 + $0x1c48] sm:$0xff] }
 0x394   : > { %v2047_v61 = vld [vmem:[#allocation3 + $0x1488] sm:$0xff] }
 0x395   : > { %5350 = vmatpush1.bf16.msra.mxu1 %v5349_v2  ;;  %v5387_v2 = vpack.c.bf16 %v1534_v63, %v1532_v62  ;;  %v2049_v62 = vld [vmem:[#allocation3 + $0x1498] sm:$0xff] }
 0x396   : > { %5352 = vmatprep.subr.bf16.mxu1 %v5351_v3  ;;  %v1531_v3 = vld [vmem:[#allocation3 + $0xfe0] sm:$0xff]  ;;  %v2539_v63 = vld [vmem:[#allocation3 + $0x1c58] sm:$0xff]  ;;  %v5407_v7 = vpack.c.bf16 %v2049_v62, %v2047_v61  ;;  %v2554_v61 = vld [vmem:[#allocation3 + $0x1cd0] sm:$0xff] }
 0x399   : > { %5354 = vmatpush1.bf16.msra.mxu1 %v5353_v8  ;;  %v1396_v8 = vld [vmem:[#allocation2 + $0x10] sm:$0xc0] }
 0x39a   : > { %5356 = vmatprep.subr.bf16.mxu1 %v5355_v9  ;;  %v5389_v9 = vpack.c.bf16 %v1533_v4, %v1531_v3  ;;  %v2046_v3 = vld [vmem:[#allocation3 + $0x1480] sm:$0xff]  ;;  %v5527_v4 = vpack.c.bf16 %v2539_v63, %v2537_v59  ;;  %v2064_v63 = vld [vmem:[#allocation3 + $0x1510] sm:$0xff] }
 0x39b   : > { %v2552_v59 = vld [vmem:[#allocation3 + $0x1cc0] sm:$0xff] }
 0x39d   : > { %5358 = vmatpush1.bf16.msra.mxu1 %v5357_v15  ;;  %v1842_v15 = vrot.slane %v7028_v30, 6 }
 0x39e   : > { %5360 = vmatprep.subr.bf16.mxu1 %v5359_v17  ;;  %v1841_v17 = vrot.slane %v1396_v8, 6  ;;  %v2048_v8 = vld [vmem:[#allocation3 + $0x1490] sm:$0xff] }
 0x3a0   : > { %v1843_v27 = vsel %vm1834_vm2, %v1841_v17, %v1842_v15  ;;  %v2050_v17 = vld [vmem:[#allocation3 + $0x14a0] sm:$0xff] }
 0x3a1   : > { %5362 = vmatpush1.bf16.msra.mxu1 %v5361_v23  ;;  %v2018_v23 = vld [vmem:[#allocation2 + $0x28] sm:$0xfc] }
 0x3a2   : > { %5364 = vmatprep.subr.bf16.mxu1 %v5363_v5  ;;  %v1854_v5 = vsel %vm1834_vm2, %v7054_v11, %v1853_v13  ;;  %v2174_v30 = vrot.slane %v2018_v23, 2  ;;  %v5529_v13 = vpack.c.bf16 %v2538_v6, %v2536_v58  ;;  %v2052_v23 = vld [vmem:[#allocation3 + $0x14b0] sm:$0xff]  ;;  %v5545_v58 = vpack.c.bf16 %v2554_v61, %v2552_v59 }
 0x3a4   : > { %v2176_v44 = vsel %vm2170_vm3, %v2174_v30, %v2175_v34  ;;  %v2544_v30 = vld [vmem:[#allocation3 + $0x1c80] sm:$0xff] }
 0x3a5   : > { %5366 = vmatpush1.bf16.msra.mxu1 %v5365_v24  ;;  %v1851_v24 = vrot.slane %v1404_v21, 6  ;;  %v2542_v21 = vld [vmem:[#allocation3 + $0x1c70] sm:$0xff] }
 0x3a6   : > { %5368 = vmatprep.subr.bf16.mxu1 %v5367_v29  ;;  %v2039_v29 = vld [vmem:[#allocation3 + $0x1448] sm:$0xff] }
 0x3a7   : > { %v5399_v35 = vpack.c.bf16 %v2041_v31, %v2039_v29  ;;  %v1852_v11 = vsel %vm1834_vm2, %v1842_v15, %v1851_v24  ;;  %v5409_v15 = vpack.c.bf16 %v2048_v8, %v2046_v3  ;;  %v5413_v24 = vpack.c.bf16 %v2052_v23, %v2050_v17  ;;  %v2054_v29 = vld [vmem:[#allocation3 + $0x14c0] sm:$0xff]  ;;  %v2067_v3 = vld [vmem:[#allocation3 + $0x1528] sm:$0xff] }
 0x3a8   : > { %v2071_v17 = vld [vmem:[#allocation3 + $0x1548] sm:$0xff] }
 0x3a9   : > { %5370 = vmatpush1.bf16.msra.mxu1 %v5369_v36  ;;  %v2038_v36 = vld [vmem:[#allocation3 + $0x1440] sm:$0xff] }
 0x3aa   : > { %5372 = vmatprep.subr.bf16.mxu1 %v5371_v37  ;;  %v2040_v37 = vld [vmem:[#allocation3 + $0x1450] sm:$0xff] }
 0x3ab   : > { %v5401_v50 = vpack.c.bf16 %v2040_v37, %v2038_v36  ;;  %v2056_v36 = vld [vmem:[#allocation3 + $0x14d0] sm:$0xff]  ;;  %v2549_v37 = vld [vmem:[#allocation3 + $0x1ca8] sm:$0xff] }
 0x3ad   : > { %5374 = vmatpush1.bf16.msra.mxu1 %v5373_v48  ;;  %v2044_v48 = vld [vmem:[#allocation3 + $0x1470] sm:$0xff] }
 0x3ae   : > { %5376 = vmatprep.subr.bf16.mxu1 %v5375_v28  ;;  %v2529_v28 = vld [vmem:[#allocation3 + $0x1c08] sm:$0xff] }
 0x3af   : > { %v5519_v51 = vpack.c.bf16 %v2531_v32, %v2529_v28  ;;  %v2548_v32 = vld [vmem:[#allocation3 + $0x1ca0] sm:$0xff] }
 0x3b1   : > { %5378 = vmatpush1.bf16.msra.mxu1 %v5377_v52  ;;  %v2530_v52 = vld [vmem:[#allocation3 + $0x1c10] sm:$0xff]  ;;  %5520 = vmatprep.subr.bf16.mxu0 %v5519_v51 }
 0x3b2   : > { %5380 = vmatprep.subr.bf16.mxu1 %v5379_v46  ;;  %v2533_v46 = vld [vmem:[#allocation3 + $0x1c28] sm:$0xff]  ;;  %v5521_v39 = vpack.c.bf16 %v2530_v52, %v2528_v49  ;;  %v2550_v49 = vld [vmem:[#allocation3 + $0x1cb0] sm:$0xff] }
 0x3b3   : > { %v5523_v43 = vpack.c.bf16 %v2535_v53, %v2533_v46  ;;  %v2060_v51 = vld [vmem:[#allocation3 + $0x14f0] sm:$0xff]  ;;  %v2553_v52 = vld [vmem:[#allocation3 + $0x1cc8] sm:$0xff]  ;;  %v2555_v46 = vld [vmem:[#allocation3 + $0x1cd8] sm:$0xff] }
 0x3b4   : > { %5522 = vmatpush1.bf16.msra.mxu0 %v5521_v39  ;;  %v2063_v53 = vld [vmem:[#allocation3 + $0x1508] sm:$0xff]  ;;  %v5541_v39 = vpack.c.bf16 %v2550_v49, %v2548_v32 }
 0x3b5   : > { %5382 = vmatpush1.bf16.msra.mxu1 %v5381_v55  ;;  %v2532_v55 = vld [vmem:[#allocation3 + $0x1c20] sm:$0xff]  ;;  %5524 = vmatprep.subr.bf16.mxu0 %v5523_v43 }
 0x3b6   : > { %5384 = vmatprep.subr.bf16.mxu1 %v5383_v56  ;;  %v2534_v56 = vld [vmem:[#allocation3 + $0x1c30] sm:$0xff] }
 0x3b9   : > { %5386 = vmatpush1.bf16.msra.mxu1 %v5385_v1  ;;  %v5525_v1 = vpack.c.bf16 %v2534_v56, %v2532_v55  ;;  %v2062_v55 = vld [vmem:[#allocation3 + $0x1500] sm:$0xff]  ;;  %v5543_v56 = vpack.c.bf16 %v2555_v46, %v2553_v52  ;;  %v2570_v46 = vld [vmem:[#allocation3 + $0x1d50] sm:$0xff] }
 0x3ba   : > { %5388 = vmatprep.subr.bf16.mxu1 %v5387_v2  ;;  %v5405_v2 = vpack.c.bf16 %v2044_v48, %v2042_v47  ;;  %v5417_v47 = vpack.c.bf16 %v2056_v36, %v2054_v29  ;;  %v2058_v48 = vld [vmem:[#allocation3 + $0x14e0] sm:$0xff]  ;;  %v5425_v6 = vpack.c.bf16 %v2064_v63, %v2062_v55  ;;  %v2075_v29 = vld [vmem:[#allocation3 + $0x1568] sm:$0xff] }
 0x3bb   : > { %5526 = vmatpush1.bf16.msra.mxu0 %v5525_v1  ;;  %v5421_v43 = vpack.c.bf16 %v2060_v51, %v2058_v48  ;;  %v2557_v1 = vld [vmem:[#allocation3 + $0x1ce8] sm:$0xff]  ;;  %v2568_v52 = vld [vmem:[#allocation3 + $0x1d40] sm:$0xff] }
 0x3bc   : > { %5528 = vmatprep.subr.bf16.mxu0 %v5527_v4  ;;  %v2069_v4 = vld [vmem:[#allocation3 + $0x1538] sm:$0xff]  ;;  %v2079_v48 = vld [vmem:[#allocation3 + $0x1588] sm:$0xff]  ;;  %v5561_v59 = vpack.c.bf16 %v2570_v46, %v2568_v52  ;;  %v2100_v52 = vld [vmem:[#allocation3 + $0x1630] sm:$0xff] }
 0x3bd   : > { %5390 = vmatpush1.bf16.msra.mxu1 %v5389_v9  ;;  %v2541_v9 = vld [vmem:[#allocation3 + $0x1c68] sm:$0xff] }
 0x3be   : > { %5392 = vmatprep.subr.bf16.mxu1 %v5391_v0  ;;  %v2543_v0 = vld [vmem:[#allocation3 + $0x1c78] sm:$0xff]  ;;  %v2083_v55 = vld [vmem:[#allocation3 + $0x15a8] sm:$0xff] }
 0x3bf   : > { %v5531_v19 = vpack.c.bf16 %v2543_v0, %v2541_v9  ;;  %5530 = vmatpush1.bf16.msra.mxu0 %v5529_v13  ;;  %v2556_v9 = vld [vmem:[#allocation3 + $0x1ce0] sm:$0xff]  ;;  %v2558_v0 = vld [vmem:[#allocation3 + $0x1cf0] sm:$0xff]  ;;  %v2561_v13 = vld [vmem:[#allocation3 + $0x1d08] sm:$0xff] }
 0x3c0   : > { %2005 = vmatmul.mubr.f32.vlgmr.msra.gmra.mrb[0].mxu1 %v1843_v27  ;;  %v5533_v27 = vpack.c.bf16 %v2542_v21, %v2540_v20  ;;  %v5549_v20 = vpack.c.bf16 %v2558_v0, %v2556_v9 }
 0x3c1   : > { %5394 = vmatpush1.bf16.msra.mxu1 %v5393_v22  ;;  %2010 = vmatprep.mubr.f32.mxu1 %v1854_v5  ;;  %v5411_v22 = vpack.c.bf16 %v2053_v60, %v2051_v12  ;;  %v2545_v5 = vld [vmem:[#allocation3 + $0x1c88] sm:$0xff]  ;;  %v5427_v12 = vpack.c.bf16 %v2069_v4, %v2067_v3  ;;  %v2068_v60 = vld [vmem:[#allocation3 + $0x1530] sm:$0xff] }
 0x3c2   : > { %5396 = vmatprep.subr.bf16.mxu1 %v5395_v25  ;;  %v2547_v25 = vld [vmem:[#allocation3 + $0x1c98] sm:$0xff]  ;;  %5532 = vmatprep.subr.bf16.mxu0 %v5531_v19  ;;  %v2084_v4 = vld [vmem:[#allocation3 + $0x15b0] sm:$0xff] }
 0x3c3   : > { %v5535_v31 = vpack.c.bf16 %v2547_v25, %v2545_v5  ;;  %5534 = vmatpush1.bf16.msra.mxu0 %v5533_v27  ;;  %v2073_v19 = vld [vmem:[#allocation3 + $0x1558] sm:$0xff]  ;;  %v2560_v5 = vld [vmem:[#allocation3 + $0x1d00] sm:$0xff]  ;;  %v2562_v25 = vld [vmem:[#allocation3 + $0x1d10] sm:$0xff] }
 0x3c4   : > { %2011 = vmatmul.mubr.f32.gmra.mrb[2].mxu1 %v1852_v11  ;;  %v2551_v11 = vld [vmem:[#allocation3 + $0x1cb8] sm:$0xff]  ;;  %v2565_v27 = vld [vmem:[#allocation3 + $0x1d28] sm:$0xff] }
 0x3c5   : > { %5398 = vmatpush1.bf16.msra.mxu1 %v5397_v33  ;;  %2263 = vmatprep.mubr.f32.mxu1 %v2176_v44  ;;  %v2546_v33 = vld [vmem:[#allocation3 + $0x1c90] sm:$0xff]  ;;  %v5539_v28 = vpack.c.bf16 %v2551_v11, %v2549_v37  ;;  %v2564_v37 = vld [vmem:[#allocation3 + $0x1d20] sm:$0xff] }
 0x3c6   : > { %5400 = vmatprep.subr.bf16.mxu1 %v5399_v35  ;;  %v5415_v35 = vpack.c.bf16 %v2057_v26, %v2055_v57  ;;  %v5537_v44 = vpack.c.bf16 %v2546_v33, %v2544_v30  ;;  %5536 = vmatprep.subr.bf16.mxu0 %v5535_v31  ;;  %v5431_v57 = vpack.c.bf16 %v2073_v19, %v2071_v17  ;;  %v2072_v26 = vld [vmem:[#allocation3 + $0x1550] sm:$0xff]  ;;  %v2077_v31 = vld [vmem:[#allocation3 + $0x1578] sm:$0xff]  ;;  %v2086_v17 = vld [vmem:[#allocation3 + $0x15c0] sm:$0xff] }
 0x3c7   : > { %v5553_v30 = vpack.c.bf16 %v2562_v25, %v2560_v5  ;;  %v2566_v11 = vld [vmem:[#allocation3 + $0x1d30] sm:$0xff]  ;;  %v2090_v25 = vld [vmem:[#allocation3 + $0x15e0] sm:$0xff] }
 0x3c8   : > { %5538 = vmatpush1.bf16.msra.mxu0 %v5537_v44  ;;  %v2569_v44 = vld [vmem:[#allocation3 + $0x1d48] sm:$0xff]  ;;  %v5557_v32 = vpack.c.bf16 %v2566_v11, %v2564_v37  ;;  %v2088_v19 = vld [vmem:[#allocation3 + $0x15d0] sm:$0xff]  ;;  %v2094_v37 = vld [vmem:[#allocation3 + $0x1600] sm:$0xff] }
 0x3c9   : > { %5402 = vmatpush1.bf16.msra.mxu1 %v5401_v50  ;;  %v5419_v50 = vpack.c.bf16 %v2061_v41, %v2059_v38  ;;  %5540 = vmatprep.subr.bf16.mxu0 %v5539_v28  ;;  %v5435_v38 = vpack.c.bf16 %v2077_v31, %v2075_v29  ;;  %v2076_v41 = vld [vmem:[#allocation3 + $0x1570] sm:$0xff]  ;;  %v2081_v28 = vld [vmem:[#allocation3 + $0x1598] sm:$0xff] }
 0x3ca   : > { %5404 = vmatprep.subr.bf16.mxu1 %v5403_v54  ;;  %v2065_v54 = vld [vmem:[#allocation3 + $0x1518] sm:$0xff]  ;;  %v2096_v11 = vld [vmem:[#allocation3 + $0x1610] sm:$0xff] }
 0x3cb   : > { %v5423_v62 = vpack.c.bf16 %v2065_v54, %v2063_v53  ;;  %v5439_v53 = vpack.c.bf16 %v2081_v28, %v2079_v48  ;;  %v2080_v54 = vld [vmem:[#allocation3 + $0x1590] sm:$0xff] }
 0x3cc   : > { %5542 = vmatpush1.bf16.msra.mxu0 %v5541_v39  ;;  %v2573_v39 = vld [vmem:[#allocation3 + $0x1d68] sm:$0xff] }
 0x3cd   : > { %5406 = vmatpush1.bf16.msra.mxu1 %v5405_v2  ;;  %v2559_v2 = vld [vmem:[#allocation3 + $0x1cf8] sm:$0xff]  ;;  %5544 = vmatprep.subr.bf16.mxu0 %v5543_v56 }
 0x3ce   : > { %5408 = vmatprep.subr.bf16.mxu1 %v5407_v7  ;;  %v2066_v7 = vld [vmem:[#allocation3 + $0x1520] sm:$0xff]  ;;  %v5547_v8 = vpack.c.bf16 %v2559_v2, %v2557_v1  ;;  %v2085_v56 = vld [vmem:[#allocation3 + $0x15b8] sm:$0xff]  ;;  %v2574_v2 = vld [vmem:[#allocation3 + $0x1d70] sm:$0xff] }
 0x3cf   : > { %v5429_v21 = vpack.c.bf16 %v2068_v60, %v2066_v7  ;;  %v2572_v1 = vld [vmem:[#allocation3 + $0x1d60] sm:$0xff]  ;;  %v5443_v3 = vpack.c.bf16 %v2085_v56, %v2083_v55  ;;  %v2087_v7 = vld [vmem:[#allocation3 + $0x15c8] sm:$0xff] }
 0x3d0   : > { %5546 = vmatpush1.bf16.msra.mxu0 %v5545_v58  ;;  %v2577_v58 = vld [vmem:[#allocation3 + $0x1d88] sm:$0xff]  ;;  %v5565_v9 = vpack.c.bf16 %v2574_v2, %v2572_v1  ;;  %v2576_v60 = vld [vmem:[#allocation3 + $0x1d80] sm:$0xff]  ;;  %v2109_v1 = vld [vmem:[#allocation3 + $0x1678] sm:$0xff] }
 0x3d1   : > { %5410 = vmatpush1.bf16.msra.mxu1 %v5409_v15  ;;  %v2563_v15 = vld [vmem:[#allocation3 + $0x1d18] sm:$0xff]  ;;  %5548 = vmatprep.subr.bf16.mxu0 %v5547_v8  ;;  %v2106_v2 = vld [vmem:[#allocation3 + $0x1660] sm:$0xff] }
 0x3d2   : > { %5412 = vmatprep.subr.bf16.mxu1 %v5411_v22  ;;  %v2070_v22 = vld [vmem:[#allocation3 + $0x1540] sm:$0xff]  ;;  %v5551_v23 = vpack.c.bf16 %v2563_v15, %v2561_v13  ;;  %v2089_v8 = vld [vmem:[#allocation3 + $0x15d8] sm:$0xff]  ;;  %v2578_v13 = vld [vmem:[#allocation3 + $0x1d90] sm:$0xff] }
 0x3d3   : > { %v5433_v33 = vpack.c.bf16 %v2072_v26, %v2070_v22  ;;  %v5447_v15 = vpack.c.bf16 %v2089_v8, %v2087_v7  ;;  %v5569_v22 = vpack.c.bf16 %v2578_v13, %v2576_v60  ;;  %v2017_v26 = vld [vmem:[#allocation2 + $0x20] sm:$0xfc] }
 0x3d4   : > { %5550 = vmatpush1.bf16.msra.mxu0 %v5549_v20  ;;  %v2091_v20 = vld [vmem:[#allocation3 + $0x15e8] sm:$0xff]  ;;  %v2171_v31 = vrot.slane %v2017_v26, 2  ;;  %v2110_v8 = vld [vmem:[#allocation3 + $0x1680] sm:$0xff] }
 0x3d5   : > { %5414 = vmatpush1.bf16.msra.mxu1 %v5413_v24  ;;  %v2567_v24 = vld [vmem:[#allocation3 + $0x1d38] sm:$0xff]  ;;  %5552 = vmatprep.subr.bf16.mxu0 %v5551_v23  ;;  %v5449_v23 = vpack.c.bf16 %v2088_v19, %v2086_v17  ;;  %v2116_v17 = vld [vmem:[#allocation3 + $0x16b0] sm:$0xff]  ;;  %v2119_v19 = vld [vmem:[#allocation3 + $0x16c8] sm:$0xff] }
 0x3d6   : > { %5416 = vmatprep.subr.bf16.mxu1 %v5415_v35  ;;  %v2074_v35 = vld [vmem:[#allocation3 + $0x1560] sm:$0xff]  ;;  %v5555_v36 = vpack.c.bf16 %v2567_v24, %v2565_v27  ;;  %v2095_v27 = vld [vmem:[#allocation3 + $0x1608] sm:$0xff]  ;;  %v2097_v24 = vld [vmem:[#allocation3 + $0x1618] sm:$0xff] }
 0x3d7   : > { %v5437_v49 = vpack.c.bf16 %v2076_v41, %v2074_v35  ;;  %v2026_v35 = vld [vmem:[#allocation2 + $0x68] sm:$0x3] }
 0x3d8   : > { %5554 = vmatpush1.bf16.msra.mxu0 %v5553_v30  ;;  %v7074_v30 = vld [vmem:[#allocation2 + $0x20] sm:$0xff]  ;;  %v2099_v41 = vld [vmem:[#allocation3 + $0x1628] sm:$0xff]  ;;  %v2185_v48 = vrot.slane %v2026_v35, 2  ;;  %v2129_v35 = vld [vmem:[#allocation3 + $0x1718] sm:$0xff] }
 0x3d9   : > { %5418 = vmatpush1.bf16.msra.mxu1 %v5417_v47  ;;  %v2571_v47 = vld [vmem:[#allocation3 + $0x1d58] sm:$0xff]  ;;  %5556 = vmatprep.subr.bf16.mxu0 %v5555_v36  ;;  %v5455_v36 = vpack.c.bf16 %v2097_v24, %v2095_v27  ;;  %v2122_v24 = vld [vmem:[#allocation3 + $0x16e0] sm:$0xff] }
 0x3da   : > { %5420 = vmatprep.subr.bf16.mxu1 %v5419_v50  ;;  %v2078_v50 = vld [vmem:[#allocation3 + $0x1580] sm:$0xff]  ;;  %v5559_v51 = vpack.c.bf16 %v2571_v47, %v2569_v44  ;;  %v2101_v44 = vld [vmem:[#allocation3 + $0x1638] sm:$0xff] }
 0x3db   : > { %v5441_v61 = vpack.c.bf16 %v2080_v54, %v2078_v50  ;;  %v2020_v47 = vld [vmem:[#allocation2 + $0x38] sm:$0xfc]  ;;  %v5459_v50 = vpack.c.bf16 %v2101_v44, %v2099_v41  ;;  %v2131_v41 = vld [vmem:[#allocation3 + $0x1728] sm:$0xff] }
 0x3dc   : > { %5558 = vmatpush1.bf16.msra.mxu0 %v5557_v32  ;;  %v5457_v32 = vpack.c.bf16 %v2096_v11, %v2094_v37  ;;  %v2180_v46 = vrot.slane %v2020_v47, 2  ;;  %v2105_v54 = vld [vmem:[#allocation3 + $0x1658] sm:$0xff]  ;;  %v2126_v11 = vld [vmem:[#allocation3 + $0x1700] sm:$0xff] }
 0x3dd   : > { %5422 = vmatpush1.bf16.msra.mxu1 %v5421_v43  ;;  %v2575_v43 = vld [vmem:[#allocation3 + $0x1d78] sm:$0xff]  ;;  %5560 = vmatprep.subr.bf16.mxu0 %v5559_v51  ;;  %v2098_v51 = vld [vmem:[#allocation3 + $0x1620] sm:$0xff] }
 0x3de   : > { %5424 = vmatprep.subr.bf16.mxu1 %v5423_v62  ;;  %v2082_v62 = vld [vmem:[#allocation3 + $0x15a0] sm:$0xff]  ;;  %v5563_v63 = vpack.c.bf16 %v2575_v43, %v2573_v39  ;;  %v2186_v39 = vsel %vm2170_vm3, %v2175_v34, %v2185_v48  ;;  %v5461_v43 = vpack.c.bf16 %v2100_v52, %v2098_v51  ;;  %v2133_v44 = vld [vmem:[#allocation3 + $0x1738] sm:$0xff] }
 0x3df   : > { %v5445_v0 = vpack.c.bf16 %v2084_v4, %v2082_v62  ;;  %v2111_v4 = vld [vmem:[#allocation3 + $0x1688] sm:$0xff]  ;;  %v5491_v48 = vpack.c.bf16 %v2133_v44, %v2131_v41  ;;  %v2580_v44 = vld [vmem:[#allocation3 + $0x1da0] sm:$0xff] }
 0x3e0   : > { %5562 = vmatpush1.bf16.msra.mxu0 %v5561_v59  ;;  %v2102_v59 = vld [vmem:[#allocation3 + $0x1640] sm:$0xff] }
 0x3e1   : > { %5426 = vmatpush1.bf16.msra.mxu1 %v5425_v6  ;;  %v2579_v6 = vld [vmem:[#allocation3 + $0x1d98] sm:$0xff]  ;;  %5564 = vmatprep.subr.bf16.mxu0 %v5563_v63  ;;  %v2107_v63 = vld [vmem:[#allocation3 + $0x1668] sm:$0xff] }
 0x3e2   : > { %5428 = vmatprep.subr.bf16.mxu1 %v5427_v12  ;;  %v5567_v12 = vpack.c.bf16 %v2579_v6, %v2577_v58  ;;  %v5467_v34 = vpack.c.bf16 %v2109_v1, %v2107_v63  ;;  %v2113_v58 = vld [vmem:[#allocation3 + $0x1698] sm:$0xff] }
 0x3e3   : > { %v5471_v7 = vpack.c.bf16 %v2113_v58, %v2111_v4 }
 0x3e4   : > { %5566 = vmatpush1.bf16.msra.mxu0 %v5565_v9  ;;  %v2112_v9 = vld [vmem:[#allocation3 + $0x1690] sm:$0xff] }
 0x3e5   : > { %5430 = vmatpush1.bf16.msra.mxu1 %v5429_v21  ;;  %v2093_v21 = vld [vmem:[#allocation3 + $0x15f8] sm:$0xff]  ;;  %5568 = vmatprep.subr.bf16.mxu0 %v5567_v12  ;;  %v5473_v60 = vpack.c.bf16 %v2112_v9, %v2110_v8  ;;  %v2151_v8 = vld [vmem:[#allocation3 + $0x17c8] sm:$0xff] }
 0x3e6   : > { %5432 = vmatprep.subr.bf16.mxu1 %v5431_v57  ;;  %v5451_v5 = vpack.c.bf16 %v2093_v21, %v2091_v20  ;;  %v2092_v57 = vld [vmem:[#allocation3 + $0x15f0] sm:$0xff]  ;;  %v2117_v12 = vld [vmem:[#allocation3 + $0x16b8] sm:$0xff] }
 0x3e7   : > { %v5453_v29 = vpack.c.bf16 %v2092_v57, %v2090_v25  ;;  %v2121_v20 = vld [vmem:[#allocation3 + $0x16d8] sm:$0xff]  ;;  %v2123_v25 = vld [vmem:[#allocation3 + $0x16e8] sm:$0xff] }
 0x3e8   : > { %5570 = vmatpush1.bf16.msra.mxu0 %v5569_v22  ;;  %v5479_v22 = vpack.c.bf16 %v2121_v20, %v2119_v19  ;;  %v2125_v57 = vld [vmem:[#allocation3 + $0x16f8] sm:$0xff] }
 0x3e9   : > { %5434 = vmatpush1.bf16.msra.mxu1 %v5433_v33  ;;  %v7077_v33 = vrot.slane %v7074_v30, 2  ;;  %v5483_v27 = vpack.c.bf16 %v2125_v57, %v2123_v25  ;;  %v2153_v9 = vld [vmem:[#allocation3 + $0x17d8] sm:$0xff]  ;;  %v2019_v57 = vld [vmem:[#allocation2 + $0x30] sm:$0xfc] }
 0x3ea   : > { %5436 = vmatprep.subr.bf16.mxu1 %v5435_v38  ;;  %v2025_v38 = vld [vmem:[#allocation2 + $0x60] sm:$0x3] }
 0x3eb   : > { %v2173_v28 = vsel %vm2170_vm3, %v2171_v31, %v7077_v33  ;;  %v2182_v62 = vsel %vm2170_vm3, %v2180_v46, %v7077_v33  ;;  %v2127_v31 = vld [vmem:[#allocation3 + $0x1708] sm:$0xff]  ;;  %v2134_v46 = vld [vmem:[#allocation3 + $0x1740] sm:$0xff] }
 0x3ec   : > { %v5487_v37 = vpack.c.bf16 %v2129_v35, %v2127_v31 }
 0x3ed   : > { %5438 = vmatpush1.bf16.msra.mxu1 %v5437_v49  ;;  %v2183_v49 = vrot.slane %v2025_v38, 2  ;;  %v2128_v38 = vld [vmem:[#allocation3 + $0x1710] sm:$0xff] }
 0x3ee   : > { %5440 = vmatprep.subr.bf16.mxu1 %v5439_v53  ;;  %v2103_v53 = vld [vmem:[#allocation3 + $0x1648] sm:$0xff]  ;;  %v5489_v47 = vpack.c.bf16 %v2128_v38, %v2126_v11  ;;  %v2583_v38 = vld [vmem:[#allocation3 + $0x1db8] sm:$0xff] }
 0x3ef   : > { %v2184_v55 = vsel %vm2170_vm3, %v7077_v33, %v2183_v49  ;;  %v5463_v56 = vpack.c.bf16 %v2105_v54, %v2103_v53  ;;  %v2135_v49 = vld [vmem:[#allocation3 + $0x1748] sm:$0xff]  ;;  %v2136_v53 = vld [vmem:[#allocation3 + $0x1750] sm:$0xff] }
 0x3f0   : > { %v2139_v54 = vld [vmem:[#allocation3 + $0x1768] sm:$0xff] }
 0x3f1   : > { %5442 = vmatpush1.bf16.msra.mxu1 %v5441_v61  ;;  %v2104_v61 = vld [vmem:[#allocation3 + $0x1650] sm:$0xff]  ;;  %v2581_v11 = vld [vmem:[#allocation3 + $0x1da8] sm:$0xff] }
 0x3f2   : > { %5444 = vmatprep.subr.bf16.mxu1 %v5443_v3  ;;  %v5465_v40 = vpack.c.bf16 %v2104_v61, %v2102_v59  ;;  %v2108_v3 = vld [vmem:[#allocation3 + $0x1670] sm:$0xff]  ;;  %v2143_v61 = vld [vmem:[#allocation3 + $0x1788] sm:$0xff]  ;;  %v5571_v41 = vpack.c.bf16 %v2583_v38, %v2581_v11  ;;  %v2611_v11 = vld [vmem:[#allocation3 + $0x1e98] sm:$0xff] }
 0x3f3   : > { %v5469_v6 = vpack.c.bf16 %v2108_v3, %v2106_v2  ;;  %v2140_v59 = vld [vmem:[#allocation3 + $0x1770] sm:$0xff]  ;;  %v2147_v2 = vld [vmem:[#allocation3 + $0x17a8] sm:$0xff]  ;;  %v2149_v3 = vld [vmem:[#allocation3 + $0x17b8] sm:$0xff] }
 0x3f4   : > { %v5507_v58 = vpack.c.bf16 %v2149_v3, %v2147_v2  ;;  %5572 = vmatprep.subr.bf16.mxu0 %v5571_v41 }
 0x3f5   : > { %5446 = vmatpush1.bf16.msra.mxu1 %v5445_v0  ;;  %v2115_v0 = vld [vmem:[#allocation3 + $0x16a8] sm:$0xff] }
 0x3f6   : > { %5448 = vmatprep.subr.bf16.mxu1 %v5447_v15  ;;  %v5475_v13 = vpack.c.bf16 %v2117_v12, %v2115_v0  ;;  %v2114_v15 = vld [vmem:[#allocation3 + $0x16a0] sm:$0xff]  ;;  %v5511_v12 = vpack.c.bf16 %v2153_v9, %v2151_v8 }
 0x3f7   : > { %v5477_v21 = vpack.c.bf16 %v2116_v17, %v2114_v15  ;;  %v2155_v15 = vld [vmem:[#allocation3 + $0x17e8] sm:$0xff]  ;;  %v2157_v17 = vld [vmem:[#allocation3 + $0x17f8] sm:$0xff] }
 0x3f8   : > { %v5515_v20 = vpack.c.bf16 %v2157_v17, %v2155_v15 }
 0x3f9   : > { %5450 = vmatpush1.bf16.msra.mxu1 %v5449_v23  ;;  %v2118_v23 = vld [vmem:[#allocation3 + $0x16c0] sm:$0xff] }
 0x3fa   : > { %5452 = vmatprep.subr.bf16.mxu1 %v5451_v5  ;;  %v2120_v5 = vld [vmem:[#allocation3 + $0x16d0] sm:$0xff] }
 0x3fb   : > { %v5481_v26 = vpack.c.bf16 %v2120_v5, %v2118_v23  ;;  %v2028_v23 = vld [vmem:[#allocation2 + $0x78] sm:$0x3]  ;;  %v2023_v5 = vld [vmem:[#allocation2 + $0x50] sm:$0xff] }
 0x3fd   : > { %5454 = vmatpush1.bf16.msra.mxu1 %v5453_v29  ;;  %v2124_v29 = vld [vmem:[#allocation3 + $0x16f0] sm:$0xff] }
 0x3fe   : > { %5456 = vmatprep.subr.bf16.mxu1 %v5455_v36  ;;  %v5485_v36 = vpack.c.bf16 %v2124_v29, %v2122_v24  ;;  %v2027_v24 = vld [vmem:[#allocation2 + $0x70] sm:$0x3]  ;;  %v2177_v29 = vrot.slane %v2019_v57, 2  ;;  %v2600_v57 = vld [vmem:[#allocation3 + $0x1e40] sm:$0xff] }
 0x400   : > { %2264 = vmatmul.mubr.f32.vlgmr.msra.gmra.mrb[0].mxu1 %v2173_v28  ;;  %v2130_v28 = vld [vmem:[#allocation3 + $0x1720] sm:$0xff] }
 0x401   : > { %2269 = vmatprep.mubr.f32.mxu1 %v2186_v39  ;;  %5458 = vmatpush1.bf16.msra.mxu1 %v5457_v32  ;;  %v2132_v32 = vld [vmem:[#allocation3 + $0x1730] sm:$0xff]  ;;  %v2141_v39 = vld [vmem:[#allocation3 + $0x1778] sm:$0xff] }
 0x402   : > { %5460 = vmatprep.subr.bf16.mxu1 %v5459_v50  ;;  %v2137_v50 = vld [vmem:[#allocation3 + $0x1758] sm:$0xff]  ;;  %v5493_v51 = vpack.c.bf16 %v2132_v32, %v2130_v28  ;;  %v2585_v28 = vld [vmem:[#allocation3 + $0x1dc8] sm:$0xff] }
 0x403   : > { %v5495_v52 = vpack.c.bf16 %v2137_v50, %v2135_v49  ;;  %v2587_v32 = vld [vmem:[#allocation3 + $0x1dd8] sm:$0xff]  ;;  %v2586_v50 = vld [vmem:[#allocation3 + $0x1dd0] sm:$0xff] }
 0x404   : > { %2270 = vmatmul.mubr.f32.gmra.mrb[2].mxu1 %v2184_v55  ;;  %v5499_v55 = vpack.c.bf16 %v2141_v39, %v2139_v54  ;;  %v5575_v49 = vpack.c.bf16 %v2587_v32, %v2585_v28  ;;  %v2588_v54 = vld [vmem:[#allocation3 + $0x1de0] sm:$0xff]  ;;  %v2590_v39 = vld [vmem:[#allocation3 + $0x1df0] sm:$0xff]  ;;  %v2615_v28 = vld [vmem:[#allocation3 + $0x1eb8] sm:$0xff] }
 0x405   : > { %5462 = vmatpush1.bf16.msra.mxu1 %v5461_v43  ;;  %2340 = vmatprep.mubr.f32.mxu1 %v2182_v62  ;;  %v5497_v43 = vpack.c.bf16 %v2136_v53, %v2134_v46  ;;  %v2145_v62 = vld [vmem:[#allocation3 + $0x1798] sm:$0xff] }
 0x406   : > { %5464 = vmatprep.subr.bf16.mxu1 %v5463_v56  ;;  %v2138_v56 = vld [vmem:[#allocation3 + $0x1760] sm:$0xff]  ;;  %v5503_v1 = vpack.c.bf16 %v2145_v62, %v2143_v61  ;;  %v2591_v46 = vld [vmem:[#allocation3 + $0x1df8] sm:$0xff] }
 0x407   : > { %v5501_v63 = vpack.c.bf16 %v2140_v59, %v2138_v56  ;;  %v2595_v56 = vld [vmem:[#allocation3 + $0x1e18] sm:$0xff]  ;;  %v2358_v61 = vld [vmem:[#allocation5 + $0x2] sm:$0x3] }
 0x408   : > { %v2363_v62 = vrot.slane %v2358_v61, %v7020_v16 }
 0x409   : > { %5466 = vmatpush1.bf16.msra.mxu1 %v5465_v40  ;;  %v2142_v40 = vld [vmem:[#allocation3 + $0x1780] sm:$0xff] }
 0x40a   : > { %5468 = vmatprep.subr.bf16.mxu1 %v5467_v34  ;;  %v2144_v34 = vld [vmem:[#allocation3 + $0x1790] sm:$0xff] }
 0x40b   : > { %v5505_v4 = vpack.c.bf16 %v2144_v34, %v2142_v40  ;;  %v2592_v40 = vld [vmem:[#allocation3 + $0x1e00] sm:$0xff]  ;;  %v2594_v34 = vld [vmem:[#allocation3 + $0x1e10] sm:$0xff] }
 0x40c   : > { %v5585_v8 = vpack.c.bf16 %v2594_v34, %v2592_v40 }
 0x40d   : > { %5470 = vmatpush1.bf16.msra.mxu1 %v5469_v6  ;;  %v2146_v6 = vld [vmem:[#allocation3 + $0x17a0] sm:$0xff] }
 0x40e   : > { %5472 = vmatprep.subr.bf16.mxu1 %v5471_v7  ;;  %v2148_v7 = vld [vmem:[#allocation3 + $0x17b0] sm:$0xff] }
 0x40f   : > { %v5509_v0 = vpack.c.bf16 %v2148_v7, %v2146_v6 }
 0x411   : > { %5474 = vmatpush1.bf16.msra.mxu1 %v5473_v60  ;;  %v2150_v60 = vld [vmem:[#allocation3 + $0x17c0] sm:$0xff] }
 0x412   : > { %5476 = vmatprep.subr.bf16.mxu1 %v5475_v13  ;;  %v2152_v13 = vld [vmem:[#allocation3 + $0x17d0] sm:$0xff] }
 0x413   : > { %v5513_v19 = vpack.c.bf16 %v2152_v13, %v2150_v60  ;;  %v2596_v60 = vld [vmem:[#allocation3 + $0x1e20] sm:$0xff]  ;;  %v2598_v13 = vld [vmem:[#allocation3 + $0x1e30] sm:$0xff] }
 0x415   : > { %5478 = vmatpush1.bf16.msra.mxu1 %v5477_v21  ;;  %v2154_v21 = vld [vmem:[#allocation3 + $0x17e0] sm:$0xff] }
 0x416   : > { %5480 = vmatprep.subr.bf16.mxu1 %v5479_v22  ;;  %v2156_v22 = vld [vmem:[#allocation3 + $0x17f0] sm:$0xff] }
 0x417   : > { %v5517_v25 = vpack.c.bf16 %v2156_v22, %v2154_v21 }
 0x419   : > { %5482 = vmatpush1.bf16.msra.mxu1 %v5481_v26  ;;  %v2189_v26 = vrot.slane %v2028_v23, 2  ;;  %v5589_v23 = vpack.c.bf16 %v2598_v13, %v2596_v60  ;;  %v2633_v60 = vld [vmem:[#allocation3 + $0x1f48] sm:$0xff]  ;;  %v2635_v13 = vld [vmem:[#allocation3 + $0x1f58] sm:$0xff] }
 0x41a   : > { %5484 = vmatprep.subr.bf16.mxu1 %v5483_v27  ;;  %v2178_v27 = vrot.slane %v2023_v5, 2 }
 0x41b   : > { %v2190_v31 = vsel %vm2170_vm3, %v7077_v33, %v2189_v26  ;;  %v2584_v33 = vld [vmem:[#allocation3 + $0x1dc0] sm:$0xff]  ;;  %v2602_v26 = vld [vmem:[#allocation3 + $0x1e50] sm:$0xff] }
 0x41c   : > { %v2179_v35 = vsel %vm2170_vm3, %v2177_v29, %v2178_v27  ;;  %v5593_v29 = vpack.c.bf16 %v2602_v26, %v2600_v57 }
 0x41d   : > { %5486 = vmatpush1.bf16.msra.mxu1 %v5485_v36  ;;  %v2187_v36 = vrot.slane %v2027_v24, 2  ;;  %v2607_v24 = vld [vmem:[#allocation3 + $0x1e78] sm:$0xff] }
 0x41e   : > { %5488 = vmatprep.subr.bf16.mxu1 %v5487_v37 }
 0x41f   : > { %v2188_v37 = vsel %vm2170_vm3, %v2178_v27, %v2187_v36  ;;  %v2605_v27 = vld [vmem:[#allocation3 + $0x1e68] sm:$0xff]  ;;  %v2606_v36 = vld [vmem:[#allocation3 + $0x1e70] sm:$0xff] }
 0x421   : > { %5490 = vmatpush1.bf16.msra.mxu1 %v5489_v47  ;;  %v2582_v47 = vld [vmem:[#allocation3 + $0x1db0] sm:$0xff] }
 0x422   : > { %5492 = vmatprep.subr.bf16.mxu1 %v5491_v48  ;;  %v5573_v48 = vpack.c.bf16 %v2582_v47, %v2580_v44  ;;  %v2608_v44 = vld [vmem:[#allocation3 + $0x1e80] sm:$0xff]  ;;  %v2610_v47 = vld [vmem:[#allocation3 + $0x1e90] sm:$0xff] }
 0x423   : > { %v5601_v32 = vpack.c.bf16 %v2610_v47, %v2608_v44 }
 0x424   : > { %5574 = vmatpush1.bf16.msra.mxu0 %v5573_v48  ;;  %v2613_v48 = vld [vmem:[#allocation3 + $0x1ea8] sm:$0xff] }
 0x425   : > { %5494 = vmatpush1.bf16.msra.mxu1 %v5493_v51  ;;  %v5577_v51 = vpack.c.bf16 %v2586_v50, %v2584_v33  ;;  %5576 = vmatprep.subr.bf16.mxu0 %v5575_v49  ;;  %v5603_v49 = vpack.c.bf16 %v2615_v28, %v2613_v48  ;;  %v2612_v33 = vld [vmem:[#allocation3 + $0x1ea0] sm:$0xff]  ;;  %v2614_v50 = vld [vmem:[#allocation3 + $0x1eb0] sm:$0xff] }
 0x426   : > { %5496 = vmatprep.subr.bf16.mxu1 %v5495_v52  ;;  %v2589_v52 = vld [vmem:[#allocation3 + $0x1de8] sm:$0xff]  ;;  %v2644_v48 = vld [vmem:[#allocation3 + $0x1fa0] sm:$0xff]  ;;  %v2646_v28 = vld [vmem:[#allocation3 + $0x1fb0] sm:$0xff] }
 0x427   : > { %v5579_v53 = vpack.c.bf16 %v2591_v46, %v2589_v52  ;;  %v2619_v52 = vld [vmem:[#allocation3 + $0x1ed8] sm:$0xff]  ;;  %v5605_v46 = vpack.c.bf16 %v2614_v50, %v2612_v33  ;;  %v5637_v33 = vpack.c.bf16 %v2646_v28, %v2644_v48  ;;  %v2420_v48 = vld [vmem:[#allocation3 + $0x18c8] sm:$0xff] }
 0x428   : > { %5578 = vmatpush1.bf16.msra.mxu0 %v5577_v51  ;;  %v2617_v51 = vld [vmem:[#allocation3 + $0x1ec8] sm:$0xff]  ;;  %v2422_v28 = vld [vmem:[#allocation3 + $0x18d8] sm:$0xff] }
 0x429   : > { %5498 = vmatpush1.bf16.msra.mxu1 %v5497_v43  ;;  %v5581_v43 = vpack.c.bf16 %v2590_v39, %v2588_v54  ;;  %5580 = vmatprep.subr.bf16.mxu0 %v5579_v53  ;;  %v5607_v53 = vpack.c.bf16 %v2619_v52, %v2617_v51  ;;  %v2616_v54 = vld [vmem:[#allocation3 + $0x1ec0] sm:$0xff]  ;;  %v2618_v39 = vld [vmem:[#allocation3 + $0x1ed0] sm:$0xff] }
 0x42a   : > { %5500 = vmatprep.subr.bf16.mxu1 %v5499_v55  ;;  %v2593_v55 = vld [vmem:[#allocation3 + $0x1e08] sm:$0xff]  ;;  %v2648_v51 = vld [vmem:[#allocation3 + $0x1fc0] sm:$0xff]  ;;  %v2650_v52 = vld [vmem:[#allocation3 + $0x1fd0] sm:$0xff] }
 0x42b   : > { %v5583_v59 = vpack.c.bf16 %v2595_v56, %v2593_v55  ;;  %v2623_v55 = vld [vmem:[#allocation3 + $0x1ef8] sm:$0xff]  ;;  %v5609_v56 = vpack.c.bf16 %v2618_v39, %v2616_v54  ;;  %v5641_v54 = vpack.c.bf16 %v2650_v52, %v2648_v51  ;;  %v2424_v51 = vld [vmem:[#allocation3 + $0x18e8] sm:$0xff] }
 0x42c   : > { %5582 = vmatpush1.bf16.msra.mxu0 %v5581_v43  ;;  %v2621_v43 = vld [vmem:[#allocation3 + $0x1ee8] sm:$0xff]  ;;  %v2426_v52 = vld [vmem:[#allocation3 + $0x18f8] sm:$0xff] }
 0x42d   : > { %5502 = vmatpush1.bf16.msra.mxu1 %v5501_v63  ;;  %5584 = vmatprep.subr.bf16.mxu0 %v5583_v59  ;;  %v2367_v63 = vrot.slane %v2358_v61, %v7022_v18  ;;  %v5611_v59 = vpack.c.bf16 %v2623_v55, %v2621_v43  ;;  %v2620_v61 = vld [vmem:[#allocation3 + $0x1ee0] sm:$0xff]  ;;  %v2654_v55 = vld [vmem:[#allocation3 + $0x1ff0] sm:$0xff] }
 0x42e   : > { %5504 = vmatprep.subr.bf16.mxu1 %v5503_v1  ;;  %v2652_v43 = vld [vmem:[#allocation3 + $0x1fe0] sm:$0xff] }
 0x431   : > { %5506 = vmatpush1.bf16.msra.mxu1 %v5505_v4  ;;  %v2597_v4 = vld [vmem:[#allocation3 + $0x1e28] sm:$0xff] }
 0x432   : > { %5508 = vmatprep.subr.bf16.mxu1 %v5507_v58  ;;  %v2599_v58 = vld [vmem:[#allocation3 + $0x1e38] sm:$0xff] }
 0x435   : > { %5510 = vmatpush1.bf16.msra.mxu1 %v5509_v0 }
 0x436   : > { %5512 = vmatprep.subr.bf16.mxu1 %v5511_v12  ;;  %v5587_v12 = vpack.c.bf16 %v2599_v58, %v2597_v4  ;;  %v2629_v4 = vld [vmem:[#allocation3 + $0x1f28] sm:$0xff]  ;;  %v2631_v58 = vld [vmem:[#allocation3 + $0x1f38] sm:$0xff] }
 0x439   : > { %5514 = vmatpush1.bf16.msra.mxu1 %v5513_v19  ;;  %v2601_v19 = vld [vmem:[#allocation3 + $0x1e48] sm:$0xff] }
 0x43a   : > { %5516 = vmatprep.subr.bf16.mxu1 %v5515_v20  ;;  %v2603_v20 = vld [vmem:[#allocation3 + $0x1e58] sm:$0xff] }
 0x43d   : > { %5518 = vmatpush1.bf16.msra.mxu1 %v5517_v25  ;;  %v5591_v25 = vpack.c.bf16 %v2603_v20, %v2601_v19  ;;  %v2632_v19 = vld [vmem:[#allocation3 + $0x1f40] sm:$0xff]  ;;  %v2634_v20 = vld [vmem:[#allocation3 + $0x1f50] sm:$0xff] }
 0x43e   : > { %v5625_v57 = vpack.c.bf16 %v2634_v20, %v2632_v19  ;;  %v2405_v19 = vld [vmem:[#allocation3 + $0x1850] sm:$0xff]  ;;  %v2408_v20 = vld [vmem:[#allocation3 + $0x1868] sm:$0xff] }
 0x440   : > { %2341 = vmatmul.mubr.f32.vlgmr.msra.gmra.mrb[0].mxu1 %v2179_v35  ;;  %v2604_v35 = vld [vmem:[#allocation3 + $0x1e60] sm:$0xff] }
 0x441   : > { %2346 = vmatprep.mubr.f32.mxu1 %v2190_v31  ;;  %v5595_v31 = vpack.c.bf16 %v2607_v24, %v2605_v27  ;;  %v5597_v38 = vpack.c.bf16 %v2606_v36, %v2604_v35  ;;  %v2636_v27 = vld [vmem:[#allocation3 + $0x1f60] sm:$0xff]  ;;  %v2638_v24 = vld [vmem:[#allocation3 + $0x1f70] sm:$0xff] }
 0x442   : > { %v5629_v35 = vpack.c.bf16 %v2638_v24, %v2636_v27  ;;  %v2407_v27 = vld [vmem:[#allocation3 + $0x1860] sm:$0xff]  ;;  %v2409_v24 = vld [vmem:[#allocation3 + $0x1870] sm:$0xff] }
 0x444   : > { %2347 = vmatmul.mubr.f32.gmra.mrb[2].mxu1 %v2188_v37  ;;  %v2609_v37 = vld [vmem:[#allocation3 + $0x1e88] sm:$0xff] }
 0x445   : > { %v5599_v41 = vpack.c.bf16 %v2611_v11, %v2609_v37  ;;  %v2640_v37 = vld [vmem:[#allocation3 + $0x1f80] sm:$0xff]  ;;  %v2642_v11 = vld [vmem:[#allocation3 + $0x1f90] sm:$0xff] }
 0x446   : > { %v5633_v44 = vpack.c.bf16 %v2642_v11, %v2640_v37  ;;  %v2411_v37 = vld [vmem:[#allocation3 + $0x1880] sm:$0xff]  ;;  %v2418_v11 = vld [vmem:[#allocation3 + $0x18b8] sm:$0xff] }
 0x513   : > { %v2342_v1 = vpop.f32.mrb[0].mxu1 }
 0x514   : > { %v2370_v2 = vadd.f32 %v2363_v62, %v2342_v1  ;;  %v2344_v3 = vpop.f32.mrb[1].mxu1  ;;  %v2627_v1 = vld [vmem:[#allocation3 + $0x1f18] sm:$0xff] }
 0x515   : > { %v2371_v6 = vadd.f32 %v2367_v63, %v2344_v3  ;;  %v2626_v3 = vld [vmem:[#allocation3 + $0x1f10] sm:$0xff] }
 0x516   : > { %v7094_v7 = vmax.f32 %v2370_v2, 0.0  ;;  %v2624_v2 = vld [vmem:[#allocation3 + $0x1f00] sm:$0xff] }
 0x517   : > { %v7096_v9 = vmax.f32 %v2371_v6, 0.0  ;;  %v2348_v0 = vpop.f32.mrb[2].mxu1  ;;  %v5617_v6 = vpack.c.bf16 %v2626_v3, %v2624_v2  ;;  %v2383_v3 = vld [vmem:[#allocation2 + $0x8] sm:$0xf0] }
 0x518   : > { %2378 = vst [vmem:[#allocation2 + $0x28] sm:$0xff] %v7094_v7  ;;  %v2372_v15 = vadd.f32 %v2363_v62, %v2348_v0  ;;  %v2350_v17 = vpop.f32.mrb[3].mxu1  ;;  %2720 = vmatprep.mubr.f32.mxu0 %v7094_v7  ;;  %v2622_v62 = vld [vmem:[#allocation3 + $0x1ef0] sm:$0xff]  ;;  %v2628_v0 = vld [vmem:[#allocation3 + $0x1f20] sm:$0xff] }
 0x519   : > { %2379 = vst [vmem:[#allocation2 + $0x30] sm:$0xff] %v7096_v9  ;;  %v7101_v21 = vadd.f32 %v2367_v63, %v2350_v17  ;;  %2721 = vmatmul.mubr.f32.vlgmr.msra.gmra.mrb[4].mxu0 %v7074_v30  ;;  %v2625_v63 = vld [vmem:[#allocation3 + $0x1f08] sm:$0xff]  ;;  %v5613_v40 = vpack.c.bf16 %v2622_v62, %v2620_v61  ;;  %v5623_v17 = vpack.c.bf16 %v2635_v13, %v2633_v60  ;;  %v2826_v60 = vrot.slane %v2383_v3, 4  ;;  %v2433_v3 = vld [vmem:[#allocation3 + $0x1930] sm:$0xff] }
 0x51a   : > { %v7104_v22 = vmax.f32 %v2372_v15, 0.0  ;;  %5586 = vmatpush1.bf16.msra.mxu0 %v5585_v8  ;;  %v5615_v34 = vpack.c.bf16 %v2627_v1, %v2625_v63  ;;  %v5619_v8 = vpack.c.bf16 %v2631_v58, %v2629_v4  ;;  %v5645_v61 = vpack.c.bf16 %v2654_v55, %v2652_v43  ;;  %v2395_v63 = vld [vmem:[#allocation3 + $0x1800] sm:$0xff]  ;;  %v2397_v1 = vld [vmem:[#allocation3 + $0x1810] sm:$0xff]  ;;  %v2428_v43 = vld [vmem:[#allocation3 + $0x1908] sm:$0xff] }
 0x51b   : > { %v2377_v5 = vmax.f32 %v7101_v21, 0.0  ;;  %5588 = vmatprep.subr.bf16.mxu0 %v5587_v12  ;;  %v2630_v12 = vld [vmem:[#allocation3 + $0x1f30] sm:$0xff]  ;;  %v5649_v2 = vpack.c.bf16 %v2397_v1, %v2395_v63  ;;  %v2399_v58 = vld [vmem:[#allocation3 + $0x1820] sm:$0xff]  ;;  %v2430_v55 = vld [vmem:[#allocation3 + $0x1918] sm:$0xff] }
 0x51c   : > { %2380 = vst [vmem:[#allocation2 + $0x48] sm:$0xff] %v7104_v22  ;;  %2726 = vmatprep.mubr.f32.mxu0 %v7104_v22  ;;  %v5621_v15 = vpack.c.bf16 %v2630_v12, %v2628_v0  ;;  %v2406_v0 = vld [vmem:[#allocation3 + $0x1858] sm:$0xff]  ;;  %v2827_v12 = vrot.slane %v7094_v7, 4  ;;  %v2413_v21 = vld [vmem:[#allocation3 + $0x1890] sm:$0xff]  ;;  %v2432_v63 = vld [vmem:[#allocation3 + $0x1928] sm:$0xff] }
 0x51d   : > { %2381 = vst [vmem:[#allocation2 + $0x50] sm:$0xff] %v2377_v5  ;;  %2727 = vmatmul.mubr.f32.gmra.mrb[6].mxu0 %v7074_v30  ;;  %v2434_v1 = vld [vmem:[#allocation3 + $0x1938] sm:$0xff] }
 0x51e   : > { %5590 = vmatpush1.bf16.msra.mxu0 %v5589_v23  ;;  %2797 = vmatprep.mubr.f32.mxu0 %v7074_v30  ;;  %v2637_v23 = vld [vmem:[#allocation3 + $0x1f68] sm:$0xff] }
 0x51f   : > { %5592 = vmatprep.subr.bf16.mxu0 %v5591_v25  ;;  %v2639_v25 = vld [vmem:[#allocation3 + $0x1f78] sm:$0xff] }
 0x520   : > { %v5627_v26 = vpack.c.bf16 %v2639_v25, %v2637_v23  ;;  %v2410_v23 = vld [vmem:[#allocation3 + $0x1878] sm:$0xff]  ;;  %v2828_v25 = vsel %vm2822_vm4, %v2826_v60, %v2827_v12  ;;  %v2437_v60 = vld [vmem:[#allocation3 + $0x1950] sm:$0xff] }
 0x522   : > { %5594 = vmatpush1.bf16.msra.mxu0 %v5593_v29  ;;  %v2641_v29 = vld [vmem:[#allocation3 + $0x1f88] sm:$0xff] }
 0x523   : > { %5596 = vmatprep.subr.bf16.mxu0 %v5595_v31  ;;  %v2643_v31 = vld [vmem:[#allocation3 + $0x1f98] sm:$0xff] }
 0x524   : > { %v5631_v36 = vpack.c.bf16 %v2643_v31, %v2641_v29  ;;  %v2412_v29 = vld [vmem:[#allocation3 + $0x1888] sm:$0xff]  ;;  %v2414_v31 = vld [vmem:[#allocation3 + $0x1898] sm:$0xff] }
 0x526   : > { %5598 = vmatpush1.bf16.msra.mxu0 %v5597_v38  ;;  %v2645_v38 = vld [vmem:[#allocation3 + $0x1fa8] sm:$0xff] }
 0x527   : > { %5600 = vmatprep.subr.bf16.mxu0 %v5599_v41  ;;  %v2647_v41 = vld [vmem:[#allocation3 + $0x1fb8] sm:$0xff] }
 0x528   : > { %v5635_v47 = vpack.c.bf16 %v2647_v41, %v2645_v38  ;;  %v5665_v38 = vpack.c.bf16 %v2413_v21, %v2411_v37  ;;  %v2447_v21 = vld [vmem:[#allocation3 + $0x19a0] sm:$0xff] }
 0x52a   : > { %5602 = vmatpush1.bf16.msra.mxu0 %v5601_v32  ;;  %v2649_v32 = vld [vmem:[#allocation3 + $0x1fc8] sm:$0xff] }
 0x52b   : > { %5604 = vmatprep.subr.bf16.mxu0 %v5603_v49  ;;  %v2651_v49 = vld [vmem:[#allocation3 + $0x1fd8] sm:$0xff] }
 0x52c   : > { %v5639_v50 = vpack.c.bf16 %v2651_v49, %v2649_v32  ;;  %v5671_v49 = vpack.c.bf16 %v2422_v28, %v2420_v48  ;;  %v2453_v48 = vld [vmem:[#allocation3 + $0x19d0] sm:$0xff]  ;;  %v2456_v28 = vld [vmem:[#allocation3 + $0x19e8] sm:$0xff] }
 0x52e   : > { %5606 = vmatpush1.bf16.msra.mxu0 %v5605_v46  ;;  %v2653_v46 = vld [vmem:[#allocation3 + $0x1fe8] sm:$0xff] }
 0x52f   : > { %5608 = vmatprep.subr.bf16.mxu0 %v5607_v53  ;;  %v2655_v53 = vld [vmem:[#allocation3 + $0x1ff8] sm:$0xff] }
 0x530   : > { %v5643_v39 = vpack.c.bf16 %v2655_v53, %v2653_v46  ;;  %v5675_v53 = vpack.c.bf16 %v2426_v52, %v2424_v51  ;;  %v2457_v51 = vld [vmem:[#allocation3 + $0x19f0] sm:$0xff]  ;;  %v2382_v52 = vld [vmem:[#allocation2] sm:$0xf0] }
 0x532   : > { %5610 = vmatpush1.bf16.msra.mxu0 %v5609_v56  ;;  %v2396_v56 = vld [vmem:[#allocation3 + $0x1808] sm:$0xff] }
 0x533   : > { %5612 = vmatprep.subr.bf16.mxu0 %v5611_v59  ;;  %v2398_v59 = vld [vmem:[#allocation3 + $0x1818] sm:$0xff] }
 0x534   : > { %v5647_v62 = vpack.c.bf16 %v2398_v59, %v2396_v56  ;;  %v5679_v59 = vpack.c.bf16 %v2430_v55, %v2428_v43  ;;  %v2823_v43 = vrot.slane %v2382_v52, 4  ;;  %v2391_v55 = vld [vmem:[#allocation2 + $0x48] sm:$0xf]  ;;  %v2490_v52 = vld [vmem:[#allocation3 + $0x1af8] sm:$0xff] }
 0x536   : > { %5614 = vmatpush1.bf16.msra.mxu0 %v5613_v40  ;;  %v2400_v40 = vld [vmem:[#allocation3 + $0x1828] sm:$0xff] }
 0x537   : > { %5616 = vmatprep.subr.bf16.mxu0 %v5615_v34  ;;  %v2402_v34 = vld [vmem:[#allocation3 + $0x1838] sm:$0xff] }
 0x538   : > { %v5651_v4 = vpack.c.bf16 %v2402_v34, %v2400_v40  ;;  %v5683_v34 = vpack.c.bf16 %v2434_v1, %v2432_v63  ;;  %v2464_v63 = vld [vmem:[#allocation3 + $0x1a28] sm:$0xff]  ;;  %v2466_v1 = vld [vmem:[#allocation3 + $0x1a38] sm:$0xff] }
 0x53a   : > { %5618 = vmatpush1.bf16.msra.mxu0 %v5617_v6  ;;  %v2401_v6 = vld [vmem:[#allocation3 + $0x1830] sm:$0xff] }
 0x53b   : > { %5620 = vmatprep.subr.bf16.mxu0 %v5619_v8  ;;  %v2404_v8 = vld [vmem:[#allocation3 + $0x1848] sm:$0xff]  ;;  %v5653_v13 = vpack.c.bf16 %v2401_v6, %v2399_v58  ;;  %v2438_v58 = vld [vmem:[#allocation3 + $0x1958] sm:$0xff] }
 0x53e   : > { %5622 = vmatpush1.bf16.msra.mxu0 %v5621_v15  ;;  %v5655_v15 = vpack.c.bf16 %v2406_v0, %v2404_v8  ;;  %v2435_v0 = vld [vmem:[#allocation3 + $0x1940] sm:$0xff] }
 0x53f   : > { %5624 = vmatprep.subr.bf16.mxu0 %v5623_v17  ;;  %v2403_v17 = vld [vmem:[#allocation3 + $0x1840] sm:$0xff] }
 0x542   : > { %5626 = vmatpush1.bf16.msra.mxu0 %v5625_v57  ;;  %v5657_v57 = vpack.c.bf16 %v2405_v19, %v2403_v17  ;;  %v5689_v17 = vpack.c.bf16 %v2437_v60, %v2435_v0  ;;  %v2468_v0 = vld [vmem:[#allocation3 + $0x1a48] sm:$0xff]  ;;  %v2470_v60 = vld [vmem:[#allocation3 + $0x1a58] sm:$0xff] }
 0x543   : > { %5628 = vmatprep.subr.bf16.mxu0 %v5627_v26  ;;  %v5659_v26 = vpack.c.bf16 %v2410_v23, %v2408_v20  ;;  %v2439_v20 = vld [vmem:[#allocation3 + $0x1960] sm:$0xff]  ;;  %v2441_v23 = vld [vmem:[#allocation3 + $0x1970] sm:$0xff] }
 0x546   : > { %5630 = vmatpush1.bf16.msra.mxu0 %v5629_v35  ;;  %v5661_v35 = vpack.c.bf16 %v2409_v24, %v2407_v27  ;;  %v2443_v24 = vld [vmem:[#allocation3 + $0x1980] sm:$0xff] }
 0x547   : > { %5632 = vmatprep.subr.bf16.mxu0 %v5631_v36  ;;  %v5663_v36 = vpack.c.bf16 %v2414_v31, %v2412_v29  ;;  %v2445_v29 = vld [vmem:[#allocation3 + $0x1990] sm:$0xff]  ;;  %v2448_v31 = vld [vmem:[#allocation3 + $0x19a8] sm:$0xff] }
 0x54a   : > { %5634 = vmatpush1.bf16.msra.mxu0 %v5633_v44  ;;  %v2415_v44 = vld [vmem:[#allocation3 + $0x18a0] sm:$0xff] }
 0x54b   : > { %5636 = vmatprep.subr.bf16.mxu0 %v5635_v47  ;;  %v2417_v47 = vld [vmem:[#allocation3 + $0x18b0] sm:$0xff] }
 0x54c   : > { %v5669_v32 = vpack.c.bf16 %v2417_v47, %v2415_v44  ;;  %v2451_v47 = vld [vmem:[#allocation3 + $0x19c0] sm:$0xff] }
 0x54e   : > { %5638 = vmatpush1.bf16.msra.mxu0 %v5637_v33  ;;  %v2419_v33 = vld [vmem:[#allocation3 + $0x18c0] sm:$0xff] }
 0x54f   : > { %5640 = vmatprep.subr.bf16.mxu0 %v5639_v50  ;;  %v2421_v50 = vld [vmem:[#allocation3 + $0x18d0] sm:$0xff] }
 0x550   : > { %v5673_v46 = vpack.c.bf16 %v2421_v50, %v2419_v33  ;;  %v2455_v50 = vld [vmem:[#allocation3 + $0x19e0] sm:$0xff] }
 0x552   : > { %5642 = vmatpush1.bf16.msra.mxu0 %v5641_v54  ;;  %v2423_v54 = vld [vmem:[#allocation3 + $0x18e0] sm:$0xff] }
 0x553   : > { %5644 = vmatprep.subr.bf16.mxu0 %v5643_v39  ;;  %v2425_v39 = vld [vmem:[#allocation3 + $0x18f0] sm:$0xff] }
 0x554   : > { %v5677_v56 = vpack.c.bf16 %v2425_v39, %v2423_v54  ;;  %v7122_v54 = vrot.slane %v7074_v30, 4  ;;  %v5709_v39 = vpack.c.bf16 %v2457_v51, %v2455_v50  ;;  %v2485_v50 = vld [vmem:[#allocation3 + $0x1ad0] sm:$0xff]  ;;  %v2488_v51 = vld [vmem:[#allocation3 + $0x1ae8] sm:$0xff] }
 0x556   : > { %5646 = vmatpush1.bf16.msra.mxu0 %v5645_v61  ;;  %v2427_v61 = vld [vmem:[#allocation3 + $0x1900] sm:$0xff] }
 0x557   : > { %5648 = vmatprep.subr.bf16.mxu0 %v5647_v62  ;;  %v2429_v62 = vld [vmem:[#allocation3 + $0x1910] sm:$0xff] }
 0x558   : > { %v5681_v40 = vpack.c.bf16 %v2429_v62, %v2427_v61  ;;  %v2461_v61 = vld [vmem:[#allocation3 + $0x1a10] sm:$0xff]  ;;  %v2390_v62 = vld [vmem:[#allocation2 + $0x40] sm:$0xf] }
 0x559   : > { %2798 = vmatmul.mubr.f32.vlgmr.msra.gmra.mrb[4].mxu0 %v7096_v9 }
 0x55a   : > { %5650 = vmatpush1.bf16.msra.mxu0 %v5649_v2  ;;  %2803 = vmatprep.mubr.f32.mxu0 %v7074_v30  ;;  %v2431_v2 = vld [vmem:[#allocation3 + $0x1920] sm:$0xff]  ;;  %v2835_v30 = vrot.slane %v2390_v62, 4 }
 0x55b   : > { %5652 = vmatprep.subr.bf16.mxu0 %v5651_v4  ;;  %v2436_v4 = vld [vmem:[#allocation3 + $0x1948] sm:$0xff]  ;;  %v5685_v6 = vpack.c.bf16 %v2433_v3, %v2431_v2  ;;  %v2825_v2 = vsel %vm2822_vm4, %v2823_v43, %v7122_v54  ;;  %v2489_v43 = vld [vmem:[#allocation3 + $0x1af0] sm:$0xff]  ;;  %v2491_v62 = vld [vmem:[#allocation3 + $0x1b00] sm:$0xff] }
 0x55c   : > { %v5687_v8 = vpack.c.bf16 %v2438_v58, %v2436_v4  ;;  %v5715_v4 = vpack.c.bf16 %v2466_v1, %v2464_v63  ;;  %v2463_v58 = vld [vmem:[#allocation3 + $0x1a20] sm:$0xff]  ;;  %v2493_v63 = vld [vmem:[#allocation3 + $0x1b10] sm:$0xff]  ;;  %v2496_v1 = vld [vmem:[#allocation3 + $0x1b28] sm:$0xff] }
 0x55d   : > { %2804 = vmatmul.mubr.f32.gmra.mrb[6].mxu0 %v2377_v5  ;;  %v2416_v5 = vld [vmem:[#allocation3 + $0x18a8] sm:$0xff] }
 0x55e   : > { %5654 = vmatpush1.bf16.msra.mxu0 %v5653_v13  ;;  %2915 = vmatprep.mubr.f32.mxu0 %v2828_v25  ;;  %v5667_v41 = vpack.c.bf16 %v2418_v11, %v2416_v5  ;;  %v2440_v13 = vld [vmem:[#allocation3 + $0x1968] sm:$0xff]  ;;  %v2449_v5 = vld [vmem:[#allocation3 + $0x19b0] sm:$0xff] }
 0x55f   : > { %5656 = vmatprep.subr.bf16.mxu0 %v5655_v15  ;;  %v2442_v15 = vld [vmem:[#allocation3 + $0x1978] sm:$0xff]  ;;  %v2444_v25 = vld [vmem:[#allocation3 + $0x1988] sm:$0xff] }
 0x560   : > { %v5691_v19 = vpack.c.bf16 %v2442_v15, %v2440_v13  ;;  %v2452_v11 = vld [vmem:[#allocation3 + $0x19c8] sm:$0xff] }
 0x562   : > { %5658 = vmatpush1.bf16.msra.mxu0 %v5657_v57  ;;  %v2446_v57 = vld [vmem:[#allocation3 + $0x1998] sm:$0xff] }
 0x563   : > { %5660 = vmatprep.subr.bf16.mxu0 %v5659_v26  ;;  %v5693_v26 = vpack.c.bf16 %v2441_v23, %v2439_v20  ;;  %v5695_v27 = vpack.c.bf16 %v2446_v57, %v2444_v25  ;;  %v2467_v20 = vld [vmem:[#allocation3 + $0x1a40] sm:$0xff]  ;;  %v2469_v23 = vld [vmem:[#allocation3 + $0x1a50] sm:$0xff]  ;;  %v2472_v57 = vld [vmem:[#allocation3 + $0x1a68] sm:$0xff] }
 0x564   : > { %v5721_v7 = vpack.c.bf16 %v2469_v23, %v2467_v20  ;;  %v2503_v20 = vld [vmem:[#allocation3 + $0x1b60] sm:$0xff]  ;;  %v2505_v23 = vld [vmem:[#allocation3 + $0x1b70] sm:$0xff] }
 0x566   : > { %5662 = vmatpush1.bf16.msra.mxu0 %v5661_v35  ;;  %v2450_v35 = vld [vmem:[#allocation3 + $0x19b8] sm:$0xff] }
 0x567   : > { %5664 = vmatprep.subr.bf16.mxu0 %v5663_v36  ;;  %v5697_v36 = vpack.c.bf16 %v2445_v29, %v2443_v24  ;;  %v5699_v37 = vpack.c.bf16 %v2450_v35, %v2448_v31  ;;  %v2473_v24 = vld [vmem:[#allocation3 + $0x1a70] sm:$0xff]  ;;  %v2476_v29 = vld [vmem:[#allocation3 + $0x1a88] sm:$0xff]  ;;  %v2478_v31 = vld [vmem:[#allocation3 + $0x1a98] sm:$0xff] }
 0x56a   : > { %5666 = vmatpush1.bf16.msra.mxu0 %v5665_v38  ;;  %v2454_v38 = vld [vmem:[#allocation3 + $0x19d8] sm:$0xff] }
 0x56b   : > { %5668 = vmatprep.subr.bf16.mxu0 %v5667_v41  ;;  %v5701_v41 = vpack.c.bf16 %v2449_v5, %v2447_v21  ;;  %v5703_v44 = vpack.c.bf16 %v2454_v38, %v2452_v11  ;;  %v2477_v21 = vld [vmem:[#allocation3 + $0x1a90] sm:$0xff]  ;;  %v2480_v5 = vld [vmem:[#allocation3 + $0x1aa8] sm:$0xff]  ;;  %v2482_v11 = vld [vmem:[#allocation3 + $0x1ab8] sm:$0xff] }
 0x56e   : > { %5670 = vmatpush1.bf16.msra.mxu0 %v5669_v32  ;;  %v2458_v32 = vld [vmem:[#allocation3 + $0x19f8] sm:$0xff] }
 0x56f   : > { %5672 = vmatprep.subr.bf16.mxu0 %v5671_v49  ;;  %v5705_v49 = vpack.c.bf16 %v2453_v48, %v2451_v47  ;;  %v5707_v33 = vpack.c.bf16 %v2458_v32, %v2456_v28  ;;  %v2481_v47 = vld [vmem:[#allocation3 + $0x1ab0] sm:$0xff]  ;;  %v2484_v48 = vld [vmem:[#allocation3 + $0x1ac8] sm:$0xff]  ;;  %v2486_v28 = vld [vmem:[#allocation3 + $0x1ad8] sm:$0xff] }
 0x572   : > { %5674 = vmatpush1.bf16.msra.mxu0 %v5673_v46  ;;  %v2460_v46 = vld [vmem:[#allocation3 + $0x1a08] sm:$0xff] }
 0x573   : > { %5676 = vmatprep.subr.bf16.mxu0 %v5675_v53  ;;  %v2462_v53 = vld [vmem:[#allocation3 + $0x1a18] sm:$0xff] }
 0x576   : > { %5678 = vmatpush1.bf16.msra.mxu0 %v5677_v56  ;;  %v5711_v56 = vpack.c.bf16 %v2462_v53, %v2460_v46  ;;  %v5739_v53 = vpack.c.bf16 %v2490_v52, %v2488_v51  ;;  %v3021_v51 = vld [vmem:[#allocation3 + $0x2018] sm:$0xff] }
 0x577   : > { %5680 = vmatprep.subr.bf16.mxu0 %v5679_v59  ;;  %v2459_v59 = vld [vmem:[#allocation3 + $0x1a00] sm:$0xff]  ;;  %v2393_v52 = vld [vmem:[#allocation2 + $0x58] sm:$0xf] }
 0x578   : > { %v5713_v3 = vpack.c.bf16 %v2461_v61, %v2459_v59 }
 0x57a   : > { %5682 = vmatpush1.bf16.msra.mxu0 %v5681_v40  ;;  %v2385_v40 = vld [vmem:[#allocation2 + $0x18] sm:$0xf0] }
 0x57b   : > { %5684 = vmatprep.subr.bf16.mxu0 %v5683_v34  ;;  %v2837_v34 = vrot.slane %v2391_v55, 4  ;;  %v2492_v55 = vld [vmem:[#allocation3 + $0x1b08] sm:$0xff] }
 0x57d   : > { %v2838_v13 = vsel %vm2822_vm4, %v2827_v12, %v2837_v34  ;;  %v5745_v34 = vpack.c.bf16 %v2493_v63, %v2491_v62  ;;  %v3023_v62 = vld [vmem:[#allocation3 + $0x2028] sm:$0xff]  ;;  %v3025_v63 = vld [vmem:[#allocation3 + $0x2038] sm:$0xff] }
 0x57e   : > { %5686 = vmatpush1.bf16.msra.mxu0 %v5685_v6  ;;  %v2465_v6 = vld [vmem:[#allocation3 + $0x1a30] sm:$0xff] }
 0x57f   : > { %5688 = vmatprep.subr.bf16.mxu0 %v5687_v8  ;;  %v2832_v8 = vrot.slane %v2385_v40, 4  ;;  %v5717_v15 = vpack.c.bf16 %v2465_v6, %v2463_v58  ;;  %v2498_v40 = vld [vmem:[#allocation3 + $0x1b38] sm:$0xff] }
 0x580   : > { %v2502_v58 = vld [vmem:[#allocation3 + $0x1b58] sm:$0xff] }
 0x581   : > { %v2834_v25 = vsel %vm2822_vm4, %v2832_v8, %v7122_v54 }
 0x582   : > { %5690 = vmatpush1.bf16.msra.mxu0 %v5689_v17  ;;  %v2836_v17 = vsel %vm2822_vm4, %v7122_v54, %v2835_v30  ;;  %v2497_v30 = vld [vmem:[#allocation3 + $0x1b30] sm:$0xff] }
 0x583   : > { %5692 = vmatprep.subr.bf16.mxu0 %v5691_v19  ;;  %v5719_v19 = vpack.c.bf16 %v2470_v60, %v2468_v0  ;;  %v2499_v0 = vld [vmem:[#allocation3 + $0x1b40] sm:$0xff]  ;;  %v2501_v60 = vld [vmem:[#allocation3 + $0x1b50] sm:$0xff] }
 0x586   : > { %5694 = vmatpush1.bf16.msra.mxu0 %v5693_v26  ;;  %v2474_v26 = vld [vmem:[#allocation3 + $0x1a78] sm:$0xff] }
 0x587   : > { %5696 = vmatprep.subr.bf16.mxu0 %v5695_v27  ;;  %v5723_v12 = vpack.c.bf16 %v2474_v26, %v2472_v57  ;;  %v2471_v27 = vld [vmem:[#allocation3 + $0x1a60] sm:$0xff]  ;;  %v2510_v57 = vld [vmem:[#allocation3 + $0x1b98] sm:$0xff]  ;;  %v5757_v26 = vpack.c.bf16 %v2505_v23, %v2503_v20  ;;  %v3031_v20 = vld [vmem:[#allocation3 + $0x2068] sm:$0xff] }
 0x588   : > { %v5725_v35 = vpack.c.bf16 %v2473_v24, %v2471_v27  ;;  %v2509_v27 = vld [vmem:[#allocation3 + $0x1b90] sm:$0xff]  ;;  %v2512_v24 = vld [vmem:[#allocation3 + $0x1ba8] sm:$0xff]  ;;  %v3033_v23 = vld [vmem:[#allocation3 + $0x2078] sm:$0xff] }
 0x58a   : > { %5698 = vmatpush1.bf16.msra.mxu0 %v5697_v36  ;;  %v5727_v36 = vpack.c.bf16 %v2478_v31, %v2476_v29  ;;  %v2514_v29 = vld [vmem:[#allocation3 + $0x1bb8] sm:$0xff] }
 0x58b   : > { %5700 = vmatprep.subr.bf16.mxu0 %v5699_v37  ;;  %v2475_v37 = vld [vmem:[#allocation3 + $0x1a80] sm:$0xff] }
 0x58c   : > { %v5729_v38 = vpack.c.bf16 %v2477_v21, %v2475_v37  ;;  %v2513_v37 = vld [vmem:[#allocation3 + $0x1bb0] sm:$0xff]  ;;  %v2516_v21 = vld [vmem:[#allocation3 + $0x1bc8] sm:$0xff] }
 0x58e   : > { %5702 = vmatpush1.bf16.msra.mxu0 %v5701_v41  ;;  %v5731_v41 = vpack.c.bf16 %v2482_v11, %v2480_v5  ;;  %v2518_v5 = vld [vmem:[#allocation3 + $0x1bd8] sm:$0xff] }
 0x58f   : > { %5704 = vmatprep.subr.bf16.mxu0 %v5703_v44  ;;  %v2479_v44 = vld [vmem:[#allocation3 + $0x1aa0] sm:$0xff] }
 0x590   : > { %v5733_v32 = vpack.c.bf16 %v2481_v47, %v2479_v44  ;;  %v2517_v44 = vld [vmem:[#allocation3 + $0x1bd0] sm:$0xff]  ;;  %v2520_v47 = vld [vmem:[#allocation3 + $0x1be8] sm:$0xff] }
 0x592   : > { %5706 = vmatpush1.bf16.msra.mxu0 %v5705_v49  ;;  %v5735_v49 = vpack.c.bf16 %v2486_v28, %v2484_v48  ;;  %v2522_v48 = vld [vmem:[#allocation3 + $0x1bf8] sm:$0xff] }
 0x593   : > { %5708 = vmatprep.subr.bf16.mxu0 %v5707_v33  ;;  %v2483_v33 = vld [vmem:[#allocation3 + $0x1ac0] sm:$0xff] }
 0x594   : > { %v5737_v46 = vpack.c.bf16 %v2485_v50, %v2483_v33  ;;  %v2521_v33 = vld [vmem:[#allocation3 + $0x1bf0] sm:$0xff]  ;;  %v3019_v50 = vld [vmem:[#allocation3 + $0x2008] sm:$0xff] }
 0x596   : > { %5710 = vmatpush1.bf16.msra.mxu0 %v5709_v39  ;;  %v2487_v39 = vld [vmem:[#allocation3 + $0x1ae0] sm:$0xff] }
 0x597   : > { %5712 = vmatprep.subr.bf16.mxu0 %v5711_v56  ;;  %v2494_v56 = vld [vmem:[#allocation3 + $0x1b18] sm:$0xff]  ;;  %v5741_v59 = vpack.c.bf16 %v2489_v43, %v2487_v39  ;;  %v5775_v39 = vpack.c.bf16 %v3021_v51, %v3019_v50  ;;  %v3018_v43 = vld [vmem:[#allocation3 + $0x2000] sm:$0xff]  ;;  %v3521_v51 = vld [vmem:[#allocation3 + $0x2850] sm:$0xff] }
 0x598   : > { %v5743_v61 = vpack.c.bf16 %v2494_v56, %v2492_v55  ;;  %v3020_v55 = vld [vmem:[#allocation3 + $0x2010] sm:$0xff]  ;;  %v2841_v56 = vrot.slane %v2393_v52, 4  ;;  %v3519_v50 = vld [vmem:[#allocation3 + $0x2840] sm:$0xff] }
 0x599   : > { %2916 = vmatmul.mubr.f32.vlgmr.msra.gmra.mrb[4].mxu0 %v2825_v2  ;;  %v5747_v2 = vpack.c.bf16 %v2498_v40, %v2496_v1  ;;  %v2392_v1 = vld [vmem:[#allocation2 + $0x50] sm:$0xf]  ;;  %v5777_v40 = vpack.c.bf16 %v3020_v55, %v3018_v43  ;;  %v3039_v43 = vld [vmem:[#allocation3 + $0x20a8] sm:$0xff]  ;;  %v3041_v55 = vld [vmem:[#allocation3 + $0x20b8] sm:$0xff] }
 0x59a   : > { %2921 = vmatprep.mubr.f32.mxu0 %v2838_v13  ;;  %5714 = vmatpush1.bf16.msra.mxu0 %v5713_v3  ;;  %v2495_v3 = vld [vmem:[#allocation3 + $0x1b20] sm:$0xff]  ;;  %v2504_v13 = vld [vmem:[#allocation3 + $0x1b68] sm:$0xff] }
 0x59b   : > { %5716 = vmatprep.subr.bf16.mxu0 %v5715_v4  ;;  %v2500_v4 = vld [vmem:[#allocation3 + $0x1b48] sm:$0xff]  ;;  %v5749_v6 = vpack.c.bf16 %v2497_v30, %v2495_v3  ;;  %v5779_v3 = vpack.c.bf16 %v3025_v63, %v3023_v62  ;;  %v3022_v30 = vld [vmem:[#allocation3 + $0x2020] sm:$0xff] }
 0x59c   : > { %v5751_v8 = vpack.c.bf16 %v2502_v58, %v2500_v4  ;;  %v3024_v4 = vld [vmem:[#allocation3 + $0x2030] sm:$0xff]  ;;  %v3523_v63 = vld [vmem:[#allocation3 + $0x2860] sm:$0xff] }
 0x59d   : > { %2922 = vmatmul.mubr.f32.gmra.mrb[6].mxu0 %v2836_v17  ;;  %v5753_v17 = vpack.c.bf16 %v2501_v60, %v2499_v0  ;;  %v3029_v0 = vld [vmem:[#allocation3 + $0x2058] sm:$0xff]  ;;  %v5781_v60 = vpack.c.bf16 %v3024_v4, %v3022_v30  ;;  %v3043_v30 = vld [vmem:[#allocation3 + $0x20c8] sm:$0xff] }
 0x59e   : > { %5718 = vmatpush1.bf16.msra.mxu0 %v5717_v15  ;;  %2992 = vmatprep.mubr.f32.mxu0 %v2834_v25  ;;  %v2506_v15 = vld [vmem:[#allocation3 + $0x1b78] sm:$0xff]  ;;  %v2508_v25 = vld [vmem:[#allocation3 + $0x1b88] sm:$0xff] }
 0x59f   : > { %5720 = vmatprep.subr.bf16.mxu0 %v5719_v19  ;;  %v5755_v19 = vpack.c.bf16 %v2506_v15, %v2504_v13  ;;  %v3162_v13 = vrot.slane %v7104_v22, 4  ;;  %v3045_v4 = vld [vmem:[#allocation3 + $0x20d8] sm:$0xff] }
 0x5a2   : > { %5722 = vmatpush1.bf16.msra.mxu0 %v5721_v7  ;;  %v5759_v7 = vpack.c.bf16 %v2510_v57, %v2508_v25  ;;  %v3030_v57 = vld [vmem:[#allocation3 + $0x2060] sm:$0xff] }
 0x5a3   : > { %5724 = vmatprep.subr.bf16.mxu0 %v5723_v12  ;;  %v2507_v12 = vld [vmem:[#allocation3 + $0x1b80] sm:$0xff] }
 0x5a4   : > { %v5761_v31 = vpack.c.bf16 %v2509_v27, %v2507_v12  ;;  %v3514_v12 = vld [vmem:[#allocation3 + $0x2818] sm:$0xff]  ;;  %v3511_v27 = vld [vmem:[#allocation3 + $0x2800] sm:$0xff] }
 0x5a6   : > { %5726 = vmatpush1.bf16.msra.mxu0 %v5725_v35  ;;  %v5763_v35 = vpack.c.bf16 %v2514_v29, %v2512_v24 }
 0x5a7   : > { %5728 = vmatprep.subr.bf16.mxu0 %v5727_v36  ;;  %v2511_v36 = vld [vmem:[#allocation3 + $0x1ba0] sm:$0xff] }
 0x5a8   : > { %v5765_v11 = vpack.c.bf16 %v2513_v37, %v2511_v36  ;;  %v3518_v36 = vld [vmem:[#allocation3 + $0x2838] sm:$0xff]  ;;  %v5787_v37 = vpack.c.bf16 %v3033_v23, %v3031_v20  ;;  %v3047_v20 = vld [vmem:[#allocation3 + $0x20e8] sm:$0xff] }
 0x5a9   : > { %v3049_v23 = vld [vmem:[#allocation3 + $0x20f8] sm:$0xff] }
 0x5aa   : > { %5730 = vmatpush1.bf16.msra.mxu0 %v5729_v38  ;;  %v5767_v38 = vpack.c.bf16 %v2518_v5, %v2516_v21 }
 0x5ab   : > { %5732 = vmatprep.subr.bf16.mxu0 %v5731_v41  ;;  %v2515_v41 = vld [vmem:[#allocation3 + $0x1bc0] sm:$0xff] }
 0x5ac   : > { %v5769_v28 = vpack.c.bf16 %v2517_v44, %v2515_v41  ;;  %v3520_v41 = vld [vmem:[#allocation3 + $0x2848] sm:$0xff] }
 0x5ad   : > { %v3035_v44 = vld [vmem:[#allocation3 + $0x2088] sm:$0xff] }
 0x5ae   : > { %5734 = vmatpush1.bf16.msra.mxu0 %v5733_v32  ;;  %v5771_v32 = vpack.c.bf16 %v2522_v48, %v2520_v47  ;;  %v3037_v47 = vld [vmem:[#allocation3 + $0x2098] sm:$0xff] }
 0x5af   : > { %5736 = vmatprep.subr.bf16.mxu0 %v5735_v49  ;;  %v2519_v49 = vld [vmem:[#allocation3 + $0x1be0] sm:$0xff]  ;;  %v3522_v48 = vld [vmem:[#allocation3 + $0x2858] sm:$0xff]  ;;  %v5791_v52 = vpack.c.bf16 %v3037_v47, %v3035_v44  ;;  %v3537_v44 = vld [vmem:[#allocation3 + $0x28d0] sm:$0xff] }
 0x5b2   : > { %5738 = vmatpush1.bf16.msra.mxu0 %v5737_v46  ;;  %v2384_v46 = vld [vmem:[#allocation2 + $0x10] sm:$0xf0] }
 0x5b3   : > { %5740 = vmatprep.subr.bf16.mxu0 %v5739_v53  ;;  %v5773_v53 = vpack.c.bf16 %v2521_v33, %v2519_v49  ;;  %v3034_v49 = vld [vmem:[#allocation3 + $0x2080] sm:$0xff]  ;;  %v5911_v33 = vpack.c.bf16 %v3522_v48, %v3520_v41  ;;  %v3052_v48 = vld [vmem:[#allocation3 + $0x2110] sm:$0xff] }
 0x5b4   : > { %v3535_v41 = vld [vmem:[#allocation3 + $0x28c0] sm:$0xff] }
 0x5b6   : > { %5742 = vmatpush1.bf16.msra.mxu0 %v5741_v59  ;;  %v2830_v59 = vrot.slane %v7096_v9, 4 }
 0x5b7   : > { %5744 = vmatprep.subr.bf16.mxu0 %v5743_v61  ;;  %v2829_v61 = vrot.slane %v2384_v46, 4  ;;  %v3036_v46 = vld [vmem:[#allocation3 + $0x2090] sm:$0xff] }
 0x5b9   : > { %v2831_v58 = vsel %vm2822_vm4, %v2829_v61, %v2830_v59  ;;  %v3038_v61 = vld [vmem:[#allocation3 + $0x20a0] sm:$0xff] }
 0x5ba   : > { %5746 = vmatpush1.bf16.msra.mxu0 %v5745_v34  ;;  %v3006_v34 = vld [vmem:[#allocation2 + $0x28] sm:$0xf0] }
 0x5bb   : > { %5748 = vmatprep.subr.bf16.mxu0 %v5747_v2  ;;  %v2842_v2 = vsel %vm2822_vm4, %v7122_v54, %v2841_v56  ;;  %v3161_v9 = vrot.slane %v3006_v34, 4  ;;  %v5913_v56 = vpack.c.bf16 %v3521_v51, %v3519_v50  ;;  %v3040_v34 = vld [vmem:[#allocation3 + $0x20b0] sm:$0xff]  ;;  %v5929_v50 = vpack.c.bf16 %v3537_v44, %v3535_v41 }
 0x5bd   : > { %v3163_v25 = vsel %vm2822_vm4, %v3161_v9, %v3162_v13  ;;  %v3527_v9 = vld [vmem:[#allocation3 + $0x2880] sm:$0xff] }
 0x5be   : > { %5750 = vmatpush1.bf16.msra.mxu0 %v5749_v6  ;;  %v2839_v6 = vrot.slane %v2392_v1, 4  ;;  %v3525_v1 = vld [vmem:[#allocation3 + $0x2870] sm:$0xff] }
 0x5bf   : > { %5752 = vmatprep.subr.bf16.mxu0 %v5751_v8  ;;  %v3027_v8 = vld [vmem:[#allocation3 + $0x2048] sm:$0xff] }
 0x5c0   : > { %v5783_v15 = vpack.c.bf16 %v3029_v0, %v3027_v8  ;;  %v2840_v54 = vsel %vm2822_vm4, %v2830_v59, %v2839_v6  ;;  %v5793_v59 = vpack.c.bf16 %v3036_v46, %v3034_v49  ;;  %v5797_v6 = vpack.c.bf16 %v3040_v34, %v3038_v61  ;;  %v3042_v8 = vld [vmem:[#allocation3 + $0x20c0] sm:$0xff]  ;;  %v3055_v49 = vld [vmem:[#allocation3 + $0x2128] sm:$0xff] }
 0x5c1   : > { %v3059_v61 = vld [vmem:[#allocation3 + $0x2148] sm:$0xff] }
 0x5c2   : > { %5754 = vmatpush1.bf16.msra.mxu0 %v5753_v17  ;;  %v3026_v17 = vld [vmem:[#allocation3 + $0x2040] sm:$0xff] }
 0x5c3   : > { %5756 = vmatprep.subr.bf16.mxu0 %v5755_v19  ;;  %v3028_v19 = vld [vmem:[#allocation3 + $0x2050] sm:$0xff] }
 0x5c4   : > { %v5785_v24 = vpack.c.bf16 %v3028_v19, %v3026_v17  ;;  %v3044_v17 = vld [vmem:[#allocation3 + $0x20d0] sm:$0xff]  ;;  %v3532_v19 = vld [vmem:[#allocation3 + $0x28a8] sm:$0xff] }
 0x5c6   : > { %5758 = vmatpush1.bf16.msra.mxu0 %v5757_v26  ;;  %v3032_v26 = vld [vmem:[#allocation3 + $0x2070] sm:$0xff] }
 0x5c7   : > { %5760 = vmatprep.subr.bf16.mxu0 %v5759_v7  ;;  %v3512_v7 = vld [vmem:[#allocation3 + $0x2808] sm:$0xff] }
 0x5c8   : > { %v5903_v29 = vpack.c.bf16 %v3514_v12, %v3512_v7  ;;  %v3531_v12 = vld [vmem:[#allocation3 + $0x28a0] sm:$0xff] }
 0x5ca   : > { %5762 = vmatpush1.bf16.msra.mxu0 %v5761_v31  ;;  %v3513_v31 = vld [vmem:[#allocation3 + $0x2810] sm:$0xff]  ;;  %5904 = vmatprep.subr.bf16.mxu1 %v5903_v29 }
 0x5cb   : > { %5764 = vmatprep.subr.bf16.mxu0 %v5763_v35  ;;  %v3516_v35 = vld [vmem:[#allocation3 + $0x2828] sm:$0xff]  ;;  %v5905_v21 = vpack.c.bf16 %v3513_v31, %v3511_v27  ;;  %v3533_v27 = vld [vmem:[#allocation3 + $0x28b0] sm:$0xff] }
 0x5cc   : > { %v5907_v5 = vpack.c.bf16 %v3518_v36, %v3516_v35  ;;  %v3048_v29 = vld [vmem:[#allocation3 + $0x20f0] sm:$0xff]  ;;  %v3536_v31 = vld [vmem:[#allocation3 + $0x28c8] sm:$0xff]  ;;  %v3538_v35 = vld [vmem:[#allocation3 + $0x28d8] sm:$0xff] }
 0x5cd   : > { %5906 = vmatpush1.bf16.msra.mxu1 %v5905_v21  ;;  %v3051_v36 = vld [vmem:[#allocation3 + $0x2108] sm:$0xff]  ;;  %v5925_v21 = vpack.c.bf16 %v3533_v27, %v3531_v12 }
 0x5ce   : > { %5766 = vmatpush1.bf16.msra.mxu0 %v5765_v11  ;;  %v3515_v11 = vld [vmem:[#allocation3 + $0x2820] sm:$0xff]  ;;  %5908 = vmatprep.subr.bf16.mxu1 %v5907_v5 }
 0x5cf   : > { %5768 = vmatprep.subr.bf16.mxu0 %v5767_v38  ;;  %v3517_v38 = vld [vmem:[#allocation3 + $0x2830] sm:$0xff] }
 0x5d2   : > { %5770 = vmatpush1.bf16.msra.mxu0 %v5769_v28  ;;  %v5909_v28 = vpack.c.bf16 %v3517_v38, %v3515_v11  ;;  %v3050_v11 = vld [vmem:[#allocation3 + $0x2100] sm:$0xff]  ;;  %v5927_v38 = vpack.c.bf16 %v3538_v35, %v3536_v31  ;;  %v3553_v35 = vld [vmem:[#allocation3 + $0x2950] sm:$0xff] }
 0x5d3   : > { %5772 = vmatprep.subr.bf16.mxu0 %v5771_v32  ;;  %v5789_v32 = vpack.c.bf16 %v3032_v26, %v3030_v57  ;;  %v5801_v57 = vpack.c.bf16 %v3044_v17, %v3042_v8  ;;  %v3046_v26 = vld [vmem:[#allocation3 + $0x20e0] sm:$0xff]  ;;  %v5809_v51 = vpack.c.bf16 %v3052_v48, %v3050_v11  ;;  %v3063_v8 = vld [vmem:[#allocation3 + $0x2168] sm:$0xff] }
 0x5d4   : > { %5910 = vmatpush1.bf16.msra.mxu1 %v5909_v28  ;;  %v5805_v5 = vpack.c.bf16 %v3048_v29, %v3046_v26  ;;  %v3540_v28 = vld [vmem:[#allocation3 + $0x28e8] sm:$0xff]  ;;  %v3551_v31 = vld [vmem:[#allocation3 + $0x2940] sm:$0xff] }
 0x5d5   : > { %5912 = vmatprep.subr.bf16.mxu1 %v5911_v33  ;;  %v3057_v33 = vld [vmem:[#allocation3 + $0x2138] sm:$0xff]  ;;  %v3067_v26 = vld [vmem:[#allocation3 + $0x2188] sm:$0xff]  ;;  %v5945_v41 = vpack.c.bf16 %v3553_v35, %v3551_v31  ;;  %v3088_v31 = vld [vmem:[#allocation3 + $0x2230] sm:$0xff] }
 0x5d6   : > { %5774 = vmatpush1.bf16.msra.mxu0 %v5773_v53  ;;  %v3524_v53 = vld [vmem:[#allocation3 + $0x2868] sm:$0xff] }
 0x5d7   : > { %5776 = vmatprep.subr.bf16.mxu0 %v5775_v39  ;;  %v3526_v39 = vld [vmem:[#allocation3 + $0x2878] sm:$0xff]  ;;  %v3071_v11 = vld [vmem:[#allocation3 + $0x21a8] sm:$0xff] }
 0x5d8   : > { %v5915_v62 = vpack.c.bf16 %v3526_v39, %v3524_v53  ;;  %5914 = vmatpush1.bf16.msra.mxu1 %v5913_v56  ;;  %v3539_v53 = vld [vmem:[#allocation3 + $0x28e0] sm:$0xff]  ;;  %v3541_v39 = vld [vmem:[#allocation3 + $0x28f0] sm:$0xff]  ;;  %v3544_v56 = vld [vmem:[#allocation3 + $0x2908] sm:$0xff] }
 0x5d9   : > { %2993 = vmatmul.mubr.f32.vlgmr.msra.gmra.mrb[4].mxu0 %v2831_v58  ;;  %v5917_v58 = vpack.c.bf16 %v3525_v1, %v3523_v63  ;;  %v5933_v63 = vpack.c.bf16 %v3541_v39, %v3539_v53 }
 0x5da   : > { %5778 = vmatpush1.bf16.msra.mxu0 %v5777_v40  ;;  %2998 = vmatprep.mubr.f32.mxu0 %v2842_v2  ;;  %v5795_v40 = vpack.c.bf16 %v3041_v55, %v3039_v43  ;;  %v3528_v2 = vld [vmem:[#allocation3 + $0x2888] sm:$0xff]  ;;  %v5811_v43 = vpack.c.bf16 %v3057_v33, %v3055_v49  ;;  %v3056_v55 = vld [vmem:[#allocation3 + $0x2130] sm:$0xff] }
 0x5db   : > { %5780 = vmatprep.subr.bf16.mxu0 %v5779_v3  ;;  %v3530_v3 = vld [vmem:[#allocation3 + $0x2898] sm:$0xff]  ;;  %5916 = vmatprep.subr.bf16.mxu1 %v5915_v62  ;;  %v3072_v33 = vld [vmem:[#allocation3 + $0x21b0] sm:$0xff] }
 0x5dc   : > { %v5919_v0 = vpack.c.bf16 %v3530_v3, %v3528_v2  ;;  %5918 = vmatpush1.bf16.msra.mxu1 %v5917_v58  ;;  %v3061_v62 = vld [vmem:[#allocation3 + $0x2158] sm:$0xff]  ;;  %v3543_v2 = vld [vmem:[#allocation3 + $0x2900] sm:$0xff]  ;;  %v3545_v3 = vld [vmem:[#allocation3 + $0x2910] sm:$0xff] }
 0x5dd   : > { %2999 = vmatmul.mubr.f32.gmra.mrb[6].mxu0 %v2840_v54  ;;  %v3534_v54 = vld [vmem:[#allocation3 + $0x28b8] sm:$0xff]  ;;  %v3548_v58 = vld [vmem:[#allocation3 + $0x2928] sm:$0xff] }
 0x5de   : > { %5782 = vmatpush1.bf16.msra.mxu0 %v5781_v60  ;;  %3250 = vmatprep.mubr.f32.mxu0 %v3163_v25  ;;  %v3529_v60 = vld [vmem:[#allocation3 + $0x2890] sm:$0xff]  ;;  %v5923_v7 = vpack.c.bf16 %v3534_v54, %v3532_v19  ;;  %v3547_v19 = vld [vmem:[#allocation3 + $0x2920] sm:$0xff] }
 0x5df   : > { %5784 = vmatprep.subr.bf16.mxu0 %v5783_v15  ;;  %v5799_v15 = vpack.c.bf16 %v3045_v4, %v3043_v30  ;;  %v5921_v25 = vpack.c.bf16 %v3529_v60, %v3527_v9  ;;  %5920 = vmatprep.subr.bf16.mxu1 %v5919_v0  ;;  %v5815_v30 = vpack.c.bf16 %v3061_v62, %v3059_v61  ;;  %v3060_v4 = vld [vmem:[#allocation3 + $0x2150] sm:$0xff]  ;;  %v3065_v0 = vld [vmem:[#allocation3 + $0x2178] sm:$0xff]  ;;  %v3074_v61 = vld [vmem:[#allocation3 + $0x21c0] sm:$0xff] }
 0x5e0   : > { %v5937_v9 = vpack.c.bf16 %v3545_v3, %v3543_v2  ;;  %v3549_v54 = vld [vmem:[#allocation3 + $0x2930] sm:$0xff]  ;;  %v3078_v3 = vld [vmem:[#allocation3 + $0x21e0] sm:$0xff] }
 0x5e1   : > { %5922 = vmatpush1.bf16.msra.mxu1 %v5921_v25  ;;  %v3552_v25 = vld [vmem:[#allocation3 + $0x2948] sm:$0xff]  ;;  %v5941_v12 = vpack.c.bf16 %v3549_v54, %v3547_v19  ;;  %v3076_v62 = vld [vmem:[#allocation3 + $0x21d0] sm:$0xff]  ;;  %v3082_v19 = vld [vmem:[#allocation3 + $0x2200] sm:$0xff] }
 0x5e2   : > { %5786 = vmatpush1.bf16.msra.mxu0 %v5785_v24  ;;  %v5803_v24 = vpack.c.bf16 %v3049_v23, %v3047_v20  ;;  %5924 = vmatprep.subr.bf16.mxu1 %v5923_v7  ;;  %v5819_v20 = vpack.c.bf16 %v3065_v0, %v3063_v8  ;;  %v3064_v23 = vld [vmem:[#allocation3 + $0x2170] sm:$0xff]  ;;  %v3069_v7 = vld [vmem:[#allocation3 + $0x2198] sm:$0xff] }
 0x5e3   : > { %5788 = vmatprep.subr.bf16.mxu0 %v5787_v37  ;;  %v3053_v37 = vld [vmem:[#allocation3 + $0x2118] sm:$0xff]  ;;  %v3084_v54 = vld [vmem:[#allocation3 + $0x2210] sm:$0xff] }
 0x5e4   : > { %v5807_v47 = vpack.c.bf16 %v3053_v37, %v3051_v36  ;;  %v5823_v36 = vpack.c.bf16 %v3069_v7, %v3067_v26  ;;  %v3068_v37 = vld [vmem:[#allocation3 + $0x2190] sm:$0xff] }
 0x5e5   : > { %5926 = vmatpush1.bf16.msra.mxu1 %v5925_v21  ;;  %v3556_v21 = vld [vmem:[#allocation3 + $0x2968] sm:$0xff] }
 0x5e6   : > { %5790 = vmatpush1.bf16.msra.mxu0 %v5789_v32  ;;  %v3542_v32 = vld [vmem:[#allocation3 + $0x28f8] sm:$0xff]  ;;  %5928 = vmatprep.subr.bf16.mxu1 %v5927_v38 }
 0x5e7   : > { %5792 = vmatprep.subr.bf16.mxu0 %v5791_v52  ;;  %v3054_v52 = vld [vmem:[#allocation3 + $0x2120] sm:$0xff]  ;;  %v5931_v46 = vpack.c.bf16 %v3542_v32, %v3540_v28  ;;  %v3073_v38 = vld [vmem:[#allocation3 + $0x21b8] sm:$0xff]  ;;  %v3557_v32 = vld [vmem:[#allocation3 + $0x2970] sm:$0xff] }
 0x5e8   : > { %v5813_v1 = vpack.c.bf16 %v3056_v55, %v3054_v52  ;;  %v3555_v28 = vld [vmem:[#allocation3 + $0x2960] sm:$0xff]  ;;  %v5827_v49 = vpack.c.bf16 %v3073_v38, %v3071_v11  ;;  %v3075_v52 = vld [vmem:[#allocation3 + $0x21c8] sm:$0xff] }
 0x5e9   : > { %5930 = vmatpush1.bf16.msra.mxu1 %v5929_v50  ;;  %v3560_v50 = vld [vmem:[#allocation3 + $0x2988] sm:$0xff]  ;;  %v5949_v53 = vpack.c.bf16 %v3557_v32, %v3555_v28  ;;  %v3559_v55 = vld [vmem:[#allocation3 + $0x2980] sm:$0xff]  ;;  %v3097_v28 = vld [vmem:[#allocation3 + $0x2278] sm:$0xff] }
 0x5ea   : > { %5794 = vmatpush1.bf16.msra.mxu0 %v5793_v59  ;;  %v3546_v59 = vld [vmem:[#allocation3 + $0x2918] sm:$0xff]  ;;  %5932 = vmatprep.subr.bf16.mxu1 %v5931_v46  ;;  %v3094_v32 = vld [vmem:[#allocation3 + $0x2260] sm:$0xff] }
 0x5eb   : > { %5796 = vmatprep.subr.bf16.mxu0 %v5795_v40  ;;  %v3058_v40 = vld [vmem:[#allocation3 + $0x2140] sm:$0xff]  ;;  %v5935_v34 = vpack.c.bf16 %v3546_v59, %v3544_v56  ;;  %v3077_v46 = vld [vmem:[#allocation3 + $0x21d8] sm:$0xff]  ;;  %v3561_v56 = vld [vmem:[#allocation3 + $0x2990] sm:$0xff] }
 0x5ec   : > { %v5817_v60 = vpack.c.bf16 %v3060_v4, %v3058_v40  ;;  %v5831_v59 = vpack.c.bf16 %v3077_v46, %v3075_v52  ;;  %v5953_v40 = vpack.c.bf16 %v3561_v56, %v3559_v55  ;;  %v3005_v4 = vld [vmem:[#allocation2 + $0x20] sm:$0xf0] }
 0x5ed   : > { %5934 = vmatpush1.bf16.msra.mxu1 %v5933_v63  ;;  %v3079_v63 = vld [vmem:[#allocation3 + $0x21e8] sm:$0xff]  ;;  %v3158_v0 = vrot.slane %v3005_v4, 4  ;;  %v3098_v46 = vld [vmem:[#allocation3 + $0x2280] sm:$0xff] }
 0x5ee   : > { %5798 = vmatpush1.bf16.msra.mxu0 %v5797_v6  ;;  %v3550_v6 = vld [vmem:[#allocation3 + $0x2938] sm:$0xff]  ;;  %5936 = vmatprep.subr.bf16.mxu1 %v5935_v34  ;;  %v5833_v34 = vpack.c.bf16 %v3076_v62, %v3074_v61  ;;  %v3104_v61 = vld [vmem:[#allocation3 + $0x22b0] sm:$0xff]  ;;  %v3107_v62 = vld [vmem:[#allocation3 + $0x22c8] sm:$0xff] }
 0x5ef   : > { %5800 = vmatprep.subr.bf16.mxu0 %v5799_v15  ;;  %v3062_v15 = vld [vmem:[#allocation3 + $0x2160] sm:$0xff]  ;;  %v5939_v17 = vpack.c.bf16 %v3550_v6, %v3548_v58  ;;  %v3083_v58 = vld [vmem:[#allocation3 + $0x2208] sm:$0xff]  ;;  %v3085_v6 = vld [vmem:[#allocation3 + $0x2218] sm:$0xff] }
 0x5f0   : > { %v5821_v27 = vpack.c.bf16 %v3064_v23, %v3062_v15  ;;  %v3014_v15 = vld [vmem:[#allocation2 + $0x68] sm:$0xf] }
 0x5f1   : > { %5938 = vmatpush1.bf16.msra.mxu1 %v5937_v9  ;;  %v7142_v9 = vld [vmem:[#allocation2 + $0x20] sm:$0xff]  ;;  %v3087_v23 = vld [vmem:[#allocation3 + $0x2228] sm:$0xff]  ;;  %v3172_v26 = vrot.slane %v3014_v15, 4  ;;  %v3117_v15 = vld [vmem:[#allocation3 + $0x2318] sm:$0xff] }
 0x5f2   : > { %5802 = vmatpush1.bf16.msra.mxu0 %v5801_v57  ;;  %v3554_v57 = vld [vmem:[#allocation3 + $0x2958] sm:$0xff]  ;;  %5940 = vmatprep.subr.bf16.mxu1 %v5939_v17  ;;  %v5839_v17 = vpack.c.bf16 %v3085_v6, %v3083_v58  ;;  %v3110_v6 = vld [vmem:[#allocation3 + $0x22e0] sm:$0xff] }
 0x5f3   : > { %5804 = vmatprep.subr.bf16.mxu0 %v5803_v24  ;;  %v3066_v24 = vld [vmem:[#allocation3 + $0x2180] sm:$0xff]  ;;  %v5943_v29 = vpack.c.bf16 %v3554_v57, %v3552_v25  ;;  %v3089_v25 = vld [vmem:[#allocation3 + $0x2238] sm:$0xff] }
 0x5f4   : > { %v5825_v44 = vpack.c.bf16 %v3068_v37, %v3066_v24  ;;  %v3008_v57 = vld [vmem:[#allocation2 + $0x38] sm:$0xf0]  ;;  %v5843_v24 = vpack.c.bf16 %v3089_v25, %v3087_v23  ;;  %v3119_v23 = vld [vmem:[#allocation3 + $0x2328] sm:$0xff] }
 0x5f5   : > { %5942 = vmatpush1.bf16.msra.mxu1 %v5941_v12  ;;  %v5841_v12 = vpack.c.bf16 %v3084_v54, %v3082_v19  ;;  %v3167_v35 = vrot.slane %v3008_v57, 4  ;;  %v3093_v37 = vld [vmem:[#allocation3 + $0x2258] sm:$0xff]  ;;  %v3114_v54 = vld [vmem:[#allocation3 + $0x2300] sm:$0xff] }
 0x5f6   : > { %5806 = vmatpush1.bf16.msra.mxu0 %v5805_v5  ;;  %v3558_v5 = vld [vmem:[#allocation3 + $0x2978] sm:$0xff]  ;;  %5944 = vmatprep.subr.bf16.mxu1 %v5943_v29  ;;  %v3086_v29 = vld [vmem:[#allocation3 + $0x2220] sm:$0xff] }
 0x5f7   : > { %5808 = vmatprep.subr.bf16.mxu0 %v5807_v47  ;;  %v3070_v47 = vld [vmem:[#allocation3 + $0x21a0] sm:$0xff]  ;;  %v5947_v48 = vpack.c.bf16 %v3558_v5, %v3556_v21  ;;  %v3173_v21 = vsel %vm2822_vm4, %v3162_v13, %v3172_v26  ;;  %v5845_v5 = vpack.c.bf16 %v3088_v31, %v3086_v29  ;;  %v3121_v25 = vld [vmem:[#allocation3 + $0x2338] sm:$0xff] }
 0x5f8   : > { %v5829_v39 = vpack.c.bf16 %v3072_v33, %v3070_v47  ;;  %v3099_v33 = vld [vmem:[#allocation3 + $0x2288] sm:$0xff]  ;;  %v5875_v26 = vpack.c.bf16 %v3121_v25, %v3119_v23  ;;  %v3563_v25 = vld [vmem:[#allocation3 + $0x29a0] sm:$0xff] }
 0x5f9   : > { %5946 = vmatpush1.bf16.msra.mxu1 %v5945_v41  ;;  %v3090_v41 = vld [vmem:[#allocation3 + $0x2240] sm:$0xff] }
 0x5fa   : > { %5810 = vmatpush1.bf16.msra.mxu0 %v5809_v51  ;;  %v3562_v51 = vld [vmem:[#allocation3 + $0x2998] sm:$0xff]  ;;  %5948 = vmatprep.subr.bf16.mxu1 %v5947_v48  ;;  %v3095_v48 = vld [vmem:[#allocation3 + $0x2268] sm:$0xff] }
 0x5fb   : > { %5812 = vmatprep.subr.bf16.mxu0 %v5811_v43  ;;  %v5951_v43 = vpack.c.bf16 %v3562_v51, %v3560_v50  ;;  %v5851_v13 = vpack.c.bf16 %v3097_v28, %v3095_v48  ;;  %v3101_v50 = vld [vmem:[#allocation3 + $0x2298] sm:$0xff] }
 0x5fc   : > { %v5855_v52 = vpack.c.bf16 %v3101_v50, %v3099_v33 }
 0x5fd   : > { %5950 = vmatpush1.bf16.msra.mxu1 %v5949_v53  ;;  %v3100_v53 = vld [vmem:[#allocation3 + $0x2290] sm:$0xff] }
 0x5fe   : > { %5814 = vmatpush1.bf16.msra.mxu0 %v5813_v1  ;;  %v3081_v1 = vld [vmem:[#allocation3 + $0x21f8] sm:$0xff]  ;;  %5952 = vmatprep.subr.bf16.mxu1 %v5951_v43  ;;  %v5857_v55 = vpack.c.bf16 %v3100_v53, %v3098_v46  ;;  %v3139_v46 = vld [vmem:[#allocation3 + $0x23c8] sm:$0xff] }
 0x5ff   : > { %5816 = vmatprep.subr.bf16.mxu0 %v5815_v30  ;;  %v5835_v2 = vpack.c.bf16 %v3081_v1, %v3079_v63  ;;  %v3080_v30 = vld [vmem:[#allocation3 + $0x21f0] sm:$0xff]  ;;  %v3105_v43 = vld [vmem:[#allocation3 + $0x22b8] sm:$0xff] }
 0x600   : > { %v5837_v8 = vpack.c.bf16 %v3080_v30, %v3078_v3  ;;  %v3109_v63 = vld [vmem:[#allocation3 + $0x22d8] sm:$0xff]  ;;  %v3111_v3 = vld [vmem:[#allocation3 + $0x22e8] sm:$0xff] }
 0x601   : > { %5954 = vmatpush1.bf16.msra.mxu1 %v5953_v40  ;;  %v5863_v40 = vpack.c.bf16 %v3109_v63, %v3107_v62  ;;  %v3113_v30 = vld [vmem:[#allocation3 + $0x22f8] sm:$0xff] }
 0x602   : > { %5818 = vmatpush1.bf16.msra.mxu0 %v5817_v60  ;;  %v7145_v60 = vrot.slane %v7142_v9, 4  ;;  %v5867_v58 = vpack.c.bf16 %v3113_v30, %v3111_v3  ;;  %v3141_v53 = vld [vmem:[#allocation3 + $0x23d8] sm:$0xff]  ;;  %v3007_v30 = vld [vmem:[#allocation2 + $0x30] sm:$0xf0] }
 0x603   : > { %5820 = vmatprep.subr.bf16.mxu0 %v5819_v20  ;;  %v3013_v20 = vld [vmem:[#allocation2 + $0x60] sm:$0xf] }
 0x604   : > { %v3160_v7 = vsel %vm2822_vm4, %v3158_v0, %v7145_v60  ;;  %v3169_v47 = vsel %vm2822_vm4, %v3167_v35, %v7145_v60  ;;  %v3115_v0 = vld [vmem:[#allocation3 + $0x2308] sm:$0xff]  ;;  %v3122_v35 = vld [vmem:[#allocation3 + $0x2340] sm:$0xff] }
 0x605   : > { %v5871_v19 = vpack.c.bf16 %v3117_v15, %v3115_v0 }
 0x606   : > { %5822 = vmatpush1.bf16.msra.mxu0 %v5821_v27  ;;  %v3170_v27 = vrot.slane %v3013_v20, 4  ;;  %v3116_v20 = vld [vmem:[#allocation3 + $0x2310] sm:$0xff] }
 0x607   : > { %5824 = vmatprep.subr.bf16.mxu0 %v5823_v36  ;;  %v3091_v36 = vld [vmem:[#allocation3 + $0x2248] sm:$0xff]  ;;  %v5873_v57 = vpack.c.bf16 %v3116_v20, %v3114_v54  ;;  %v3566_v20 = vld [vmem:[#allocation3 + $0x29b8] sm:$0xff] }
 0x608   : > { %v3171_v11 = vsel %vm2822_vm4, %v7145_v60, %v3170_v27  ;;  %v5847_v38 = vpack.c.bf16 %v3093_v37, %v3091_v36  ;;  %v3123_v27 = vld [vmem:[#allocation3 + $0x2348] sm:$0xff]  ;;  %v3124_v36 = vld [vmem:[#allocation3 + $0x2350] sm:$0xff] }
 0x609   : > { %v3127_v37 = vld [vmem:[#allocation3 + $0x2368] sm:$0xff] }
 0x60a   : > { %5826 = vmatpush1.bf16.msra.mxu0 %v5825_v44  ;;  %v3092_v44 = vld [vmem:[#allocation3 + $0x2250] sm:$0xff]  ;;  %v3564_v54 = vld [vmem:[#allocation3 + $0x29a8] sm:$0xff] }
 0x60b   : > { %5828 = vmatprep.subr.bf16.mxu0 %v5827_v49  ;;  %v5849_v22 = vpack.c.bf16 %v3092_v44, %v3090_v41  ;;  %v3096_v49 = vld [vmem:[#allocation3 + $0x2270] sm:$0xff]  ;;  %v3131_v44 = vld [vmem:[#allocation3 + $0x2388] sm:$0xff]  ;;  %v5955_v23 = vpack.c.bf16 %v3566_v20, %v3564_v54  ;;  %v3594_v54 = vld [vmem:[#allocation3 + $0x2a98] sm:$0xff] }
 0x60c   : > { %v5853_v51 = vpack.c.bf16 %v3096_v49, %v3094_v32  ;;  %v3128_v41 = vld [vmem:[#allocation3 + $0x2370] sm:$0xff]  ;;  %v3135_v32 = vld [vmem:[#allocation3 + $0x23a8] sm:$0xff]  ;;  %v3137_v49 = vld [vmem:[#allocation3 + $0x23b8] sm:$0xff] }
 0x60d   : > { %v5891_v50 = vpack.c.bf16 %v3137_v49, %v3135_v32  ;;  %5956 = vmatprep.subr.bf16.mxu1 %v5955_v23 }
 0x60e   : > { %5830 = vmatpush1.bf16.msra.mxu0 %v5829_v39  ;;  %v3103_v39 = vld [vmem:[#allocation3 + $0x22a8] sm:$0xff] }
 0x60f   : > { %5832 = vmatprep.subr.bf16.mxu0 %v5831_v59  ;;  %v5859_v56 = vpack.c.bf16 %v3105_v43, %v3103_v39  ;;  %v3102_v59 = vld [vmem:[#allocation3 + $0x22a0] sm:$0xff]  ;;  %v5895_v43 = vpack.c.bf16 %v3141_v53, %v3139_v46 }
 0x610   : > { %v5861_v1 = vpack.c.bf16 %v3104_v61, %v3102_v59  ;;  %v3143_v59 = vld [vmem:[#allocation3 + $0x23e8] sm:$0xff]  ;;  %v3145_v61 = vld [vmem:[#allocation3 + $0x23f8] sm:$0xff] }
 0x611   : > { %v5899_v63 = vpack.c.bf16 %v3145_v61, %v3143_v59 }
 0x612   : > { %5834 = vmatpush1.bf16.msra.mxu0 %v5833_v34  ;;  %v3106_v34 = vld [vmem:[#allocation3 + $0x22c0] sm:$0xff] }
 0x613   : > { %5836 = vmatprep.subr.bf16.mxu0 %v5835_v2  ;;  %v3108_v2 = vld [vmem:[#allocation3 + $0x22d0] sm:$0xff] }
 0x614   : > { %v5865_v4 = vpack.c.bf16 %v3108_v2, %v3106_v34  ;;  %v3016_v34 = vld [vmem:[#allocation2 + $0x78] sm:$0xf]  ;;  %v3011_v2 = vld [vmem:[#allocation2 + $0x50] sm:$0xff] }
 0x616   : > { %5838 = vmatpush1.bf16.msra.mxu0 %v5837_v8  ;;  %v3112_v8 = vld [vmem:[#allocation3 + $0x22f0] sm:$0xff] }
 0x617   : > { %5840 = vmatprep.subr.bf16.mxu0 %v5839_v17  ;;  %v5869_v17 = vpack.c.bf16 %v3112_v8, %v3110_v6  ;;  %v3015_v6 = vld [vmem:[#allocation2 + $0x70] sm:$0xf]  ;;  %v3164_v8 = vrot.slane %v3007_v30, 4  ;;  %v3583_v30 = vld [vmem:[#allocation3 + $0x2a40] sm:$0xff] }
 0x619   : > { %3251 = vmatmul.mubr.f32.vlgmr.msra.gmra.mrb[4].mxu0 %v3160_v7  ;;  %v3118_v7 = vld [vmem:[#allocation3 + $0x2320] sm:$0xff] }
 0x61a   : > { %3256 = vmatprep.mubr.f32.mxu0 %v3173_v21  ;;  %5842 = vmatpush1.bf16.msra.mxu0 %v5841_v12  ;;  %v3120_v12 = vld [vmem:[#allocation3 + $0x2330] sm:$0xff]  ;;  %v3129_v21 = vld [vmem:[#allocation3 + $0x2378] sm:$0xff] }
 0x61b   : > { %5844 = vmatprep.subr.bf16.mxu0 %v5843_v24  ;;  %v3125_v24 = vld [vmem:[#allocation3 + $0x2358] sm:$0xff]  ;;  %v5877_v29 = vpack.c.bf16 %v3120_v12, %v3118_v7  ;;  %v3568_v7 = vld [vmem:[#allocation3 + $0x29c8] sm:$0xff] }
 0x61c   : > { %v5879_v31 = vpack.c.bf16 %v3125_v24, %v3123_v27  ;;  %v3570_v12 = vld [vmem:[#allocation3 + $0x29d8] sm:$0xff]  ;;  %v3569_v24 = vld [vmem:[#allocation3 + $0x29d0] sm:$0xff] }
 0x61d   : > { %3257 = vmatmul.mubr.f32.gmra.mrb[6].mxu0 %v3171_v11  ;;  %v5883_v11 = vpack.c.bf16 %v3129_v21, %v3127_v37  ;;  %v5959_v27 = vpack.c.bf16 %v3570_v12, %v3568_v7  ;;  %v3571_v37 = vld [vmem:[#allocation3 + $0x29e0] sm:$0xff]  ;;  %v3573_v21 = vld [vmem:[#allocation3 + $0x29f0] sm:$0xff]  ;;  %v3598_v7 = vld [vmem:[#allocation3 + $0x2ab8] sm:$0xff] }
 0x61e   : > { %5846 = vmatpush1.bf16.msra.mxu0 %v5845_v5  ;;  %3327 = vmatprep.mubr.f32.mxu0 %v3169_v47  ;;  %v5881_v5 = vpack.c.bf16 %v3124_v36, %v3122_v35  ;;  %v3133_v47 = vld [vmem:[#allocation3 + $0x2398] sm:$0xff] }
 0x61f   : > { %5848 = vmatprep.subr.bf16.mxu0 %v5847_v38  ;;  %v3126_v38 = vld [vmem:[#allocation3 + $0x2360] sm:$0xff]  ;;  %v5887_v28 = vpack.c.bf16 %v3133_v47, %v3131_v44  ;;  %v3574_v35 = vld [vmem:[#allocation3 + $0x29f8] sm:$0xff] }
 0x620   : > { %v5885_v48 = vpack.c.bf16 %v3128_v41, %v3126_v38  ;;  %v3578_v38 = vld [vmem:[#allocation3 + $0x2a18] sm:$0xff]  ;;  %v3345_v44 = vld [vmem:[#allocation5 + $0x4] sm:$0x3] }
 0x621   : > { %v3350_v47 = vrot.slane %v3345_v44, %v7020_v16 }
 0x622   : > { %5850 = vmatpush1.bf16.msra.mxu0 %v5849_v22  ;;  %v3130_v22 = vld [vmem:[#allocation3 + $0x2380] sm:$0xff] }
 0x623   : > { %5852 = vmatprep.subr.bf16.mxu0 %v5851_v13  ;;  %v3132_v13 = vld [vmem:[#allocation3 + $0x2390] sm:$0xff] }
 0x624   : > { %v5889_v33 = vpack.c.bf16 %v3132_v13, %v3130_v22  ;;  %v3575_v22 = vld [vmem:[#allocation3 + $0x2a00] sm:$0xff]  ;;  %v3577_v13 = vld [vmem:[#allocation3 + $0x2a10] sm:$0xff] }
 0x625   : > { %v5969_v46 = vpack.c.bf16 %v3577_v13, %v3575_v22 }
 0x626   : > { %5854 = vmatpush1.bf16.msra.mxu0 %v5853_v51  ;;  %v3134_v51 = vld [vmem:[#allocation3 + $0x23a0] sm:$0xff] }
 0x627   : > { %5856 = vmatprep.subr.bf16.mxu0 %v5855_v52  ;;  %v3136_v52 = vld [vmem:[#allocation3 + $0x23b0] sm:$0xff] }
 0x628   : > { %v5893_v39 = vpack.c.bf16 %v3136_v52, %v3134_v51 }
 0x62a   : > { %5858 = vmatpush1.bf16.msra.mxu0 %v5857_v55  ;;  %v3138_v55 = vld [vmem:[#allocation3 + $0x23c0] sm:$0xff] }
 0x62b   : > { %5860 = vmatprep.subr.bf16.mxu0 %v5859_v56  ;;  %v3140_v56 = vld [vmem:[#allocation3 + $0x23d0] sm:$0xff] }
 0x62c   : > { %v5897_v62 = vpack.c.bf16 %v3140_v56, %v3138_v55  ;;  %v3579_v55 = vld [vmem:[#allocation3 + $0x2a20] sm:$0xff]  ;;  %v3581_v56 = vld [vmem:[#allocation3 + $0x2a30] sm:$0xff] }
 0x62e   : > { %5862 = vmatpush1.bf16.msra.mxu0 %v5861_v1  ;;  %v3142_v1 = vld [vmem:[#allocation3 + $0x23e0] sm:$0xff] }
 0x62f   : > { %5864 = vmatprep.subr.bf16.mxu0 %v5863_v40  ;;  %v3144_v40 = vld [vmem:[#allocation3 + $0x23f0] sm:$0xff] }
 0x630   : > { %v5901_v3 = vpack.c.bf16 %v3144_v40, %v3142_v1 }
 0x632   : > { %5866 = vmatpush1.bf16.msra.mxu0 %v5865_v4  ;;  %v3176_v4 = vrot.slane %v3016_v34, 4  ;;  %v5973_v34 = vpack.c.bf16 %v3581_v56, %v3579_v55  ;;  %v3616_v55 = vld [vmem:[#allocation3 + $0x2b48] sm:$0xff]  ;;  %v3618_v56 = vld [vmem:[#allocation3 + $0x2b58] sm:$0xff] }
 0x633   : > { %5868 = vmatprep.subr.bf16.mxu0 %v5867_v58  ;;  %v3165_v58 = vrot.slane %v3011_v2, 4 }
 0x634   : > { %v3177_v0 = vsel %vm2822_vm4, %v7145_v60, %v3176_v4  ;;  %v3567_v60 = vld [vmem:[#allocation3 + $0x29c0] sm:$0xff]  ;;  %v3585_v4 = vld [vmem:[#allocation3 + $0x2a50] sm:$0xff] }
 0x635   : > { %v3166_v15 = vsel %vm2822_vm4, %v3164_v8, %v3165_v58  ;;  %v5977_v8 = vpack.c.bf16 %v3585_v4, %v3583_v30 }
 0x636   : > { %5870 = vmatpush1.bf16.msra.mxu0 %v5869_v17  ;;  %v3174_v17 = vrot.slane %v3015_v6, 4  ;;  %v3590_v6 = vld [vmem:[#allocation3 + $0x2a78] sm:$0xff] }
 0x637   : > { %5872 = vmatprep.subr.bf16.mxu0 %v5871_v19 }
 0x638   : > { %v3175_v19 = vsel %vm2822_vm4, %v3165_v58, %v3174_v17  ;;  %v3588_v58 = vld [vmem:[#allocation3 + $0x2a68] sm:$0xff]  ;;  %v3589_v17 = vld [vmem:[#allocation3 + $0x2a70] sm:$0xff] }
 0x63a   : > { %5874 = vmatpush1.bf16.msra.mxu0 %v5873_v57  ;;  %v3565_v57 = vld [vmem:[#allocation3 + $0x29b0] sm:$0xff] }
 0x63b   : > { %5876 = vmatprep.subr.bf16.mxu0 %v5875_v26  ;;  %v5957_v26 = vpack.c.bf16 %v3565_v57, %v3563_v25  ;;  %v3591_v25 = vld [vmem:[#allocation3 + $0x2a80] sm:$0xff]  ;;  %v3593_v57 = vld [vmem:[#allocation3 + $0x2a90] sm:$0xff] }
 0x63c   : > { %v5985_v12 = vpack.c.bf16 %v3593_v57, %v3591_v25 }
 0x63d   : > { %5958 = vmatpush1.bf16.msra.mxu1 %v5957_v26  ;;  %v3596_v26 = vld [vmem:[#allocation3 + $0x2aa8] sm:$0xff] }
 0x63e   : > { %5878 = vmatpush1.bf16.msra.mxu0 %v5877_v29  ;;  %v5961_v29 = vpack.c.bf16 %v3569_v24, %v3567_v60  ;;  %5960 = vmatprep.subr.bf16.mxu1 %v5959_v27  ;;  %v5987_v27 = vpack.c.bf16 %v3598_v7, %v3596_v26  ;;  %v3595_v60 = vld [vmem:[#allocation3 + $0x2aa0] sm:$0xff]  ;;  %v3597_v24 = vld [vmem:[#allocation3 + $0x2ab0] sm:$0xff] }
 0x63f   : > { %5880 = vmatprep.subr.bf16.mxu0 %v5879_v31  ;;  %v3572_v31 = vld [vmem:[#allocation3 + $0x29e8] sm:$0xff]  ;;  %v3627_v26 = vld [vmem:[#allocation3 + $0x2ba0] sm:$0xff]  ;;  %v3629_v7 = vld [vmem:[#allocation3 + $0x2bb0] sm:$0xff] }
 0x640   : > { %v5963_v36 = vpack.c.bf16 %v3574_v35, %v3572_v31  ;;  %v3602_v31 = vld [vmem:[#allocation3 + $0x2ad8] sm:$0xff]  ;;  %v5989_v35 = vpack.c.bf16 %v3597_v24, %v3595_v60  ;;  %v6021_v60 = vpack.c.bf16 %v3629_v7, %v3627_v26  ;;  %v3402_v26 = vld [vmem:[#allocation3 + $0x24c0] sm:$0xff]  ;;  %v3404_v7 = vld [vmem:[#allocation3 + $0x24d0] sm:$0xff] }
 0x641   : > { %5962 = vmatpush1.bf16.msra.mxu1 %v5961_v29  ;;  %v3600_v29 = vld [vmem:[#allocation3 + $0x2ac8] sm:$0xff] }
 0x642   : > { %5882 = vmatpush1.bf16.msra.mxu0 %v5881_v5  ;;  %v5965_v5 = vpack.c.bf16 %v3573_v21, %v3571_v37  ;;  %5964 = vmatprep.subr.bf16.mxu1 %v5963_v36  ;;  %v5991_v36 = vpack.c.bf16 %v3602_v31, %v3600_v29  ;;  %v3599_v37 = vld [vmem:[#allocation3 + $0x2ac0] sm:$0xff]  ;;  %v3601_v21 = vld [vmem:[#allocation3 + $0x2ad0] sm:$0xff] }
 0x643   : > { %5884 = vmatprep.subr.bf16.mxu0 %v5883_v11  ;;  %v3576_v11 = vld [vmem:[#allocation3 + $0x2a08] sm:$0xff]  ;;  %v3631_v29 = vld [vmem:[#allocation3 + $0x2bc0] sm:$0xff]  ;;  %v3633_v31 = vld [vmem:[#allocation3 + $0x2bd0] sm:$0xff] }
 0x644   : > { %v5967_v41 = vpack.c.bf16 %v3578_v38, %v3576_v11  ;;  %v3606_v11 = vld [vmem:[#allocation3 + $0x2af8] sm:$0xff]  ;;  %v5993_v38 = vpack.c.bf16 %v3601_v21, %v3599_v37  ;;  %v6025_v37 = vpack.c.bf16 %v3633_v31, %v3631_v29  ;;  %v3406_v29 = vld [vmem:[#allocation3 + $0x24e0] sm:$0xff]  ;;  %v3408_v31 = vld [vmem:[#allocation3 + $0x24f0] sm:$0xff] }
 0x645   : > { %5966 = vmatpush1.bf16.msra.mxu1 %v5965_v5  ;;  %v3604_v5 = vld [vmem:[#allocation3 + $0x2ae8] sm:$0xff] }
 0x646   : > { %5886 = vmatpush1.bf16.msra.mxu0 %v5885_v48  ;;  %5968 = vmatprep.subr.bf16.mxu1 %v5967_v41  ;;  %v3354_v48 = vrot.slane %v3345_v44, %v7022_v18  ;;  %v5995_v41 = vpack.c.bf16 %v3606_v11, %v3604_v5  ;;  %v3603_v44 = vld [vmem:[#allocation3 + $0x2ae0] sm:$0xff]  ;;  %v3637_v11 = vld [vmem:[#allocation3 + $0x2bf0] sm:$0xff] }
 0x647   : > { %5888 = vmatprep.subr.bf16.mxu0 %v5887_v28  ;;  %v3635_v5 = vld [vmem:[#allocation3 + $0x2be0] sm:$0xff] }
 0x64a   : > { %5890 = vmatpush1.bf16.msra.mxu0 %v5889_v33  ;;  %v3580_v33 = vld [vmem:[#allocation3 + $0x2a28] sm:$0xff] }
 0x64b   : > { %5892 = vmatprep.subr.bf16.mxu0 %v5891_v50  ;;  %v3582_v50 = vld [vmem:[#allocation3 + $0x2a38] sm:$0xff] }
 0x64e   : > { %5894 = vmatpush1.bf16.msra.mxu0 %v5893_v39 }
 0x64f   : > { %5896 = vmatprep.subr.bf16.mxu0 %v5895_v43  ;;  %v5971_v43 = vpack.c.bf16 %v3582_v50, %v3580_v33  ;;  %v3612_v33 = vld [vmem:[#allocation3 + $0x2b28] sm:$0xff]  ;;  %v3614_v50 = vld [vmem:[#allocation3 + $0x2b38] sm:$0xff] }
 0x652   : > { %5898 = vmatpush1.bf16.msra.mxu0 %v5897_v62  ;;  %v3584_v62 = vld [vmem:[#allocation3 + $0x2a48] sm:$0xff] }
 0x653   : > { %5900 = vmatprep.subr.bf16.mxu0 %v5899_v63  ;;  %v3586_v63 = vld [vmem:[#allocation3 + $0x2a58] sm:$0xff] }
 0x656   : > { %5902 = vmatpush1.bf16.msra.mxu0 %v5901_v3  ;;  %v5975_v3 = vpack.c.bf16 %v3586_v63, %v3584_v62  ;;  %v3615_v62 = vld [vmem:[#allocation3 + $0x2b40] sm:$0xff]  ;;  %v3617_v63 = vld [vmem:[#allocation3 + $0x2b50] sm:$0xff] }
 0x657   : > { %v6009_v30 = vpack.c.bf16 %v3617_v63, %v3615_v62 }
 0x659   : > { %3328 = vmatmul.mubr.f32.vlgmr.msra.gmra.mrb[4].mxu0 %v3166_v15  ;;  %v3587_v15 = vld [vmem:[#allocation3 + $0x2a60] sm:$0xff] }
 0x65a   : > { %3333 = vmatprep.mubr.f32.mxu0 %v3177_v0  ;;  %v5979_v0 = vpack.c.bf16 %v3590_v6, %v3588_v58  ;;  %v5981_v20 = vpack.c.bf16 %v3589_v17, %v3587_v15  ;;  %v3619_v58 = vld [vmem:[#allocation3 + $0x2b60] sm:$0xff]  ;;  %v3621_v6 = vld [vmem:[#allocation3 + $0x2b70] sm:$0xff] }
 0x65b   : > { %v6013_v15 = vpack.c.bf16 %v3621_v6, %v3619_v58 }
 0x65d   : > { %3334 = vmatmul.mubr.f32.gmra.mrb[6].mxu0 %v3175_v19  ;;  %v3592_v19 = vld [vmem:[#allocation3 + $0x2a88] sm:$0xff] }
 0x65e   : > { %v5983_v23 = vpack.c.bf16 %v3594_v54, %v3592_v19  ;;  %v3623_v19 = vld [vmem:[#allocation3 + $0x2b80] sm:$0xff]  ;;  %v3625_v54 = vld [vmem:[#allocation3 + $0x2b90] sm:$0xff] }
 0x65f   : > { %v6017_v25 = vpack.c.bf16 %v3625_v54, %v3623_v19  ;;  %v3398_v19 = vld [vmem:[#allocation3 + $0x24a0] sm:$0xff]  ;;  %v3400_v54 = vld [vmem:[#allocation3 + $0x24b0] sm:$0xff] }
 0x72c   : > { %v3329_v28 = vpop.f32.mrb[4].mxu0 }
 0x72d   : > { %v3357_v32 = vadd.f32 %v3350_v47, %v3329_v28  ;;  %v3331_v49 = vpop.f32.mrb[5].mxu0  ;;  %v3610_v28 = vld [vmem:[#allocation3 + $0x2b18] sm:$0xff] }
 0x72e   : > { %v3358_v51 = vadd.f32 %v3354_v48, %v3331_v49  ;;  %v3609_v49 = vld [vmem:[#allocation3 + $0x2b10] sm:$0xff] }
 0x72f   : > { %v7162_v52 = vmax.f32 %v3357_v32, 0.0  ;;  %v3607_v32 = vld [vmem:[#allocation3 + $0x2b00] sm:$0xff] }
 0x730   : > { %v7164_v53 = vmax.f32 %v3358_v51, 0.0  ;;  %v3335_v39 = vpop.f32.mrb[6].mxu0  ;;  %v6001_v51 = vpack.c.bf16 %v3609_v49, %v3607_v32 }
 0x731   : > { %3365 = vst [vmem:[#allocation2 + $0x28] sm:$0xff] %v7162_v52  ;;  %v3359_v59 = vadd.f32 %v3350_v47, %v3335_v39  ;;  %v3337_v61 = vpop.f32.mrb[7].mxu0  ;;  %3703 = vmatprep.mubr.f32.mxu1 %v7162_v52  ;;  %v3605_v47 = vld [vmem:[#allocation3 + $0x2af0] sm:$0xff]  ;;  %v3611_v39 = vld [vmem:[#allocation3 + $0x2b20] sm:$0xff] }
 0x732   : > { %3366 = vst [vmem:[#allocation2 + $0x30] sm:$0xff] %v7164_v53  ;;  %v7169_v1 = vadd.f32 %v3354_v48, %v3337_v61  ;;  %3704 = vmatmul.mubr.f32.vlgmr.msra.gmra.mrb[4].mxu1 %v7142_v9  ;;  %v3608_v48 = vld [vmem:[#allocation3 + $0x2b08] sm:$0xff]  ;;  %v5997_v22 = vpack.c.bf16 %v3605_v47, %v3603_v44  ;;  %v6007_v61 = vpack.c.bf16 %v3618_v56, %v3616_v55  ;;  %v3386_v55 = vld [vmem:[#allocation3 + $0x2440] sm:$0xff]  ;;  %v3388_v56 = vld [vmem:[#allocation3 + $0x2450] sm:$0xff] }
 0x733   : > { %v7172_v40 = vmax.f32 %v3359_v59, 0.0  ;;  %5970 = vmatpush1.bf16.msra.mxu1 %v5969_v46  ;;  %v5999_v13 = vpack.c.bf16 %v3610_v28, %v3608_v48  ;;  %v6003_v46 = vpack.c.bf16 %v3614_v50, %v3612_v33  ;;  %v6029_v44 = vpack.c.bf16 %v3637_v11, %v3635_v5  ;;  %v3378_v48 = vld [vmem:[#allocation3 + $0x2400] sm:$0xff]  ;;  %v3380_v28 = vld [vmem:[#allocation3 + $0x2410] sm:$0xff] }
 0x734   : > { %v3364_v2 = vmax.f32 %v7169_v1, 0.0  ;;  %5972 = vmatprep.subr.bf16.mxu1 %v5971_v43  ;;  %v3613_v43 = vld [vmem:[#allocation3 + $0x2b30] sm:$0xff]  ;;  %v6033_v32 = vpack.c.bf16 %v3380_v28, %v3378_v48  ;;  %v3382_v33 = vld [vmem:[#allocation3 + $0x2420] sm:$0xff]  ;;  %v6041_v62 = vpack.c.bf16 %v3388_v56, %v3386_v55 }
 0x735   : > { %3367 = vst [vmem:[#allocation2 + $0x48] sm:$0xff] %v7172_v40  ;;  %3709 = vmatprep.mubr.f32.mxu1 %v7172_v40  ;;  %v6005_v59 = vpack.c.bf16 %v3613_v43, %v3611_v39  ;;  %v3384_v50 = vld [vmem:[#allocation3 + $0x2430] sm:$0xff]  ;;  %v3410_v5 = vld [vmem:[#allocation3 + $0x2500] sm:$0xff] }
 0x736   : > { %3368 = vst [vmem:[#allocation2 + $0x50] sm:$0xff] %v3364_v2  ;;  %3710 = vmatmul.mubr.f32.gmra.mrb[6].mxu1 %v7142_v9  ;;  %v6037_v39 = vpack.c.bf16 %v3384_v50, %v3382_v33  ;;  %v3412_v11 = vld [vmem:[#allocation3 + $0x2510] sm:$0xff]  ;;  %v3414_v48 = vld [vmem:[#allocation3 + $0x2520] sm:$0xff] }
 0x737   : > { %5974 = vmatpush1.bf16.msra.mxu1 %v5973_v34  ;;  %3780 = vmatprep.mubr.f32.mxu1 %v7142_v9  ;;  %v3620_v34 = vld [vmem:[#allocation3 + $0x2b68] sm:$0xff]  ;;  %v3416_v28 = vld [vmem:[#allocation3 + $0x2530] sm:$0xff]  ;;  %v3418_v33 = vld [vmem:[#allocation3 + $0x2540] sm:$0xff] }
 0x738   : > { %5976 = vmatprep.subr.bf16.mxu1 %v5975_v3  ;;  %v3622_v3 = vld [vmem:[#allocation3 + $0x2b78] sm:$0xff]  ;;  %v3420_v50 = vld [vmem:[#allocation3 + $0x2550] sm:$0xff]  ;;  %v3422_v55 = vld [vmem:[#allocation3 + $0x2560] sm:$0xff] }
 0x739   : > { %v6011_v4 = vpack.c.bf16 %v3622_v3, %v3620_v34  ;;  %v3390_v34 = vld [vmem:[#allocation3 + $0x2460] sm:$0xff]  ;;  %v3392_v3 = vld [vmem:[#allocation3 + $0x2470] sm:$0xff] }
 0x73a   : > { %v6045_v58 = vpack.c.bf16 %v3392_v3, %v3390_v34  ;;  %v3424_v56 = vld [vmem:[#allocation3 + $0x2570] sm:$0xff]  ;;  %v3426_v34 = vld [vmem:[#allocation3 + $0x2580] sm:$0xff] }
 0x73b   : > { %5978 = vmatpush1.bf16.msra.mxu1 %v5977_v8  ;;  %v3624_v8 = vld [vmem:[#allocation3 + $0x2b88] sm:$0xff]  ;;  %v3428_v3 = vld [vmem:[#allocation3 + $0x2590] sm:$0xff] }
 0x73c   : > { %5980 = vmatprep.subr.bf16.mxu1 %v5979_v0  ;;  %v3626_v0 = vld [vmem:[#allocation3 + $0x2b98] sm:$0xff] }
 0x73d   : > { %v6015_v17 = vpack.c.bf16 %v3626_v0, %v3624_v8  ;;  %v3394_v8 = vld [vmem:[#allocation3 + $0x2480] sm:$0xff]  ;;  %v3396_v0 = vld [vmem:[#allocation3 + $0x2490] sm:$0xff] }
 0x73e   : > { %v6049_v1 = vpack.c.bf16 %v3396_v0, %v3394_v8  ;;  %v3430_v8 = vld [vmem:[#allocation3 + $0x25a0] sm:$0xff]  ;;  %v3432_v0 = vld [vmem:[#allocation3 + $0x25b0] sm:$0xff] }
 0x73f   : > { %5982 = vmatpush1.bf16.msra.mxu1 %v5981_v20  ;;  %v3628_v20 = vld [vmem:[#allocation3 + $0x2ba8] sm:$0xff] }
 0x740   : > { %5984 = vmatprep.subr.bf16.mxu1 %v5983_v23  ;;  %v3630_v23 = vld [vmem:[#allocation3 + $0x2bb8] sm:$0xff] }
 0x741   : > { %v6019_v57 = vpack.c.bf16 %v3630_v23, %v3628_v20  ;;  %v3403_v20 = vld [vmem:[#allocation3 + $0x24c8] sm:$0xff]  ;;  %v3405_v23 = vld [vmem:[#allocation3 + $0x24d8] sm:$0xff] }
 0x743   : > { %5986 = vmatpush1.bf16.msra.mxu1 %v5985_v12  ;;  %v3632_v12 = vld [vmem:[#allocation3 + $0x2bc8] sm:$0xff] }
 0x744   : > { %5988 = vmatprep.subr.bf16.mxu1 %v5987_v27  ;;  %v3634_v27 = vld [vmem:[#allocation3 + $0x2bd8] sm:$0xff] }
 0x745   : > { %v6023_v24 = vpack.c.bf16 %v3634_v27, %v3632_v12  ;;  %v3407_v12 = vld [vmem:[#allocation3 + $0x24e8] sm:$0xff]  ;;  %v3409_v27 = vld [vmem:[#allocation3 + $0x24f8] sm:$0xff] }
 0x747   : > { %5990 = vmatpush1.bf16.msra.mxu1 %v5989_v35  ;;  %v3636_v35 = vld [vmem:[#allocation3 + $0x2be8] sm:$0xff] }
 0x748   : > { %5992 = vmatprep.subr.bf16.mxu1 %v5991_v36  ;;  %v3638_v36 = vld [vmem:[#allocation3 + $0x2bf8] sm:$0xff] }
 0x749   : > { %v6027_v21 = vpack.c.bf16 %v3638_v36, %v3636_v35  ;;  %v3411_v35 = vld [vmem:[#allocation3 + $0x2508] sm:$0xff]  ;;  %v3413_v36 = vld [vmem:[#allocation3 + $0x2518] sm:$0xff] }
 0x74b   : > { %5994 = vmatpush1.bf16.msra.mxu1 %v5993_v38  ;;  %v3379_v38 = vld [vmem:[#allocation3 + $0x2408] sm:$0xff] }
 0x74c   : > { %5996 = vmatprep.subr.bf16.mxu1 %v5995_v41  ;;  %v3381_v41 = vld [vmem:[#allocation3 + $0x2418] sm:$0xff] }
 0x74d   : > { %v6031_v47 = vpack.c.bf16 %v3381_v41, %v3379_v38  ;;  %v3415_v38 = vld [vmem:[#allocation3 + $0x2528] sm:$0xff]  ;;  %v3417_v41 = vld [vmem:[#allocation3 + $0x2538] sm:$0xff] }
 0x74f   : > { %5998 = vmatpush1.bf16.msra.mxu1 %v5997_v22  ;;  %v3383_v22 = vld [vmem:[#allocation3 + $0x2428] sm:$0xff] }
 0x750   : > { %6000 = vmatprep.subr.bf16.mxu1 %v5999_v13  ;;  %v3385_v13 = vld [vmem:[#allocation3 + $0x2438] sm:$0xff] }
 0x751   : > { %v6035_v49 = vpack.c.bf16 %v3385_v13, %v3383_v22  ;;  %v3419_v22 = vld [vmem:[#allocation3 + $0x2548] sm:$0xff]  ;;  %v3421_v13 = vld [vmem:[#allocation3 + $0x2558] sm:$0xff] }
 0x753   : > { %6002 = vmatpush1.bf16.msra.mxu1 %v6001_v51  ;;  %v3387_v51 = vld [vmem:[#allocation3 + $0x2448] sm:$0xff] }
 0x754   : > { %6004 = vmatprep.subr.bf16.mxu1 %v6003_v46  ;;  %v3389_v46 = vld [vmem:[#allocation3 + $0x2458] sm:$0xff] }
 0x755   : > { %v6039_v43 = vpack.c.bf16 %v3389_v46, %v3387_v51  ;;  %v3423_v51 = vld [vmem:[#allocation3 + $0x2568] sm:$0xff]  ;;  %v3425_v46 = vld [vmem:[#allocation3 + $0x2578] sm:$0xff] }
 0x757   : > { %6006 = vmatpush1.bf16.msra.mxu1 %v6005_v59  ;;  %v3391_v59 = vld [vmem:[#allocation3 + $0x2468] sm:$0xff] }
 0x758   : > { %6008 = vmatprep.subr.bf16.mxu1 %v6007_v61  ;;  %v3393_v61 = vld [vmem:[#allocation3 + $0x2478] sm:$0xff] }
 0x759   : > { %v6043_v63 = vpack.c.bf16 %v3393_v61, %v3391_v59  ;;  %v3427_v59 = vld [vmem:[#allocation3 + $0x2588] sm:$0xff]  ;;  %v3429_v61 = vld [vmem:[#allocation3 + $0x2598] sm:$0xff] }
 0x75b   : > { %6010 = vmatpush1.bf16.msra.mxu1 %v6009_v30  ;;  %v3395_v30 = vld [vmem:[#allocation3 + $0x2488] sm:$0xff] }
 0x75c   : > { %6012 = vmatprep.subr.bf16.mxu1 %v6011_v4  ;;  %v3397_v4 = vld [vmem:[#allocation3 + $0x2498] sm:$0xff] }
 0x75d   : > { %v6047_v6 = vpack.c.bf16 %v3397_v4, %v3395_v30  ;;  %v3431_v30 = vld [vmem:[#allocation3 + $0x25a8] sm:$0xff]  ;;  %v3433_v4 = vld [vmem:[#allocation3 + $0x25b8] sm:$0xff] }
 0x75f   : > { %6014 = vmatpush1.bf16.msra.mxu1 %v6013_v15  ;;  %v3399_v15 = vld [vmem:[#allocation3 + $0x24a8] sm:$0xff] }
 0x760   : > { %6016 = vmatprep.subr.bf16.mxu1 %v6015_v17  ;;  %v3401_v17 = vld [vmem:[#allocation3 + $0x24b8] sm:$0xff] }
 0x763   : > { %6018 = vmatpush1.bf16.msra.mxu1 %v6017_v25  ;;  %v6053_v25 = vpack.c.bf16 %v3400_v54, %v3398_v19  ;;  %v3434_v19 = vld [vmem:[#allocation3 + $0x25c0] sm:$0xff]  ;;  %v3436_v54 = vld [vmem:[#allocation3 + $0x25d0] sm:$0xff] }
 0x764   : > { %6020 = vmatprep.subr.bf16.mxu1 %v6019_v57  ;;  %v6055_v57 = vpack.c.bf16 %v3405_v23, %v3403_v20  ;;  %v3439_v20 = vld [vmem:[#allocation3 + $0x25e8] sm:$0xff]  ;;  %v3441_v23 = vld [vmem:[#allocation3 + $0x25f8] sm:$0xff] }
 0x767   : > { %6022 = vmatpush1.bf16.msra.mxu1 %v6021_v60  ;;  %v6057_v60 = vpack.c.bf16 %v3404_v7, %v3402_v26  ;;  %v3438_v26 = vld [vmem:[#allocation3 + $0x25e0] sm:$0xff]  ;;  %v3440_v7 = vld [vmem:[#allocation3 + $0x25f0] sm:$0xff] }
 0x768   : > { %6024 = vmatprep.subr.bf16.mxu1 %v6023_v24  ;;  %v6059_v24 = vpack.c.bf16 %v3409_v27, %v3407_v12  ;;  %v3443_v12 = vld [vmem:[#allocation3 + $0x2608] sm:$0xff]  ;;  %v3445_v27 = vld [vmem:[#allocation3 + $0x2618] sm:$0xff] }
 0x76b   : > { %6026 = vmatpush1.bf16.msra.mxu1 %v6025_v37  ;;  %v6061_v37 = vpack.c.bf16 %v3408_v31, %v3406_v29  ;;  %v3442_v29 = vld [vmem:[#allocation3 + $0x2600] sm:$0xff]  ;;  %v3444_v31 = vld [vmem:[#allocation3 + $0x2610] sm:$0xff] }
 0x76c   : > { %6028 = vmatprep.subr.bf16.mxu1 %v6027_v21  ;;  %v6063_v21 = vpack.c.bf16 %v3413_v36, %v3411_v35  ;;  %v3447_v35 = vld [vmem:[#allocation3 + $0x2628] sm:$0xff]  ;;  %v3449_v36 = vld [vmem:[#allocation3 + $0x2638] sm:$0xff] }
 0x76f   : > { %6030 = vmatpush1.bf16.msra.mxu1 %v6029_v44  ;;  %v6065_v44 = vpack.c.bf16 %v3412_v11, %v3410_v5  ;;  %v3446_v5 = vld [vmem:[#allocation3 + $0x2620] sm:$0xff]  ;;  %v3448_v11 = vld [vmem:[#allocation3 + $0x2630] sm:$0xff] }
 0x770   : > { %6032 = vmatprep.subr.bf16.mxu1 %v6031_v47  ;;  %v6067_v47 = vpack.c.bf16 %v3417_v41, %v3415_v38  ;;  %v3451_v38 = vld [vmem:[#allocation3 + $0x2648] sm:$0xff]  ;;  %v3453_v41 = vld [vmem:[#allocation3 + $0x2658] sm:$0xff] }
 0x772   : > { %3781 = vmatmul.mubr.f32.vlgmr.msra.gmra.mrb[4].mxu1 %v7164_v53 }
 0x773   : > { %6034 = vmatpush1.bf16.msra.mxu1 %v6033_v32  ;;  %3786 = vmatprep.mubr.f32.mxu1 %v7142_v9  ;;  %v6069_v32 = vpack.c.bf16 %v3416_v28, %v3414_v48  ;;  %v3450_v48 = vld [vmem:[#allocation3 + $0x2640] sm:$0xff]  ;;  %v3452_v28 = vld [vmem:[#allocation3 + $0x2650] sm:$0xff] }
 0x774   : > { %6036 = vmatprep.subr.bf16.mxu1 %v6035_v49  ;;  %v6071_v49 = vpack.c.bf16 %v3421_v13, %v3419_v22  ;;  %v3455_v22 = vld [vmem:[#allocation3 + $0x2668] sm:$0xff]  ;;  %v3457_v13 = vld [vmem:[#allocation3 + $0x2678] sm:$0xff] }
 0x776   : > { %3787 = vmatmul.mubr.f32.gmra.mrb[6].mxu1 %v3364_v2  ;;  %v6051_v2 = vpack.c.bf16 %v3401_v17, %v3399_v15  ;;  %v3435_v15 = vld [vmem:[#allocation3 + $0x25c8] sm:$0xff]  ;;  %v3437_v17 = vld [vmem:[#allocation3 + $0x25d8] sm:$0xff] }
 0x777   : > { %6038 = vmatpush1.bf16.msra.mxu1 %v6037_v39  ;;  %3857 = vmatprep.mubr.f32.mxu1 %v7142_v9  ;;  %v6073_v39 = vpack.c.bf16 %v3420_v50, %v3418_v33  ;;  %v3454_v33 = vld [vmem:[#allocation3 + $0x2660] sm:$0xff]  ;;  %v3456_v50 = vld [vmem:[#allocation3 + $0x2670] sm:$0xff] }
 0x778   : > { %6040 = vmatprep.subr.bf16.mxu1 %v6039_v43  ;;  %v6075_v43 = vpack.c.bf16 %v3425_v46, %v3423_v51  ;;  %v3459_v51 = vld [vmem:[#allocation3 + $0x2688] sm:$0xff]  ;;  %v6109_v46 = vpack.c.bf16 %v3456_v50, %v3454_v33  ;;  %v3497_v50 = vld [vmem:[#allocation3 + $0x27b8] sm:$0xff] }
 0x779   : > { %v3495_v33 = vld [vmem:[#allocation3 + $0x27a8] sm:$0xff] }
 0x77b   : > { %6042 = vmatpush1.bf16.msra.mxu1 %v6041_v62  ;;  %v6077_v62 = vpack.c.bf16 %v3424_v56, %v3422_v55  ;;  %v3460_v55 = vld [vmem:[#allocation3 + $0x2690] sm:$0xff]  ;;  %v3463_v56 = vld [vmem:[#allocation3 + $0x26a8] sm:$0xff] }
 0x77c   : > { %6044 = vmatprep.subr.bf16.mxu1 %v6043_v63  ;;  %v6079_v63 = vpack.c.bf16 %v3429_v61, %v3427_v59  ;;  %v3465_v59 = vld [vmem:[#allocation3 + $0x26b8] sm:$0xff] }
 0x77f   : > { %6046 = vmatpush1.bf16.msra.mxu1 %v6045_v58  ;;  %v6081_v58 = vpack.c.bf16 %v3428_v3, %v3426_v34  ;;  %v3467_v34 = vld [vmem:[#allocation3 + $0x26c8] sm:$0xff]  ;;  %v3469_v3 = vld [vmem:[#allocation3 + $0x26d8] sm:$0xff] }
 0x780   : > { %6048 = vmatprep.subr.bf16.mxu1 %v6047_v6  ;;  %v6083_v6 = vpack.c.bf16 %v3433_v4, %v3431_v30  ;;  %v6119_v4 = vpack.c.bf16 %v3469_v3, %v3467_v34 }
 0x783   : > { %6050 = vmatpush1.bf16.msra.mxu1 %v6049_v1  ;;  %v6085_v1 = vpack.c.bf16 %v3432_v0, %v3430_v8  ;;  %v3471_v8 = vld [vmem:[#allocation3 + $0x26e8] sm:$0xff]  ;;  %v3473_v0 = vld [vmem:[#allocation3 + $0x26f8] sm:$0xff] }
 0x784   : > { %6052 = vmatprep.subr.bf16.mxu1 %v6051_v2  ;;  %v6087_v2 = vpack.c.bf16 %v3437_v17, %v3435_v15  ;;  %v6123_v17 = vpack.c.bf16 %v3473_v0, %v3471_v8 }
 0x787   : > { %6054 = vmatpush1.bf16.msra.mxu1 %v6053_v25  ;;  %v6089_v25 = vpack.c.bf16 %v3436_v54, %v3434_v19  ;;  %v3475_v19 = vld [vmem:[#allocation3 + $0x2708] sm:$0xff]  ;;  %v3477_v54 = vld [vmem:[#allocation3 + $0x2718] sm:$0xff] }
 0x788   : > { %6056 = vmatprep.subr.bf16.mxu1 %v6055_v57  ;;  %v6091_v57 = vpack.c.bf16 %v3441_v23, %v3439_v20  ;;  %v6127_v23 = vpack.c.bf16 %v3477_v54, %v3475_v19 }
 0x78b   : > { %6058 = vmatpush1.bf16.msra.mxu1 %v6057_v60  ;;  %v6093_v60 = vpack.c.bf16 %v3440_v7, %v3438_v26  ;;  %v3479_v26 = vld [vmem:[#allocation3 + $0x2728] sm:$0xff]  ;;  %v3481_v7 = vld [vmem:[#allocation3 + $0x2738] sm:$0xff] }
 0x78c   : > { %6060 = vmatprep.subr.bf16.mxu1 %v6059_v24  ;;  %v6095_v24 = vpack.c.bf16 %v3445_v27, %v3443_v12  ;;  %v6131_v27 = vpack.c.bf16 %v3481_v7, %v3479_v26  ;;  %v7190_v26 = vld [vmem:[#allocation2 + $0x20] sm:$0xff] }
 0x78f   : > { %6062 = vmatpush1.bf16.msra.mxu1 %v6061_v37  ;;  %v6097_v37 = vpack.c.bf16 %v3444_v31, %v3442_v29  ;;  %v3483_v29 = vld [vmem:[#allocation3 + $0x2748] sm:$0xff]  ;;  %v3485_v31 = vld [vmem:[#allocation3 + $0x2758] sm:$0xff] }
 0x790   : > { %6064 = vmatprep.subr.bf16.mxu1 %v6063_v21  ;;  %v6099_v21 = vpack.c.bf16 %v3449_v36, %v3447_v35  ;;  %v6135_v36 = vpack.c.bf16 %v3485_v31, %v3483_v29  ;;  %v3971_v29 = vld [vmem:[#allocation3 + $0x2c78] sm:$0xff]  ;;  %v3968_v31 = vld [vmem:[#allocation3 + $0x2c60] sm:$0xff] }
 0x793   : > { %6066 = vmatpush1.bf16.msra.mxu1 %v6065_v44  ;;  %v6101_v44 = vpack.c.bf16 %v3448_v11, %v3446_v5  ;;  %v3487_v5 = vld [vmem:[#allocation3 + $0x2768] sm:$0xff]  ;;  %v3489_v11 = vld [vmem:[#allocation3 + $0x2778] sm:$0xff] }
 0x794   : > { %6068 = vmatprep.subr.bf16.mxu1 %v6067_v47  ;;  %v6103_v47 = vpack.c.bf16 %v3453_v41, %v3451_v38  ;;  %v6139_v41 = vpack.c.bf16 %v3489_v11, %v3487_v5  ;;  %v4295_v11 = vld [vmem:[%s7330_s3 + $0x90] sm:$0xff] }
 0x797   : > { %6070 = vmatpush1.bf16.msra.mxu1 %v6069_v32  ;;  %v6105_v32 = vpack.c.bf16 %v3452_v28, %v3450_v48  ;;  %v3491_v48 = vld [vmem:[#allocation3 + $0x2788] sm:$0xff]  ;;  %v3493_v28 = vld [vmem:[#allocation3 + $0x2798] sm:$0xff] }
 0x798   : > { %6072 = vmatprep.subr.bf16.mxu1 %v6071_v49  ;;  %v6107_v49 = vpack.c.bf16 %v3457_v13, %v3455_v22  ;;  %v6143_v13 = vpack.c.bf16 %v3493_v28, %v3491_v48  ;;  %v4280_v28 = vld [vmem:[%s7330_s3 + $0x18] sm:$0xff] }
 0x79b   : > { %6074 = vmatpush1.bf16.msra.mxu1 %v6073_v39 }
 0x79c   : > { %6076 = vmatprep.subr.bf16.mxu1 %v6075_v43  ;;  %v3458_v43 = vld [vmem:[#allocation3 + $0x2680] sm:$0xff] }
 0x79d   : > { %v6113_v61 = vpack.c.bf16 %v3460_v55, %v3458_v43  ;;  %v3499_v43 = vld [vmem:[#allocation3 + $0x27c8] sm:$0xff]  ;;  %v3501_v55 = vld [vmem:[#allocation3 + $0x27d8] sm:$0xff] }
 0x79f   : > { %6078 = vmatpush1.bf16.msra.mxu1 %v6077_v62  ;;  %v6115_v62 = vpack.c.bf16 %v3465_v59, %v3463_v56  ;;  %v6151_v59 = vpack.c.bf16 %v3501_v55, %v3499_v43  ;;  %v3976_v55 = vld [vmem:[#allocation3 + $0x2ca0] sm:$0xff] }
 0x7a0   : > { %6080 = vmatprep.subr.bf16.mxu1 %v6079_v63  ;;  %v3462_v63 = vld [vmem:[#allocation3 + $0x26a0] sm:$0xff] }
 0x7a3   : > { %6082 = vmatpush1.bf16.msra.mxu1 %v6081_v58  ;;  %v3466_v58 = vld [vmem:[#allocation3 + $0x26c0] sm:$0xff] }
 0x7a4   : > { %6084 = vmatprep.subr.bf16.mxu1 %v6083_v6  ;;  %v3468_v6 = vld [vmem:[#allocation3 + $0x26d0] sm:$0xff] }
 0x7a5   : > { %v6121_v15 = vpack.c.bf16 %v3468_v6, %v3466_v58  ;;  %v3957_v58 = vld [vmem:[#allocation3 + $0x2c08] sm:$0xff]  ;;  %v3959_v6 = vld [vmem:[#allocation3 + $0x2c18] sm:$0xff] }
 0x7a6   : > { %v6159_v0 = vpack.c.bf16 %v3959_v6, %v3957_v58  ;;  %v3984_v6 = vld [vmem:[#allocation3 + $0x2ce0] sm:$0xff] }
 0x7a7   : > { %6086 = vmatpush1.bf16.msra.mxu1 %v6085_v1  ;;  %v3470_v1 = vld [vmem:[#allocation3 + $0x26e0] sm:$0xff] }
 0x7a8   : > { %6088 = vmatprep.subr.bf16.mxu1 %v6087_v2  ;;  %v3472_v2 = vld [vmem:[#allocation3 + $0x26f0] sm:$0xff] }
 0x7a9   : > { %v6125_v20 = vpack.c.bf16 %v3472_v2, %v3470_v1  ;;  %v3961_v1 = vld [vmem:[#allocation3 + $0x2c28] sm:$0xff]  ;;  %v3963_v2 = vld [vmem:[#allocation3 + $0x2c38] sm:$0xff] }
 0x7aa   : > { %v6163_v54 = vpack.c.bf16 %v3963_v2, %v3961_v1  ;;  %v3988_v2 = vld [vmem:[#allocation3 + $0x2d00] sm:$0xff] }
 0x7ab   : > { %6090 = vmatpush1.bf16.msra.mxu1 %v6089_v25  ;;  %v3474_v25 = vld [vmem:[#allocation3 + $0x2700] sm:$0xff] }
 0x7ac   : > { %6092 = vmatprep.subr.bf16.mxu1 %v6091_v57  ;;  %v3476_v57 = vld [vmem:[#allocation3 + $0x2710] sm:$0xff] }
 0x7ad   : > { %v6129_v12 = vpack.c.bf16 %v3476_v57, %v3474_v25  ;;  %v3965_v25 = vld [vmem:[#allocation3 + $0x2c48] sm:$0xff]  ;;  %v3967_v57 = vld [vmem:[#allocation3 + $0x2c58] sm:$0xff] }
 0x7af   : > { %6094 = vmatpush1.bf16.msra.mxu1 %v6093_v60  ;;  %v3478_v60 = vld [vmem:[#allocation3 + $0x2720] sm:$0xff] }
 0x7b0   : > { %6096 = vmatprep.subr.bf16.mxu1 %v6095_v24  ;;  %v3480_v24 = vld [vmem:[#allocation3 + $0x2730] sm:$0xff] }
 0x7b1   : > { %v6133_v35 = vpack.c.bf16 %v3480_v24, %v3478_v60  ;;  %v3966_v60 = vld [vmem:[#allocation3 + $0x2c50] sm:$0xff]  ;;  %v3969_v24 = vld [vmem:[#allocation3 + $0x2c68] sm:$0xff] }
 0x7b2   : > { %3858 = vmatmul.mubr.f32.vlgmr.msra.gmra.mrb[4].mxu1 %v7142_v9 }
 0x7b3   : > { %3863 = vmatprep.mubr.f32.mxu1 %v7162_v52  ;;  %6098 = vmatpush1.bf16.msra.mxu1 %v6097_v37  ;;  %v3461_v52 = vld [vmem:[#allocation3 + $0x2698] sm:$0xff]  ;;  %v3482_v37 = vld [vmem:[#allocation3 + $0x2740] sm:$0xff] }
 0x7b4   : > { %6100 = vmatprep.subr.bf16.mxu1 %v6099_v21  ;;  %v6111_v39 = vpack.c.bf16 %v3461_v52, %v3459_v51  ;;  %v3484_v21 = vld [vmem:[#allocation3 + $0x2750] sm:$0xff]  ;;  %v6147_v52 = vpack.c.bf16 %v3497_v50, %v3495_v33  ;;  %v3972_v50 = vld [vmem:[#allocation3 + $0x2c80] sm:$0xff] }
 0x7b5   : > { %v6137_v38 = vpack.c.bf16 %v3484_v21, %v3482_v37  ;;  %v4277_v37 = vld [vmem:[%s7330_s3] sm:$0xff] }
 0x7b6   : > { %3864 = vmatmul.mubr.f32.gmra.mrb[6].mxu1 %v7142_v9 }
 0x7b7   : > { %6102 = vmatpush1.bf16.msra.mxu1 %v6101_v44  ;;  %3934 = vmatprep.mubr.f32.mxu1 %v7142_v9  ;;  %v3464_v9 = vld [vmem:[#allocation3 + $0x26b0] sm:$0xff]  ;;  %v3486_v44 = vld [vmem:[#allocation3 + $0x2760] sm:$0xff] }
 0x7b8   : > { %6104 = vmatprep.subr.bf16.mxu1 %v6103_v47  ;;  %v6117_v30 = vpack.c.bf16 %v3464_v9, %v3462_v63  ;;  %v3488_v47 = vld [vmem:[#allocation3 + $0x2770] sm:$0xff]  ;;  %v3503_v63 = vld [vmem:[#allocation3 + $0x27e8] sm:$0xff]  ;;  %v3505_v9 = vld [vmem:[#allocation3 + $0x27f8] sm:$0xff] }
 0x7b9   : > { %v6141_v22 = vpack.c.bf16 %v3488_v47, %v3486_v44  ;;  %v6155_v3 = vpack.c.bf16 %v3505_v9, %v3503_v63  ;;  %v3970_v44 = vld [vmem:[#allocation3 + $0x2c70] sm:$0xff]  ;;  %v3980_v9 = vld [vmem:[#allocation3 + $0x2cc0] sm:$0xff] }
 0x7bb   : > { %6106 = vmatpush1.bf16.msra.mxu1 %v6105_v32  ;;  %v3490_v32 = vld [vmem:[#allocation3 + $0x2780] sm:$0xff] }
 0x7bc   : > { %6108 = vmatprep.subr.bf16.mxu1 %v6107_v49  ;;  %v3492_v49 = vld [vmem:[#allocation3 + $0x2790] sm:$0xff] }
 0x7bd   : > { %v6145_v51 = vpack.c.bf16 %v3492_v49, %v3490_v32  ;;  %v6173_v49 = vpack.c.bf16 %v3970_v44, %v3968_v31  ;;  %v3998_v31 = vld [vmem:[#allocation3 + $0x2d50] sm:$0xff] }
 0x7bf   : > { %6110 = vmatpush1.bf16.msra.mxu1 %v6109_v46  ;;  %v3494_v46 = vld [vmem:[#allocation3 + $0x27a0] sm:$0xff] }
 0x7c0   : > { %6112 = vmatprep.subr.bf16.mxu1 %v6111_v39  ;;  %v3496_v39 = vld [vmem:[#allocation3 + $0x27b0] sm:$0xff] }
 0x7c1   : > { %v6149_v56 = vpack.c.bf16 %v3496_v39, %v3494_v46  ;;  %v3979_v46 = vld [vmem:[#allocation3 + $0x2cb8] sm:$0xff] }
 0x7c3   : > { %6114 = vmatpush1.bf16.msra.mxu1 %v6113_v61  ;;  %v3498_v61 = vld [vmem:[#allocation3 + $0x27c0] sm:$0xff] }
 0x7c4   : > { %6116 = vmatprep.subr.bf16.mxu1 %v6115_v62  ;;  %v3500_v62 = vld [vmem:[#allocation3 + $0x27d0] sm:$0xff] }
 0x7c5   : > { %v6153_v34 = vpack.c.bf16 %v3500_v62, %v3498_v61  ;;  %v3983_v61 = vld [vmem:[#allocation3 + $0x2cd8] sm:$0xff] }
 0x7c7   : > { %6118 = vmatpush1.bf16.msra.mxu1 %v6117_v30  ;;  %v3502_v30 = vld [vmem:[#allocation3 + $0x27e0] sm:$0xff] }
 0x7c8   : > { %6120 = vmatprep.subr.bf16.mxu1 %v6119_v4  ;;  %v3504_v4 = vld [vmem:[#allocation3 + $0x27f0] sm:$0xff] }
 0x7c9   : > { %v6157_v8 = vpack.c.bf16 %v3504_v4, %v3502_v30  ;;  %v3987_v30 = vld [vmem:[#allocation3 + $0x2cf8] sm:$0xff] }
 0x7cb   : > { %6122 = vmatpush1.bf16.msra.mxu1 %v6121_v15  ;;  %v3956_v15 = vld [vmem:[#allocation3 + $0x2c00] sm:$0xff] }
 0x7cc   : > { %6124 = vmatprep.subr.bf16.mxu1 %v6123_v17  ;;  %v3958_v17 = vld [vmem:[#allocation3 + $0x2c10] sm:$0xff] }
 0x7cd   : > { %v6161_v19 = vpack.c.bf16 %v3958_v17, %v3956_v15  ;;  %v3991_v15 = vld [vmem:[#allocation3 + $0x2d18] sm:$0xff] }
 0x7cf   : > { %6126 = vmatpush1.bf16.msra.mxu1 %v6125_v20  ;;  %v3960_v20 = vld [vmem:[#allocation3 + $0x2c20] sm:$0xff] }
 0x7d0   : > { %6128 = vmatprep.subr.bf16.mxu1 %v6127_v23  ;;  %v3962_v23 = vld [vmem:[#allocation3 + $0x2c30] sm:$0xff] }
 0x7d1   : > { %v6165_v7 = vpack.c.bf16 %v3962_v23, %v3960_v20  ;;  %v3995_v20 = vld [vmem:[#allocation3 + $0x2d38] sm:$0xff] }
 0x7d3   : > { %6130 = vmatpush1.bf16.msra.mxu1 %v6129_v12  ;;  %v6167_v12 = vpack.c.bf16 %v3967_v57, %v3965_v25  ;;  %v3992_v57 = vld [vmem:[#allocation3 + $0x2d20] sm:$0xff] }
 0x7d4   : > { %6132 = vmatprep.subr.bf16.mxu1 %v6131_v27  ;;  %v3964_v27 = vld [vmem:[#allocation3 + $0x2c40] sm:$0xff] }
 0x7d5   : > { %v6169_v21 = vpack.c.bf16 %v3966_v60, %v3964_v27  ;;  %v3999_v27 = vld [vmem:[#allocation3 + $0x2d58] sm:$0xff] }
 0x7d7   : > { %6134 = vmatpush1.bf16.msra.mxu1 %v6133_v35  ;;  %v4293_v35 = vld [vmem:[%s7330_s3 + $0x80] sm:$0xff] }
 0x7d8   : > { %6136 = vmatprep.subr.bf16.mxu1 %v6135_v36  ;;  %v4294_v36 = vld [vmem:[%s7330_s3 + $0x88] sm:$0xff] }
 0x7d9   : > { %v6287_v5 = vpack.c.bf16 %v4294_v36, %v4293_v35  ;;  %v4001_v35 = vld [vmem:[#allocation3 + $0x2d68] sm:$0xff]  ;;  %v4003_v36 = vld [vmem:[#allocation3 + $0x2d78] sm:$0xff] }
 0x7db   : > { %6138 = vmatpush1.bf16.msra.mxu1 %v6137_v38  ;;  %v4296_v38 = vld [vmem:[%s7330_s3 + $0x98] sm:$0xff]  ;;  %6288 = vmatprep.subr.bf16.mxu0 %v6287_v5  ;;  %v4000_v5 = vld [vmem:[#allocation3 + $0x2d60] sm:$0xff] }
 0x7dc   : > { %6140 = vmatprep.subr.bf16.mxu1 %v6139_v41  ;;  %v6171_v41 = vpack.c.bf16 %v3971_v29, %v3969_v24  ;;  %v6291_v48 = vpack.c.bf16 %v4296_v38, %v4295_v11  ;;  %v3996_v29 = vld [vmem:[#allocation3 + $0x2d40] sm:$0xff]  ;;  %v4005_v11 = vld [vmem:[#allocation3 + $0x2d88] sm:$0xff]  ;;  %v4007_v38 = vld [vmem:[#allocation3 + $0x2d98] sm:$0xff] }
 0x7dd   : > { %v6207_v44 = vpack.c.bf16 %v4007_v38, %v4005_v11  ;;  %v4040_v38 = vld [vmem:[#allocation3 + $0x2ea0] sm:$0xff] }
 0x7df   : > { %6142 = vmatpush1.bf16.msra.mxu1 %v6141_v22  ;;  %v3973_v22 = vld [vmem:[#allocation3 + $0x2c88] sm:$0xff] }
 0x7e0   : > { %6144 = vmatprep.subr.bf16.mxu1 %v6143_v13  ;;  %v3975_v13 = vld [vmem:[#allocation3 + $0x2c98] sm:$0xff] }
 0x7e1   : > { %v6175_v33 = vpack.c.bf16 %v3975_v13, %v3973_v22 }
 0x7e3   : > { %6146 = vmatpush1.bf16.msra.mxu1 %v6145_v51  ;;  %v3974_v51 = vld [vmem:[#allocation3 + $0x2c90] sm:$0xff] }
 0x7e4   : > { %6148 = vmatprep.subr.bf16.mxu1 %v6147_v52  ;;  %v3977_v52 = vld [vmem:[#allocation3 + $0x2ca8] sm:$0xff]  ;;  %v6177_v39 = vpack.c.bf16 %v3974_v51, %v3972_v50  ;;  %v4015_v50 = vld [vmem:[#allocation3 + $0x2dd8] sm:$0xff] }
 0x7e5   : > { %v6179_v43 = vpack.c.bf16 %v3979_v46, %v3977_v52  ;;  %v4012_v46 = vld [vmem:[#allocation3 + $0x2dc0] sm:$0xff] }
 0x7e7   : > { %6150 = vmatpush1.bf16.msra.mxu1 %v6149_v56  ;;  %v3978_v56 = vld [vmem:[#allocation3 + $0x2cb0] sm:$0xff] }
 0x7e8   : > { %6152 = vmatprep.subr.bf16.mxu1 %v6151_v59  ;;  %v3981_v59 = vld [vmem:[#allocation3 + $0x2cc8] sm:$0xff]  ;;  %v6181_v62 = vpack.c.bf16 %v3978_v56, %v3976_v55  ;;  %v4019_v55 = vld [vmem:[#allocation3 + $0x2df8] sm:$0xff] }
 0x7e9   : > { %v6183_v63 = vpack.c.bf16 %v3983_v61, %v3981_v59  ;;  %v4016_v61 = vld [vmem:[#allocation3 + $0x2de0] sm:$0xff] }
 0x7eb   : > { %6154 = vmatpush1.bf16.msra.mxu1 %v6153_v34  ;;  %v3982_v34 = vld [vmem:[#allocation3 + $0x2cd0] sm:$0xff] }
 0x7ec   : > { %6156 = vmatprep.subr.bf16.mxu1 %v6155_v3  ;;  %v3985_v3 = vld [vmem:[#allocation3 + $0x2ce8] sm:$0xff]  ;;  %v6185_v4 = vpack.c.bf16 %v3982_v34, %v3980_v9  ;;  %v4023_v9 = vld [vmem:[#allocation3 + $0x2e18] sm:$0xff] }
 0x7ed   : > { %v6187_v58 = vpack.c.bf16 %v3987_v30, %v3985_v3  ;;  %v4020_v30 = vld [vmem:[#allocation3 + $0x2e00] sm:$0xff] }
 0x7ef   : > { %6158 = vmatpush1.bf16.msra.mxu1 %v6157_v8  ;;  %v3986_v8 = vld [vmem:[#allocation3 + $0x2cf0] sm:$0xff] }
 0x7f0   : > { %6160 = vmatprep.subr.bf16.mxu1 %v6159_v0  ;;  %v3989_v0 = vld [vmem:[#allocation3 + $0x2d08] sm:$0xff]  ;;  %v6189_v17 = vpack.c.bf16 %v3986_v8, %v3984_v6  ;;  %v4027_v6 = vld [vmem:[#allocation3 + $0x2e38] sm:$0xff] }
 0x7f1   : > { %v6191_v1 = vpack.c.bf16 %v3991_v15, %v3989_v0  ;;  %v4024_v15 = vld [vmem:[#allocation3 + $0x2e20] sm:$0xff] }
 0x7f2   : > { %3935 = vmatmul.mubr.f32.vlgmr.msra.gmra.mrb[4].mxu1 %v7190_v26 }
 0x7f3   : > { %6162 = vmatpush1.bf16.msra.mxu1 %v6161_v19  ;;  %3940 = vmatprep.mubr.f32.mxu1 %v7190_v26  ;;  %v3990_v19 = vld [vmem:[#allocation3 + $0x2d10] sm:$0xff] }
 0x7f4   : > { %6164 = vmatprep.subr.bf16.mxu1 %v6163_v54  ;;  %v3993_v54 = vld [vmem:[#allocation3 + $0x2d28] sm:$0xff]  ;;  %v6193_v23 = vpack.c.bf16 %v3990_v19, %v3988_v2  ;;  %v4031_v2 = vld [vmem:[#allocation3 + $0x2e58] sm:$0xff] }
 0x7f5   : > { %v6195_v25 = vpack.c.bf16 %v3995_v20, %v3993_v54  ;;  %v4028_v20 = vld [vmem:[#allocation3 + $0x2e40] sm:$0xff] }
 0x7f6   : > { %3941 = vmatmul.mubr.f32.gmra.mrb[6].mxu1 %v7164_v53  ;;  %v4278_v53 = vld [vmem:[%s7330_s3 + $0x8] sm:$0xff] }
 0x7f7   : > { %6166 = vmatpush1.bf16.msra.mxu1 %v6165_v7  ;;  %4148 = vmatprep.mubr.f32.mxu1 %v7172_v40  ;;  %v6289_v47 = vpack.c.bf16 %v4278_v53, %v4277_v37  ;;  %v4279_v40 = vld [vmem:[%s7330_s3 + $0x10] sm:$0xff]  ;;  %v6201_v37 = vpack.c.bf16 %v3998_v31, %v3996_v29  ;;  %v4039_v29 = vld [vmem:[#allocation3 + $0x2e98] sm:$0xff] }
 0x7f8   : > { %6168 = vmatprep.subr.bf16.mxu1 %v6167_v12  ;;  %v6293_v32 = vpack.c.bf16 %v4280_v28, %v4279_v40  ;;  %v3994_v7 = vld [vmem:[#allocation3 + $0x2d30] sm:$0xff]  ;;  %v3997_v12 = vld [vmem:[#allocation3 + $0x2d48] sm:$0xff]  ;;  %v4011_v28 = vld [vmem:[#allocation3 + $0x2db8] sm:$0xff] }
 0x7f9   : > { %6290 = vmatpush3.bf16.msra.mxu0 %v6289_v47  ;;  %v6197_v60 = vpack.c.bf16 %v3994_v7, %v3992_v57  ;;  %v6199_v24 = vpack.c.bf16 %v3999_v27, %v3997_v12  ;;  %v4002_v53 = vld [vmem:[#allocation3 + $0x2d70] sm:$0xff]  ;;  %v4004_v47 = vld [vmem:[#allocation3 + $0x2d80] sm:$0xff]  ;;  %v4009_v40 = vld [vmem:[#allocation3 + $0x2da8] sm:$0xff] }
 0x7fa   : > { %6292 = vmatprep.subr.bf16.mxu0 %v6291_v48  ;;  %v4006_v48 = vld [vmem:[#allocation3 + $0x2d90] sm:$0xff]  ;;  %v6211_v13 = vpack.c.bf16 %v4011_v28, %v4009_v40  ;;  %v4035_v57 = vld [vmem:[#allocation3 + $0x2e78] sm:$0xff]  ;;  %v4032_v27 = vld [vmem:[#allocation3 + $0x2e60] sm:$0xff] }
 0x7fb   : > { %6170 = vmatpush1.bf16.msra.mxu1 %v6169_v21  ;;  %v6203_v21 = vpack.c.bf16 %v4003_v36, %v4001_v35  ;;  %v6209_v22 = vpack.c.bf16 %v4006_v48, %v4004_v47  ;;  %v4036_v36 = vld [vmem:[#allocation3 + $0x2e80] sm:$0xff]  ;;  %v4047_v47 = vld [vmem:[#allocation3 + $0x2ed8] sm:$0xff] }
 0x7fc   : > { %6172 = vmatprep.subr.bf16.mxu1 %v6171_v41  ;;  %v6205_v41 = vpack.c.bf16 %v4002_v53, %v4000_v5  ;;  %v4043_v5 = vld [vmem:[#allocation3 + $0x2eb8] sm:$0xff]  ;;  %v4044_v28 = vld [vmem:[#allocation3 + $0x2ec0] sm:$0xff] }
 0x7fd   : > { %6294 = vmatpush3.bf16.msra.mxu0 %v6293_v32  ;;  %v4008_v32 = vld [vmem:[#allocation3 + $0x2da0] sm:$0xff] }
 0x7ff   : > { %6174 = vmatpush1.bf16.msra.mxu1 %v6173_v49  ;;  %v4010_v49 = vld [vmem:[#allocation3 + $0x2db0] sm:$0xff] }
 0x800   : > { %6176 = vmatprep.subr.bf16.mxu1 %v6175_v33  ;;  %v4013_v33 = vld [vmem:[#allocation3 + $0x2dc8] sm:$0xff]  ;;  %v6213_v51 = vpack.c.bf16 %v4010_v49, %v4008_v32  ;;  %v4051_v32 = vld [vmem:[#allocation3 + $0x2ef8] sm:$0xff] }
 0x801   : > { %v6215_v52 = vpack.c.bf16 %v4015_v50, %v4013_v33  ;;  %v4048_v50 = vld [vmem:[#allocation3 + $0x2ee0] sm:$0xff] }
 0x803   : > { %6178 = vmatpush1.bf16.msra.mxu1 %v6177_v39  ;;  %v4014_v39 = vld [vmem:[#allocation3 + $0x2dd0] sm:$0xff] }
 0x804   : > { %6180 = vmatprep.subr.bf16.mxu1 %v6179_v43  ;;  %v4017_v43 = vld [vmem:[#allocation3 + $0x2de8] sm:$0xff]  ;;  %v6217_v56 = vpack.c.bf16 %v4014_v39, %v4012_v46  ;;  %v4055_v46 = vld [vmem:[#allocation3 + $0x2f18] sm:$0xff] }
 0x805   : > { %v6219_v59 = vpack.c.bf16 %v4019_v55, %v4017_v43  ;;  %v4052_v55 = vld [vmem:[#allocation3 + $0x2f00] sm:$0xff] }
 0x807   : > { %6182 = vmatpush1.bf16.msra.mxu1 %v6181_v62  ;;  %v4018_v62 = vld [vmem:[#allocation3 + $0x2df0] sm:$0xff] }
 0x808   : > { %6184 = vmatprep.subr.bf16.mxu1 %v6183_v63  ;;  %v4021_v63 = vld [vmem:[#allocation3 + $0x2e08] sm:$0xff]  ;;  %v6221_v34 = vpack.c.bf16 %v4018_v62, %v4016_v61  ;;  %v4059_v61 = vld [vmem:[#allocation3 + $0x2f38] sm:$0xff] }
 0x809   : > { %v6223_v3 = vpack.c.bf16 %v4023_v9, %v4021_v63  ;;  %v4056_v9 = vld [vmem:[#allocation3 + $0x2f20] sm:$0xff] }
 0x80b   : > { %6186 = vmatpush1.bf16.msra.mxu1 %v6185_v4  ;;  %v4022_v4 = vld [vmem:[#allocation3 + $0x2e10] sm:$0xff] }
 0x80c   : > { %6188 = vmatprep.subr.bf16.mxu1 %v6187_v58  ;;  %v4025_v58 = vld [vmem:[#allocation3 + $0x2e28] sm:$0xff]  ;;  %v6225_v8 = vpack.c.bf16 %v4022_v4, %v4020_v30  ;;  %v4063_v30 = vld [vmem:[#allocation3 + $0x2f58] sm:$0xff] }
 0x80d   : > { %v6227_v0 = vpack.c.bf16 %v4027_v6, %v4025_v58  ;;  %v4060_v6 = vld [vmem:[#allocation3 + $0x2f40] sm:$0xff] }
 0x80f   : > { %6190 = vmatpush1.bf16.msra.mxu1 %v6189_v17  ;;  %v4026_v17 = vld [vmem:[#allocation3 + $0x2e30] sm:$0xff] }
 0x810   : > { %6192 = vmatprep.subr.bf16.mxu1 %v6191_v1  ;;  %v4029_v1 = vld [vmem:[#allocation3 + $0x2e48] sm:$0xff]  ;;  %v6229_v19 = vpack.c.bf16 %v4026_v17, %v4024_v15  ;;  %v4067_v15 = vld [vmem:[#allocation3 + $0x2f78] sm:$0xff] }
 0x811   : > { %v6231_v54 = vpack.c.bf16 %v4031_v2, %v4029_v1  ;;  %v4064_v2 = vld [vmem:[#allocation3 + $0x2f60] sm:$0xff] }
 0x813   : > { %6194 = vmatpush1.bf16.msra.mxu1 %v6193_v23  ;;  %v4030_v23 = vld [vmem:[#allocation3 + $0x2e50] sm:$0xff] }
 0x814   : > { %6196 = vmatprep.subr.bf16.mxu1 %v6195_v25  ;;  %v4033_v25 = vld [vmem:[#allocation3 + $0x2e68] sm:$0xff]  ;;  %v6233_v7 = vpack.c.bf16 %v4030_v23, %v4028_v20  ;;  %v4071_v20 = vld [vmem:[#allocation3 + $0x2f98] sm:$0xff] }
 0x815   : > { %v6235_v12 = vpack.c.bf16 %v4035_v57, %v4033_v25  ;;  %v4068_v57 = vld [vmem:[#allocation3 + $0x2f80] sm:$0xff] }
 0x817   : > { %6198 = vmatpush1.bf16.msra.mxu1 %v6197_v60  ;;  %v4034_v60 = vld [vmem:[#allocation3 + $0x2e70] sm:$0xff] }
 0x818   : > { %6200 = vmatprep.subr.bf16.mxu1 %v6199_v24  ;;  %v4037_v24 = vld [vmem:[#allocation3 + $0x2e88] sm:$0xff]  ;;  %v6237_v31 = vpack.c.bf16 %v4034_v60, %v4032_v27  ;;  %v4075_v27 = vld [vmem:[#allocation3 + $0x2fb8] sm:$0xff] }
 0x819   : > { %v6239_v35 = vpack.c.bf16 %v4039_v29, %v4037_v24  ;;  %v4072_v29 = vld [vmem:[#allocation3 + $0x2fa0] sm:$0xff] }
 0x81b   : > { %6202 = vmatpush1.bf16.msra.mxu1 %v6201_v37  ;;  %v4038_v37 = vld [vmem:[#allocation3 + $0x2e90] sm:$0xff] }
 0x81c   : > { %6204 = vmatprep.subr.bf16.mxu1 %v6203_v21  ;;  %v4041_v21 = vld [vmem:[#allocation3 + $0x2ea8] sm:$0xff]  ;;  %v6241_v53 = vpack.c.bf16 %v4038_v37, %v4036_v36  ;;  %v4079_v36 = vld [vmem:[#allocation3 + $0x2fd8] sm:$0xff] }
 0x81d   : > { %v6243_v11 = vpack.c.bf16 %v4043_v5, %v4041_v21  ;;  %v4076_v5 = vld [vmem:[#allocation3 + $0x2fc0] sm:$0xff] }
 0x81f   : > { %6206 = vmatpush1.bf16.msra.mxu1 %v6205_v41  ;;  %v4042_v41 = vld [vmem:[#allocation3 + $0x2eb0] sm:$0xff] }
 0x820   : > { %6208 = vmatprep.subr.bf16.mxu1 %v6207_v44  ;;  %v4045_v44 = vld [vmem:[#allocation3 + $0x2ec8] sm:$0xff]  ;;  %v6245_v48 = vpack.c.bf16 %v4042_v41, %v4040_v38  ;;  %v4083_v38 = vld [vmem:[#allocation3 + $0x2ff8] sm:$0xff] }
 0x821   : > { %v6247_v40 = vpack.c.bf16 %v4047_v47, %v4045_v44  ;;  %v4080_v47 = vld [vmem:[#allocation3 + $0x2fe0] sm:$0xff] }
 0x823   : > { %6210 = vmatpush1.bf16.msra.mxu1 %v6209_v22  ;;  %v4046_v22 = vld [vmem:[#allocation3 + $0x2ed0] sm:$0xff] }
 0x824   : > { %6212 = vmatprep.subr.bf16.mxu1 %v6211_v13  ;;  %v4049_v13 = vld [vmem:[#allocation3 + $0x2ee8] sm:$0xff]  ;;  %v6249_v49 = vpack.c.bf16 %v4046_v22, %v4044_v28  ;;  %v3949_v28 = vld [vmem:[#allocation2 + $0x50] sm:$0xff]  ;;  %v4297_v22 = vld [vmem:[%s7330_s3 + $0xa0] sm:$0xff] }
 0x825   : > { %v6251_v33 = vpack.c.bf16 %v4051_v32, %v4049_v13  ;;  %v4298_v13 = vld [vmem:[%s7330_s3 + $0xa8] sm:$0xff] }
 0x826   : > { %v6295_v32 = vpack.c.bf16 %v4298_v13, %v4297_v22 }
 0x827   : > { %6214 = vmatpush1.bf16.msra.mxu1 %v6213_v51  ;;  %v4050_v51 = vld [vmem:[#allocation3 + $0x2ef0] sm:$0xff] }
 0x828   : > { %6216 = vmatprep.subr.bf16.mxu1 %v6215_v52  ;;  %v4053_v52 = vld [vmem:[#allocation3 + $0x2f08] sm:$0xff]  ;;  %v6253_v39 = vpack.c.bf16 %v4050_v51, %v4048_v50  ;;  %6296 = vmatprep.subr.bf16.mxu0 %v6295_v32  ;;  %v4299_v51 = vld [vmem:[%s7330_s3 + $0xb0] sm:$0xff] }
 0x829   : > { %v6255_v43 = vpack.c.bf16 %v4055_v46, %v4053_v52  ;;  %v4300_v52 = vld [vmem:[%s7330_s3 + $0xb8] sm:$0xff] }
 0x82a   : > { %v6299_v46 = vpack.c.bf16 %v4300_v52, %v4299_v51  ;;  %v4381_v52 = vld [vmem:[#allocation8] sm:$0xf] }
 0x82b   : > { %6218 = vmatpush1.bf16.msra.mxu1 %v6217_v56  ;;  %v4054_v56 = vld [vmem:[#allocation3 + $0x2f10] sm:$0xff] }
 0x82c   : > { %6220 = vmatprep.subr.bf16.mxu1 %v6219_v59  ;;  %v4057_v59 = vld [vmem:[#allocation3 + $0x2f28] sm:$0xff]  ;;  %v6257_v62 = vpack.c.bf16 %v4054_v56, %v4052_v55  ;;  %v4301_v56 = vld [vmem:[%s7330_s3 + $0xc0] sm:$0xff] }
 0x82d   : > { %v6259_v63 = vpack.c.bf16 %v4059_v61, %v4057_v59  ;;  %v4302_v59 = vld [vmem:[%s7330_s3 + $0xc8] sm:$0xff] }
 0x82e   : > { %v6303_v61 = vpack.c.bf16 %v4302_v59, %v4301_v56 }
 0x82f   : > { %6222 = vmatpush1.bf16.msra.mxu1 %v6221_v34  ;;  %v4058_v34 = vld [vmem:[#allocation3 + $0x2f30] sm:$0xff] }
 0x830   : > { %6224 = vmatprep.subr.bf16.mxu1 %v6223_v3  ;;  %v4061_v3 = vld [vmem:[#allocation3 + $0x2f48] sm:$0xff]  ;;  %v6261_v4 = vpack.c.bf16 %v4058_v34, %v4056_v9  ;;  %v4303_v34 = vld [vmem:[%s7330_s3 + $0xd0] sm:$0xff] }
 0x831   : > { %v6263_v58 = vpack.c.bf16 %v4063_v30, %v4061_v3  ;;  %v4304_v3 = vld [vmem:[%s7330_s3 + $0xd8] sm:$0xff] }
 0x832   : > { %4149 = vmatmul.mubr.f32.vlgmr.msra.gmra.mrb[4].mxu1 %v7190_v26  ;;  %v6307_v30 = vpack.c.bf16 %v4304_v3, %v4303_v34  ;;  %v4468_v34 = vld [vmem:[#allocation11 + $0x10] sm:$0xff] }
 0x833   : > { %6226 = vmatpush1.bf16.msra.mxu1 %v6225_v8  ;;  %4154 = vmatprep.mubr.f32.mxu1 %v7190_v26  ;;  %v4062_v8 = vld [vmem:[#allocation3 + $0x2f50] sm:$0xff] }
 0x834   : > { %6228 = vmatprep.subr.bf16.mxu1 %v6227_v0  ;;  %v4065_v0 = vld [vmem:[#allocation3 + $0x2f68] sm:$0xff]  ;;  %v6265_v17 = vpack.c.bf16 %v4062_v8, %v4060_v6  ;;  %v4305_v8 = vld [vmem:[%s7330_s3 + $0xe0] sm:$0xff] }
 0x835   : > { %v6267_v1 = vpack.c.bf16 %v4067_v15, %v4065_v0  ;;  %v4306_v0 = vld [vmem:[%s7330_s3 + $0xe8] sm:$0xff] }
 0x836   : > { %4155 = vmatmul.mubr.f32.gmra.mrb[6].mxu1 %v7190_v26  ;;  %v6311_v15 = vpack.c.bf16 %v4306_v0, %v4305_v8 }
 0x837   : > { %6230 = vmatpush1.bf16.msra.mxu1 %v6229_v19  ;;  %4225 = vmatprep.mubr.f32.mxu1 %v7190_v26  ;;  %v4066_v19 = vld [vmem:[#allocation3 + $0x2f70] sm:$0xff] }
 0x838   : > { %6232 = vmatprep.subr.bf16.mxu1 %v6231_v54  ;;  %v4069_v54 = vld [vmem:[#allocation3 + $0x2f88] sm:$0xff]  ;;  %v6269_v23 = vpack.c.bf16 %v4066_v19, %v4064_v2  ;;  %v4307_v19 = vld [vmem:[%s7330_s3 + $0xf0] sm:$0xff] }
 0x839   : > { %v6271_v25 = vpack.c.bf16 %v4071_v20, %v4069_v54  ;;  %v4308_v54 = vld [vmem:[%s7330_s3 + $0xf8] sm:$0xff] }
 0x83a   : > { %v6315_v20 = vpack.c.bf16 %v4308_v54, %v4307_v19 }
 0x83b   : > { %6234 = vmatpush1.bf16.msra.mxu1 %v6233_v7  ;;  %v4070_v7 = vld [vmem:[#allocation3 + $0x2f90] sm:$0xff] }
 0x83c   : > { %6236 = vmatprep.subr.bf16.mxu1 %v6235_v12  ;;  %v4073_v12 = vld [vmem:[#allocation3 + $0x2fa8] sm:$0xff]  ;;  %v6273_v60 = vpack.c.bf16 %v4070_v7, %v4068_v57  ;;  %v4243_v7 = vld [vmem:[#allocation5 + $0x6] sm:$0x3] }
 0x83d   : > { %v6275_v24 = vpack.c.bf16 %v4075_v27, %v4073_v12  ;;  %v4248_v12 = vrot.slane %v4243_v7, %v7020_v16 }
 0x83f   : > { %6238 = vmatpush1.bf16.msra.mxu1 %v6237_v31  ;;  %v4074_v31 = vld [vmem:[#allocation3 + $0x2fb0] sm:$0xff] }
 0x840   : > { %6240 = vmatprep.subr.bf16.mxu1 %v6239_v35  ;;  %v4077_v35 = vld [vmem:[#allocation3 + $0x2fc8] sm:$0xff]  ;;  %v6277_v37 = vpack.c.bf16 %v4074_v31, %v4072_v29 }
 0x841   : > { %v6279_v21 = vpack.c.bf16 %v4079_v36, %v4077_v35 }
 0x843   : > { %6242 = vmatpush1.bf16.msra.mxu1 %v6241_v53  ;;  %v4078_v53 = vld [vmem:[#allocation3 + $0x2fd0] sm:$0xff] }
 0x844   : > { %6244 = vmatprep.subr.bf16.mxu1 %v6243_v11  ;;  %v4081_v11 = vld [vmem:[#allocation3 + $0x2fe8] sm:$0xff]  ;;  %v6281_v41 = vpack.c.bf16 %v4078_v53, %v4076_v5 }
 0x845   : > { %v6283_v44 = vpack.c.bf16 %v4083_v38, %v4081_v11 }
 0x847   : > { %6246 = vmatpush1.bf16.msra.mxu1 %v6245_v48  ;;  %v4082_v48 = vld [vmem:[#allocation3 + $0x2ff0] sm:$0xff] }
 0x848   : > { %6248 = vmatprep.subr.bf16.mxu1 %v6247_v40  ;;  %v6285_v40 = vpack.c.bf16 %v4082_v48, %v4080_v47 }
 0x84b   : > { %6250 = vmatpush1.bf16.msra.mxu1 %v6249_v49  ;;  %v4281_v49 = vld [vmem:[%s7330_s3 + $0x20] sm:$0xff] }
 0x84c   : > { %6252 = vmatprep.subr.bf16.mxu1 %v6251_v33  ;;  %v4282_v33 = vld [vmem:[%s7330_s3 + $0x28] sm:$0xff] }
 0x84d   : > { %v6297_v50 = vpack.c.bf16 %v4282_v33, %v4281_v49 }
 0x84f   : > { %6254 = vmatpush1.bf16.msra.mxu1 %v6253_v39  ;;  %6298 = vmatpush3.bf16.msra.mxu0 %v6297_v50  ;;  %v4283_v39 = vld [vmem:[%s7330_s3 + $0x30] sm:$0xff] }
 0x850   : > { %6256 = vmatprep.subr.bf16.mxu1 %v6255_v43  ;;  %v4284_v43 = vld [vmem:[%s7330_s3 + $0x38] sm:$0xff]  ;;  %6300 = vmatprep.subr.bf16.mxu0 %v6299_v46 }
 0x851   : > { %v6301_v55 = vpack.c.bf16 %v4284_v43, %v4283_v39  ;;  %v4309_v39 = vld [vmem:[#allocation7] sm:$0x1] }
 0x853   : > { %6258 = vmatpush1.bf16.msra.mxu1 %v6257_v62  ;;  %6302 = vmatpush3.bf16.msra.mxu0 %v6301_v55  ;;  %v4285_v62 = vld [vmem:[%s7330_s3 + $0x40] sm:$0xff] }
 0x854   : > { %6260 = vmatprep.subr.bf16.mxu1 %v6259_v63  ;;  %v4286_v63 = vld [vmem:[%s7330_s3 + $0x48] sm:$0xff]  ;;  %6304 = vmatprep.subr.bf16.mxu0 %v6303_v61  ;;  %v4467_v61 = vld [vmem:[#allocation11 + $0x8] sm:$0xff] }
 0x855   : > { %v6305_v9 = vpack.c.bf16 %v4286_v63, %v4285_v62  ;;  %v4469_v62 = vld [vmem:[#allocation11 + $0x18] sm:$0xff]  ;;  %v4466_v63 = vld [vmem:[#allocation11] sm:$0xff] }
 0x856   : > { %v6321_v3 = vpack.c.bf16 %v4468_v34, %v4466_v63 }
 0x857   : > { %6262 = vmatpush1.bf16.msra.mxu1 %v6261_v4  ;;  %6306 = vmatpush3.bf16.msra.mxu0 %v6305_v9  ;;  %v4287_v4 = vld [vmem:[%s7330_s3 + $0x50] sm:$0xff]  ;;  %v6319_v9 = vpack.c.bf16 %v4469_v62, %v4467_v61 }
 0x858   : > { %6264 = vmatprep.subr.bf16.mxu1 %v6263_v58  ;;  %v4288_v58 = vld [vmem:[%s7330_s3 + $0x58] sm:$0xff]  ;;  %6308 = vmatprep.subr.bf16.mxu0 %v6307_v30  ;;  %v4382_v30 = vld [vmem:[#allocation10] sm:$0x1] }
 0x859   : > { %v6309_v6 = vpack.c.bf16 %v4288_v58, %v4287_v4 }
 0x85b   : > { %6266 = vmatpush1.bf16.msra.mxu1 %v6265_v17  ;;  %6310 = vmatpush3.bf16.msra.mxu0 %v6309_v6  ;;  %v4289_v17 = vld [vmem:[%s7330_s3 + $0x60] sm:$0xff] }
 0x85c   : > { %6268 = vmatprep.subr.bf16.mxu1 %v6267_v1  ;;  %v4290_v1 = vld [vmem:[%s7330_s3 + $0x68] sm:$0xff]  ;;  %6312 = vmatprep.subr.bf16.mxu0 %v6311_v15 }
 0x85d   : > { %v6313_v2 = vpack.c.bf16 %v4290_v1, %v4289_v17 }
 0x85f   : > { %6270 = vmatpush1.bf16.msra.mxu1 %v6269_v23  ;;  %6314 = vmatpush3.bf16.msra.mxu0 %v6313_v2  ;;  %v4291_v23 = vld [vmem:[%s7330_s3 + $0x70] sm:$0xff] }
 0x860   : > { %6272 = vmatprep.subr.bf16.mxu1 %v6271_v25  ;;  %v4292_v25 = vld [vmem:[%s7330_s3 + $0x78] sm:$0xff]  ;;  %6316 = vmatprep.subr.bf16.mxu0 %v6315_v20 }
 0x861   : > { %v6317_v57 = vpack.c.bf16 %v4292_v25, %v4291_v23 }
 0x863   : > { %6274 = vmatpush1.bf16.msra.mxu1 %v6273_v60  ;;  %6318 = vmatpush3.bf16.msra.mxu0 %v6317_v57  ;;  %v4252_v60 = vrot.slane %v4243_v7, %v7022_v18 }
 0x864   : > { %6276 = vmatprep.subr.bf16.mxu1 %v6275_v24 }
 0x867   : > { %6278 = vmatpush1.bf16.msra.mxu1 %v6277_v37 }
 0x868   : > { %6280 = vmatprep.subr.bf16.mxu1 %v6279_v21 }
 0x86b   : > { %6282 = vmatpush1.bf16.msra.mxu1 %v6281_v41 }
 0x86c   : > { %6284 = vmatprep.subr.bf16.mxu1 %v6283_v44 }
 0x86f   : > { %6286 = vmatpush1.bf16.msra.mxu1 %v6285_v40 }
 0x870   : > { %4746 = vmatprep.subr.mxu1 %v7190_v26 }
 0x872   : > { %4226 = vmatmul.mubr.f32.vlgmr.msra.gmra.mrb[4].mxu1 %v3949_v28 }
 0x873   : > { %4231 = vmatprep.mubr.f32.mxu1 %v7190_v26  ;;  %4747 = vmatpush3.msk.msra.mxu1 %vm2822_vm4, %v4381_v52 }
 0x874   : > { %6320 = vmatprep.subr.bf16.mxu1 %v6319_v9 }
 0x876   : > { %4232 = vmatmul.mubr.f32.gmra.mrb[6].mxu1 %v7190_v26 }
 0x877   : > { %4748 = vmatprep.mubr.msk.f32.mxu1 %vm6690_vm5, %v7190_v26 }
 0x945   : > { %v4227_v27 = vpop.f32.mrb[4].mxu1 }
 0x946   : > { %v4229_v24 = vpop.f32.mrb[5].mxu1  ;;  %v7301_v29 = vadd.f32 %v4248_v12, %v4227_v27 }
 0x947   : > { %v7303_v31 = vadd.f32 %v4252_v60, %v4229_v24 }
 0x948   : > { %v4259_v5 = vmax.f32 %v7301_v29, 0.0 }
 0x949   : > { %v4233_v35 = vpop.f32.mrb[6].mxu1  ;;  %v4260_v11 = vmax.f32 %v7303_v31, 0.0 }
 0x94a   : > { %v4257_v36 = vadd.f32 %v4248_v12, %v4233_v35  ;;  %v4235_v37 = vpop.f32.mrb[7].mxu1 }
 0x94b   : > { %v7305_v21 = vadd.f32 %v4252_v60, %v4235_v37 }
 0x94c   : > { %v4261_v53 = vmax.f32 %v4257_v36, 0.0 }
 0x94d   : > { %v4262_v38 = vmax.f32 %v7305_v21, 0.0 }
 0x94e   : > { %v4263_v41 = vadd.f32 %v4261_v53, %v4259_v5 }
 0x94f   : > { %v4270_v44 = vadd.f32 %v4262_v38, %v4260_v11 }
 0x950   : > { %v4264_v18 = vrot.slane %v4263_v41, 4 }
 0x951   : > { %v4271_v47 = vrot.slane %v4270_v44, 4 }
 0x952   : > { %v4265_v48 = vadd.f32 %v4264_v18, %v4263_v41 }
 0x953   : > { %v4272_v40 = vadd.f32 %v4271_v47, %v4270_v44 }
 0x954   : > { %v4266_v28 = vrot.slane %v4265_v48, 2 }
 0x955   : > { %v4273_v22 = vrot.slane %v4272_v40, 2 }
 0x956   : > { %v4267_v13 = vadd.f32 %v4266_v28, %v4265_v48 }
 0x957   : > { %v4274_v32 = vadd.f32 %v4273_v22, %v4272_v40 }
 0x958   : > { %v4268_v49 = vrot.slane %v4267_v13, 1 }
 0x959   : > { %v4275_v33 = vrot.slane %v4274_v32, 1 }
 0x95a   : > { %v4269_v51 = vadd.f32 %v4268_v49, %v4267_v13 }
 0x95b   : > { %v4276_v50 = vadd.f32 %v4275_v33, %v4274_v32 }
 0x95d   : > { %4374 = vmatprep.mubr.f32.mxu0 %v4276_v50 }
 0x95e   : > { %4375 = vmatmul.mubr.f32.vlgmr.msra.gmra.mrb[8].mxu0 %v4269_v51 }
 0xa31   : > { %v4741_v46 = vpop.f32.mrb[8].mxu0 }
 0xa32   : > { %v4742_v43 = vpop.f32.mrb[9].mxu0 }
 0xa33   : > { %v4743_v55 = vadd.f32 %v4742_v43, %v4741_v46 }
 0xa35   : > { %v4377_v56 = vadd.f32 %v4743_v55, %v4309_v39 }
 0xa37   : > { %v4380_v59 = vmax.f32 %v4377_v56, 0.0 }
 0xa39   : > { %4749 = vmatmul.mubr.msk.f32.vlgmr.msra.gmra.mrb[8].mxu1 %vm4383_vm6, %v4380_v59 }
 0xa3a   : > { %4538 = vmatprep.mubr.f32.mxu1 %v7190_v26  ;;  %6322 = vmatpush1.bf16.msra.mxu1 %v6321_v3 }
 0xb0c   : > { %v4456_v4 = vpop.f32.mrb[8].mxu1 }
 0xb0d   : > { %v4457_v58 = vadd.f32 %v4456_v4, %v4382_v30  ;;  %v4750_v6 = vpop.f32.mrb[9].mxu1 }
 0xb0f   : > { %v4703_v8 = vmul.f32 -1.442695, %v4457_v58 }
 0xb11   : > { %6478 = vpow2.f32 %v4703_v8 }
 0xb1b   : > { %v6479_v0 = vpop.eup %6478 }
 0xb1c   : > { %v4463_v15 = vadd.f32 1.0, %v6479_v0 }
 0xb1e   : > { %6480 = vrcp.f32 %v4463_v15 }
 0xb28   : > { %v6481_v26 = vpop.eup %6480 }
 0xb29   : > { %4704 = vmatmul.mubr.msk.f32.vlgmr.msra.gmra.mrb[10].mxu1 %vm4470_vm7, %v6481_v26 }
 0xbfc   : > { %v4540_v17 = vpop.f32.mrb[10].mxu1 }
 0xbfd   : > { %v4548_v1 = vrot.slane %v4540_v17, %v7020_v16  ;;  %v4542_v2 = vpop.f32.mrb[11].mxu1 }
 0xbfe   : > { %v4552_v19 = vrot.slane %v4542_v2, %v7020_v16 }
 0xbff   : > { %v4553_v54 = vmul.f32 %v4548_v1, %v4259_v5  ;;  %v4555_v20 = vmul.f32 %v4548_v1, %v4261_v53 }
 0xc00   : > { %v4554_v23 = vmul.f32 %v4552_v19, %v4260_v11  ;;  %v4556_v25 = vmul.f32 %v4552_v19, %v4262_v38 }
 0xc01   : > { %v4557_v57 = vadd.f32 %v4553_v54, %v6951_v42  ;;  %v4559_v7 = vadd.f32 %v4555_v20, %v6956_v10 }
 0xc02   : > { %v4558_v12 = vadd.f32 %v4554_v23, %v6960_v14  ;;  %v4560_v27 = vadd.f32 %v7013_v45, %v4556_v25 }
 0xc03   : > { %4561 = vst [vmem:[%s387_s23] sm:$0xff] %v4557_v57  ;;  %4563 = vst [vmem:[%s387_s23 + $0x10] sm:$0xff] %v4559_v7 }
 0xc04   : > { %4562 = vst [vmem:[%s387_s23 + $0x8] sm:$0xff] %v4558_v12  ;;  %4564 = vst [vmem:[%s387_s23 + $0x18] sm:$0xff] %v4560_v27 }
 0xc05 PF: > { %s22_s27 = sadd.s32 1, %s6677_s27  }
 0xc06   : > { %p19_p9 = scmp.ge.s32.totalorder %s22_s27, 4  }
 0xc08   :  { %21 = sbr.rel (!%p19_p9) target bundleno = 4 (0x4), region = 121 }
 0xc0f   :  { %4586 = vsyncpa [#allocation4], 1 }
 0xc10   :  { %4588 = vsyncpa [#allocation4 + $0x1], 1 }
 0xc11   :  { %4589 = vsyncpa [#allocation6], 1 }
 0xc12   :  { %4590 = vsyncpa [#allocation9], 1 }
 0xc13   :  { %4591 = vsyncpa [#allocation12], 1 }

</bundles_post_ra>
